<compile_context>
chip_gen: v7x
topology: tpu7x:2x2x1
jax: 0.10.0
libtpu: 0.0.40
codegen_flags: <defaults>
</compile_context>

<pallas_src>
import jax
import jax.numpy as jnp
from jax import lax
from jax.experimental import pallas as pl
from jax.experimental.pallas import tpu as pltpu

NEG_SLOPE = 0.01                      # F.leaky_relu default negative_slope
VMEM_LIMIT = 32 * 1024 * 1024         # explicit scoped-VMEM budget (all gens)


def _leaky(x, slope=NEG_SLOPE):
    return jnp.where(x >= 0, x, slope * x)


# ---------------------------------------------------------------------------
# Kernel 1: encoder_gc1 + act + encoder_gc2 + act + fc1 + fc2 + act
# Everything is computed transposed: features on sublanes, nodes on lanes.
# ---------------------------------------------------------------------------
def enc_fc_kernel(x_ref, adj_ref, w1c_ref, w2t_ref, bcol_ref,
                  fc1b_ref, fc2b_ref, w1v_hbm, w2_hbm, o_ref,
                  w1v_vmem, w2_vmem, sem):
    B, N = x_ref.shape                  # (2, 128)
    D0 = w1c_ref.shape[0]               # 16
    BD1 = w2t_ref.shape[0]               # B*D1 = 64
    D1 = BD1 // B                        # 32
    L = w2_vmem.shape[0]                 # latent = 128

    # Prefetch the two big fc weights (HBM -> VMEM scratch); waits are placed
    # right before their use so the DMAs overlap the encoder compute.
    cp_w1 = pltpu.make_async_copy(w1v_hbm, w1v_vmem, sem.at[0])
    cp_w2 = pltpu.make_async_copy(w2_hbm, w2_vmem, sem.at[1])
    cp_w1.start()
    cp_w2.start()

    adj = adj_ref[...]                   # (N, N)
    w1c = w1c_ref[...]                   # (D0, 1)  enc1 weight as a column
    bcol = bcol_ref[...]                 # (B*D1, 2) packed bias columns
    b1col = bcol[0:B * D0, 0:1]          # (B*D0, 1)
    b2col = bcol[:, 1:2]                 # (B*D1, 1)
    fc1b = fc1b_ref[...]                 # (1, L)

    # encoder_gc1 (Din = 1): adj @ (x ⊗ w1) == (adj @ x) ⊗ w1 (rank-1), so one
    # lane-dense adjacency matmul for both batch elements + a VPU outer product.
    axT = lax.dot_general(x_ref[...], adj, (((1,), (1,)), ((), ())),
                          preferred_element_type=jnp.float32)        # (B, N)
    s1T = jnp.concatenate(
        [w1c * axT[b:b + 1, :] for b in range(B)], axis=0)           # (B*D0, N)
    h1T = _leaky(s1T + b1col)

    # encoder_gc2: block-diagonal weight makes both batch elements share the
    # single adjacency matmul.
    s2T = jnp.dot(w2t_ref[...], h1T,
                  preferred_element_type=jnp.float32)                # (B*D1, N)
    h2T = _leaky(lax.dot_general(s2T, adj, (((1,), (1,)), ((), ())),
                                 preferred_element_type=jnp.float32)
                 + b2col)                                            # (B*D1, N)

    # fc1: vec(H_b) @ W1  ==  sum_d (H_b^T @ W1.reshape(N, D1*L))[d, d*L:(d+1)*L]
    cp_w1.wait()
    C = jnp.dot(h2T, w1v_vmem[...],
                preferred_element_type=jnp.float32)                  # (B*D1, D1*L)
    zrows = []
    for b in range(B):
        acc = fc1b
        for d in range(D1):
            r = b * D1 + d
            acc = acc + C[r:r + 1, d * L:(d + 1) * L]
        zrows.append(acc)
    z = jnp.concatenate(zrows, axis=0)                               # (B, L)

    # fc2 + act, lane-dense (B, N*D1) output.
    cp_w2.wait()
    y = jnp.dot(z, w2_vmem[...],
                preferred_element_type=jnp.float32) + fc2b_ref[...]  # (B, N*D1)
    o_ref[...] = _leaky(y).astype(o_ref.dtype)


def encoder_fc(x2d, adj, w1col, w2blkT, bcol1, fc1b, fc2b, w1v, w2):
    B, N = x2d.shape
    ND1 = w2.shape[1]
    return pl.pallas_call(
        enc_fc_kernel,
        out_shape=jax.ShapeDtypeStruct((B, ND1), x2d.dtype),
        grid=(1,),
        in_specs=[
            pl.BlockSpec((B, N), lambda i: (0, 0)),
            pl.BlockSpec(adj.shape, lambda i: (0, 0)),
            pl.BlockSpec(w1col.shape, lambda i: (0, 0)),
            pl.BlockSpec(w2blkT.shape, lambda i: (0, 0)),
            pl.BlockSpec(bcol1.shape, lambda i: (0, 0)),
            pl.BlockSpec(fc1b.shape, lambda i: (0, 0)),
            pl.BlockSpec(fc2b.shape, lambda i: (0, 0)),
            pl.BlockSpec(memory_space=pl.ANY),     # fc1 weight (reshaped), HBM
            pl.BlockSpec(memory_space=pl.ANY),     # fc2 weight, HBM
        ],
        out_specs=pl.BlockSpec((B, ND1), lambda i: (0, 0)),
        scratch_shapes=[
            pltpu.VMEM(w1v.shape, jnp.float32),
            pltpu.VMEM(w2.shape, jnp.float32),
            pltpu.SemaphoreType.DMA((2,)),
        ],
        compiler_params=pltpu.CompilerParams(
            dimension_semantics=("arbitrary",), vmem_limit_bytes=VMEM_LIMIT),
    )(x2d, adj, w1col, w2blkT, bcol1, fc1b, fc2b, w1v, w2)


# ---------------------------------------------------------------------------
# Kernel 2: decoder_gc1 + act + decoder_gc2 (no final activation).
# Fully transposed so the final store is lane-dense (B, N).
# ---------------------------------------------------------------------------
def decoder_kernel(h_ref, adj_ref, w1t_ref, wd2t_ref, bcol_ref, o_ref):
    B = h_ref.shape[0]
    adj = adj_ref[...]                    # (N, N)
    bcol = bcol_ref[...]                  # (B*D0, 2)
    bd1col = bcol[:, 0:1]                 # (B*D0, 1)
    bd2 = bcol[0:1, 1:2]                  # (1, 1)

    # decoder_gc1 (transposed): s^T = dec1_w^T @ h_b^T, concat over batch.
    sT = jnp.concatenate(
        [lax.dot_general(w1t_ref[...], h_ref[b], (((1,), (1,)), ((), ())),
                         preferred_element_type=jnp.float32)
         for b in range(B)], axis=0)                                 # (B*D0, N)
    gT = _leaky(lax.dot_general(sT, adj, (((1,), (1,)), ((), ())),
                                preferred_element_type=jnp.float32)
                + bd1col)                                            # (B*D0, N)

    # decoder_gc2 (Dout = 1): out_b = adj @ (g_b @ w2) computed transposed,
    # so the adjacency matmul stays lane-dense and the store is (B, N).
    t = jnp.dot(wd2t_ref[...], gT,
                preferred_element_type=jnp.float32)                  # (B, N)
    out = lax.dot_general(t, adj, (((1,), (1,)), ((), ())),
                          preferred_element_type=jnp.float32) + bd2  # (B, N)
    o_ref[...] = out.astype(o_ref.dtype)


def decoder(h2, adj, dec1_wT, wd2t, bcol2):
    B, N, D1 = h2.shape
    return pl.pallas_call(
        decoder_kernel,
        out_shape=jax.ShapeDtypeStruct((B, N), h2.dtype),
        grid=(1,),
        in_specs=[
            pl.BlockSpec((B, N, D1), lambda i: (0, 0, 0)),
            pl.BlockSpec(adj.shape, lambda i: (0, 0)),
            pl.BlockSpec(dec1_wT.shape, lambda i: (0, 0)),
            pl.BlockSpec(wd2t.shape, lambda i: (0, 0)),
            pl.BlockSpec(bcol2.shape, lambda i: (0, 0)),
        ],
        out_specs=pl.BlockSpec((B, N), lambda i: (0, 0)),
        compiler_params=pltpu.CompilerParams(
            dimension_semantics=("arbitrary",), vmem_limit_bytes=VMEM_LIMIT),
    )(h2, adj, dec1_wT, wd2t, bcol2)


# ---------------------------------------------------------------------------
# Parameter init (synthetic), one-time kernel-layout prep, and the forward.
# ---------------------------------------------------------------------------
def xavier_uniform(key, fan_in, fan_out):
    bound = (6.0 / (fan_in + fan_out)) ** 0.5
    return jax.random.uniform(key, (fan_in, fan_out), jnp.float32,
                              minval=-bound, maxval=bound)


def init_params(key, n_nodes, dims, latent):
    ks = jax.random.split(key, 6)
    d0, d1 = dims
    return {
        "enc1_w": xavier_uniform(ks[0], 1, d0),
        "enc1_b": jnp.zeros((d0,), jnp.float32),
        "enc2_w": xavier_uniform(ks[1], d0, d1),
        "enc2_b": jnp.zeros((d1,), jnp.float32),
        "fc1_w": xavier_uniform(ks[2], d1 * n_nodes, latent),
        "fc1_b": jnp.zeros((latent,), jnp.float32),
        "fc2_w": xavier_uniform(ks[3], latent, d1 * n_nodes),
        "fc2_b": jnp.zeros((d1 * n_nodes,), jnp.float32),
        "dec1_w": xavier_uniform(ks[4], d1, d0),
        "dec1_b": jnp.zeros((d0,), jnp.float32),
        "dec2_w": xavier_uniform(ks[5], d0, 1),
        "dec2_b": jnp.zeros((1,), jnp.float32),
    }


def prepare_params(params, batch):
    """One-time re-layout of the module parameters into kernel-friendly form."""
    B = batch
    d0 = params["enc1_w"].shape[1]
    d1 = params["enc2_w"].shape[1]
    latent = params["fc1_w"].shape[1]
    nd1 = params["fc2_w"].shape[1]
    n_nodes = nd1 // d1
    eye_b = jnp.eye(B, dtype=jnp.float32)

    bcol1 = jnp.zeros((B * d1, 2), jnp.float32)
    bcol1 = bcol1.at[0:B * d0, 0].set(jnp.tile(params["enc1_b"], B))
    bcol1 = bcol1.at[:, 1].set(jnp.tile(params["enc2_b"], B))

    bcol2 = jnp.zeros((B * d0, 2), jnp.float32)
    bcol2 = bcol2.at[:, 0].set(jnp.tile(params["dec1_b"], B))
    bcol2 = bcol2.at[0, 1].set(params["dec2_b"][0])

    return {
        "w1col": params["enc1_w"].reshape(d0, 1),              # (D0, 1)
        "w2blkT": jnp.kron(eye_b, params["enc2_w"].T),          # (B*D1, B*D0)
        "bcol1": bcol1,                                         # (B*D1, 2)
        "fc1b": params["fc1_b"].reshape(1, latent),             # (1, L)
        "fc2b": params["fc2_b"].reshape(1, nd1),                # (1, N*D1)
        "w1v": params["fc1_w"].reshape(n_nodes, d1 * latent),   # (N, D1*L) free
        "w2": params["fc2_w"],                                  # (L, N*D1)
        "dec1_wT": params["dec1_w"].T,                          # (D0, D1)
        "wd2t": jnp.kron(eye_b, params["dec2_w"].T),            # (B, B*D0)
        "bcol2": bcol2,                                         # (B*D0, 2)
    }


def image_gcn_forward(prep, x, adj):
    B = x.shape[0]
    D1 = prep["dec1_wT"].shape[1]
    x2d = x[:, :, 0]                                    # free squeeze
    yflat = encoder_fc(x2d, adj, prep["w1col"], prep["w2blkT"], prep["bcol1"],
                       prep["fc1b"], prep["fc2b"], prep["w1v"], prep["w2"])
    N = yflat.shape[1] // D1
    h2 = yflat.reshape(B, N, D1)                        # free Unflatten
    out = decoder(h2, adj, prep["dec1_wT"], prep["wd2t"], prep["bcol2"])
    return out.reshape(B, N, 1)


# Pure-JAX reference (original parameter layout) for correctness checking.
def reference_forward(params, x, adj):
    def gc(h, w, b):
        return jnp.einsum("nm,bmd->bnd", adj, h @ w) + b

    h = _leaky(gc(x, params["enc1_w"], params["enc1_b"]))
    h = _leaky(gc(h, params["enc2_w"], params["enc2_b"]))
    B, N, D = h.shape
    z = h.reshape(B, N * D) @ params["fc1_w"] + params["fc1_b"]
    h = _leaky(z @ params["fc2_w"] + params["fc2_b"]).reshape(B, N, D)
    h = _leaky(gc(h, params["dec1_w"], params["dec1_b"]))
    return gc(h, params["dec2_w"], params["dec2_b"])


if __name__ == "__main__":
    # Small, forward-consistent shapes: batch=2, n_nodes=128, dims=[16,32], latent=128.
    B, N, dims, latent = 2, 128, (16, 32), 128

    key = jax.random.PRNGKey(0)
    k_params, k_x, k_adj = jax.random.split(key, 3)

    params = init_params(k_params, N, dims, latent)
    x = jax.random.normal(k_x, (B, N, 1), jnp.float32)
    a = jax.random.uniform(k_adj, (N, N), jnp.float32)
    adj = (a + a.T) / (2.0 * N)            # symmetric, roughly normalized

    prep = prepare_params(params, B)
    fwd = jax.jit(image_gcn_forward)

    out = jax.block_until_ready(fwd(prep, x, adj))
    ref = reference_forward(params, x, adj)

    assert out.shape == (B, N, 1)
    assert jnp.allclose(out, ref, atol=1e-4, rtol=1e-3), (
        float(jnp.max(jnp.abs(out - ref))))

    print("KERNEL_OK")
</pallas_src>

<mosaic_0001>
module attributes {stable_mosaic.version = 11 : i64} {
  func.func @enc_fc_kernel(%arg0: i32, %arg1: memref<2x128xf32, #tpu.memory_space<vmem>>, %arg2: memref<128x128xf32, #tpu.memory_space<vmem>>, %arg3: memref<16x1xf32, #tpu.memory_space<vmem>>, %arg4: memref<64x32xf32, #tpu.memory_space<vmem>>, %arg5: memref<64x2xf32, #tpu.memory_space<vmem>>, %arg6: memref<1x128xf32, #tpu.memory_space<vmem>>, %arg7: memref<1x4096xf32, #tpu.memory_space<vmem>>, %arg8: memref<128x4096xf32, #tpu.memory_space<any>>, %arg9: memref<128x4096xf32, #tpu.memory_space<any>>, %arg10: memref<2x4096xf32, #tpu.memory_space<vmem>>, %arg11: memref<128x4096xf32, #tpu.memory_space<vmem>>, %arg12: memref<128x4096xf32, #tpu.memory_space<vmem>>, %arg13: memref<2x!tpu.dma_semaphore, #tpu.memory_space<semaphore_mem>>) attributes {dimension_semantics = [#tpu.dimension_semantics<arbitrary>], iteration_bounds = array<i64: 1>, scalar_prefetch = 0 : i64, scratch_operands = 3 : i64, tpu.core_type = #tpu.core_type<tc>, window_params = [{pipeline_mode = #tpu.pipeline_mode<synchronous>, transform_indices = @transform_0, window_bounds = array<i64: 2, 128>}, {pipeline_mode = #tpu.pipeline_mode<synchronous>, transform_indices = @transform_1, window_bounds = array<i64: 128, 128>}, {pipeline_mode = #tpu.pipeline_mode<synchronous>, transform_indices = @transform_2, window_bounds = array<i64: 16, 1>}, {pipeline_mode = #tpu.pipeline_mode<synchronous>, transform_indices = @transform_3, window_bounds = array<i64: 64, 32>}, {pipeline_mode = #tpu.pipeline_mode<synchronous>, transform_indices = @transform_4, window_bounds = array<i64: 64, 2>}, {pipeline_mode = #tpu.pipeline_mode<synchronous>, transform_indices = @transform_5, window_bounds = array<i64: 1, 128>}, {pipeline_mode = #tpu.pipeline_mode<synchronous>, transform_indices = @transform_6, window_bounds = array<i64: 1, 4096>}, {}, {}, {pipeline_mode = #tpu.pipeline_mode<synchronous>, transform_indices = @transform_9, window_bounds = array<i64: 2, 4096>}]} {
    %c0_i32 = arith.constant 0 : i32
    %0 = tpu.memref_slice %arg13[%c0_i32] : memref<2x!tpu.dma_semaphore, #tpu.memory_space<semaphore_mem>> -> memref<1x!tpu.dma_semaphore, #tpu.memory_space<semaphore_mem>>
    %1 = tpu.memref_squeeze %0 : memref<1x!tpu.dma_semaphore, #tpu.memory_space<semaphore_mem>> -> memref<!tpu.dma_semaphore, #tpu.memory_space<semaphore_mem>>
    tpu.enqueue_dma source(%arg8 : memref<128x4096xf32, #tpu.memory_space<any>>) target(%arg11 : memref<128x4096xf32, #tpu.memory_space<vmem>>) target_semaphore(%1 : memref<!tpu.dma_semaphore, #tpu.memory_space<semaphore_mem>>)
    %c1_i32 = arith.constant 1 : i32
    %2 = tpu.memref_slice %arg13[%c1_i32] : memref<2x!tpu.dma_semaphore, #tpu.memory_space<semaphore_mem>> -> memref<1x!tpu.dma_semaphore, #tpu.memory_space<semaphore_mem>>
    %3 = tpu.memref_squeeze %2 : memref<1x!tpu.dma_semaphore, #tpu.memory_space<semaphore_mem>> -> memref<!tpu.dma_semaphore, #tpu.memory_space<semaphore_mem>>
    tpu.enqueue_dma source(%arg9 : memref<128x4096xf32, #tpu.memory_space<any>>) target(%arg12 : memref<128x4096xf32, #tpu.memory_space<vmem>>) target_semaphore(%3 : memref<!tpu.dma_semaphore, #tpu.memory_space<semaphore_mem>>)
    %c0 = arith.constant 0 : index
    %c0_0 = arith.constant 0 : index
    %4 = vector.load %arg2[%c0, %c0_0] : memref<128x128xf32, #tpu.memory_space<vmem>>, vector<128x128xf32>
    %c0_1 = arith.constant 0 : index
    %c0_2 = arith.constant 0 : index
    %5 = vector.load %arg3[%c0_1, %c0_2] : memref<16x1xf32, #tpu.memory_space<vmem>>, vector<16x1xf32>
    %c0_3 = arith.constant 0 : index
    %c0_4 = arith.constant 0 : index
    %6 = vector.load %arg5[%c0_3, %c0_4] : memref<64x2xf32, #tpu.memory_space<vmem>>, vector<64x2xf32>
    %7 = vector.extract_strided_slice %6 {offsets = [0, 0], sizes = [32, 1], strides = [1, 1]} : vector<64x2xf32> to vector<32x1xf32>
    %8 = vector.extract_strided_slice %6 {offsets = [0, 1], sizes = [64, 1], strides = [1, 1]} : vector<64x2xf32> to vector<64x1xf32>
    %c0_5 = arith.constant 0 : index
    %c0_6 = arith.constant 0 : index
    %9 = vector.load %arg6[%c0_5, %c0_6] : memref<1x128xf32, #tpu.memory_space<vmem>>, vector<1x128xf32>
    %c0_7 = arith.constant 0 : index
    %c0_8 = arith.constant 0 : index
    %10 = vector.load %arg1[%c0_7, %c0_8] : memref<2x128xf32, #tpu.memory_space<vmem>>, vector<2x128xf32>
    %cst = arith.constant dense<0.000000e+00> : vector<2x128xf32>
    %11 = tpu.matmul %10, %4, %cst {dimension_numbers = #tpu.dot_dimension_numbers<[1], [1], [0], [0], [0, 0, 1, 0], [], []>} : vector<2x128xf32>, vector<128x128xf32>, vector<2x128xf32> -> vector<2x128xf32>
    %12 = vector.extract_strided_slice %11 {offsets = [0, 0], sizes = [1, 128], strides = [1, 1]} : vector<2x128xf32> to vector<1x128xf32>
    %13 = vector.broadcast %5 : vector<16x1xf32> to vector<16x128xf32>
    %14 = vector.broadcast %12 : vector<1x128xf32> to vector<16x128xf32>
    %15 = arith.mulf %13, %14 : vector<16x128xf32>
    %16 = vector.extract_strided_slice %11 {offsets = [1, 0], sizes = [1, 128], strides = [1, 1]} : vector<2x128xf32> to vector<1x128xf32>
    %17 = vector.broadcast %5 : vector<16x1xf32> to vector<16x128xf32>
    %18 = vector.broadcast %16 : vector<1x128xf32> to vector<16x128xf32>
    %19 = arith.mulf %17, %18 : vector<16x128xf32>
    %20 = tpu.concatenate %15, %19 in 0 : vector<16x128xf32>, vector<16x128xf32> -> vector<32x128xf32>
    %21 = vector.broadcast %7 : vector<32x1xf32> to vector<32x128xf32>
    %22 = arith.addf %20, %21 : vector<32x128xf32>
    %cst_9 = arith.constant 0.000000e+00 : f32
    %23 = vector.broadcast %cst_9 : f32 to vector<32x128xf32>
    %24 = arith.cmpf oge, %22, %23 : vector<32x128xf32>
    %cst_10 = arith.constant 0.00999999977 : f32
    %25 = vector.broadcast %cst_10 : f32 to vector<32x128xf32>
    %26 = arith.mulf %25, %22 : vector<32x128xf32>
    %27 = arith.select %24, %22, %26 : vector<32x128xi1>, vector<32x128xf32>
    %c0_11 = arith.constant 0 : index
    %c0_12 = arith.constant 0 : index
    %28 = vector.load %arg4[%c0_11, %c0_12] : memref<64x32xf32, #tpu.memory_space<vmem>>, vector<64x32xf32>
    %cst_13 = arith.constant dense<0.000000e+00> : vector<64x128xf32>
    %29 = tpu.matmul %28, %27, %cst_13 {dimension_numbers = #tpu.dot_dimension_numbers<[1], [0], [0], [1], [0, 0, 1, 1], [], []>} : vector<64x32xf32>, vector<32x128xf32>, vector<64x128xf32> -> vector<64x128xf32>
    %cst_14 = arith.constant dense<0.000000e+00> : vector<64x128xf32>
    %30 = tpu.matmul %29, %4, %cst_14 {dimension_numbers = #tpu.dot_dimension_numbers<[1], [1], [0], [0], [0, 0, 1, 0], [], []>} : vector<64x128xf32>, vector<128x128xf32>, vector<64x128xf32> -> vector<64x128xf32>
    %31 = vector.broadcast %8 : vector<64x1xf32> to vector<64x128xf32>
    %32 = arith.addf %30, %31 : vector<64x128xf32>
    %cst_15 = arith.constant 0.000000e+00 : f32
    %33 = vector.broadcast %cst_15 : f32 to vector<64x128xf32>
    %34 = arith.cmpf oge, %32, %33 : vector<64x128xf32>
    %cst_16 = arith.constant 0.00999999977 : f32
    %35 = vector.broadcast %cst_16 : f32 to vector<64x128xf32>
    %36 = arith.mulf %35, %32 : vector<64x128xf32>
    %37 = arith.select %34, %32, %36 : vector<64x128xi1>, vector<64x128xf32>
    %c0_i32_17 = arith.constant 0 : i32
    %38 = tpu.memref_slice %arg13[%c0_i32_17] : memref<2x!tpu.dma_semaphore, #tpu.memory_space<semaphore_mem>> -> memref<1x!tpu.dma_semaphore, #tpu.memory_space<semaphore_mem>>
    %39 = tpu.memref_squeeze %38 : memref<1x!tpu.dma_semaphore, #tpu.memory_space<semaphore_mem>> -> memref<!tpu.dma_semaphore, #tpu.memory_space<semaphore_mem>>
    tpu.wait_dma2 semaphore(%39 : memref<!tpu.dma_semaphore, #tpu.memory_space<semaphore_mem>>) src(%arg8 : memref<128x4096xf32, #tpu.memory_space<any>>) dst(%arg11 : memref<128x4096xf32, #tpu.memory_space<vmem>>)
    %c0_18 = arith.constant 0 : index
    %c0_19 = arith.constant 0 : index
    %40 = vector.load %arg11[%c0_18, %c0_19] : memref<128x4096xf32, #tpu.memory_space<vmem>>, vector<128x4096xf32>
    %cst_20 = arith.constant dense<0.000000e+00> : vector<64x4096xf32>
    %41 = tpu.matmul %37, %40, %cst_20 {dimension_numbers = #tpu.dot_dimension_numbers<[1], [0], [0], [1], [0, 0, 1, 1], [], []>} : vector<64x128xf32>, vector<128x4096xf32>, vector<64x4096xf32> -> vector<64x4096xf32>
    %42 = vector.extract_strided_slice %41 {offsets = [0, 0], sizes = [1, 128], strides = [1, 1]} : vector<64x4096xf32> to vector<1x128xf32>
    %43 = arith.addf %9, %42 : vector<1x128xf32>
    %44 = vector.extract_strided_slice %41 {offsets = [1, 128], sizes = [1, 128], strides = [1, 1]} : vector<64x4096xf32> to vector<1x128xf32>
    %45 = arith.addf %43, %44 : vector<1x128xf32>
    %46 = vector.extract_strided_slice %41 {offsets = [2, 256], sizes = [1, 128], strides = [1, 1]} : vector<64x4096xf32> to vector<1x128xf32>
    %47 = arith.addf %45, %46 : vector<1x128xf32>
    %48 = vector.extract_strided_slice %41 {offsets = [3, 384], sizes = [1, 128], strides = [1, 1]} : vector<64x4096xf32> to vector<1x128xf32>
    %49 = arith.addf %47, %48 : vector<1x128xf32>
    %50 = vector.extract_strided_slice %41 {offsets = [4, 512], sizes = [1, 128], strides = [1, 1]} : vector<64x4096xf32> to vector<1x128xf32>
    %51 = arith.addf %49, %50 : vector<1x128xf32>
    %52 = vector.extract_strided_slice %41 {offsets = [5, 640], sizes = [1, 128], strides = [1, 1]} : vector<64x4096xf32> to vector<1x128xf32>
    %53 = arith.addf %51, %52 : vector<1x128xf32>
    %54 = vector.extract_strided_slice %41 {offsets = [6, 768], sizes = [1, 128], strides = [1, 1]} : vector<64x4096xf32> to vector<1x128xf32>
    %55 = arith.addf %53, %54 : vector<1x128xf32>
    %56 = vector.extract_strided_slice %41 {offsets = [7, 896], sizes = [1, 128], strides = [1, 1]} : vector<64x4096xf32> to vector<1x128xf32>
    %57 = arith.addf %55, %56 : vector<1x128xf32>
    %58 = vector.extract_strided_slice %41 {offsets = [8, 1024], sizes = [1, 128], strides = [1, 1]} : vector<64x4096xf32> to vector<1x128xf32>
    %59 = arith.addf %57, %58 : vector<1x128xf32>
    %60 = vector.extract_strided_slice %41 {offsets = [9, 1152], sizes = [1, 128], strides = [1, 1]} : vector<64x4096xf32> to vector<1x128xf32>
    %61 = arith.addf %59, %60 : vector<1x128xf32>
    %62 = vector.extract_strided_slice %41 {offsets = [10, 1280], sizes = [1, 128], strides = [1, 1]} : vector<64x4096xf32> to vector<1x128xf32>
    %63 = arith.addf %61, %62 : vector<1x128xf32>
    %64 = vector.extract_strided_slice %41 {offsets = [11, 1408], sizes = [1, 128], strides = [1, 1]} : vector<64x4096xf32> to vector<1x128xf32>
    %65 = arith.addf %63, %64 : vector<1x128xf32>
    %66 = vector.extract_strided_slice %41 {offsets = [12, 1536], sizes = [1, 128], strides = [1, 1]} : vector<64x4096xf32> to vector<1x128xf32>
    %67 = arith.addf %65, %66 : vector<1x128xf32>
    %68 = vector.extract_strided_slice %41 {offsets = [13, 1664], sizes = [1, 128], strides = [1, 1]} : vector<64x4096xf32> to vector<1x128xf32>
    %69 = arith.addf %67, %68 : vector<1x128xf32>
    %70 = vector.extract_strided_slice %41 {offsets = [14, 1792], sizes = [1, 128], strides = [1, 1]} : vector<64x4096xf32> to vector<1x128xf32>
    %71 = arith.addf %69, %70 : vector<1x128xf32>
    %72 = vector.extract_strided_slice %41 {offsets = [15, 1920], sizes = [1, 128], strides = [1, 1]} : vector<64x4096xf32> to vector<1x128xf32>
    %73 = arith.addf %71, %72 : vector<1x128xf32>
    %74 = vector.extract_strided_slice %41 {offsets = [16, 2048], sizes = [1, 128], strides = [1, 1]} : vector<64x4096xf32> to vector<1x128xf32>
    %75 = arith.addf %73, %74 : vector<1x128xf32>
    %76 = vector.extract_strided_slice %41 {offsets = [17, 2176], sizes = [1, 128], strides = [1, 1]} : vector<64x4096xf32> to vector<1x128xf32>
    %77 = arith.addf %75, %76 : vector<1x128xf32>
    %78 = vector.extract_strided_slice %41 {offsets = [18, 2304], sizes = [1, 128], strides = [1, 1]} : vector<64x4096xf32> to vector<1x128xf32>
    %79 = arith.addf %77, %78 : vector<1x128xf32>
    %80 = vector.extract_strided_slice %41 {offsets = [19, 2432], sizes = [1, 128], strides = [1, 1]} : vector<64x4096xf32> to vector<1x128xf32>
    %81 = arith.addf %79, %80 : vector<1x128xf32>
    %82 = vector.extract_strided_slice %41 {offsets = [20, 2560], sizes = [1, 128], strides = [1, 1]} : vector<64x4096xf32> to vector<1x128xf32>
    %83 = arith.addf %81, %82 : vector<1x128xf32>
    %84 = vector.extract_strided_slice %41 {offsets = [21, 2688], sizes = [1, 128], strides = [1, 1]} : vector<64x4096xf32> to vector<1x128xf32>
    %85 = arith.addf %83, %84 : vector<1x128xf32>
    %86 = vector.extract_strided_slice %41 {offsets = [22, 2816], sizes = [1, 128], strides = [1, 1]} : vector<64x4096xf32> to vector<1x128xf32>
    %87 = arith.addf %85, %86 : vector<1x128xf32>
    %88 = vector.extract_strided_slice %41 {offsets = [23, 2944], sizes = [1, 128], strides = [1, 1]} : vector<64x4096xf32> to vector<1x128xf32>
    %89 = arith.addf %87, %88 : vector<1x128xf32>
    %90 = vector.extract_strided_slice %41 {offsets = [24, 3072], sizes = [1, 128], strides = [1, 1]} : vector<64x4096xf32> to vector<1x128xf32>
    %91 = arith.addf %89, %90 : vector<1x128xf32>
    %92 = vector.extract_strided_slice %41 {offsets = [25, 3200], sizes = [1, 128], strides = [1, 1]} : vector<64x4096xf32> to vector<1x128xf32>
    %93 = arith.addf %91, %92 : vector<1x128xf32>
    %94 = vector.extract_strided_slice %41 {offsets = [26, 3328], sizes = [1, 128], strides = [1, 1]} : vector<64x4096xf32> to vector<1x128xf32>
    %95 = arith.addf %93, %94 : vector<1x128xf32>
    %96 = vector.extract_strided_slice %41 {offsets = [27, 3456], sizes = [1, 128], strides = [1, 1]} : vector<64x4096xf32> to vector<1x128xf32>
    %97 = arith.addf %95, %96 : vector<1x128xf32>
    %98 = vector.extract_strided_slice %41 {offsets = [28, 3584], sizes = [1, 128], strides = [1, 1]} : vector<64x4096xf32> to vector<1x128xf32>
    %99 = arith.addf %97, %98 : vector<1x128xf32>
    %100 = vector.extract_strided_slice %41 {offsets = [29, 3712], sizes = [1, 128], strides = [1, 1]} : vector<64x4096xf32> to vector<1x128xf32>
    %101 = arith.addf %99, %100 : vector<1x128xf32>
    %102 = vector.extract_strided_slice %41 {offsets = [30, 3840], sizes = [1, 128], strides = [1, 1]} : vector<64x4096xf32> to vector<1x128xf32>
    %103 = arith.addf %101, %102 : vector<1x128xf32>
    %104 = vector.extract_strided_slice %41 {offsets = [31, 3968], sizes = [1, 128], strides = [1, 1]} : vector<64x4096xf32> to vector<1x128xf32>
    %105 = arith.addf %103, %104 : vector<1x128xf32>
    %106 = vector.extract_strided_slice %41 {offsets = [32, 0], sizes = [1, 128], strides = [1, 1]} : vector<64x4096xf32> to vector<1x128xf32>
    %107 = arith.addf %9, %106 : vector<1x128xf32>
    %108 = vector.extract_strided_slice %41 {offsets = [33, 128], sizes = [1, 128], strides = [1, 1]} : vector<64x4096xf32> to vector<1x128xf32>
    %109 = arith.addf %107, %108 : vector<1x128xf32>
    %110 = vector.extract_strided_slice %41 {offsets = [34, 256], sizes = [1, 128], strides = [1, 1]} : vector<64x4096xf32> to vector<1x128xf32>
    %111 = arith.addf %109, %110 : vector<1x128xf32>
    %112 = vector.extract_strided_slice %41 {offsets = [35, 384], sizes = [1, 128], strides = [1, 1]} : vector<64x4096xf32> to vector<1x128xf32>
    %113 = arith.addf %111, %112 : vector<1x128xf32>
    %114 = vector.extract_strided_slice %41 {offsets = [36, 512], sizes = [1, 128], strides = [1, 1]} : vector<64x4096xf32> to vector<1x128xf32>
    %115 = arith.addf %113, %114 : vector<1x128xf32>
    %116 = vector.extract_strided_slice %41 {offsets = [37, 640], sizes = [1, 128], strides = [1, 1]} : vector<64x4096xf32> to vector<1x128xf32>
    %117 = arith.addf %115, %116 : vector<1x128xf32>
    %118 = vector.extract_strided_slice %41 {offsets = [38, 768], sizes = [1, 128], strides = [1, 1]} : vector<64x4096xf32> to vector<1x128xf32>
    %119 = arith.addf %117, %118 : vector<1x128xf32>
    %120 = vector.extract_strided_slice %41 {offsets = [39, 896], sizes = [1, 128], strides = [1, 1]} : vector<64x4096xf32> to vector<1x128xf32>
    %121 = arith.addf %119, %120 : vector<1x128xf32>
    %122 = vector.extract_strided_slice %41 {offsets = [40, 1024], sizes = [1, 128], strides = [1, 1]} : vector<64x4096xf32> to vector<1x128xf32>
    %123 = arith.addf %121, %122 : vector<1x128xf32>
    %124 = vector.extract_strided_slice %41 {offsets = [41, 1152], sizes = [1, 128], strides = [1, 1]} : vector<64x4096xf32> to vector<1x128xf32>
    %125 = arith.addf %123, %124 : vector<1x128xf32>
    %126 = vector.extract_strided_slice %41 {offsets = [42, 1280], sizes = [1, 128], strides = [1, 1]} : vector<64x4096xf32> to vector<1x128xf32>
    %127 = arith.addf %125, %126 : vector<1x128xf32>
    %128 = vector.extract_strided_slice %41 {offsets = [43, 1408], sizes = [1, 128], strides = [1, 1]} : vector<64x4096xf32> to vector<1x128xf32>
    %129 = arith.addf %127, %128 : vector<1x128xf32>
    %130 = vector.extract_strided_slice %41 {offsets = [44, 1536], sizes = [1, 128], strides = [1, 1]} : vector<64x4096xf32> to vector<1x128xf32>
    %131 = arith.addf %129, %130 : vector<1x128xf32>
    %132 = vector.extract_strided_slice %41 {offsets = [45, 1664], sizes = [1, 128], strides = [1, 1]} : vector<64x4096xf32> to vector<1x128xf32>
    %133 = arith.addf %131, %132 : vector<1x128xf32>
    %134 = vector.extract_strided_slice %41 {offsets = [46, 1792], sizes = [1, 128], strides = [1, 1]} : vector<64x4096xf32> to vector<1x128xf32>
    %135 = arith.addf %133, %134 : vector<1x128xf32>
    %136 = vector.extract_strided_slice %41 {offsets = [47, 1920], sizes = [1, 128], strides = [1, 1]} : vector<64x4096xf32> to vector<1x128xf32>
    %137 = arith.addf %135, %136 : vector<1x128xf32>
    %138 = vector.extract_strided_slice %41 {offsets = [48, 2048], sizes = [1, 128], strides = [1, 1]} : vector<64x4096xf32> to vector<1x128xf32>
    %139 = arith.addf %137, %138 : vector<1x128xf32>
    %140 = vector.extract_strided_slice %41 {offsets = [49, 2176], sizes = [1, 128], strides = [1, 1]} : vector<64x4096xf32> to vector<1x128xf32>
    %141 = arith.addf %139, %140 : vector<1x128xf32>
    %142 = vector.extract_strided_slice %41 {offsets = [50, 2304], sizes = [1, 128], strides = [1, 1]} : vector<64x4096xf32> to vector<1x128xf32>
    %143 = arith.addf %141, %142 : vector<1x128xf32>
    %144 = vector.extract_strided_slice %41 {offsets = [51, 2432], sizes = [1, 128], strides = [1, 1]} : vector<64x4096xf32> to vector<1x128xf32>
    %145 = arith.addf %143, %144 : vector<1x128xf32>
    %146 = vector.extract_strided_slice %41 {offsets = [52, 2560], sizes = [1, 128], strides = [1, 1]} : vector<64x4096xf32> to vector<1x128xf32>
    %147 = arith.addf %145, %146 : vector<1x128xf32>
    %148 = vector.extract_strided_slice %41 {offsets = [53, 2688], sizes = [1, 128], strides = [1, 1]} : vector<64x4096xf32> to vector<1x128xf32>
    %149 = arith.addf %147, %148 : vector<1x128xf32>
    %150 = vector.extract_strided_slice %41 {offsets = [54, 2816], sizes = [1, 128], strides = [1, 1]} : vector<64x4096xf32> to vector<1x128xf32>
    %151 = arith.addf %149, %150 : vector<1x128xf32>
    %152 = vector.extract_strided_slice %41 {offsets = [55, 2944], sizes = [1, 128], strides = [1, 1]} : vector<64x4096xf32> to vector<1x128xf32>
    %153 = arith.addf %151, %152 : vector<1x128xf32>
    %154 = vector.extract_strided_slice %41 {offsets = [56, 3072], sizes = [1, 128], strides = [1, 1]} : vector<64x4096xf32> to vector<1x128xf32>
    %155 = arith.addf %153, %154 : vector<1x128xf32>
    %156 = vector.extract_strided_slice %41 {offsets = [57, 3200], sizes = [1, 128], strides = [1, 1]} : vector<64x4096xf32> to vector<1x128xf32>
    %157 = arith.addf %155, %156 : vector<1x128xf32>
    %158 = vector.extract_strided_slice %41 {offsets = [58, 3328], sizes = [1, 128], strides = [1, 1]} : vector<64x4096xf32> to vector<1x128xf32>
    %159 = arith.addf %157, %158 : vector<1x128xf32>
    %160 = vector.extract_strided_slice %41 {offsets = [59, 3456], sizes = [1, 128], strides = [1, 1]} : vector<64x4096xf32> to vector<1x128xf32>
    %161 = arith.addf %159, %160 : vector<1x128xf32>
    %162 = vector.extract_strided_slice %41 {offsets = [60, 3584], sizes = [1, 128], strides = [1, 1]} : vector<64x4096xf32> to vector<1x128xf32>
    %163 = arith.addf %161, %162 : vector<1x128xf32>
    %164 = vector.extract_strided_slice %41 {offsets = [61, 3712], sizes = [1, 128], strides = [1, 1]} : vector<64x4096xf32> to vector<1x128xf32>
    %165 = arith.addf %163, %164 : vector<1x128xf32>
    %166 = vector.extract_strided_slice %41 {offsets = [62, 3840], sizes = [1, 128], strides = [1, 1]} : vector<64x4096xf32> to vector<1x128xf32>
    %167 = arith.addf %165, %166 : vector<1x128xf32>
    %168 = vector.extract_strided_slice %41 {offsets = [63, 3968], sizes = [1, 128], strides = [1, 1]} : vector<64x4096xf32> to vector<1x128xf32>
    %169 = arith.addf %167, %168 : vector<1x128xf32>
    %170 = tpu.concatenate %105, %169 in 0 : vector<1x128xf32>, vector<1x128xf32> -> vector<2x128xf32>
    %c1_i32_21 = arith.constant 1 : i32
    %171 = tpu.memref_slice %arg13[%c1_i32_21] : memref<2x!tpu.dma_semaphore, #tpu.memory_space<semaphore_mem>> -> memref<1x!tpu.dma_semaphore, #tpu.memory_space<semaphore_mem>>
    %172 = tpu.memref_squeeze %171 : memref<1x!tpu.dma_semaphore, #tpu.memory_space<semaphore_mem>> -> memref<!tpu.dma_semaphore, #tpu.memory_space<semaphore_mem>>
    tpu.wait_dma2 semaphore(%172 : memref<!tpu.dma_semaphore, #tpu.memory_space<semaphore_mem>>) src(%arg9 : memref<128x4096xf32, #tpu.memory_space<any>>) dst(%arg12 : memref<128x4096xf32, #tpu.memory_space<vmem>>)
    %c0_22 = arith.constant 0 : index
    %c0_23 = arith.constant 0 : index
    %173 = vector.load %arg12[%c0_22, %c0_23] : memref<128x4096xf32, #tpu.memory_space<vmem>>, vector<128x4096xf32>
    %cst_24 = arith.constant dense<0.000000e+00> : vector<2x4096xf32>
    %174 = tpu.matmul %170, %173, %cst_24 {dimension_numbers = #tpu.dot_dimension_numbers<[1], [0], [0], [1], [0, 0, 1, 1], [], []>} : vector<2x128xf32>, vector<128x4096xf32>, vector<2x4096xf32> -> vector<2x4096xf32>
    %c0_25 = arith.constant 0 : index
    %c0_26 = arith.constant 0 : index
    %175 = vector.load %arg7[%c0_25, %c0_26] : memref<1x4096xf32, #tpu.memory_space<vmem>>, vector<1x4096xf32>
    %176 = vector.broadcast %175 : vector<1x4096xf32> to vector<2x4096xf32>
    %177 = arith.addf %174, %176 : vector<2x4096xf32>
    %cst_27 = arith.constant 0.000000e+00 : f32
    %178 = vector.broadcast %cst_27 : f32 to vector<2x4096xf32>
    %179 = arith.cmpf oge, %177, %178 : vector<2x4096xf32>
    %cst_28 = arith.constant 0.00999999977 : f32
    %180 = vector.broadcast %cst_28 : f32 to vector<2x4096xf32>
    %181 = arith.mulf %180, %177 : vector<2x4096xf32>
    %182 = arith.select %179, %177, %181 : vector<2x4096xi1>, vector<2x4096xf32>
    %c0_29 = arith.constant 0 : index
    %c0_30 = arith.constant 0 : index
    %183 = vector.load %arg10[%c0_29, %c0_30] : memref<2x4096xf32, #tpu.memory_space<vmem>>, vector<2x4096xf32>
    tpu.vector_store %arg10[%c0_29, %c0_30], %182 {strides = array<i32>} : memref<2x4096xf32, #tpu.memory_space<vmem>>, vector<2x4096xf32>,
    return
  }
  func.func @transform_0(%arg0: i32) -> (i32, i32) {
    %c0_i32 = arith.constant 0 : i32
    %c0_i32_0 = arith.constant 0 : i32
    %c0_i32_1 = arith.constant 0 : i32
    return %c0_i32, %c0_i32_0 : i32, i32
  }
  func.func @transform_1(%arg0: i32) -> (i32, i32) {
    %c0_i32 = arith.constant 0 : i32
    %c0_i32_0 = arith.constant 0 : i32
    %c0_i32_1 = arith.constant 0 : i32
    return %c0_i32, %c0_i32_0 : i32, i32
  }
  func.func @transform_2(%arg0: i32) -> (i32, i32) {
    %c0_i32 = arith.constant 0 : i32
    %c0_i32_0 = arith.constant 0 : i32
    %c0_i32_1 = arith.constant 0 : i32
    return %c0_i32, %c0_i32_0 : i32, i32
  }
  func.func @transform_3(%arg0: i32) -> (i32, i32) {
    %c0_i32 = arith.constant 0 : i32
    %c0_i32_0 = arith.constant 0 : i32
    %c0_i32_1 = arith.constant 0 : i32
    return %c0_i32, %c0_i32_0 : i32, i32
  }
  func.func @transform_4(%arg0: i32) -> (i32, i32) {
    %c0_i32 = arith.constant 0 : i32
    %c0_i32_0 = arith.constant 0 : i32
    %c0_i32_1 = arith.constant 0 : i32
    return %c0_i32, %c0_i32_0 : i32, i32
  }
  func.func @transform_5(%arg0: i32) -> (i32, i32) {
    %c0_i32 = arith.constant 0 : i32
    %c0_i32_0 = arith.constant 0 : i32
    %c0_i32_1 = arith.constant 0 : i32
    return %c0_i32, %c0_i32_0 : i32, i32
  }
  func.func @transform_6(%arg0: i32) -> (i32, i32) {
    %c0_i32 = arith.constant 0 : i32
    %c0_i32_0 = arith.constant 0 : i32
    %c0_i32_1 = arith.constant 0 : i32
    return %c0_i32, %c0_i32_0 : i32, i32
  }
  func.func @transform_9(%arg0: i32) -> (i32, i32) {
    %c0_i32 = arith.constant 0 : i32
    %c0_i32_0 = arith.constant 0 : i32
    %c0_i32_1 = arith.constant 0 : i32
    return %c0_i32, %c0_i32_0 : i32, i32
  }
}

module attributes {stable_mosaic.version = 11 : i64} {
  func.func @decoder_kernel(%arg0: i32, %arg1: memref<2x128x32xf32, #tpu.memory_space<vmem>>, %arg2: memref<128x128xf32, #tpu.memory_space<vmem>>, %arg3: memref<16x32xf32, #tpu.memory_space<vmem>>, %arg4: memref<2x32xf32, #tpu.memory_space<vmem>>, %arg5: memref<32x2xf32, #tpu.memory_space<vmem>>, %arg6: memref<2x128xf32, #tpu.memory_space<vmem>>) attributes {dimension_semantics = [#tpu.dimension_semantics<arbitrary>], iteration_bounds = array<i64: 1>, scalar_prefetch = 0 : i64, scratch_operands = 0 : i64, tpu.core_type = #tpu.core_type<tc>, window_params = [{pipeline_mode = #tpu.pipeline_mode<synchronous>, transform_indices = @transform_0, window_bounds = array<i64: 2, 128, 32>}, {pipeline_mode = #tpu.pipeline_mode<synchronous>, transform_indices = @transform_1, window_bounds = array<i64: 128, 128>}, {pipeline_mode = #tpu.pipeline_mode<synchronous>, transform_indices = @transform_2, window_bounds = array<i64: 16, 32>}, {pipeline_mode = #tpu.pipeline_mode<synchronous>, transform_indices = @transform_3, window_bounds = array<i64: 2, 32>}, {pipeline_mode = #tpu.pipeline_mode<synchronous>, transform_indices = @transform_4, window_bounds = array<i64: 32, 2>}, {pipeline_mode = #tpu.pipeline_mode<synchronous>, transform_indices = @transform_5, window_bounds = array<i64: 2, 128>}]} {
    %c0 = arith.constant 0 : index
    %c0_0 = arith.constant 0 : index
    %0 = vector.load %arg2[%c0, %c0_0] : memref<128x128xf32, #tpu.memory_space<vmem>>, vector<128x128xf32>
    %c0_1 = arith.constant 0 : index
    %c0_2 = arith.constant 0 : index
    %1 = vector.load %arg5[%c0_1, %c0_2] : memref<32x2xf32, #tpu.memory_space<vmem>>, vector<32x2xf32>
    %2 = vector.extract_strided_slice %1 {offsets = [0, 0], sizes = [32, 1], strides = [1, 1]} : vector<32x2xf32> to vector<32x1xf32>
    %3 = vector.extract_strided_slice %1 {offsets = [0, 1], sizes = [1, 1], strides = [1, 1]} : vector<32x2xf32> to vector<1x1xf32>
    %c0_3 = arith.constant 0 : index
    %c0_4 = arith.constant 0 : index
    %4 = vector.load %arg3[%c0_3, %c0_4] : memref<16x32xf32, #tpu.memory_space<vmem>>, vector<16x32xf32>
    %c0_5 = arith.constant 0 : index
    %c0_6 = arith.constant 0 : index
    %c0_7 = arith.constant 0 : index
    %5 = vector.load %arg1[%c0_5, %c0_6, %c0_7] : memref<2x128x32xf32, #tpu.memory_space<vmem>>, vector<1x128x32xf32>
    %6 = vector.shape_cast %5 : vector<1x128x32xf32> to vector<128x32xf32>
    %cst = arith.constant dense<0.000000e+00> : vector<16x128xf32>
    %7 = tpu.matmul %4, %6, %cst {dimension_numbers = #tpu.dot_dimension_numbers<[1], [1], [0], [0], [0, 0, 1, 0], [], []>} : vector<16x32xf32>, vector<128x32xf32>, vector<16x128xf32> -> vector<16x128xf32>
    %c0_8 = arith.constant 0 : index
    %c0_9 = arith.constant 0 : index
    %8 = vector.load %arg3[%c0_8, %c0_9] : memref<16x32xf32, #tpu.memory_space<vmem>>, vector<16x32xf32>
    %c1 = arith.constant 1 : index
    %c0_10 = arith.constant 0 : index
    %c0_11 = arith.constant 0 : index
    %9 = vector.load %arg1[%c1, %c0_10, %c0_11] : memref<2x128x32xf32, #tpu.memory_space<vmem>>, vector<1x128x32xf32>
    %10 = vector.shape_cast %9 : vector<1x128x32xf32> to vector<128x32xf32>
    %cst_12 = arith.constant dense<0.000000e+00> : vector<16x128xf32>
    %11 = tpu.matmul %8, %10, %cst_12 {dimension_numbers = #tpu.dot_dimension_numbers<[1], [1], [0], [0], [0, 0, 1, 0], [], []>} : vector<16x32xf32>, vector<128x32xf32>, vector<16x128xf32> -> vector<16x128xf32>
    %12 = tpu.concatenate %7, %11 in 0 : vector<16x128xf32>, vector<16x128xf32> -> vector<32x128xf32>
    %cst_13 = arith.constant dense<0.000000e+00> : vector<32x128xf32>
    %13 = tpu.matmul %12, %0, %cst_13 {dimension_numbers = #tpu.dot_dimension_numbers<[1], [1], [0], [0], [0, 0, 1, 0], [], []>} : vector<32x128xf32>, vector<128x128xf32>, vector<32x128xf32> -> vector<32x128xf32>
    %14 = vector.broadcast %2 : vector<32x1xf32> to vector<32x128xf32>
    %15 = arith.addf %13, %14 : vector<32x128xf32>
    %cst_14 = arith.constant 0.000000e+00 : f32
    %16 = vector.broadcast %cst_14 : f32 to vector<32x128xf32>
    %17 = arith.cmpf oge, %15, %16 : vector<32x128xf32>
    %cst_15 = arith.constant 0.00999999977 : f32
    %18 = vector.broadcast %cst_15 : f32 to vector<32x128xf32>
    %19 = arith.mulf %18, %15 : vector<32x128xf32>
    %20 = arith.select %17, %15, %19 : vector<32x128xi1>, vector<32x128xf32>
    %c0_16 = arith.constant 0 : index
    %c0_17 = arith.constant 0 : index
    %21 = vector.load %arg4[%c0_16, %c0_17] : memref<2x32xf32, #tpu.memory_space<vmem>>, vector<2x32xf32>
    %cst_18 = arith.constant dense<0.000000e+00> : vector<2x128xf32>
    %22 = tpu.matmul %21, %20, %cst_18 {dimension_numbers = #tpu.dot_dimension_numbers<[1], [0], [0], [1], [0, 0, 1, 1], [], []>} : vector<2x32xf32>, vector<32x128xf32>, vector<2x128xf32> -> vector<2x128xf32>
    %cst_19 = arith.constant dense<0.000000e+00> : vector<2x128xf32>
    %23 = tpu.matmul %22, %0, %cst_19 {dimension_numbers = #tpu.dot_dimension_numbers<[1], [1], [0], [0], [0, 0, 1, 0], [], []>} : vector<2x128xf32>, vector<128x128xf32>, vector<2x128xf32> -> vector<2x128xf32>
    %24 = vector.broadcast %3 : vector<1x1xf32> to vector<2x128xf32>
    %25 = arith.addf %23, %24 : vector<2x128xf32>
    %c0_20 = arith.constant 0 : index
    %c0_21 = arith.constant 0 : index
    %26 = vector.load %arg6[%c0_20, %c0_21] : memref<2x128xf32, #tpu.memory_space<vmem>>, vector<2x128xf32>
    tpu.vector_store %arg6[%c0_20, %c0_21], %25 {strides = array<i32>} : memref<2x128xf32, #tpu.memory_space<vmem>>, vector<2x128xf32>,
    return
  }
  func.func @transform_0(%arg0: i32) -> (i32, i32, i32) {
    %c0_i32 = arith.constant 0 : i32
    %c0_i32_0 = arith.constant 0 : i32
    %c0_i32_1 = arith.constant 0 : i32
    %c0_i32_2 = arith.constant 0 : i32
    return %c0_i32, %c0_i32_0, %c0_i32_1 : i32, i32, i32
  }
  func.func @transform_1(%arg0: i32) -> (i32, i32) {
    %c0_i32 = arith.constant 0 : i32
    %c0_i32_0 = arith.constant 0 : i32
    %c0_i32_1 = arith.constant 0 : i32
    return %c0_i32, %c0_i32_0 : i32, i32
  }
  func.func @transform_2(%arg0: i32) -> (i32, i32) {
    %c0_i32 = arith.constant 0 : i32
    %c0_i32_0 = arith.constant 0 : i32
    %c0_i32_1 = arith.constant 0 : i32
    return %c0_i32, %c0_i32_0 : i32, i32
  }
  func.func @transform_3(%arg0: i32) -> (i32, i32) {
    %c0_i32 = arith.constant 0 : i32
    %c0_i32_0 = arith.constant 0 : i32
    %c0_i32_1 = arith.constant 0 : i32
    return %c0_i32, %c0_i32_0 : i32, i32
  }
  func.func @transform_4(%arg0: i32) -> (i32, i32) {
    %c0_i32 = arith.constant 0 : i32
    %c0_i32_0 = arith.constant 0 : i32
    %c0_i32_1 = arith.constant 0 : i32
    return %c0_i32, %c0_i32_0 : i32, i32
  }
  func.func @transform_5(%arg0: i32) -> (i32, i32) {
    %c0_i32 = arith.constant 0 : i32
    %c0_i32_0 = arith.constant 0 : i32
    %c0_i32_1 = arith.constant 0 : i32
    return %c0_i32, %c0_i32_0 : i32, i32
  }
}

</mosaic_0001>

<bundles_post_ra>
// kernel: image_gcn_forward.3
= control target key start
LH: loop header
LB: loop body
LE: loop exit
PB: predicated region body
PF: predicated region fallthrough
CT: control target
= control target key end

     0   :  { %vm59_vm0 = vcmask 261120   ;;  %s1421_s0 = inlined_call_operand.vmem [shape: f32[2,128,32], index: 0, kind: input, shape index: {}]   ;;  %s1422_s1 = inlined_call_operand.vmem [shape: f32[128,128], index: 1, kind: input, shape index: {}]   ;;  %s1423_s2 = inlined_call_operand.vmem [shape: f32[16,32], index: 2, kind: input, shape index: {}]   ;;  %s1424_s3 = inlined_call_operand.vmem [shape: f32[2,32], index: 3, kind: input, shape index: {}]   ;;  %s1425_s4 = inlined_call_operand.vmem [shape: f32[32,2], index: 4, kind: input, shape index: {}]   ;;  %s1426_s5 = inlined_call_operand.hbm [shape: f32[2,128], index: 5, kind: output, shape index: {}]  }
   0x1   :  { %v43_v0 = vld [vmem:[%s1421_s0] sm:$0xff]  ;;  %v44_v1 = vld [vmem:[%s1421_s0 + $0x8] sm:$0xff]  ;;  %vm1134_vm1 = vmpackc.low %vm59_vm0, %vm59_vm0 }
   0x2   :  { %v628_v2 = vld [vmem:[%s1421_s0 + $0x80] sm:$0xff]  ;;  %v895_v3 = vpack.c.bf16 %v44_v1, %v43_v0  ;;  %v629_v5 = vld [vmem:[%s1421_s0 + $0x88] sm:$0xff]  ;;  %v45_v6 = vld [vmem:[%s1421_s0 + $0x10] sm:$0xff] }
   0x3   :  { %v943_v7 = vpack.c.bf16 %v629_v5, %v628_v2  ;;  %v46_v8 = vld [vmem:[%s1421_s0 + $0x18] sm:$0xff]  ;;  %v630_v9 = vld [vmem:[%s1421_s0 + $0x90] sm:$0xff]  ;;  %v47_v13 = vld [vmem:[%s1421_s0 + $0x20] sm:$0xff] }
   0x4   :  { %v631_v10 = vld [vmem:[%s1421_s0 + $0x98] sm:$0xff]  ;;  %897 = vmatprep.subr.msk.bf16.mxu0 %vm1134_vm1, %v895_v3  ;;  %v901_v11 = vpack.c.bf16 %v46_v8, %v45_v6  ;;  %v48_v14 = vld [vmem:[%s1421_s0 + $0x28] sm:$0xff]  ;;  %v632_v15 = vld [vmem:[%s1421_s0 + $0xa0] sm:$0xff] }
   0x5   :  { %v949_v12 = vpack.c.bf16 %v631_v10, %v630_v9  ;;  %900 = vmatpush3.bf16.xpose.msk.msra.mxu0 %vm1134_vm1, %v895_v3  ;;  %945 = vmatprep.subr.msk.bf16.mxu1 %vm1134_vm1, %v943_v7  ;;  %v633_v16 = vld [vmem:[%s1421_s0 + $0xa8] sm:$0xff]  ;;  %v907_v17 = vpack.c.bf16 %v48_v14, %v47_v13  ;;  %v41_v19 = vld [vmem:[%s1423_s2] sm:$0xff]  ;;  %v49_v20 = vld [vmem:[%s1421_s0 + $0x30] sm:$0xff] }
   0x6   :  { %948 = vmatpush3.bf16.xpose.msk.msra.mxu1 %vm1134_vm1, %v943_v7  ;;  %903 = vmatprep.subr.msk.bf16.mxu0 %vm1134_vm1, %v901_v11  ;;  %v955_v18 = vpack.c.bf16 %v633_v16, %v632_v15  ;;  %v50_v21 = vld [vmem:[%s1421_s0 + $0x38] sm:$0xff]  ;;  %v634_v22 = vld [vmem:[%s1421_s0 + $0xb0] sm:$0xff] }
   0x7   :  { %951 = vmatprep.subr.msk.bf16.mxu1 %vm1134_vm1, %v949_v12  ;;  %773 = vmatprep.mubr.msk.f32.mxu0 %vm59_vm0, %v41_v19  ;;  %v635_v23 = vld [vmem:[%s1421_s0 + $0xb8] sm:$0xff]  ;;  %v913_v24 = vpack.c.bf16 %v50_v21, %v49_v20 }
   0x8   :  { %808 = vmatprep.mubr.msk.f32.mxu1 %vm59_vm0, %v41_v19 }
   0xd   :  { %906 = vmatpush3.bf16.xpose.msk.msra.mxu0 %vm1134_vm1, %v901_v11 }
   0xe   :  { %954 = vmatpush3.bf16.xpose.msk.msra.mxu1 %vm1134_vm1, %v949_v12  ;;  %909 = vmatprep.subr.msk.bf16.mxu0 %vm1134_vm1, %v907_v17 }
   0xf   :  { %957 = vmatprep.subr.msk.bf16.mxu1 %vm1134_vm1, %v955_v18 }
  0x10   :  { %10 = vsyncpa [#allocation3], 0  ;;  %v961_v25 = vpack.c.bf16 %v635_v23, %v634_v22  ;;  %v51_v26 = vld [vmem:[%s1421_s0 + $0x40] sm:$0xff]  ;;  %v52_v27 = vld [vmem:[%s1421_s0 + $0x48] sm:$0xff]  ;;  %v1087_v13 = vmov 0   ;;  %v1088_v20 = vmov 0.0|0.0  }
  0x11   :  { %v636_v28 = vld [vmem:[%s1421_s0 + $0xc0] sm:$0xff]  ;;  %v637_v29 = vld [vmem:[%s1421_s0 + $0xc8] sm:$0xff]  ;;  %v919_v30 = vpack.c.bf16 %v52_v27, %v51_v26  ;;  %v53_v32 = vld [vmem:[%s1421_s0 + $0x50] sm:$0xff]  ;;  %1061 = vset.pattern.permute.xlu0 %v1087_v13  ;;  %1062 = vset.pattern.permute.xlu1 %v1087_v13  ;;  %vm1089_vm2 = vmmov 0   ;;  %v1090_v21 = vmov 0.0   ;;  %s1092_s23 = smov [#allocation2]  }
  0x12   :  { %v967_v31 = vpack.c.bf16 %v637_v29, %v636_v28  ;;  %v54_v33 = vld [vmem:[%s1421_s0 + $0x58] sm:$0xff]  ;;  %v638_v34 = vld [vmem:[%s1421_s0 + $0xd0] sm:$0xff]  ;;  %v55_v38 = vld [vmem:[%s1421_s0 + $0x60] sm:$0xff]  ;;  %s602_s24 = sshll.u32 %s1092_s23, 4  ;;  %s603_s24 = int_to_ptr.vmem [resolvable:$true] %s602_s24 }
  0x13   :  { %v639_v35 = vld [vmem:[%s1421_s0 + $0xd8] sm:$0xff]  ;;  %v925_v36 = vpack.c.bf16 %v54_v33, %v53_v32  ;;  %v56_v39 = vld [vmem:[%s1421_s0 + $0x68] sm:$0xff]  ;;  %v640_v40 = vld [vmem:[%s1421_s0 + $0xe0] sm:$0xff]  ;;  %s1063_s25 = scalar_lea.vmem %s603_s24, 32  ;;  %p1068_p1 = scmp.lt.s32.totalorder %s603_s24, %s603_s24 }
  0x14   :  { %v973_v37 = vpack.c.bf16 %v639_v35, %v638_v34  ;;  %v641_v41 = vld [vmem:[%s1421_s0 + $0xe8] sm:$0xff]  ;;  %v931_v42 = vpack.c.bf16 %v56_v39, %v55_v38  ;;  %v57_v44 = vld [vmem:[%s1421_s0 + $0x70] sm:$0xff]  ;;  %v58_v45 = vld [vmem:[%s1421_s0 + $0x78] sm:$0xff]  ;;  %p1064_p0 = scmp.ne.s32.totalorder %s603_s24, %s1063_s25  ;;  %p1069_p2 = scmp.lt.s32.totalorder %s1063_s25, %s1063_s25 }
  0x15   :  { %912 = vmatpush3.bf16.xpose.msk.msra.mxu0 %vm1134_vm1, %v907_v17  ;;  %v979_v43 = vpack.c.bf16 %v641_v41, %v640_v40  ;;  %v642_v46 = vld [vmem:[%s1421_s0 + $0xf0] sm:$0xff]  ;;  %v643_v47 = vld [vmem:[%s1421_s0 + $0xf8] sm:$0xff]  ;;  %v937_v48 = vpack.c.bf16 %v58_v45, %v57_v44  ;;  %v21_v50 = vld [vmem:[%s1422_s1] sm:$0xff] }
  0x16   :  { %960 = vmatpush3.bf16.xpose.msk.msra.mxu1 %vm1134_vm1, %v955_v18  ;;  %915 = vmatprep.subr.msk.bf16.mxu0 %vm1134_vm1, %v913_v24  ;;  %v985_v49 = vpack.c.bf16 %v643_v47, %v642_v46  ;;  %v22_v51 = vld [vmem:[%s1422_s1 + $0x8] sm:$0xff]  ;;  %v23_v53 = vld [vmem:[%s1422_s1 + $0x10] sm:$0xff]  ;;  %v24_v54 = vld [vmem:[%s1422_s1 + $0x18] sm:$0xff]  ;;  %p1070_p3 = por %p1069_p2, %p1068_p1 }
  0x17   :  { %963 = vmatprep.subr.msk.bf16.mxu1 %vm1134_vm1, %v961_v25  ;;  %v1296_v52 = vpack.c.bf16 %v22_v51, %v21_v50  ;;  %v42_v55 = vld [vmem:[%s1423_s2 + $0x8] sm:$0xff]  ;;  %v1312_v56 = vpack.c.bf16 %v24_v54, %v23_v53  ;;  %v25_v57 = vld [vmem:[%s1422_s1 + $0x20] sm:$0xff]  ;;  %v27_v60 = vld [vmem:[%s1422_s1 + $0x30] sm:$0xff] }
  0x18   :  { %v26_v58 = vld [vmem:[%s1422_s1 + $0x28] sm:$0xff]  ;;  %v28_v61 = vld [vmem:[%s1422_s1 + $0x38] sm:$0xff]  ;;  %v29_v63 = vld [vmem:[%s1422_s1 + $0x40] sm:$0xff]  ;;  %p1071_p4 = pnand %p1070_p3, %p1064_p0 }
  0x19   :  { %v1324_v59 = vpack.c.bf16 %v26_v58, %v25_v57  ;;  %v1334_v62 = vpack.c.bf16 %v28_v61, %v27_v60  ;;  %v30_v0 = vld [vmem:[%s1422_s1 + $0x48] sm:$0xff]  ;;  %v31_v2 = vld [vmem:[%s1422_s1 + $0x50] sm:$0xff]  ;;  %v32_v3 = vld [vmem:[%s1422_s1 + $0x58] sm:$0xff] }
  0x1a   :  { %v1344_v1 = vpack.c.bf16 %v30_v0, %v29_v63  ;;  %v1354_v4 = vpack.c.bf16 %v32_v3, %v31_v2  ;;  %v33_v5 = vld [vmem:[%s1422_s1 + $0x60] sm:$0xff]  ;;  %v34_v6 = vld [vmem:[%s1422_s1 + $0x68] sm:$0xff]  ;;  %v35_v8 = vld [vmem:[%s1422_s1 + $0x70] sm:$0xff] }
  0x1b   :  { %v1364_v7 = vpack.c.bf16 %v34_v6, %v33_v5  ;;  %v36_v9 = vld [vmem:[%s1422_s1 + $0x78] sm:$0xff]  ;;  %v1382_v11 = vld [vmem:[%s1425_s4] sm:$0xff]  ;;  %v39_v12 = vld [vmem:[%s1425_s4 + $0x10] sm:$0xff] }
  0x1c   :  { %v1374_v10 = vpack.c.bf16 %v36_v9, %v35_v8  ;;  %331 = vperm.xlu0 %1061, %v1382_v11   ;;  %341 = vperm.xlu1 %1062, %v39_v12   ;;  %v38_v14 = vld [vmem:[%s1425_s4 + $0x8] sm:$0xff]  ;;  %v40_v15 = vld [vmem:[%s1425_s4 + $0x18] sm:$0xff]  ;;  %v446_v44 = vld [vmem:[%s1424_s3] sm:$0x3]  ;;  %s1091_s3 = smov 127  }
  0x1d   :  { %918 = vmatpush3.bf16.xpose.msk.msra.mxu0 %vm1134_vm1, %v913_v24 }
  0x1e   :  { %966 = vmatpush3.bf16.xpose.msk.msra.mxu1 %vm1134_vm1, %v961_v25  ;;  %921 = vmatprep.subr.msk.bf16.mxu0 %vm1134_vm1, %v919_v30 }
  0x1f   :  { %969 = vmatprep.subr.msk.bf16.mxu1 %vm1134_vm1, %v967_v31 }
  0x20   :  { %336 = vperm.xlu0 %1061, %v38_v14   ;;  %346 = vperm.xlu1 %1062, %v40_v15  }
  0x24   :  { %520 = vrot.lane.b32.xlu0 %v1382_v11, %s1091_s3 }
  0x25   :  { %924 = vmatpush3.bf16.xpose.msk.msra.mxu0 %vm1134_vm1, %v919_v30 }
  0x26   :  { %972 = vmatpush3.bf16.xpose.msk.msra.mxu1 %vm1134_vm1, %v967_v31  ;;  %927 = vmatprep.subr.msk.bf16.mxu0 %vm1134_vm1, %v925_v36 }
  0x27   :  { %975 = vmatprep.subr.msk.bf16.mxu1 %vm1134_vm1, %v973_v37 }
  0x2d   :  { %930 = vmatpush3.bf16.xpose.msk.msra.mxu0 %vm1134_vm1, %v925_v36 }
  0x2e   :  { %978 = vmatpush3.bf16.xpose.msk.msra.mxu1 %vm1134_vm1, %v973_v37  ;;  %933 = vmatprep.subr.msk.bf16.mxu0 %vm1134_vm1, %v931_v42 }
  0x2f   :  { %981 = vmatprep.subr.msk.bf16.mxu1 %vm1134_vm1, %v979_v43 }
  0x35   :  { %936 = vmatpush3.bf16.xpose.msk.msra.mxu0 %vm1134_vm1, %v931_v42 }
  0x36   :  { %984 = vmatpush3.bf16.xpose.msk.msra.mxu1 %vm1134_vm1, %v979_v43  ;;  %939 = vmatprep.subr.msk.bf16.mxu0 %vm1134_vm1, %v937_v48 }
  0x37   :  { %987 = vmatprep.subr.msk.bf16.mxu1 %vm1134_vm1, %v985_v49 }
  0x3d   :  { %942 = vmatpush3.bf16.xpose.msk.msra.mxu0 %vm1134_vm1, %v937_v48 }
  0x3e   :  { %990 = vmatpush3.bf16.xpose.msk.msra.mxu1 %vm1134_vm1, %v985_v49  ;;  %992 = vmatprep.subr.bf16.mxu0 %v1296_v52 }
  0x3f   :  { %1023 = vmatprep.subr.bf16.mxu1 %v1088_v20 }
  0x44   :  { %774 = vmatmul.mubr.msk.f32.vlgmr.msra.gmra.mrb[0].mxu0 %vm59_vm0, %v42_v55 }
  0x45   :  { %809 = vmatmul.mubr.msk.f32.vlgmr.msra.gmra.mrb[0].mxu1 %vm59_vm0, %v42_v55  ;;  %994 = vmatpush3.bf16.xpose.msra.mxu0 %v1296_v52 }
  0x46   :  { %996 = vmatprep.subr.bf16.mxu0 %v1312_v56  ;;  %857 = vmatprep.mubr.msk.f32.mxu1 %vm1089_vm2, %v1090_v21 }
  0x4d   :  { %998 = vmatpush3.bf16.xpose.msra.mxu0 %v1312_v56 }
  0x4e   :  { %1000 = vmatprep.subr.bf16.mxu0 %v1324_v59 }
  0x55   :  { %1002 = vmatpush3.bf16.xpose.msra.mxu0 %v1324_v59 }
  0x56   :  { %1004 = vmatprep.subr.bf16.mxu0 %v1334_v62 }
  0x5d   :  { %1006 = vmatpush3.bf16.xpose.msra.mxu0 %v1334_v62 }
  0x5e   :  { %1008 = vmatprep.subr.bf16.mxu0 %v1344_v1 }
  0x65   :  { %1010 = vmatpush3.bf16.xpose.msra.mxu0 %v1344_v1 }
  0x66   :  { %1012 = vmatprep.subr.bf16.mxu0 %v1354_v4 }
  0x6d   :  { %1014 = vmatpush3.bf16.xpose.msra.mxu0 %v1354_v4 }
  0x6e   :  { %1016 = vmatprep.subr.bf16.mxu0 %v1364_v7 }
  0x75   :  { %1018 = vmatpush3.bf16.xpose.msra.mxu0 %v1364_v7 }
  0x76   :  { %1020 = vmatprep.subr.bf16.mxu0 %v1374_v10 }
  0x7d   :  { %1022 = vmatpush3.bf16.xpose.msra.mxu0 %v1374_v10 }
  0x9b   :  { %v332_v22 = vpop.permute.xlu0 %331  ;;  %v342_v23 = vpop.permute.xlu1 %341 }
  0x9f   :  { %v337_v24 = vpop.permute.xlu0 %336  ;;  %v347_v30 = vpop.permute.xlu1 %346 }
  0xa3   :  { %v521_v45 = vpop.permute.xlu0 %520 }
  0xa4   :  { %1053 = vpush %v521_v45 }
  0xd5   :  { %s1054_s22 = spop %1053 }
  0xd6   :  { %v523_v48 = vstv %s1054_s22 }
 0x117   :  { %v775_v16 = vpop.f32.mrb[0].mxu0 }
 0x118   :  { %v180_v17 = vpop.f32.mrb[1].mxu0  ;;  %v810_v18 = vpop.f32.mrb[0].mxu1 }
 0x119   :  { %843 = vmatprep.mubr.f32.mxu0 %v180_v17  ;;  %v320_v19 = vpop.f32.mrb[1].mxu1 }
 0x11a   :  { %844 = vmatmul.mubr.f32.vlgmr.msra.gmra.mrb[2].mxu0 %v775_v16 }
 0x11b   :  { %846 = vmatprep.mubr.f32.mxu0 %v320_v19 }
 0x11e   :  { %847 = vmatmul.mubr.f32.gmra.mrb[4].mxu0 %v810_v18 }
 0x1ed   :  { %v845_v25 = vpop.f32.mrb[2].mxu0 }
 0x1ee   :  { %v421_v26 = vadd.f32 %v845_v25, %v337_v24  ;;  %v415_v27 = vpop.f32.mrb[3].mxu0 }
 0x1ef   :  { %v416_v28 = vadd.f32 %v415_v27, %v332_v22 }
 0x1f0   :  { %vm435_vm3 = vcmp.ge.f32.partialorder %v421_v26, 0.0  ;;  %v439_v29 = vmul.f32 0.01, %v421_v26 }
 0x1f1   :  { %vm434_vm4 = vcmp.ge.f32.partialorder %v416_v28, 0.0  ;;  %v438_v31 = vmul.f32 0.01, %v416_v28  ;;  %v848_v32 = vpop.f32.mrb[4].mxu0 }
 0x1f2   :  { %v443_v33 = vsel %vm435_vm3, %v421_v26, %v439_v29  ;;  %v431_v34 = vadd.f32 %v848_v32, %v347_v30  ;;  %v425_v35 = vpop.f32.mrb[5].mxu0 }
 0x1f3   :  { %v442_v36 = vsel %vm434_vm4, %v416_v28, %v438_v31  ;;  %v426_v37 = vadd.f32 %v425_v35, %v342_v23 }
 0x1f4   :  { %v1024_v38 = vpack.c.bf16 %v443_v33, %v442_v36  ;;  %vm437_vm5 = vcmp.ge.f32.partialorder %v431_v34, 0.0  ;;  %v441_v39 = vmul.f32 0.01, %v431_v34 }
 0x1f5   :  { %vm436_vm6 = vcmp.ge.f32.partialorder %v426_v37, 0.0  ;;  %v440_v40 = vmul.f32 0.01, %v426_v37 }
 0x1f6   :  { %v445_v41 = vsel %vm437_vm5, %v431_v34, %v441_v39  ;;  %1025 = vmatpush3.bf16.msra.mxu1 %v1024_v38 }
 0x1f7   :  { %v444_v42 = vsel %vm436_vm6, %v426_v37, %v440_v40  ;;  %1026 = vmatprep.subr.bf16.mxu1 %v1088_v20 }
 0x1f8   :  { %v1027_v43 = vpack.c.bf16 %v445_v41, %v444_v42 }
 0x1fa   :  { %1028 = vmatpush3.bf16.msra.mxu1 %v1027_v43 }
 0x1fb   :  { %1029 = vmatprep.subr.bf16.mxu1 %v1088_v20 }
 0x1fd   :  { %858 = vmatmul.mubr.msk.f32.vlgmr.msra.gmra.mrb[2].mxu1 %vm59_vm0, %v446_v44 }
 0x1fe   :  { %892 = vmatprep.mubr.msk.f32.mxu1 %vm1089_vm2, %v1090_v21 }
 0x203   :  { %1031 = vmatpush3.bf16.xpose.msra.mxu1 %v1296_v52 }
 0x204   :  { %1032 = vmatprep.subr.bf16.mxu1 %v1088_v20 }
 0x20b   :  { %1034 = vmatpush3.bf16.xpose.msra.mxu1 %v1312_v56 }
 0x20c   :  { %1035 = vmatprep.subr.bf16.mxu1 %v1088_v20 }
 0x213   :  { %1037 = vmatpush3.bf16.xpose.msra.mxu1 %v1324_v59 }
 0x214   :  { %1038 = vmatprep.subr.bf16.mxu1 %v1088_v20 }
 0x21b   :  { %1040 = vmatpush3.bf16.xpose.msra.mxu1 %v1334_v62 }
 0x21c   :  { %1041 = vmatprep.subr.bf16.mxu1 %v1088_v20 }
 0x223   :  { %1043 = vmatpush3.bf16.xpose.msra.mxu1 %v1344_v1 }
 0x224   :  { %1044 = vmatprep.subr.bf16.mxu1 %v1088_v20 }
 0x22b   :  { %1046 = vmatpush3.bf16.xpose.msra.mxu1 %v1354_v4 }
 0x22c   :  { %1047 = vmatprep.subr.bf16.mxu1 %v1088_v20 }
 0x233   :  { %1049 = vmatpush3.bf16.xpose.msra.mxu1 %v1364_v7 }
 0x234   :  { %1050 = vmatprep.subr.bf16.mxu1 %v1088_v20 }
 0x23b   :  { %1052 = vmatpush3.bf16.xpose.msra.mxu1 %v1374_v10 }
 0x2d0   :  { %v516_v46 = vpop.f32.mrb[2].mxu1 }
 0x2d1   :  { %v859_v47 = vpop.f32.mrb[3].mxu1  ;;  %893 = vmatmul.mubr.f32.vlgmr.msra.gmra.mrb[4].mxu1 %v516_v46 }
 0x3a4   :  { %v591_v49 = vpop.f32.mrb[4].mxu1 }
 0x3a5   :  { %v592_v50 = vadd.f32 %v591_v49, %v523_v48  ;;  %v894_v51 = vpop.f32.mrb[5].mxu1 }
 0x3a7   :  { %595 = vst [vmem:[#allocation2] sm:$0x3] %v592_v50 }
 0x3a8   :  { %1074 = shalt.err (!%p1071_p4)
}
 0x3a9   :  { %s1075_s28 = scalar_lea.hbm %s1426_s5, 32 }
 0x3aa   :  { %p1076_p5 = scmp.ne.s32.totalorder %s1426_s5, %s1075_s28  ;;  %p1079_p6 = scmp.lt.u32.totalorder %s1075_s28, %s1426_s5 }
 0x3ac   :  { %p1081_p7 = pnand %p1079_p6, %p1076_p5 }
 0x3ae   :  { %1084 = shalt.err (!%p1081_p7)
}
 0x3af   :  { %605 = dma.vmem_to_hbm [thread:$0]  %s603_s24, 32, %s1426_s5, [#allocation3]  }
 0x3b0   :  { %1085 = dma.done.wait [#allocation3], 32  }
 0x3b1   :  { %1086 = vsyncadd [#allocation3], 4294967264 }
 0x3b2   :  { %609 = vsyncpa [#allocation3], 1 }

// kernel: image_gcn_forward.2
= control target key start
LH: loop header
LB: loop body
LE: loop exit
PB: predicated region body
PF: predicated region fallthrough
CT: control target
= control target key end

     0   :  { %14 = vsyncpa [#allocation6], 0  ;;  %s8085_s0 = inlined_call_operand.hbm [shape: f32[2,128], index: 0, kind: input, shape index: {}]   ;;  %s8086_s1 = inlined_call_operand.hbm [shape: f32[128,128], index: 1, kind: input, shape index: {}]   ;;  %s8087_s2 = inlined_call_operand.vmem [shape: f32[16,1], index: 2, kind: input, shape index: {}]   ;;  %s8088_s3 = inlined_call_operand.vmem [shape: f32[64,32], index: 3, kind: input, shape index: {}]   ;;  %s8089_s4 = inlined_call_operand.vmem [shape: f32[64,2], index: 4, kind: input, shape index: {}]   ;;  %s8090_s5 = inlined_call_operand.hbm [shape: f32[1,128], index: 5, kind: input, shape index: {}]   ;;  %s8091_s6 = inlined_call_operand.hbm [shape: f32[1,4096], index: 6, kind: input, shape index: {}]   ;;  %s8092_s7 = inlined_call_operand.hbm [shape: f32[128,4096], index: 7, kind: input, shape index: {}]   ;;  %s8093_s8 = inlined_call_operand.hbm [shape: f32[128,4096], index: 8, kind: input, shape index: {}]   ;;  %s8094_s9 = inlined_call_operand.vmem [shape: f32[2,4096], index: 9, kind: output, shape index: {}]  }
   0x1   :  { %15 = vsyncpa [#allocation8], 0 }
   0x2   :  { %16 = vsyncpa [#allocation11], 0  ;;  %s7284_s30 = smov [#allocation7]   ;;  %s7142_s13 = scalar_lea.hbm %s8086_s1, 2048 }
   0x3   :  { %s32_s10 = sshll.u32 %s7284_s30, 4  ;;  %p7143_p0 = scmp.ne.s32.totalorder %s8086_s1, %s7142_s13  ;;  %s33_s10 = int_to_ptr.vmem [resolvable:$true] %s32_s10 }
   0x4   :  { %p7146_p1 = scmp.lt.u32.totalorder %s7142_s13, %s8086_s1 }
   0x6   :  { %p7148_p2 = pnand %p7146_p1, %p7143_p0 }
   0x8   :  { %7151 = shalt.err (!%p7148_p2)
}
   0x9   :  { %s7152_s18 = scalar_lea.vmem %s33_s10, 2048  ;;  %p7157_p4 = scmp.lt.s32.totalorder %s33_s10, %s33_s10 }
   0xa   :  { %p7153_p3 = scmp.ne.s32.totalorder %s33_s10, %s7152_s18  ;;  %p7158_p5 = scmp.lt.s32.totalorder %s7152_s18, %s7152_s18 }
   0xc   :  { %p7159_p6 = por %p7158_p5, %p7157_p4 }
   0xe   :  { %p7160_p7 = pnand %p7159_p6, %p7153_p3 }
  0x10   :  { %7163 = shalt.err (!%p7160_p7)
}
  0x11   :  { %s7285_s19 = smov 128   ;;  %s7286_s20 = smov 8  }
  0x12   :  { %38 = dma.hbm_to_vmem [thread:$0]  %s8086_s1, 2048, %s33_s10, [#allocation8], %s7285_s19, %s7285_s19, %s7286_s20  }
  0x13   :  { %s7287_s23 = smov [#allocation5]   ;;  %s7288_s25 = smov [#allocation9]  }
  0x14   :  { %s23_s24 = sshll.u32 %s7287_s23, 4  ;;  %s51_s26 = sshll.u32 %s7288_s25, 4  ;;  %s24_s24 = int_to_ptr.vmem [resolvable:$true] %s23_s24  ;;  %s52_s26 = int_to_ptr.vmem [resolvable:$true] %s51_s26 }
  0x15   :  { %s7164_s29 = scalar_lea.hbm %s8085_s0, 32 }
  0x16   :  { %p7165_p8 = scmp.ne.s32.totalorder %s8085_s0, %s7164_s29  ;;  %p7168_p9 = scmp.lt.u32.totalorder %s7164_s29, %s8085_s0 }
  0x18   :  { %p7170_p10 = pnand %p7168_p9, %p7165_p8 }
  0x1a   :  { %7173 = shalt.err (!%p7170_p10)
}
  0x1b   :  { %s7174_s1 = scalar_lea.vmem %s24_s24, 32  ;;  %p7179_p12 = scmp.lt.s32.totalorder %s24_s24, %s24_s24 }
  0x1c   :  { %p7175_p11 = scmp.ne.s32.totalorder %s24_s24, %s7174_s1  ;;  %p7180_p13 = scmp.lt.s32.totalorder %s7174_s1, %s7174_s1 }
  0x1e   :  { %p7181_p0 = por %p7180_p13, %p7179_p12 }
  0x20   :  { %p7182_p1 = pnand %p7181_p0, %p7175_p11 }
  0x22   :  { %7185 = shalt.err (!%p7182_p1)
}
  0x23   :  { %26 = dma.hbm_to_vmem [thread:$0]  %s8085_s0, 32, %s24_s24, [#allocation6]  }
  0x24   :  { %s7186_s17 = scalar_lea.hbm %s8090_s5, 16 }
  0x25   :  { %p7187_p2 = scmp.ne.s32.totalorder %s8090_s5, %s7186_s17  ;;  %p7190_p3 = scmp.lt.u32.totalorder %s7186_s17, %s8090_s5 }
  0x27   :  { %p7192_p4 = pnand %p7190_p3, %p7187_p2 }
  0x29   :  { %7195 = shalt.err (!%p7192_p4)
}
  0x2a   :  { %s7196_s22 = scalar_lea.vmem %s52_s26, 16  ;;  %s7200_s23 = scalar_lea.vmem %s52_s26, 32 }
  0x2b   :  { %p7197_p5 = scmp.ne.s32.totalorder %s52_s26, %s7196_s22  ;;  %p7201_p6 = scmp.lt.s32.totalorder %s52_s26, %s52_s26 }
  0x2c   :  { %p7202_p7 = scmp.lt.s32.totalorder %s7200_s23, %s7196_s22 }
  0x2e   :  { %p7203_p8 = por %p7202_p7, %p7201_p6 }
  0x30   :  { %p7204_p9 = pnand %p7203_p8, %p7197_p5 }
  0x32   :  { %7207 = shalt.err (!%p7204_p9)
}
  0x33   :  { %54 = dma.hbm_to_vmem [thread:$0]  %s8090_s5, 16, %s52_s26, [#allocation8]  }
  0x34   :  { %s7289_s25 = smov [#allocation10]   ;;  %s7208_s30 = scalar_lea.hbm %s8091_s6, 512 }
  0x35   :  { %s61_s27 = sshll.u32 %s7289_s25, 4  ;;  %p7209_p10 = scmp.ne.s32.totalorder %s8091_s6, %s7208_s30  ;;  %s62_s27 = int_to_ptr.vmem [resolvable:$true] %s61_s27 }
  0x36   :  { %p7212_p11 = scmp.lt.u32.totalorder %s7208_s30, %s8091_s6 }
  0x38   :  { %p7214_p12 = pnand %p7212_p11, %p7209_p10 }
  0x3a   :  { %7217 = shalt.err (!%p7214_p12)
}
  0x3b   :  { %s7218_s10 = scalar_lea.vmem %s62_s27, 512  ;;  %p7223_p0 = scmp.lt.s32.totalorder %s62_s27, %s62_s27 }
  0x3c   :  { %p7219_p13 = scmp.ne.s32.totalorder %s62_s27, %s7218_s10  ;;  %p7224_p1 = scmp.lt.s32.totalorder %s7218_s10, %s7218_s10 }
  0x3e   :  { %p7225_p2 = por %p7224_p1, %p7223_p0 }
  0x40   :  { %p7226_p3 = pnand %p7225_p2, %p7219_p13 }
  0x42   :  { %7229 = shalt.err (!%p7226_p3)
}
  0x43   :  { %64 = dma.hbm_to_vmem [thread:$0]  %s8091_s6, 512, %s62_s27, [#allocation11]  }
  0x44   :  { %7274 = dma.done.wait [#allocation6], 32  }
  0x45   :  { %7275 = vsyncadd [#allocation6], 4294967264 }
  0x46   :  { %7276 = dma.done.wait [#allocation8], 2064  }
  0x47   :  { %7277 = vsyncadd [#allocation8], 4294965232 }
  0x48   :  { %7278 = dma.done.wait [#allocation11], 512  }
  0x49   :  { %7279 = vsyncadd [#allocation11], 4294966784  ;;  %v7290_v0 = vmov 0.0|0.0   ;;  %vm7291_vm0 = vmmov 0   ;;  %v7292_v1 = vmov 0.0   ;;  %v7293_v2 = vmov 0  }
  0x4a   :  { %6035 = vmatprep.subr.bf16.mxu0 %v7290_v0  ;;  %5968 = vmatprep.mubr.msk.f32.mxu0 %vm7291_vm0, %v7292_v1  ;;  %v7398_v3 = vld [vmem:[#allocation9] sm:$0x1]  ;;  %v101_v5 = vld [vmem:[#allocation7 + $0x8] sm:$0xff]  ;;  %v102_v7 = vld [vmem:[#allocation7 + $0x10] sm:$0xff]  ;;  %vm264_vm1 = vcmask 261120   ;;  %v208_v36 = vlaneseq  ;;  %s7295_s22 = smov [#allocation2]  }
  0x4b   :  { %7138 = vset.pattern.permute.xlu0 %v7293_v2  ;;  %7139 = vset.pattern.permute.xlu1 %v7293_v2  ;;  %v100_v4 = vld [vmem:[#allocation7] sm:$0xff]  ;;  %v103_v8 = vld [vmem:[#allocation7 + $0x18] sm:$0xff]  ;;  %v105_v15 = vld [vmem:[#allocation7 + $0x28] sm:$0xff]  ;;  %s7296_s23 = smov [#allocation3]   ;;  %s7230_s25 = scalar_lea.hbm %s8092_s7, 65536 }
  0x4c   :  { %v7400_v6 = vpack.c.bf16 %v101_v5, %v100_v4  ;;  %v116_v9 = vld [vmem:[%s8087_s2] sm:$0xff]  ;;  %v7411_v11 = vpack.c.bf16 %v103_v8, %v102_v7  ;;  %v117_v12 = vld [vmem:[%s8087_s2 + $0x8] sm:$0xff]  ;;  %v7427_v16 = vld [vmem:[%s8089_s4 + $0x10] sm:$0xff]  ;;  %v7458_v39 = vshrl.u32 %v208_v36, 7  ;;  %s96_s2 = sshll.u32 %s7296_s23, 4  ;;  %p7231_p4 = scmp.ne.s32.totalorder %s8092_s7, %s7230_s25  ;;  %s97_s2 = int_to_ptr.vmem [resolvable:$true] %s96_s2 }
  0x4d   :  { %v7409_v10 = vld [vmem:[%s8089_s4] sm:$0xff]  ;;  %200 = vperm.xlu0 %7138, %v116_v9   ;;  %v7420_v13 = vld [vmem:[%s8089_s4 + $0x8] sm:$0xff]  ;;  %v7432_v17 = vld [vmem:[%s8089_s4 + $0x18] sm:$0xff]  ;;  %p7234_p5 = scmp.lt.u32.totalorder %s7230_s25, %s8092_s7 }
  0x4e   :  { %6037 = vmatpush3.bf16.xpose.msra.mxu0 %v7400_v6  ;;  %222 = vperm.xlu1 %7139, %v7409_v10   ;;  %v104_v14 = vld [vmem:[#allocation7 + $0x20] sm:$0xff]  ;;  %v106_v19 = vld [vmem:[#allocation7 + $0x30] sm:$0xff]  ;;  %v107_v20 = vld [vmem:[#allocation7 + $0x38] sm:$0xff]  ;;  %v7461_v40 = vsub.s32 0, %v7458_v39  ;;  %v7464_v41 = vsub.s32 1, %v7458_v39 }
  0x4f   :  { %6038 = vmatprep.subr.bf16.mxu0 %v7290_v0  ;;  %v7434_v18 = vpack.c.bf16 %v105_v15, %v104_v14  ;;  %v7439_v21 = vpack.c.bf16 %v107_v20, %v106_v19  ;;  %v108_v22 = vld [vmem:[#allocation7 + $0x40] sm:$0xff]  ;;  %v109_v23 = vld [vmem:[#allocation7 + $0x48] sm:$0xff]  ;;  %v110_v25 = vld [vmem:[#allocation7 + $0x50] sm:$0xff]  ;;  %p7236_p6 = pnand %p7234_p5, %p7231_p4 }
  0x50   :  { %v7442_v24 = vpack.c.bf16 %v109_v23, %v108_v22  ;;  %v111_v26 = vld [vmem:[#allocation7 + $0x58] sm:$0xff]  ;;  %v112_v28 = vld [vmem:[#allocation7 + $0x60] sm:$0xff]  ;;  %v113_v29 = vld [vmem:[#allocation7 + $0x68] sm:$0xff] }
  0x51   :  { %205 = vperm.xlu0 %7138, %v117_v12   ;;  %v7445_v27 = vpack.c.bf16 %v111_v26, %v110_v25  ;;  %v7448_v30 = vpack.c.bf16 %v113_v29, %v112_v28  ;;  %v114_v31 = vld [vmem:[#allocation7 + $0x70] sm:$0xff]  ;;  %v115_v32 = vld [vmem:[#allocation7 + $0x78] sm:$0xff]  ;;  %v257_v7 = vld [vmem:[%s8088_s3 + $0x8] sm:$0xff] }
  0x52   :  { %227 = vperm.xlu1 %7139, %v7420_v13   ;;  %v7451_v33 = vpack.c.bf16 %v115_v32, %v114_v31  ;;  %v127_v34 = vld [vmem:[#allocation5] sm:$0x3]  ;;  %v258_v8 = vld [vmem:[%s8088_s3 + $0x10] sm:$0xff]  ;;  %v259_v9 = vld [vmem:[%s8088_s3 + $0x18] sm:$0xff] }
  0x53   :  { %v256_v35 = vld [vmem:[%s8088_s3] sm:$0xff]  ;;  %v261_v14 = vld [vmem:[%s8088_s3 + $0x28] sm:$0xff]  ;;  %v262_v15 = vld [vmem:[%s8088_s3 + $0x30] sm:$0xff] }
  0x54   :  { %5979 = vmatprep.mubr.msk.f32.mxu1 %vm264_vm1, %v256_v35  ;;  %v260_v12 = vld [vmem:[%s8088_s3 + $0x20] sm:$0xff]  ;;  %v263_v19 = vld [vmem:[%s8088_s3 + $0x38] sm:$0xff] }
  0x55   :  { %232 = vperm.xlu0 %7138, %v7427_v16  }
  0x56   :  { %6040 = vmatpush3.bf16.xpose.msra.mxu0 %v7411_v11  ;;  %237 = vperm.xlu1 %7139, %v7432_v17  }
  0x57   :  { %6041 = vmatprep.subr.bf16.mxu0 %v7290_v0 }
  0x5e   :  { %6043 = vmatpush3.bf16.xpose.msra.mxu0 %v7434_v18 }
  0x5f   :  { %6044 = vmatprep.subr.bf16.mxu0 %v7290_v0 }
  0x66   :  { %6046 = vmatpush3.bf16.xpose.msra.mxu0 %v7439_v21 }
  0x67   :  { %6047 = vmatprep.subr.bf16.mxu0 %v7290_v0 }
  0x6e   :  { %6049 = vmatpush3.bf16.xpose.msra.mxu0 %v7442_v24 }
  0x6f   :  { %6050 = vmatprep.subr.bf16.mxu0 %v7290_v0 }
  0x76   :  { %6052 = vmatpush3.bf16.xpose.msra.mxu0 %v7445_v27 }
  0x77   :  { %6053 = vmatprep.subr.bf16.mxu0 %v7290_v0 }
  0x7e   :  { %6055 = vmatpush3.bf16.xpose.msra.mxu0 %v7448_v30 }
  0x7f   :  { %6056 = vmatprep.subr.bf16.mxu0 %v7290_v0 }
  0x86   :  { %6058 = vmatpush3.bf16.xpose.msra.mxu0 %v7451_v33 }
  0x8d   :  { %5969 = vmatmul.mubr.f32.vlgmr.msra.gmra.mrb[0].mxu0 %v127_v34 }
  0xcc   :  { %v201_v37 = vpop.permute.xlu0 %200 }
  0xcd   :  { %v223_v38 = vpop.permute.xlu1 %222 }
  0xd0   :  { %v206_v42 = vpop.permute.xlu0 %205 }
  0xd1   :  { %v228_v43 = vpop.permute.xlu1 %227 }
  0xd4   :  { %v233_v52 = vpop.permute.xlu0 %232 }
  0xd5   :  { %v238_v53 = vpop.permute.xlu1 %237 }
 0x160   :  { %v194_v44 = vpop.f32.mrb[0].mxu0 }
 0x161   :  { %v211_v45 = vrot.slane %v194_v44, %v7461_v40  ;;  %v217_v46 = vrot.slane %v194_v44, %v7464_v41  ;;  %v5970_v47 = vpop.f32.mrb[1].mxu0 }
 0x163   :  { %v212_v48 = vmul.f32 %v211_v45, %v201_v37  ;;  %v213_v49 = vmul.f32 %v211_v45, %v206_v42  ;;  %v218_v50 = vmul.f32 %v217_v46, %v201_v37  ;;  %v219_v51 = vmul.f32 %v217_v46, %v206_v42 }
 0x165   :  { %v240_v54 = vadd.f32 %v223_v38, %v212_v48  ;;  %v241_v55 = vadd.f32 %v228_v43, %v213_v49  ;;  %v242_v56 = vadd.f32 %v233_v52, %v218_v50  ;;  %v243_v57 = vadd.f32 %v238_v53, %v219_v51 }
 0x167   :  { %vm244_vm2 = vcmp.ge.f32.partialorder %v240_v54, 0.0  ;;  %vm245_vm3 = vcmp.ge.f32.partialorder %v241_v55, 0.0  ;;  %v248_v58 = vmul.f32 0.01, %v240_v54  ;;  %v249_v59 = vmul.f32 0.01, %v241_v55 }
 0x168   :  { %vm246_vm4 = vcmp.ge.f32.partialorder %v242_v56, 0.0  ;;  %vm247_vm5 = vcmp.ge.f32.partialorder %v243_v57, 0.0  ;;  %v250_v60 = vmul.f32 0.01, %v242_v56  ;;  %v251_v61 = vmul.f32 0.01, %v243_v57 }
 0x169   :  { %v252_v62 = vsel %vm244_vm2, %v240_v54, %v248_v58  ;;  %v253_v63 = vsel %vm245_vm3, %v241_v55, %v249_v59 }
 0x16a   :  { %v6059_v0 = vpack.c.bf16 %v253_v63, %v252_v62  ;;  %v254_v2 = vsel %vm246_vm4, %v242_v56, %v250_v60  ;;  %v255_v4 = vsel %vm247_vm5, %v243_v57, %v251_v61 }
 0x16b   :  { %v6063_v5 = vpack.c.bf16 %v255_v4, %v254_v2 }
 0x16c   :  { %6060 = vmatprep.subr.bf16.mxu1 %v6059_v0 }
 0x16d   :  { %6062 = vmatpush3.bf16.msra.mxu1 %v6059_v0 }
 0x16e   :  { %6064 = vmatprep.subr.bf16.mxu1 %v6063_v5 }
 0x171   :  { %6066 = vmatpush3.bf16.msra.mxu1 %v6063_v5 }
 0x172   :  { %6068 = vmatprep.subr.bf16.mxu1 %v7400_v6 }
 0x174   :  { %5980 = vmatmul.mubr.msk.f32.vlgmr.msra.gmra.mrb[0].mxu1 %vm264_vm1, %v257_v7 }
 0x175   :  { %5982 = vmatprep.mubr.msk.f32.mxu1 %vm264_vm1, %v258_v8 }
 0x178   :  { %5983 = vmatmul.mubr.msk.f32.gmra.mrb[2].mxu1 %vm264_vm1, %v259_v9 }
 0x179   :  { %5985 = vmatprep.mubr.msk.f32.mxu1 %vm264_vm1, %v260_v12 }
 0x17a   :  { %6070 = vmatpush3.bf16.xpose.msra.mxu1 %v7400_v6  ;;  %v7294_v6 = vmov 1  }
 0x17b   :  { %6072 = vmatprep.subr.bf16.mxu1 %v7411_v11  ;;  %7141 = vset.pattern.permute.xlu1 %v7294_v6 }
 0x17c   :  { %5986 = vmatmul.mubr.msk.f32.gmra.mrb[4].mxu1 %vm264_vm1, %v261_v14  ;;  %7140 = vset.pattern.permute.xlu0 %v7294_v6 }
 0x17d   :  { %5988 = vmatprep.mubr.msk.f32.mxu1 %vm264_vm1, %v262_v15  ;;  %399 = vperm.xlu1 %7141, %v7420_v13   ;;  %v124_v13 = vld [vmem:[%s8089_s4 + $0x30] sm:$0xff] }
 0x17e   :  { %395 = vperm.xlu0 %7140, %v7409_v10   ;;  %v125_v10 = vld [vmem:[%s8089_s4 + $0x38] sm:$0xff] }
 0x180   :  { %5989 = vmatmul.mubr.msk.f32.gmra.mrb[6].mxu1 %vm264_vm1, %v263_v19 }
 0x181   :  { %403 = vperm.xlu1 %7141, %v7427_v16  }
 0x182   :  { %6074 = vmatpush3.bf16.xpose.msra.mxu1 %v7411_v11  ;;  %407 = vperm.xlu0 %7140, %v7432_v17   ;;  %v122_v11 = vld [vmem:[%s8089_s4 + $0x20] sm:$0xff] }
 0x183   :  { %6076 = vmatprep.subr.bf16.mxu1 %v7434_v18 }
 0x185   :  { %412 = vperm.xlu1 %7141, %v122_v11  }
 0x189   :  { %422 = vperm.xlu1 %7141, %v124_v13  }
 0x18a   :  { %6078 = vmatpush3.bf16.xpose.msra.mxu1 %v7434_v18  ;;  %v123_v18 = vld [vmem:[%s8089_s4 + $0x28] sm:$0xff]  ;;  %s84_s4 = sshll.u32 %s7295_s22, 4  ;;  %s85_s4 = int_to_ptr.vmem [resolvable:$true] %s84_s4 }
 0x18b   :  { %6080 = vmatprep.subr.bf16.mxu1 %v7439_v21  ;;  %417 = vperm.xlu0 %7140, %v123_v18  }
 0x18f   :  { %427 = vperm.xlu0 %7140, %v125_v10  }
 0x192   :  { %6082 = vmatpush3.bf16.xpose.msra.mxu1 %v7439_v21 }
 0x193   :  { %6084 = vmatprep.subr.bf16.mxu1 %v7442_v24 }
 0x19a   :  { %6086 = vmatpush3.bf16.xpose.msra.mxu1 %v7442_v24 }
 0x19b   :  { %6088 = vmatprep.subr.bf16.mxu1 %v7445_v27 }
 0x1a2   :  { %6090 = vmatpush3.bf16.xpose.msra.mxu1 %v7445_v27 }
 0x1a3   :  { %6092 = vmatprep.subr.bf16.mxu1 %v7448_v30 }
 0x1aa   :  { %6094 = vmatpush3.bf16.xpose.msra.mxu1 %v7448_v30 }
 0x1ab   :  { %6096 = vmatprep.subr.bf16.mxu1 %v7451_v33 }
 0x1b2   :  { %6098 = vmatpush3.bf16.xpose.msra.mxu1 %v7451_v33 }
 0x247   :  { %v5981_v16 = vpop.f32.mrb[0].mxu1 }
 0x248   :  { %v355_v17 = vpop.f32.mrb[1].mxu1 }
 0x249   :  { %6023 = vmatprep.mubr.f32.mxu1 %v355_v17 }
 0x24a   :  { %6024 = vmatmul.mubr.f32.vlgmr.msra.gmra.mrb[8].mxu1 %v5981_v16 }
 0x24b   :  { %v5984_v20 = vpop.f32.mrb[2].mxu1 }
 0x24c   :  { %v365_v21 = vpop.f32.mrb[3].mxu1 }
 0x24d   :  { %6026 = vmatprep.mubr.f32.mxu1 %v365_v21 }
 0x24e   :  { %6027 = vmatmul.mubr.f32.gmra.mrb[10].mxu1 %v5984_v20 }
 0x24f   :  { %v5987_v22 = vpop.f32.mrb[4].mxu1 }
 0x250   :  { %v375_v23 = vpop.f32.mrb[5].mxu1 }
 0x251   :  { %6029 = vmatprep.mubr.f32.mxu1 %v375_v23 }
 0x252   :  { %6030 = vmatmul.mubr.f32.gmra.mrb[12].mxu1 %v5987_v22 }
 0x253   :  { %v5990_v24 = vpop.f32.mrb[6].mxu1 }
 0x254   :  { %v385_v25 = vpop.f32.mrb[7].mxu1 }
 0x255   :  { %6032 = vmatprep.mubr.f32.mxu1 %v385_v25 }
 0x256   :  { %6033 = vmatmul.mubr.f32.gmra.mrb[14].mxu1 %v5990_v24 }
 0x257   :  { %7239 = shalt.err (!%p7236_p6)  }
 0x258   :  { %s7240_s11 = scalar_lea.vmem %s85_s4, 65536  ;;  %p7245_p8 = scmp.lt.s32.totalorder %s85_s4, %s85_s4 }
 0x259   :  { %p7241_p7 = scmp.ne.s32.totalorder %s85_s4, %s7240_s11  ;;  %p7246_p9 = scmp.lt.s32.totalorder %s7240_s11, %s7240_s11 }
 0x25b   :  { %p7247_p10 = por %p7246_p9, %p7245_p8 }
 0x25d   :  { %p7248_p11 = pnand %p7247_p10, %p7241_p7 }
 0x25f   :  { %7251 = shalt.err (!%p7248_p11)  }
 0x260   :  { %87 = dma.hbm_to_vmem [thread:$0]  %s8092_s7, 65536, %s85_s4, [#allocation4] }
 0x261   :  { %s7252_s5 = scalar_lea.hbm %s8093_s8, 65536 }
 0x262   :  { %p7253_p12 = scmp.ne.s32.totalorder %s8093_s8, %s7252_s5  ;;  %p7256_p13 = scmp.lt.u32.totalorder %s7252_s5, %s8093_s8 }
 0x264   :  { %p7258_p0 = pnand %p7256_p13, %p7253_p12 }
 0x266   :  { %7261 = shalt.err (!%p7258_p0)  }
 0x267   :  { %s7262_s15 = scalar_lea.vmem %s97_s2, 65536  ;;  %p7267_p2 = scmp.lt.s32.totalorder %s97_s2, %s97_s2 }
 0x268   :  { %p7263_p1 = scmp.ne.s32.totalorder %s97_s2, %s7262_s15  ;;  %p7268_p3 = scmp.lt.s32.totalorder %s7262_s15, %s7262_s15 }
 0x26a   :  { %p7269_p4 = por %p7268_p3, %p7267_p2 }
 0x26c   :  { %p7270_p5 = pnand %p7269_p4, %p7263_p1 }
 0x26e   :  { %7273 = shalt.err (!%p7270_p5)  }
 0x26f   :  { %99 = dma.hbm_to_vmem [thread:$0]  %s8093_s8, 65536, %s97_s2, [#allocation4 + $0x1]  ;;  %v396_v26 = vpop.permute.xlu0 %395  ;;  %v400_v27 = vpop.permute.xlu1 %399 }
 0x273   :  { %v408_v28 = vpop.permute.xlu0 %407  ;;  %v404_v30 = vpop.permute.xlu1 %403 }
 0x277   :  { %v418_v43 = vpop.permute.xlu0 %417  ;;  %v413_v46 = vpop.permute.xlu1 %412 }
 0x27b   :  { %v428_v56 = vpop.permute.xlu0 %427  ;;  %v423_v59 = vpop.permute.xlu1 %422 }
 0x31d   :  { %v6025_v29 = vpop.f32.mrb[8].mxu1 }
 0x31e   :  { %v502_v31 = vadd.f32 %v6025_v29, %v400_v27  ;;  %v496_v32 = vpop.f32.mrb[9].mxu1 }
 0x31f   :  { %v497_v33 = vadd.f32 %v496_v32, %v396_v26 }
 0x320   :  { %vm536_vm6 = vcmp.ge.f32.partialorder %v502_v31, 0.0  ;;  %v544_v34 = vmul.f32 0.01, %v502_v31 }
 0x321   :  { %vm535_vm7 = vcmp.ge.f32.partialorder %v497_v33, 0.0  ;;  %v543_v35 = vmul.f32 0.01, %v497_v33  ;;  %v6028_v36 = vpop.f32.mrb[10].mxu1 }
 0x322   :  { %v7552_v37 = vsel %vm536_vm6, %v502_v31, %v544_v34  ;;  %v512_v38 = vadd.f32 %v6028_v36, %v408_v28  ;;  %v506_v42 = vpop.f32.mrb[11].mxu1 }
 0x323   :  { %v7554_v44 = vsel %vm535_vm7, %v497_v33, %v543_v35  ;;  %v507_v45 = vadd.f32 %v506_v42, %v404_v30 }
 0x324   :  { %vm538_vm8 = vcmp.ge.f32.partialorder %v512_v38, 0.0  ;;  %v546_v47 = vmul.f32 0.01, %v512_v38 }
 0x325   :  { %vm537_vm9 = vcmp.ge.f32.partialorder %v507_v45, 0.0  ;;  %v545_v48 = vmul.f32 0.01, %v507_v45  ;;  %v6031_v49 = vpop.f32.mrb[12].mxu1 }
 0x326   :  { %v7556_v50 = vsel %vm538_vm8, %v512_v38, %v546_v47  ;;  %v522_v51 = vadd.f32 %v6031_v49, %v418_v43  ;;  %v516_v52 = vpop.f32.mrb[13].mxu1 }
 0x327   :  { %v7558_v53 = vsel %vm537_vm9, %v507_v45, %v545_v48  ;;  %v517_v54 = vadd.f32 %v516_v52, %v413_v46 }
 0x328   :  { %vm540_vm10 = vcmp.ge.f32.partialorder %v522_v51, 0.0  ;;  %v548_v55 = vmul.f32 0.01, %v522_v51 }
 0x329   :  { %vm539_vm11 = vcmp.ge.f32.partialorder %v517_v54, 0.0  ;;  %v547_v57 = vmul.f32 0.01, %v517_v54  ;;  %v6034_v58 = vpop.f32.mrb[14].mxu1 }
 0x32a   :  { %v7560_v60 = vsel %vm540_vm10, %v522_v51, %v548_v55  ;;  %v532_v61 = vadd.f32 %v6034_v58, %v428_v56  ;;  %v526_v62 = vpop.f32.mrb[15].mxu1 }
 0x32b   :  { %v7562_v63 = vsel %vm539_vm11, %v517_v54, %v547_v57  ;;  %v527_v0 = vadd.f32 %v526_v62, %v423_v59 }
 0x32c   :  { %vm542_vm12 = vcmp.ge.f32.partialorder %v532_v61, 0.0  ;;  %v550_v2 = vmul.f32 0.01, %v532_v61 }
 0x32d   :  { %vm541_vm13 = vcmp.ge.f32.partialorder %v527_v0, 0.0  ;;  %v549_v4 = vmul.f32 0.01, %v527_v0 }
 0x32e   :  { %v7564_v5 = vsel %vm542_vm12, %v532_v61, %v550_v2 }
 0x32f   :  { %v7566_v7 = vsel %vm541_vm13, %v527_v0, %v549_v4 }
 0x330   :  { %7280 = dma.done.wait [#allocation4], 65536 }
 0x331   :  { %7281 = vsyncadd [#allocation4], 4294901760  ;;  %1139 = vmatprep.mubr.f32.mxu0 %v7292_v1  ;;  %1240 = vmatprep.mubr.f32.mxu1 %v7292_v1  ;;  %v564_v8 = vld [vmem:[#allocation2 + $0x8] sm:$0xff]  ;;  %v563_v12 = vld [vmem:[#allocation2] sm:$0xff]  ;;  %vm3753_vm14 = vcmask 1040384  }
 0x332   :  { %v596_v9 = vld [vmem:[#allocation2 + $0x108] sm:$0xff]  ;;  %v595_v15 = vld [vmem:[#allocation2 + $0x100] sm:$0xff]  ;;  %v566_v19 = vld [vmem:[#allocation2 + $0x18] sm:$0xff] }
 0x333   :  { %v6099_v14 = vpack.c.bf16 %v596_v9, %v564_v8  ;;  %v598_v6 = vld [vmem:[#allocation2 + $0x118] sm:$0xff]  ;;  %v6101_v11 = vpack.c.bf16 %v595_v15, %v563_v12  ;;  %v565_v13 = vld [vmem:[#allocation2 + $0x10] sm:$0xff]  ;;  %v628_v16 = vld [vmem:[#allocation2 + $0x208] sm:$0xff] }
 0x334   :  { %v6131_v18 = vpack.c.bf16 %v598_v6, %v566_v19  ;;  %v597_v10 = vld [vmem:[#allocation2 + $0x110] sm:$0xff]  ;;  %v660_v20 = vld [vmem:[#allocation2 + $0x308] sm:$0xff]  ;;  %v627_v21 = vld [vmem:[#allocation2 + $0x200] sm:$0xff] }
 0x335   :  { %6100 = vmatprep.subr.bf16.mxu0 %v6099_v14  ;;  %v6133_v17 = vpack.c.bf16 %v597_v10, %v565_v13  ;;  %v659_v22 = vld [vmem:[#allocation2 + $0x300] sm:$0xff]  ;;  %v6103_v23 = vpack.c.bf16 %v660_v20, %v628_v16  ;;  %v630_v25 = vld [vmem:[#allocation2 + $0x218] sm:$0xff]  ;;  %v629_v27 = vld [vmem:[#allocation2 + $0x210] sm:$0xff] }
 0x336   :  { %6102 = vmatpush1.bf16.msra.mxu0 %v6101_v11  ;;  %6132 = vmatprep.subr.bf16.mxu1 %v6131_v18  ;;  %v6105_v24 = vpack.c.bf16 %v659_v22, %v627_v21  ;;  %v662_v26 = vld [vmem:[#allocation2 + $0x318] sm:$0xff]  ;;  %v661_v29 = vld [vmem:[#allocation2 + $0x310] sm:$0xff]  ;;  %v692_v30 = vld [vmem:[#allocation2 + $0x408] sm:$0xff] }
 0x337   :  { %6134 = vmatpush1.bf16.msra.mxu1 %v6133_v17  ;;  %v6135_v28 = vpack.c.bf16 %v662_v26, %v630_v25  ;;  %v724_v31 = vld [vmem:[#allocation2 + $0x508] sm:$0xff]  ;;  %6104 = vmatprep.subr.bf16.mxu0 %v6103_v23  ;;  %v6137_v32 = vpack.c.bf16 %v661_v29, %v629_v27  ;;  %v691_v34 = vld [vmem:[#allocation2 + $0x400] sm:$0xff]  ;;  %v694_v36 = vld [vmem:[#allocation2 + $0x418] sm:$0xff] }
 0x338   :  { %v6107_v33 = vpack.c.bf16 %v724_v31, %v692_v30  ;;  %v723_v35 = vld [vmem:[#allocation2 + $0x500] sm:$0xff]  ;;  %v726_v38 = vld [vmem:[#allocation2 + $0x518] sm:$0xff]  ;;  %v693_v42 = vld [vmem:[#allocation2 + $0x410] sm:$0xff] }
 0x339   :  { %6136 = vmatprep.subr.bf16.mxu1 %v6135_v28  ;;  %v725_v43 = vld [vmem:[#allocation2 + $0x510] sm:$0xff]  ;;  %v6109_v45 = vpack.c.bf16 %v723_v35, %v691_v34  ;;  %v6139_v46 = vpack.c.bf16 %v726_v38, %v694_v36  ;;  %v756_v47 = vld [vmem:[#allocation2 + $0x608] sm:$0xff]  ;;  %v755_v49 = vld [vmem:[#allocation2 + $0x600] sm:$0xff] }
 0x33a   :  { %6106 = vmatpush1.bf16.msra.mxu0 %v6105_v24  ;;  %v788_v48 = vld [vmem:[#allocation2 + $0x708] sm:$0xff]  ;;  %v6141_v51 = vpack.c.bf16 %v725_v43, %v693_v42  ;;  %v787_v54 = vld [vmem:[#allocation2 + $0x700] sm:$0xff]  ;;  %v758_v55 = vld [vmem:[#allocation2 + $0x618] sm:$0xff] }
 0x33b   :  { %6138 = vmatpush1.bf16.msra.mxu1 %v6137_v32  ;;  %6108 = vmatprep.subr.bf16.mxu0 %v6107_v33  ;;  %v6111_v52 = vpack.c.bf16 %v788_v48, %v756_v47  ;;  %v790_v56 = vld [vmem:[#allocation2 + $0x718] sm:$0xff]  ;;  %v757_v58 = vld [vmem:[#allocation2 + $0x610] sm:$0xff]  ;;  %v820_v61 = vld [vmem:[#allocation2 + $0x808] sm:$0xff]  ;;  %v6113_v0 = vpack.c.bf16 %v787_v54, %v755_v49 }
 0x33c   :  { %6140 = vmatprep.subr.bf16.mxu1 %v6139_v46  ;;  %v6143_v57 = vpack.c.bf16 %v790_v56, %v758_v55  ;;  %v789_v59 = vld [vmem:[#allocation2 + $0x710] sm:$0xff]  ;;  %v852_v62 = vld [vmem:[#allocation2 + $0x908] sm:$0xff]  ;;  %v822_v2 = vld [vmem:[#allocation2 + $0x818] sm:$0xff] }
 0x33d   :  { %v854_v4 = vld [vmem:[#allocation2 + $0x918] sm:$0xff]  ;;  %v6145_v8 = vpack.c.bf16 %v789_v59, %v757_v58  ;;  %v6115_v9 = vpack.c.bf16 %v852_v62, %v820_v61  ;;  %v819_v12 = vld [vmem:[#allocation2 + $0x800] sm:$0xff]  ;;  %v821_v15 = vld [vmem:[#allocation2 + $0x810] sm:$0xff] }
 0x33e   :  { %6110 = vmatpush1.bf16.msra.mxu0 %v6109_v45  ;;  %v851_v14 = vld [vmem:[#allocation2 + $0x900] sm:$0xff]  ;;  %v6147_v19 = vpack.c.bf16 %v854_v4, %v822_v2  ;;  %v853_v6 = vld [vmem:[#allocation2 + $0x910] sm:$0xff]  ;;  %v884_v11 = vld [vmem:[#allocation2 + $0xa08] sm:$0xff] }
 0x33f   :  { %6142 = vmatpush1.bf16.msra.mxu1 %v6141_v51  ;;  %6112 = vmatprep.subr.bf16.mxu0 %v6111_v52  ;;  %v916_v18 = vld [vmem:[#allocation2 + $0xb08] sm:$0xff]  ;;  %v886_v13 = vld [vmem:[#allocation2 + $0xa18] sm:$0xff]  ;;  %v6117_v16 = vpack.c.bf16 %v851_v14, %v819_v12  ;;  %v6149_v17 = vpack.c.bf16 %v853_v6, %v821_v15  ;;  %v883_v21 = vld [vmem:[#allocation2 + $0xa00] sm:$0xff] }
 0x340   :  { %6144 = vmatprep.subr.bf16.mxu1 %v6143_v57  ;;  %v918_v10 = vld [vmem:[#allocation2 + $0xb18] sm:$0xff]  ;;  %v6119_v20 = vpack.c.bf16 %v916_v18, %v884_v11  ;;  %v915_v22 = vld [vmem:[#allocation2 + $0xb00] sm:$0xff]  ;;  %v885_v23 = vld [vmem:[#allocation2 + $0xa10] sm:$0xff] }
 0x341   :  { %v6151_v24 = vpack.c.bf16 %v918_v10, %v886_v13  ;;  %v917_v25 = vld [vmem:[#allocation2 + $0xb10] sm:$0xff]  ;;  %v948_v26 = vld [vmem:[#allocation2 + $0xc08] sm:$0xff]  ;;  %v950_v28 = vld [vmem:[#allocation2 + $0xc18] sm:$0xff]  ;;  %v6121_v30 = vpack.c.bf16 %v915_v22, %v883_v21 }
 0x342   :  { %6114 = vmatpush1.bf16.msra.mxu0 %v6113_v0  ;;  %v980_v27 = vld [vmem:[#allocation2 + $0xd08] sm:$0xff]  ;;  %v982_v29 = vld [vmem:[#allocation2 + $0xd18] sm:$0xff]  ;;  %v6153_v31 = vpack.c.bf16 %v917_v25, %v885_v23  ;;  %v947_v33 = vld [vmem:[#allocation2 + $0xc00] sm:$0xff] }
 0x343   :  { %6146 = vmatpush1.bf16.msra.mxu1 %v6145_v8  ;;  %6116 = vmatprep.subr.bf16.mxu0 %v6115_v9  ;;  %v6123_v32 = vpack.c.bf16 %v980_v27, %v948_v26  ;;  %v979_v34 = vld [vmem:[#allocation2 + $0xd00] sm:$0xff]  ;;  %v949_v35 = vld [vmem:[#allocation2 + $0xc10] sm:$0xff]  ;;  %v6155_v36 = vpack.c.bf16 %v982_v29, %v950_v28  ;;  %v1012_v42 = vld [vmem:[#allocation2 + $0xe08] sm:$0xff] }
 0x344   :  { %6148 = vmatprep.subr.bf16.mxu1 %v6147_v19  ;;  %v981_v38 = vld [vmem:[#allocation2 + $0xd10] sm:$0xff]  ;;  %v1044_v43 = vld [vmem:[#allocation2 + $0xf08] sm:$0xff]  ;;  %v1014_v45 = vld [vmem:[#allocation2 + $0xe18] sm:$0xff]  ;;  %v6125_v47 = vpack.c.bf16 %v979_v34, %v947_v33 }
 0x345   :  { %v1046_v46 = vld [vmem:[#allocation2 + $0xf18] sm:$0xff]  ;;  %v6157_v48 = vpack.c.bf16 %v981_v38, %v949_v35  ;;  %v6127_v49 = vpack.c.bf16 %v1044_v43, %v1012_v42  ;;  %v1011_v51 = vld [vmem:[#allocation2 + $0xe00] sm:$0xff]  ;;  %v1013_v54 = vld [vmem:[#allocation2 + $0xe10] sm:$0xff] }
 0x346   :  { %6118 = vmatpush1.bf16.msra.mxu0 %v6117_v16  ;;  %v1043_v52 = vld [vmem:[#allocation2 + $0xf00] sm:$0xff]  ;;  %v6159_v55 = vpack.c.bf16 %v1046_v46, %v1014_v45  ;;  %v1045_v56 = vld [vmem:[#allocation2 + $0xf10] sm:$0xff]  ;;  %v568_v57 = vld [vmem:[#allocation2 + $0x28] sm:$0xff] }
 0x347   :  { %6150 = vmatpush1.bf16.msra.mxu1 %v6149_v17  ;;  %6120 = vmatprep.subr.bf16.mxu0 %v6119_v20  ;;  %v600_v58 = vld [vmem:[#allocation2 + $0x128] sm:$0xff]  ;;  %v570_v59 = vld [vmem:[#allocation2 + $0x38] sm:$0xff]  ;;  %v6129_v62 = vpack.c.bf16 %v1043_v52, %v1011_v51  ;;  %v6161_v0 = vpack.c.bf16 %v1045_v56, %v1013_v54  ;;  %v567_v4 = vld [vmem:[#allocation2 + $0x20] sm:$0xff] }
 0x348   :  { %6152 = vmatprep.subr.bf16.mxu1 %v6151_v24  ;;  %v602_v61 = vld [vmem:[#allocation2 + $0x138] sm:$0xff]  ;;  %v6163_v2 = vpack.c.bf16 %v600_v58, %v568_v57  ;;  %v599_v8 = vld [vmem:[#allocation2 + $0x120] sm:$0xff]  ;;  %v569_v12 = vld [vmem:[#allocation2 + $0x30] sm:$0xff] }
 0x349   :  { %v6195_v9 = vpack.c.bf16 %v602_v61, %v570_v59  ;;  %v601_v14 = vld [vmem:[#allocation2 + $0x130] sm:$0xff]  ;;  %v632_v15 = vld [vmem:[#allocation2 + $0x228] sm:$0xff]  ;;  %v6165_v6 = vpack.c.bf16 %v599_v8, %v567_v4  ;;  %v634_v11 = vld [vmem:[#allocation2 + $0x238] sm:$0xff] }
 0x34a   :  { %6122 = vmatpush1.bf16.msra.mxu0 %v6121_v30  ;;  %v664_v19 = vld [vmem:[#allocation2 + $0x328] sm:$0xff]  ;;  %v666_v18 = vld [vmem:[#allocation2 + $0x338] sm:$0xff]  ;;  %v6197_v13 = vpack.c.bf16 %v601_v14, %v569_v12  ;;  %v631_v10 = vld [vmem:[#allocation2 + $0x220] sm:$0xff] }
 0x34b   :  { %6154 = vmatpush1.bf16.msra.mxu1 %v6153_v31  ;;  %6124 = vmatprep.subr.bf16.mxu0 %v6123_v32  ;;  %v663_v16 = vld [vmem:[#allocation2 + $0x320] sm:$0xff]  ;;  %v6167_v17 = vpack.c.bf16 %v664_v19, %v632_v15  ;;  %v633_v20 = vld [vmem:[#allocation2 + $0x230] sm:$0xff]  ;;  %v6199_v22 = vpack.c.bf16 %v666_v18, %v634_v11  ;;  %v696_v23 = vld [vmem:[#allocation2 + $0x428] sm:$0xff] }
 0x34c   :  { %6156 = vmatprep.subr.bf16.mxu1 %v6155_v36  ;;  %v665_v21 = vld [vmem:[#allocation2 + $0x330] sm:$0xff]  ;;  %v728_v24 = vld [vmem:[#allocation2 + $0x528] sm:$0xff]  ;;  %v6169_v25 = vpack.c.bf16 %v663_v16, %v631_v10  ;;  %v698_v26 = vld [vmem:[#allocation2 + $0x438] sm:$0xff] }
 0x34d   :  { %v730_v27 = vld [vmem:[#allocation2 + $0x538] sm:$0xff]  ;;  %v6201_v28 = vpack.c.bf16 %v665_v21, %v633_v20  ;;  %v695_v29 = vld [vmem:[#allocation2 + $0x420] sm:$0xff]  ;;  %v6171_v31 = vpack.c.bf16 %v728_v24, %v696_v23  ;;  %v697_v32 = vld [vmem:[#allocation2 + $0x430] sm:$0xff] }
 0x34e   :  { %6126 = vmatpush1.bf16.msra.mxu0 %v6125_v47  ;;  %v727_v30 = vld [vmem:[#allocation2 + $0x520] sm:$0xff]  ;;  %v729_v33 = vld [vmem:[#allocation2 + $0x530] sm:$0xff]  ;;  %v6203_v34 = vpack.c.bf16 %v730_v27, %v698_v26  ;;  %v760_v35 = vld [vmem:[#allocation2 + $0x628] sm:$0xff] }
 0x34f   :  { %6158 = vmatpush1.bf16.msra.mxu1 %v6157_v48  ;;  %6128 = vmatprep.subr.bf16.mxu0 %v6127_v49  ;;  %v792_v36 = vld [vmem:[#allocation2 + $0x728] sm:$0xff]  ;;  %v6173_v38 = vpack.c.bf16 %v727_v30, %v695_v29  ;;  %v762_v42 = vld [vmem:[#allocation2 + $0x638] sm:$0xff]  ;;  %v6205_v45 = vpack.c.bf16 %v729_v33, %v697_v32  ;;  %v759_v46 = vld [vmem:[#allocation2 + $0x620] sm:$0xff] }
 0x350   :  { %6160 = vmatprep.subr.bf16.mxu1 %v6159_v55  ;;  %v794_v43 = vld [vmem:[#allocation2 + $0x738] sm:$0xff]  ;;  %v791_v47 = vld [vmem:[#allocation2 + $0x720] sm:$0xff]  ;;  %v6175_v48 = vpack.c.bf16 %v792_v36, %v760_v35  ;;  %v761_v49 = vld [vmem:[#allocation2 + $0x630] sm:$0xff] }
 0x351   :  { %v793_v51 = vld [vmem:[#allocation2 + $0x730] sm:$0xff]  ;;  %v6207_v52 = vpack.c.bf16 %v794_v43, %v762_v42  ;;  %v824_v54 = vld [vmem:[#allocation2 + $0x828] sm:$0xff]  ;;  %v6177_v56 = vpack.c.bf16 %v791_v47, %v759_v46  ;;  %v826_v57 = vld [vmem:[#allocation2 + $0x838] sm:$0xff] }
 0x352   :  { %6130 = vmatpush1.bf16.msra.mxu0 %v6129_v62  ;;  %v856_v55 = vld [vmem:[#allocation2 + $0x928] sm:$0xff]  ;;  %v858_v58 = vld [vmem:[#allocation2 + $0x938] sm:$0xff]  ;;  %v6209_v59 = vpack.c.bf16 %v793_v51, %v761_v49  ;;  %v823_v61 = vld [vmem:[#allocation2 + $0x820] sm:$0xff] }
 0x353   :  { %6162 = vmatpush1.bf16.msra.mxu1 %v6161_v0  ;;  %6164 = vmatprep.subr.bf16.mxu0 %v6163_v2  ;;  %v855_v62 = vld [vmem:[#allocation2 + $0x920] sm:$0xff]  ;;  %v6179_v0 = vpack.c.bf16 %v856_v55, %v824_v54  ;;  %v825_v2 = vld [vmem:[#allocation2 + $0x830] sm:$0xff]  ;;  %v6211_v8 = vpack.c.bf16 %v858_v58, %v826_v57  ;;  %v920_v12 = vld [vmem:[#allocation2 + $0xb28] sm:$0xff] }
 0x354   :  { %6196 = vmatprep.subr.bf16.mxu1 %v6195_v9  ;;  %v857_v4 = vld [vmem:[#allocation2 + $0x930] sm:$0xff]  ;;  %v888_v9 = vld [vmem:[#allocation2 + $0xa28] sm:$0xff]  ;;  %v6181_v14 = vpack.c.bf16 %v855_v62, %v823_v61  ;;  %v890_v15 = vld [vmem:[#allocation2 + $0xa38] sm:$0xff] }
 0x355   :  { %1140 = vmatmul.mubr.f32.vlgmr.msra.gmra.mrb[2].mxu0 %v7554_v44  ;;  %v922_v19 = vld [vmem:[#allocation2 + $0xb38] sm:$0xff]  ;;  %v887_v11 = vld [vmem:[#allocation2 + $0xa20] sm:$0xff]  ;;  %v889_v10 = vld [vmem:[#allocation2 + $0xa30] sm:$0xff] }
 0x356   :  { %6166 = vmatpush1.bf16.msra.mxu0 %v6165_v6  ;;  %1241 = vmatmul.mubr.f32.vlgmr.msra.gmra.mrb[16].mxu1 %v7554_v44  ;;  %v6213_v6 = vpack.c.bf16 %v857_v4, %v825_v2  ;;  %v919_v18 = vld [vmem:[#allocation2 + $0xb20] sm:$0xff]  ;;  %v921_v16 = vld [vmem:[#allocation2 + $0xb30] sm:$0xff]  ;;  %v952_v20 = vld [vmem:[#allocation2 + $0xc28] sm:$0xff] }
 0x357   :  { %1145 = vmatprep.mubr.f32.mxu0 %v7292_v1  ;;  %6198 = vmatpush1.bf16.msra.mxu1 %v6197_v13  ;;  %v6183_v13 = vpack.c.bf16 %v920_v12, %v888_v9  ;;  %v984_v21 = vld [vmem:[#allocation2 + $0xd28] sm:$0xff]  ;;  %v954_v23 = vld [vmem:[#allocation2 + $0xc38] sm:$0xff]  ;;  %v951_v26 = vld [vmem:[#allocation2 + $0xc20] sm:$0xff] }
 0x358   :  { %6168 = vmatprep.subr.bf16.mxu0 %v6167_v17  ;;  %1246 = vmatprep.mubr.f32.mxu1 %v7292_v1  ;;  %v6215_v17 = vpack.c.bf16 %v922_v19, %v890_v15  ;;  %v986_v24 = vld [vmem:[#allocation2 + $0xd38] sm:$0xff]  ;;  %v983_v27 = vld [vmem:[#allocation2 + $0xd20] sm:$0xff]  ;;  %v953_v29 = vld [vmem:[#allocation2 + $0xc30] sm:$0xff] }
 0x359   :  { %1146 = vmatmul.mubr.f32.gmra.mrb[4].mxu0 %v7552_v37  ;;  %6200 = vmatprep.subr.bf16.mxu1 %v6199_v22  ;;  %v6185_v22 = vpack.c.bf16 %v919_v18, %v887_v11  ;;  %v985_v30 = vld [vmem:[#allocation2 + $0xd30] sm:$0xff]  ;;  %v1016_v32 = vld [vmem:[#allocation2 + $0xe28] sm:$0xff]  ;;  %v1018_v35 = vld [vmem:[#allocation2 + $0xe38] sm:$0xff] }
 0x35a   :  { %6170 = vmatpush1.bf16.msra.mxu0 %v6169_v25  ;;  %1247 = vmatmul.mubr.f32.gmra.mrb[18].mxu1 %v7552_v37  ;;  %v6217_v25 = vpack.c.bf16 %v921_v16, %v889_v10  ;;  %v1048_v33 = vld [vmem:[#allocation2 + $0xf28] sm:$0xff]  ;;  %v1050_v36 = vld [vmem:[#allocation2 + $0xf38] sm:$0xff]  ;;  %v1015_v42 = vld [vmem:[#allocation2 + $0xe20] sm:$0xff] }
 0x35b   :  { %1149 = vmatprep.mubr.f32.mxu0 %v7292_v1  ;;  %6202 = vmatpush1.bf16.msra.mxu1 %v6201_v28  ;;  %v6187_v28 = vpack.c.bf16 %v984_v21, %v952_v20  ;;  %v1047_v43 = vld [vmem:[#allocation2 + $0xf20] sm:$0xff]  ;;  %v1017_v46 = vld [vmem:[#allocation2 + $0xe30] sm:$0xff]  ;;  %v572_v49 = vld [vmem:[#allocation2 + $0x48] sm:$0xff] }
 0x35c   :  { %6172 = vmatprep.subr.bf16.mxu0 %v6171_v31  ;;  %1250 = vmatprep.mubr.f32.mxu1 %v7292_v1  ;;  %v6219_v31 = vpack.c.bf16 %v986_v24, %v954_v23  ;;  %v1049_v47 = vld [vmem:[#allocation2 + $0xf30] sm:$0xff]  ;;  %v604_v51 = vld [vmem:[#allocation2 + $0x148] sm:$0xff]  ;;  %v574_v54 = vld [vmem:[#allocation2 + $0x58] sm:$0xff] }
 0x35d   :  { %1150 = vmatmul.mubr.f32.gmra.mrb[6].mxu0 %v7558_v53  ;;  %6204 = vmatprep.subr.bf16.mxu1 %v6203_v34  ;;  %v6189_v34 = vpack.c.bf16 %v983_v27, %v951_v26  ;;  %v606_v55 = vld [vmem:[#allocation2 + $0x158] sm:$0xff]  ;;  %v571_v57 = vld [vmem:[#allocation2 + $0x40] sm:$0xff]  ;;  %v573_v61 = vld [vmem:[#allocation2 + $0x50] sm:$0xff] }
 0x35e   :  { %6174 = vmatpush1.bf16.msra.mxu0 %v6173_v38  ;;  %1251 = vmatmul.mubr.f32.gmra.mrb[20].mxu1 %v7558_v53  ;;  %v6221_v38 = vpack.c.bf16 %v985_v30, %v953_v29  ;;  %v603_v58 = vld [vmem:[#allocation2 + $0x140] sm:$0xff]  ;;  %v605_v62 = vld [vmem:[#allocation2 + $0x150] sm:$0xff]  ;;  %v636_v2 = vld [vmem:[#allocation2 + $0x248] sm:$0xff] }
 0x35f   :  { %1153 = vmatprep.mubr.f32.mxu0 %v7292_v1  ;;  %6206 = vmatpush1.bf16.msra.mxu1 %v6205_v45  ;;  %v6191_v45 = vpack.c.bf16 %v1048_v33, %v1016_v32  ;;  %v668_v4 = vld [vmem:[#allocation2 + $0x348] sm:$0xff]  ;;  %v638_v9 = vld [vmem:[#allocation2 + $0x258] sm:$0xff]  ;;  %v635_v15 = vld [vmem:[#allocation2 + $0x240] sm:$0xff] }
 0x360   :  { %6176 = vmatprep.subr.bf16.mxu0 %v6175_v48  ;;  %1254 = vmatprep.mubr.f32.mxu1 %v7292_v1  ;;  %v6223_v48 = vpack.c.bf16 %v1050_v36, %v1018_v35  ;;  %v670_v12 = vld [vmem:[#allocation2 + $0x358] sm:$0xff]  ;;  %v667_v19 = vld [vmem:[#allocation2 + $0x340] sm:$0xff]  ;;  %v637_v11 = vld [vmem:[#allocation2 + $0x250] sm:$0xff] }
 0x361   :  { %1154 = vmatmul.mubr.f32.gmra.mrb[8].mxu0 %v7556_v50  ;;  %6208 = vmatprep.subr.bf16.mxu1 %v6207_v52  ;;  %v6193_v52 = vpack.c.bf16 %v1047_v43, %v1015_v42  ;;  %v669_v18 = vld [vmem:[#allocation2 + $0x350] sm:$0xff]  ;;  %v700_v10 = vld [vmem:[#allocation2 + $0x448] sm:$0xff]  ;;  %v702_v20 = vld [vmem:[#allocation2 + $0x458] sm:$0xff] }
 0x362   :  { %6178 = vmatpush1.bf16.msra.mxu0 %v6177_v56  ;;  %1255 = vmatmul.mubr.f32.gmra.mrb[22].mxu1 %v7556_v50  ;;  %v6225_v56 = vpack.c.bf16 %v1049_v47, %v1017_v46  ;;  %v732_v16 = vld [vmem:[#allocation2 + $0x548] sm:$0xff]  ;;  %v734_v21 = vld [vmem:[#allocation2 + $0x558] sm:$0xff]  ;;  %v699_v23 = vld [vmem:[#allocation2 + $0x440] sm:$0xff] }
 0x363   :  { %1157 = vmatprep.mubr.f32.mxu0 %v7292_v1  ;;  %6210 = vmatpush1.bf16.msra.mxu1 %v6209_v59  ;;  %v6227_v59 = vpack.c.bf16 %v604_v51, %v572_v49  ;;  %v731_v24 = vld [vmem:[#allocation2 + $0x540] sm:$0xff]  ;;  %v701_v26 = vld [vmem:[#allocation2 + $0x450] sm:$0xff]  ;;  %v764_v29 = vld [vmem:[#allocation2 + $0x648] sm:$0xff] }
 0x364   :  { %6180 = vmatprep.subr.bf16.mxu0 %v6179_v0  ;;  %1258 = vmatprep.mubr.f32.mxu1 %v7292_v1  ;;  %v6259_v0 = vpack.c.bf16 %v606_v55, %v574_v54  ;;  %v733_v27 = vld [vmem:[#allocation2 + $0x550] sm:$0xff]  ;;  %v796_v30 = vld [vmem:[#allocation2 + $0x748] sm:$0xff]  ;;  %v766_v32 = vld [vmem:[#allocation2 + $0x658] sm:$0xff] }
 0x365   :  { %1158 = vmatmul.mubr.f32.gmra.mrb[10].mxu0 %v7562_v63  ;;  %6212 = vmatprep.subr.bf16.mxu1 %v6211_v8  ;;  %v6229_v8 = vpack.c.bf16 %v603_v58, %v571_v57  ;;  %v798_v33 = vld [vmem:[#allocation2 + $0x758] sm:$0xff]  ;;  %v763_v35 = vld [vmem:[#allocation2 + $0x640] sm:$0xff]  ;;  %v765_v42 = vld [vmem:[#allocation2 + $0x650] sm:$0xff] }
 0x366   :  { %6182 = vmatpush1.bf16.msra.mxu0 %v6181_v14  ;;  %1259 = vmatmul.mubr.f32.gmra.mrb[24].mxu1 %v7562_v63  ;;  %v6261_v14 = vpack.c.bf16 %v605_v62, %v573_v61  ;;  %v795_v36 = vld [vmem:[#allocation2 + $0x740] sm:$0xff]  ;;  %v797_v43 = vld [vmem:[#allocation2 + $0x750] sm:$0xff]  ;;  %v828_v46 = vld [vmem:[#allocation2 + $0x848] sm:$0xff] }
 0x367   :  { %1163 = vmatprep.mubr.f32.mxu0 %v7292_v1  ;;  %6214 = vmatpush1.bf16.msra.mxu1 %v6213_v6  ;;  %v6231_v6 = vpack.c.bf16 %v668_v4, %v636_v2  ;;  %v860_v47 = vld [vmem:[#allocation2 + $0x948] sm:$0xff]  ;;  %v830_v49 = vld [vmem:[#allocation2 + $0x858] sm:$0xff]  ;;  %v827_v54 = vld [vmem:[#allocation2 + $0x840] sm:$0xff] }
 0x368   :  { %6184 = vmatprep.subr.bf16.mxu0 %v6183_v13  ;;  %1264 = vmatprep.mubr.f32.mxu1 %v7292_v1  ;;  %v6263_v13 = vpack.c.bf16 %v670_v12, %v638_v9  ;;  %v862_v51 = vld [vmem:[#allocation2 + $0x958] sm:$0xff]  ;;  %v859_v55 = vld [vmem:[#allocation2 + $0x940] sm:$0xff]  ;;  %v829_v57 = vld [vmem:[#allocation2 + $0x850] sm:$0xff] }
 0x369   :  { %1164 = vmatmul.mubr.f32.gmra.mrb[12].mxu0 %v7560_v60  ;;  %6216 = vmatprep.subr.bf16.mxu1 %v6215_v17  ;;  %v6233_v17 = vpack.c.bf16 %v667_v19, %v635_v15  ;;  %v861_v58 = vld [vmem:[#allocation2 + $0x950] sm:$0xff]  ;;  %v892_v61 = vld [vmem:[#allocation2 + $0xa48] sm:$0xff]  ;;  %v894_v2 = vld [vmem:[#allocation2 + $0xa58] sm:$0xff] }
 0x36a   :  { %6186 = vmatpush1.bf16.msra.mxu0 %v6185_v22  ;;  %1265 = vmatmul.mubr.f32.gmra.mrb[26].mxu1 %v7560_v60  ;;  %v6265_v22 = vpack.c.bf16 %v669_v18, %v637_v11  ;;  %v924_v62 = vld [vmem:[#allocation2 + $0xb48] sm:$0xff]  ;;  %v926_v4 = vld [vmem:[#allocation2 + $0xb58] sm:$0xff]  ;;  %v891_v9 = vld [vmem:[#allocation2 + $0xa40] sm:$0xff] }
 0x36b   :  { %1167 = vmatprep.mubr.f32.mxu0 %v7292_v1  ;;  %6218 = vmatpush1.bf16.msra.mxu1 %v6217_v25  ;;  %v6235_v25 = vpack.c.bf16 %v732_v16, %v700_v10  ;;  %v923_v12 = vld [vmem:[#allocation2 + $0xb40] sm:$0xff]  ;;  %v893_v15 = vld [vmem:[#allocation2 + $0xa50] sm:$0xff]  ;;  %v956_v11 = vld [vmem:[#allocation2 + $0xc48] sm:$0xff] }
 0x36c   :  { %6188 = vmatprep.subr.bf16.mxu0 %v6187_v28  ;;  %1268 = vmatprep.mubr.f32.mxu1 %v7292_v1  ;;  %v6267_v28 = vpack.c.bf16 %v734_v21, %v702_v20  ;;  %v925_v19 = vld [vmem:[#allocation2 + $0xb50] sm:$0xff]  ;;  %v988_v18 = vld [vmem:[#allocation2 + $0xd48] sm:$0xff]  ;;  %v958_v10 = vld [vmem:[#allocation2 + $0xc58] sm:$0xff] }
 0x36d   :  { %1168 = vmatmul.mubr.f32.gmra.mrb[14].mxu0 %v7566_v7  ;;  %6220 = vmatprep.subr.bf16.mxu1 %v6219_v31  ;;  %v6237_v31 = vpack.c.bf16 %v731_v24, %v699_v23  ;;  %v990_v16 = vld [vmem:[#allocation2 + $0xd58] sm:$0xff]  ;;  %v955_v20 = vld [vmem:[#allocation2 + $0xc40] sm:$0xff]  ;;  %v957_v23 = vld [vmem:[#allocation2 + $0xc50] sm:$0xff] }
 0x36e   :  { %6190 = vmatpush1.bf16.msra.mxu0 %v6189_v34  ;;  %1269 = vmatmul.mubr.f32.gmra.mrb[28].mxu1 %v7566_v7  ;;  %v6269_v34 = vpack.c.bf16 %v733_v27, %v701_v26  ;;  %v987_v21 = vld [vmem:[#allocation2 + $0xd40] sm:$0xff]  ;;  %v989_v24 = vld [vmem:[#allocation2 + $0xd50] sm:$0xff]  ;;  %v1020_v26 = vld [vmem:[#allocation2 + $0xe48] sm:$0xff] }
 0x36f   :  { %1171 = vmatprep.mubr.f32.mxu0 %v7292_v1  ;;  %6222 = vmatpush1.bf16.msra.mxu1 %v6221_v38  ;;  %v6239_v38 = vpack.c.bf16 %v796_v30, %v764_v29  ;;  %v1052_v27 = vld [vmem:[#allocation2 + $0xf48] sm:$0xff]  ;;  %v1022_v29 = vld [vmem:[#allocation2 + $0xe58] sm:$0xff] }
 0x370   :  { %6192 = vmatprep.subr.bf16.mxu0 %v6191_v45  ;;  %1272 = vmatprep.mubr.f32.mxu1 %v7292_v1  ;;  %v6271_v45 = vpack.c.bf16 %v798_v33, %v766_v32  ;;  %v1054_v30 = vld [vmem:[#allocation2 + $0xf58] sm:$0xff]  ;;  %v1019_v32 = vld [vmem:[#allocation2 + $0xe40] sm:$0xff] }
 0x371   :  { %1172 = vmatmul.mubr.f32.gmra.mrb[16].mxu0 %v7564_v5  ;;  %6224 = vmatprep.subr.bf16.mxu1 %v6223_v48  ;;  %v6241_v48 = vpack.c.bf16 %v795_v36, %v763_v35  ;;  %v1051_v33 = vld [vmem:[#allocation2 + $0xf40] sm:$0xff]  ;;  %v1021_v35 = vld [vmem:[#allocation2 + $0xe50] sm:$0xff] }
 0x372   :  { %6194 = vmatpush1.bf16.msra.mxu0 %v6193_v52  ;;  %1273 = vmatmul.mubr.f32.gmra.mrb[30].mxu1 %v7564_v5  ;;  %v6273_v52 = vpack.c.bf16 %v797_v43, %v765_v42  ;;  %v1053_v36 = vld [vmem:[#allocation2 + $0xf50] sm:$0xff]  ;;  %v576_v42 = vld [vmem:[#allocation2 + $0x68] sm:$0xff] }
 0x373   :  { %1341 = vmatprep.mubr.f32.mxu0 %v7292_v1  ;;  %6226 = vmatpush1.bf16.msra.mxu1 %v6225_v56  ;;  %v6243_v56 = vpack.c.bf16 %v860_v47, %v828_v46  ;;  %v608_v43 = vld [vmem:[#allocation2 + $0x168] sm:$0xff]  ;;  %v578_v46 = vld [vmem:[#allocation2 + $0x78] sm:$0xff] }
 0x374   :  { %6228 = vmatprep.subr.bf16.mxu0 %v6227_v59  ;;  %1442 = vmatprep.mubr.f32.mxu1 %v7292_v1  ;;  %v6275_v59 = vpack.c.bf16 %v862_v51, %v830_v49  ;;  %v610_v47 = vld [vmem:[#allocation2 + $0x178] sm:$0xff]  ;;  %v575_v49 = vld [vmem:[#allocation2 + $0x60] sm:$0xff] }
 0x375   :  { %1342 = vmatmul.mubr.f32.vlgmr.msra.gmra.mrb[18].mxu0 %v7554_v44  ;;  %6260 = vmatprep.subr.bf16.mxu1 %v6259_v0  ;;  %v6245_v0 = vpack.c.bf16 %v859_v55, %v827_v54  ;;  %v607_v51 = vld [vmem:[#allocation2 + $0x160] sm:$0xff]  ;;  %v577_v54 = vld [vmem:[#allocation2 + $0x70] sm:$0xff] }
 0x376   :  { %6230 = vmatpush1.bf16.msra.mxu0 %v6229_v8  ;;  %1443 = vmatmul.mubr.f32.vlgmr.msra.gmra.mrb[32].mxu1 %v7554_v44  ;;  %v6277_v8 = vpack.c.bf16 %v861_v58, %v829_v57  ;;  %v609_v55 = vld [vmem:[#allocation2 + $0x170] sm:$0xff]  ;;  %v640_v57 = vld [vmem:[#allocation2 + $0x268] sm:$0xff] }
 0x377   :  { %1347 = vmatprep.mubr.f32.mxu0 %v7292_v1  ;;  %6262 = vmatpush1.bf16.msra.mxu1 %v6261_v14  ;;  %v6247_v14 = vpack.c.bf16 %v924_v62, %v892_v61  ;;  %v672_v58 = vld [vmem:[#allocation2 + $0x368] sm:$0xff]  ;;  %v642_v61 = vld [vmem:[#allocation2 + $0x278] sm:$0xff] }
 0x378   :  { %6232 = vmatprep.subr.bf16.mxu0 %v6231_v6  ;;  %1448 = vmatprep.mubr.f32.mxu1 %v7292_v1  ;;  %v6279_v6 = vpack.c.bf16 %v926_v4, %v894_v2  ;;  %v674_v62 = vld [vmem:[#allocation2 + $0x378] sm:$0xff]  ;;  %v639_v2 = vld [vmem:[#allocation2 + $0x260] sm:$0xff] }
 0x379   :  { %1348 = vmatmul.mubr.f32.gmra.mrb[20].mxu0 %v7552_v37  ;;  %6264 = vmatprep.subr.bf16.mxu1 %v6263_v13  ;;  %v6249_v13 = vpack.c.bf16 %v923_v12, %v891_v9  ;;  %v671_v4 = vld [vmem:[#allocation2 + $0x360] sm:$0xff]  ;;  %v641_v9 = vld [vmem:[#allocation2 + $0x270] sm:$0xff] }
 0x37a   :  { %6234 = vmatpush1.bf16.msra.mxu0 %v6233_v17  ;;  %1449 = vmatmul.mubr.f32.gmra.mrb[34].mxu1 %v7552_v37  ;;  %v6281_v17 = vpack.c.bf16 %v925_v19, %v893_v15  ;;  %v673_v12 = vld [vmem:[#allocation2 + $0x370] sm:$0xff]  ;;  %v704_v15 = vld [vmem:[#allocation2 + $0x468] sm:$0xff] }
 0x37b   :  { %1351 = vmatprep.mubr.f32.mxu0 %v7292_v1  ;;  %6266 = vmatpush1.bf16.msra.mxu1 %v6265_v22  ;;  %v6251_v22 = vpack.c.bf16 %v988_v18, %v956_v11  ;;  %v736_v19 = vld [vmem:[#allocation2 + $0x568] sm:$0xff]  ;;  %v706_v11 = vld [vmem:[#allocation2 + $0x478] sm:$0xff] }
 0x37c   :  { %6236 = vmatprep.subr.bf16.mxu0 %v6235_v25  ;;  %1452 = vmatprep.mubr.f32.mxu1 %v7292_v1  ;;  %v6283_v25 = vpack.c.bf16 %v990_v16, %v958_v10  ;;  %v738_v18 = vld [vmem:[#allocation2 + $0x578] sm:$0xff]  ;;  %v703_v10 = vld [vmem:[#allocation2 + $0x460] sm:$0xff] }
 0x37d   :  { %1352 = vmatmul.mubr.f32.gmra.mrb[22].mxu0 %v7558_v53  ;;  %6268 = vmatprep.subr.bf16.mxu1 %v6267_v28  ;;  %v6253_v28 = vpack.c.bf16 %v987_v21, %v955_v20  ;;  %v735_v16 = vld [vmem:[#allocation2 + $0x560] sm:$0xff]  ;;  %v705_v20 = vld [vmem:[#allocation2 + $0x470] sm:$0xff] }
 0x37e   :  { %6238 = vmatpush1.bf16.msra.mxu0 %v6237_v31  ;;  %1453 = vmatmul.mubr.f32.gmra.mrb[36].mxu1 %v7558_v53  ;;  %v6285_v31 = vpack.c.bf16 %v989_v24, %v957_v23  ;;  %v737_v21 = vld [vmem:[#allocation2 + $0x570] sm:$0xff]  ;;  %v768_v23 = vld [vmem:[#allocation2 + $0x668] sm:$0xff] }
 0x37f   :  { %1355 = vmatprep.mubr.f32.mxu0 %v7292_v1  ;;  %6270 = vmatpush1.bf16.msra.mxu1 %v6269_v34  ;;  %v6255_v34 = vpack.c.bf16 %v1052_v27, %v1020_v26  ;;  %v800_v24 = vld [vmem:[#allocation2 + $0x768] sm:$0xff]  ;;  %v770_v26 = vld [vmem:[#allocation2 + $0x678] sm:$0xff] }
 0x380   :  { %6240 = vmatprep.subr.bf16.mxu0 %v6239_v38  ;;  %1456 = vmatprep.mubr.f32.mxu1 %v7292_v1  ;;  %v6287_v38 = vpack.c.bf16 %v1054_v30, %v1022_v29  ;;  %v802_v27 = vld [vmem:[#allocation2 + $0x778] sm:$0xff]  ;;  %v767_v29 = vld [vmem:[#allocation2 + $0x660] sm:$0xff] }
 0x381   :  { %1356 = vmatmul.mubr.f32.gmra.mrb[24].mxu0 %v7556_v50  ;;  %6272 = vmatprep.subr.bf16.mxu1 %v6271_v45  ;;  %v6257_v45 = vpack.c.bf16 %v1051_v33, %v1019_v32  ;;  %v799_v30 = vld [vmem:[#allocation2 + $0x760] sm:$0xff]  ;;  %v769_v32 = vld [vmem:[#allocation2 + $0x670] sm:$0xff] }
 0x382   :  { %6242 = vmatpush1.bf16.msra.mxu0 %v6241_v48  ;;  %1457 = vmatmul.mubr.f32.gmra.mrb[38].mxu1 %v7556_v50  ;;  %v6289_v48 = vpack.c.bf16 %v1053_v36, %v1021_v35  ;;  %v801_v33 = vld [vmem:[#allocation2 + $0x770] sm:$0xff]  ;;  %v832_v35 = vld [vmem:[#allocation2 + $0x868] sm:$0xff] }
 0x383   :  { %1359 = vmatprep.mubr.f32.mxu0 %v7292_v1  ;;  %6274 = vmatpush1.bf16.msra.mxu1 %v6273_v52  ;;  %v6291_v52 = vpack.c.bf16 %v608_v43, %v576_v42  ;;  %v864_v36 = vld [vmem:[#allocation2 + $0x968] sm:$0xff]  ;;  %v834_v42 = vld [vmem:[#allocation2 + $0x878] sm:$0xff] }
 0x384   :  { %6244 = vmatprep.subr.bf16.mxu0 %v6243_v56  ;;  %1460 = vmatprep.mubr.f32.mxu1 %v7292_v1  ;;  %v6323_v56 = vpack.c.bf16 %v610_v47, %v578_v46  ;;  %v866_v43 = vld [vmem:[#allocation2 + $0x978] sm:$0xff]  ;;  %v831_v46 = vld [vmem:[#allocation2 + $0x860] sm:$0xff] }
 0x385   :  { %1360 = vmatmul.mubr.f32.gmra.mrb[26].mxu0 %v7562_v63  ;;  %6276 = vmatprep.subr.bf16.mxu1 %v6275_v59  ;;  %v6293_v59 = vpack.c.bf16 %v607_v51, %v575_v49  ;;  %v863_v47 = vld [vmem:[#allocation2 + $0x960] sm:$0xff]  ;;  %v833_v49 = vld [vmem:[#allocation2 + $0x870] sm:$0xff] }
 0x386   :  { %6246 = vmatpush1.bf16.msra.mxu0 %v6245_v0  ;;  %1461 = vmatmul.mubr.f32.gmra.mrb[40].mxu1 %v7562_v63  ;;  %v6325_v0 = vpack.c.bf16 %v609_v55, %v577_v54  ;;  %v865_v51 = vld [vmem:[#allocation2 + $0x970] sm:$0xff]  ;;  %v896_v54 = vld [vmem:[#allocation2 + $0xa68] sm:$0xff] }
 0x387   :  { %1365 = vmatprep.mubr.f32.mxu0 %v7292_v1  ;;  %6278 = vmatpush1.bf16.msra.mxu1 %v6277_v8  ;;  %v6295_v8 = vpack.c.bf16 %v672_v58, %v640_v57  ;;  %v928_v55 = vld [vmem:[#allocation2 + $0xb68] sm:$0xff]  ;;  %v898_v57 = vld [vmem:[#allocation2 + $0xa78] sm:$0xff] }
 0x388   :  { %6248 = vmatprep.subr.bf16.mxu0 %v6247_v14  ;;  %1466 = vmatprep.mubr.f32.mxu1 %v7292_v1  ;;  %v6327_v14 = vpack.c.bf16 %v674_v62, %v642_v61  ;;  %v930_v58 = vld [vmem:[#allocation2 + $0xb78] sm:$0xff]  ;;  %v895_v61 = vld [vmem:[#allocation2 + $0xa60] sm:$0xff] }
 0x389   :  { %1366 = vmatmul.mubr.f32.gmra.mrb[28].mxu0 %v7560_v60  ;;  %6280 = vmatprep.subr.bf16.mxu1 %v6279_v6  ;;  %v6297_v6 = vpack.c.bf16 %v671_v4, %v639_v2  ;;  %v927_v62 = vld [vmem:[#allocation2 + $0xb60] sm:$0xff]  ;;  %v897_v2 = vld [vmem:[#allocation2 + $0xa70] sm:$0xff] }
 0x38a   :  { %6250 = vmatpush1.bf16.msra.mxu0 %v6249_v13  ;;  %1467 = vmatmul.mubr.f32.gmra.mrb[42].mxu1 %v7560_v60  ;;  %v6329_v13 = vpack.c.bf16 %v673_v12, %v641_v9  ;;  %v929_v4 = vld [vmem:[#allocation2 + $0xb70] sm:$0xff]  ;;  %v960_v9 = vld [vmem:[#allocation2 + $0xc68] sm:$0xff] }
 0x38b   :  { %1369 = vmatprep.mubr.f32.mxu0 %v7292_v1  ;;  %6282 = vmatpush1.bf16.msra.mxu1 %v6281_v17  ;;  %v6299_v17 = vpack.c.bf16 %v736_v19, %v704_v15  ;;  %v992_v12 = vld [vmem:[#allocation2 + $0xd68] sm:$0xff]  ;;  %v962_v15 = vld [vmem:[#allocation2 + $0xc78] sm:$0xff] }
 0x38c   :  { %6252 = vmatprep.subr.bf16.mxu0 %v6251_v22  ;;  %1470 = vmatprep.mubr.f32.mxu1 %v7292_v1  ;;  %v6331_v22 = vpack.c.bf16 %v738_v18, %v706_v11  ;;  %v994_v19 = vld [vmem:[#allocation2 + $0xd78] sm:$0xff]  ;;  %v959_v11 = vld [vmem:[#allocation2 + $0xc60] sm:$0xff] }
 0x38d   :  { %1370 = vmatmul.mubr.f32.gmra.mrb[30].mxu0 %v7566_v7  ;;  %6284 = vmatprep.subr.bf16.mxu1 %v6283_v25  ;;  %v6301_v25 = vpack.c.bf16 %v735_v16, %v703_v10  ;;  %v991_v18 = vld [vmem:[#allocation2 + $0xd60] sm:$0xff]  ;;  %v961_v10 = vld [vmem:[#allocation2 + $0xc70] sm:$0xff] }
 0x38e   :  { %6254 = vmatpush1.bf16.msra.mxu0 %v6253_v28  ;;  %1471 = vmatmul.mubr.f32.gmra.mrb[44].mxu1 %v7566_v7  ;;  %v6333_v28 = vpack.c.bf16 %v737_v21, %v705_v20  ;;  %v993_v16 = vld [vmem:[#allocation2 + $0xd70] sm:$0xff]  ;;  %v1024_v20 = vld [vmem:[#allocation2 + $0xe68] sm:$0xff] }
 0x38f   :  { %1373 = vmatprep.mubr.f32.mxu0 %v7292_v1  ;;  %6286 = vmatpush1.bf16.msra.mxu1 %v6285_v31  ;;  %v6303_v31 = vpack.c.bf16 %v800_v24, %v768_v23  ;;  %v1056_v21 = vld [vmem:[#allocation2 + $0xf68] sm:$0xff]  ;;  %v1026_v23 = vld [vmem:[#allocation2 + $0xe78] sm:$0xff] }
 0x390   :  { %6256 = vmatprep.subr.bf16.mxu0 %v6255_v34  ;;  %1474 = vmatprep.mubr.f32.mxu1 %v7292_v1  ;;  %v6335_v34 = vpack.c.bf16 %v802_v27, %v770_v26  ;;  %v1058_v24 = vld [vmem:[#allocation2 + $0xf78] sm:$0xff]  ;;  %v1023_v26 = vld [vmem:[#allocation2 + $0xe60] sm:$0xff] }
 0x391   :  { %1374 = vmatmul.mubr.f32.gmra.mrb[32].mxu0 %v7564_v5  ;;  %6288 = vmatprep.subr.bf16.mxu1 %v6287_v38  ;;  %v6305_v38 = vpack.c.bf16 %v799_v30, %v767_v29  ;;  %v1055_v27 = vld [vmem:[#allocation2 + $0xf60] sm:$0xff]  ;;  %v1025_v29 = vld [vmem:[#allocation2 + $0xe70] sm:$0xff] }
 0x392   :  { %6258 = vmatpush1.bf16.msra.mxu0 %v6257_v45  ;;  %1475 = vmatmul.mubr.f32.gmra.mrb[46].mxu1 %v7564_v5  ;;  %v6337_v45 = vpack.c.bf16 %v801_v33, %v769_v32  ;;  %v1057_v30 = vld [vmem:[#allocation2 + $0xf70] sm:$0xff]  ;;  %v580_v32 = vld [vmem:[#allocation2 + $0x88] sm:$0xff] }
 0x393   :  { %1543 = vmatprep.mubr.f32.mxu0 %v7292_v1  ;;  %6290 = vmatpush1.bf16.msra.mxu1 %v6289_v48  ;;  %v6307_v48 = vpack.c.bf16 %v864_v36, %v832_v35  ;;  %v612_v33 = vld [vmem:[#allocation2 + $0x188] sm:$0xff]  ;;  %v582_v35 = vld [vmem:[#allocation2 + $0x98] sm:$0xff] }
 0x394   :  { %6292 = vmatprep.subr.bf16.mxu0 %v6291_v52  ;;  %1644 = vmatprep.mubr.f32.mxu1 %v7292_v1  ;;  %v6339_v52 = vpack.c.bf16 %v866_v43, %v834_v42  ;;  %v614_v36 = vld [vmem:[#allocation2 + $0x198] sm:$0xff]  ;;  %v579_v42 = vld [vmem:[#allocation2 + $0x80] sm:$0xff] }
 0x395   :  { %1544 = vmatmul.mubr.f32.vlgmr.msra.gmra.mrb[34].mxu0 %v7554_v44  ;;  %6324 = vmatprep.subr.bf16.mxu1 %v6323_v56  ;;  %v6309_v56 = vpack.c.bf16 %v863_v47, %v831_v46  ;;  %v611_v43 = vld [vmem:[#allocation2 + $0x180] sm:$0xff]  ;;  %v581_v46 = vld [vmem:[#allocation2 + $0x90] sm:$0xff] }
 0x396   :  { %6294 = vmatpush1.bf16.msra.mxu0 %v6293_v59  ;;  %1645 = vmatmul.mubr.f32.vlgmr.msra.gmra.mrb[48].mxu1 %v7554_v44  ;;  %v6341_v59 = vpack.c.bf16 %v865_v51, %v833_v49  ;;  %v613_v47 = vld [vmem:[#allocation2 + $0x190] sm:$0xff]  ;;  %v644_v49 = vld [vmem:[#allocation2 + $0x288] sm:$0xff] }
 0x397   :  { %1547 = vmatprep.mubr.f32.mxu0 %v7292_v1  ;;  %6326 = vmatpush1.bf16.msra.mxu1 %v6325_v0  ;;  %v6311_v0 = vpack.c.bf16 %v928_v55, %v896_v54  ;;  %v676_v51 = vld [vmem:[#allocation2 + $0x388] sm:$0xff]  ;;  %v646_v54 = vld [vmem:[#allocation2 + $0x298] sm:$0xff] }
 0x398   :  { %6296 = vmatprep.subr.bf16.mxu0 %v6295_v8  ;;  %1648 = vmatprep.mubr.f32.mxu1 %v7292_v1  ;;  %v6343_v8 = vpack.c.bf16 %v930_v58, %v898_v57  ;;  %v678_v55 = vld [vmem:[#allocation2 + $0x398] sm:$0xff]  ;;  %v643_v57 = vld [vmem:[#allocation2 + $0x280] sm:$0xff] }
 0x399   :  { %1548 = vmatmul.mubr.f32.gmra.mrb[36].mxu0 %v7552_v37  ;;  %6328 = vmatprep.subr.bf16.mxu1 %v6327_v14  ;;  %v6313_v14 = vpack.c.bf16 %v927_v62, %v895_v61  ;;  %v675_v58 = vld [vmem:[#allocation2 + $0x380] sm:$0xff]  ;;  %v645_v61 = vld [vmem:[#allocation2 + $0x290] sm:$0xff] }
 0x39a   :  { %6298 = vmatpush1.bf16.msra.mxu0 %v6297_v6  ;;  %1649 = vmatmul.mubr.f32.gmra.mrb[50].mxu1 %v7552_v37  ;;  %v6345_v6 = vpack.c.bf16 %v929_v4, %v897_v2  ;;  %v677_v62 = vld [vmem:[#allocation2 + $0x390] sm:$0xff]  ;;  %v708_v2 = vld [vmem:[#allocation2 + $0x488] sm:$0xff] }
 0x39b   :  { %1553 = vmatprep.mubr.f32.mxu0 %v7292_v1  ;;  %6330 = vmatpush1.bf16.msra.mxu1 %v6329_v13  ;;  %v6315_v13 = vpack.c.bf16 %v992_v12, %v960_v9  ;;  %v740_v4 = vld [vmem:[#allocation2 + $0x588] sm:$0xff]  ;;  %v710_v9 = vld [vmem:[#allocation2 + $0x498] sm:$0xff] }
 0x39c   :  { %6300 = vmatprep.subr.bf16.mxu0 %v6299_v17  ;;  %1654 = vmatprep.mubr.f32.mxu1 %v7292_v1  ;;  %v6347_v17 = vpack.c.bf16 %v994_v19, %v962_v15  ;;  %v742_v12 = vld [vmem:[#allocation2 + $0x598] sm:$0xff]  ;;  %v707_v15 = vld [vmem:[#allocation2 + $0x480] sm:$0xff] }
 0x39d   :  { %1554 = vmatmul.mubr.f32.gmra.mrb[38].mxu0 %v7558_v53  ;;  %6332 = vmatprep.subr.bf16.mxu1 %v6331_v22  ;;  %v6317_v22 = vpack.c.bf16 %v991_v18, %v959_v11  ;;  %v739_v19 = vld [vmem:[#allocation2 + $0x580] sm:$0xff]  ;;  %v709_v11 = vld [vmem:[#allocation2 + $0x490] sm:$0xff] }
 0x39e   :  { %6302 = vmatpush1.bf16.msra.mxu0 %v6301_v25  ;;  %1655 = vmatmul.mubr.f32.gmra.mrb[52].mxu1 %v7558_v53  ;;  %v6349_v25 = vpack.c.bf16 %v993_v16, %v961_v10  ;;  %v741_v18 = vld [vmem:[#allocation2 + $0x590] sm:$0xff]  ;;  %v772_v10 = vld [vmem:[#allocation2 + $0x688] sm:$0xff] }
 0x39f   :  { %1557 = vmatprep.mubr.f32.mxu0 %v7292_v1  ;;  %6334 = vmatpush1.bf16.msra.mxu1 %v6333_v28  ;;  %v6319_v28 = vpack.c.bf16 %v1056_v21, %v1024_v20  ;;  %v804_v16 = vld [vmem:[#allocation2 + $0x788] sm:$0xff]  ;;  %v774_v20 = vld [vmem:[#allocation2 + $0x698] sm:$0xff] }
 0x3a0   :  { %6304 = vmatprep.subr.bf16.mxu0 %v6303_v31  ;;  %1658 = vmatprep.mubr.f32.mxu1 %v7292_v1  ;;  %v6351_v31 = vpack.c.bf16 %v1058_v24, %v1026_v23  ;;  %v806_v21 = vld [vmem:[#allocation2 + $0x798] sm:$0xff]  ;;  %v771_v23 = vld [vmem:[#allocation2 + $0x680] sm:$0xff] }
 0x3a1   :  { %1558 = vmatmul.mubr.f32.gmra.mrb[40].mxu0 %v7556_v50  ;;  %6336 = vmatprep.subr.bf16.mxu1 %v6335_v34  ;;  %v6321_v34 = vpack.c.bf16 %v1055_v27, %v1023_v26  ;;  %v803_v24 = vld [vmem:[#allocation2 + $0x780] sm:$0xff]  ;;  %v773_v26 = vld [vmem:[#allocation2 + $0x690] sm:$0xff] }
 0x3a2   :  { %6306 = vmatpush1.bf16.msra.mxu0 %v6305_v38  ;;  %1659 = vmatmul.mubr.f32.gmra.mrb[54].mxu1 %v7556_v50  ;;  %v6353_v38 = vpack.c.bf16 %v1057_v30, %v1025_v29  ;;  %v805_v27 = vld [vmem:[#allocation2 + $0x790] sm:$0xff]  ;;  %v836_v29 = vld [vmem:[#allocation2 + $0x888] sm:$0xff] }
 0x3a3   :  { %1561 = vmatprep.mubr.f32.mxu0 %v7292_v1  ;;  %6338 = vmatpush1.bf16.msra.mxu1 %v6337_v45  ;;  %v6355_v45 = vpack.c.bf16 %v612_v33, %v580_v32  ;;  %v868_v30 = vld [vmem:[#allocation2 + $0x988] sm:$0xff]  ;;  %v838_v32 = vld [vmem:[#allocation2 + $0x898] sm:$0xff] }
 0x3a4   :  { %6308 = vmatprep.subr.bf16.mxu0 %v6307_v48  ;;  %1662 = vmatprep.mubr.f32.mxu1 %v7292_v1  ;;  %v6387_v48 = vpack.c.bf16 %v614_v36, %v582_v35  ;;  %v870_v33 = vld [vmem:[#allocation2 + $0x998] sm:$0xff]  ;;  %v835_v35 = vld [vmem:[#allocation2 + $0x880] sm:$0xff] }
 0x3a5   :  { %1562 = vmatmul.mubr.f32.gmra.mrb[42].mxu0 %v7562_v63  ;;  %6340 = vmatprep.subr.bf16.mxu1 %v6339_v52  ;;  %v6357_v52 = vpack.c.bf16 %v611_v43, %v579_v42  ;;  %v867_v36 = vld [vmem:[#allocation2 + $0x980] sm:$0xff]  ;;  %v837_v42 = vld [vmem:[#allocation2 + $0x890] sm:$0xff] }
 0x3a6   :  { %6310 = vmatpush1.bf16.msra.mxu0 %v6309_v56  ;;  %1663 = vmatmul.mubr.f32.gmra.mrb[56].mxu1 %v7562_v63  ;;  %v6389_v56 = vpack.c.bf16 %v613_v47, %v581_v46  ;;  %v869_v43 = vld [vmem:[#allocation2 + $0x990] sm:$0xff]  ;;  %v900_v46 = vld [vmem:[#allocation2 + $0xa88] sm:$0xff] }
 0x3a7   :  { %1565 = vmatprep.mubr.f32.mxu0 %v7292_v1  ;;  %6342 = vmatpush1.bf16.msra.mxu1 %v6341_v59  ;;  %v6359_v59 = vpack.c.bf16 %v676_v51, %v644_v49  ;;  %v932_v47 = vld [vmem:[#allocation2 + $0xb88] sm:$0xff]  ;;  %v902_v49 = vld [vmem:[#allocation2 + $0xa98] sm:$0xff] }
 0x3a8   :  { %6312 = vmatprep.subr.bf16.mxu0 %v6311_v0  ;;  %1666 = vmatprep.mubr.f32.mxu1 %v7292_v1  ;;  %v6391_v0 = vpack.c.bf16 %v678_v55, %v646_v54  ;;  %v934_v51 = vld [vmem:[#allocation2 + $0xb98] sm:$0xff]  ;;  %v899_v54 = vld [vmem:[#allocation2 + $0xa80] sm:$0xff] }
 0x3a9   :  { %1566 = vmatmul.mubr.f32.gmra.mrb[44].mxu0 %v7560_v60  ;;  %6344 = vmatprep.subr.bf16.mxu1 %v6343_v8  ;;  %v6361_v8 = vpack.c.bf16 %v675_v58, %v643_v57  ;;  %v931_v55 = vld [vmem:[#allocation2 + $0xb80] sm:$0xff]  ;;  %v901_v57 = vld [vmem:[#allocation2 + $0xa90] sm:$0xff] }
 0x3aa   :  { %6314 = vmatpush1.bf16.msra.mxu0 %v6313_v14  ;;  %1667 = vmatmul.mubr.f32.gmra.mrb[58].mxu1 %v7560_v60  ;;  %v6393_v14 = vpack.c.bf16 %v677_v62, %v645_v61  ;;  %v933_v58 = vld [vmem:[#allocation2 + $0xb90] sm:$0xff]  ;;  %v964_v61 = vld [vmem:[#allocation2 + $0xc88] sm:$0xff] }
 0x3ab   :  { %1571 = vmatprep.mubr.f32.mxu0 %v7292_v1  ;;  %6346 = vmatpush1.bf16.msra.mxu1 %v6345_v6  ;;  %v6363_v6 = vpack.c.bf16 %v740_v4, %v708_v2  ;;  %v996_v62 = vld [vmem:[#allocation2 + $0xd88] sm:$0xff]  ;;  %v966_v2 = vld [vmem:[#allocation2 + $0xc98] sm:$0xff] }
 0x3ac   :  { %6316 = vmatprep.subr.bf16.mxu0 %v6315_v13  ;;  %1672 = vmatprep.mubr.f32.mxu1 %v7292_v1  ;;  %v6395_v13 = vpack.c.bf16 %v742_v12, %v710_v9  ;;  %v998_v4 = vld [vmem:[#allocation2 + $0xd98] sm:$0xff]  ;;  %v963_v9 = vld [vmem:[#allocation2 + $0xc80] sm:$0xff] }
 0x3ad   :  { %1572 = vmatmul.mubr.f32.gmra.mrb[46].mxu0 %v7566_v7  ;;  %6348 = vmatprep.subr.bf16.mxu1 %v6347_v17  ;;  %v6365_v17 = vpack.c.bf16 %v739_v19, %v707_v15  ;;  %v995_v12 = vld [vmem:[#allocation2 + $0xd80] sm:$0xff]  ;;  %v965_v15 = vld [vmem:[#allocation2 + $0xc90] sm:$0xff] }
 0x3ae   :  { %6318 = vmatpush1.bf16.msra.mxu0 %v6317_v22  ;;  %1673 = vmatmul.mubr.f32.gmra.mrb[60].mxu1 %v7566_v7  ;;  %v6397_v22 = vpack.c.bf16 %v741_v18, %v709_v11  ;;  %v997_v19 = vld [vmem:[#allocation2 + $0xd90] sm:$0xff]  ;;  %v1028_v11 = vld [vmem:[#allocation2 + $0xe88] sm:$0xff] }
 0x3af   :  { %1575 = vmatprep.mubr.f32.mxu0 %v7292_v1  ;;  %6350 = vmatpush1.bf16.msra.mxu1 %v6349_v25  ;;  %v6367_v25 = vpack.c.bf16 %v804_v16, %v772_v10  ;;  %v1060_v18 = vld [vmem:[#allocation2 + $0xf88] sm:$0xff]  ;;  %v1030_v10 = vld [vmem:[#allocation2 + $0xe98] sm:$0xff] }
 0x3b0   :  { %6320 = vmatprep.subr.bf16.mxu0 %v6319_v28  ;;  %1676 = vmatprep.mubr.f32.mxu1 %v7292_v1  ;;  %v6399_v28 = vpack.c.bf16 %v806_v21, %v774_v20  ;;  %v1062_v16 = vld [vmem:[#allocation2 + $0xf98] sm:$0xff]  ;;  %v1027_v20 = vld [vmem:[#allocation2 + $0xe80] sm:$0xff] }
 0x3b1   :  { %1576 = vmatmul.mubr.f32.gmra.mrb[48].mxu0 %v7564_v5  ;;  %6352 = vmatprep.subr.bf16.mxu1 %v6351_v31  ;;  %v6369_v31 = vpack.c.bf16 %v803_v24, %v771_v23  ;;  %v1059_v21 = vld [vmem:[#allocation2 + $0xf80] sm:$0xff]  ;;  %v1029_v23 = vld [vmem:[#allocation2 + $0xe90] sm:$0xff] }
 0x3b2   :  { %6322 = vmatpush1.bf16.msra.mxu0 %v6321_v34  ;;  %1677 = vmatmul.mubr.f32.gmra.mrb[62].mxu1 %v7564_v5  ;;  %v6401_v34 = vpack.c.bf16 %v805_v27, %v773_v26  ;;  %v1061_v24 = vld [vmem:[#allocation2 + $0xf90] sm:$0xff]  ;;  %v584_v26 = vld [vmem:[#allocation2 + $0xa8] sm:$0xff] }
 0x3b3   :  { %1745 = vmatprep.mubr.f32.mxu0 %v7292_v1  ;;  %6354 = vmatpush1.bf16.msra.mxu1 %v6353_v38  ;;  %v6371_v38 = vpack.c.bf16 %v868_v30, %v836_v29  ;;  %v616_v27 = vld [vmem:[#allocation2 + $0x1a8] sm:$0xff]  ;;  %v586_v29 = vld [vmem:[#allocation2 + $0xb8] sm:$0xff] }
 0x3b4   :  { %6356 = vmatprep.subr.bf16.mxu0 %v6355_v45  ;;  %1846 = vmatprep.mubr.f32.mxu1 %v7292_v1  ;;  %v6403_v45 = vpack.c.bf16 %v870_v33, %v838_v32  ;;  %v618_v30 = vld [vmem:[#allocation2 + $0x1b8] sm:$0xff]  ;;  %v583_v32 = vld [vmem:[#allocation2 + $0xa0] sm:$0xff] }
 0x3b5   :  { %1746 = vmatmul.mubr.f32.vlgmr.msra.gmra.mrb[50].mxu0 %v7554_v44  ;;  %6388 = vmatprep.subr.bf16.mxu1 %v6387_v48  ;;  %v6373_v48 = vpack.c.bf16 %v867_v36, %v835_v35  ;;  %v615_v33 = vld [vmem:[#allocation2 + $0x1a0] sm:$0xff]  ;;  %v585_v35 = vld [vmem:[#allocation2 + $0xb0] sm:$0xff] }
 0x3b6   :  { %6358 = vmatpush1.bf16.msra.mxu0 %v6357_v52  ;;  %1847 = vmatmul.mubr.f32.vlgmr.msra.gmra.mrb[64].mxu1 %v7554_v44  ;;  %v6405_v52 = vpack.c.bf16 %v869_v43, %v837_v42  ;;  %v617_v36 = vld [vmem:[#allocation2 + $0x1b0] sm:$0xff]  ;;  %v648_v42 = vld [vmem:[#allocation2 + $0x2a8] sm:$0xff] }
 0x3b7   :  { %1749 = vmatprep.mubr.f32.mxu0 %v7292_v1  ;;  %6390 = vmatpush1.bf16.msra.mxu1 %v6389_v56  ;;  %v6375_v56 = vpack.c.bf16 %v932_v47, %v900_v46  ;;  %v680_v43 = vld [vmem:[#allocation2 + $0x3a8] sm:$0xff]  ;;  %v650_v46 = vld [vmem:[#allocation2 + $0x2b8] sm:$0xff] }
 0x3b8   :  { %6360 = vmatprep.subr.bf16.mxu0 %v6359_v59  ;;  %1850 = vmatprep.mubr.f32.mxu1 %v7292_v1  ;;  %v6407_v59 = vpack.c.bf16 %v934_v51, %v902_v49  ;;  %v682_v47 = vld [vmem:[#allocation2 + $0x3b8] sm:$0xff]  ;;  %v647_v49 = vld [vmem:[#allocation2 + $0x2a0] sm:$0xff] }
 0x3b9   :  { %1750 = vmatmul.mubr.f32.gmra.mrb[52].mxu0 %v7552_v37  ;;  %6392 = vmatprep.subr.bf16.mxu1 %v6391_v0  ;;  %v6377_v0 = vpack.c.bf16 %v931_v55, %v899_v54  ;;  %v679_v51 = vld [vmem:[#allocation2 + $0x3a0] sm:$0xff]  ;;  %v649_v54 = vld [vmem:[#allocation2 + $0x2b0] sm:$0xff] }
 0x3ba   :  { %6362 = vmatpush1.bf16.msra.mxu0 %v6361_v8  ;;  %1851 = vmatmul.mubr.f32.gmra.mrb[66].mxu1 %v7552_v37  ;;  %v6409_v8 = vpack.c.bf16 %v933_v58, %v901_v57  ;;  %v681_v55 = vld [vmem:[#allocation2 + $0x3b0] sm:$0xff]  ;;  %v712_v57 = vld [vmem:[#allocation2 + $0x4a8] sm:$0xff] }
 0x3bb   :  { %1755 = vmatprep.mubr.f32.mxu0 %v7292_v1  ;;  %6394 = vmatpush1.bf16.msra.mxu1 %v6393_v14  ;;  %v6379_v14 = vpack.c.bf16 %v996_v62, %v964_v61  ;;  %v744_v58 = vld [vmem:[#allocation2 + $0x5a8] sm:$0xff]  ;;  %v714_v61 = vld [vmem:[#allocation2 + $0x4b8] sm:$0xff] }
 0x3bc   :  { %6364 = vmatprep.subr.bf16.mxu0 %v6363_v6  ;;  %1856 = vmatprep.mubr.f32.mxu1 %v7292_v1  ;;  %v6411_v6 = vpack.c.bf16 %v998_v4, %v966_v2  ;;  %v746_v62 = vld [vmem:[#allocation2 + $0x5b8] sm:$0xff]  ;;  %v711_v2 = vld [vmem:[#allocation2 + $0x4a0] sm:$0xff] }
 0x3bd   :  { %1756 = vmatmul.mubr.f32.gmra.mrb[54].mxu0 %v7558_v53  ;;  %6396 = vmatprep.subr.bf16.mxu1 %v6395_v13  ;;  %v6381_v13 = vpack.c.bf16 %v995_v12, %v963_v9  ;;  %v743_v4 = vld [vmem:[#allocation2 + $0x5a0] sm:$0xff]  ;;  %v713_v9 = vld [vmem:[#allocation2 + $0x4b0] sm:$0xff] }
 0x3be   :  { %6366 = vmatpush1.bf16.msra.mxu0 %v6365_v17  ;;  %1857 = vmatmul.mubr.f32.gmra.mrb[68].mxu1 %v7558_v53  ;;  %v6413_v17 = vpack.c.bf16 %v997_v19, %v965_v15  ;;  %v745_v12 = vld [vmem:[#allocation2 + $0x5b0] sm:$0xff]  ;;  %v776_v15 = vld [vmem:[#allocation2 + $0x6a8] sm:$0xff] }
 0x3bf   :  { %1759 = vmatprep.mubr.f32.mxu0 %v7292_v1  ;;  %6398 = vmatpush1.bf16.msra.mxu1 %v6397_v22  ;;  %v6383_v22 = vpack.c.bf16 %v1060_v18, %v1028_v11  ;;  %v808_v19 = vld [vmem:[#allocation2 + $0x7a8] sm:$0xff]  ;;  %v778_v11 = vld [vmem:[#allocation2 + $0x6b8] sm:$0xff] }
 0x3c0   :  { %6368 = vmatprep.subr.bf16.mxu0 %v6367_v25  ;;  %1860 = vmatprep.mubr.f32.mxu1 %v7292_v1  ;;  %v6415_v25 = vpack.c.bf16 %v1062_v16, %v1030_v10  ;;  %v810_v18 = vld [vmem:[#allocation2 + $0x7b8] sm:$0xff]  ;;  %v775_v10 = vld [vmem:[#allocation2 + $0x6a0] sm:$0xff] }
 0x3c1   :  { %1760 = vmatmul.mubr.f32.gmra.mrb[56].mxu0 %v7556_v50  ;;  %6400 = vmatprep.subr.bf16.mxu1 %v6399_v28  ;;  %v6385_v28 = vpack.c.bf16 %v1059_v21, %v1027_v20  ;;  %v807_v16 = vld [vmem:[#allocation2 + $0x7a0] sm:$0xff]  ;;  %v777_v20 = vld [vmem:[#allocation2 + $0x6b0] sm:$0xff] }
 0x3c2   :  { %6370 = vmatpush1.bf16.msra.mxu0 %v6369_v31  ;;  %1861 = vmatmul.mubr.f32.gmra.mrb[70].mxu1 %v7556_v50  ;;  %v6417_v31 = vpack.c.bf16 %v1061_v24, %v1029_v23  ;;  %v809_v21 = vld [vmem:[#allocation2 + $0x7b0] sm:$0xff]  ;;  %v840_v23 = vld [vmem:[#allocation2 + $0x8a8] sm:$0xff] }
 0x3c3   :  { %1763 = vmatprep.mubr.f32.mxu0 %v7292_v1  ;;  %6402 = vmatpush1.bf16.msra.mxu1 %v6401_v34  ;;  %v6419_v34 = vpack.c.bf16 %v616_v27, %v584_v26  ;;  %v872_v24 = vld [vmem:[#allocation2 + $0x9a8] sm:$0xff]  ;;  %v842_v26 = vld [vmem:[#allocation2 + $0x8b8] sm:$0xff] }
 0x3c4   :  { %6372 = vmatprep.subr.bf16.mxu0 %v6371_v38  ;;  %1864 = vmatprep.mubr.f32.mxu1 %v7292_v1  ;;  %v6451_v38 = vpack.c.bf16 %v618_v30, %v586_v29  ;;  %v874_v27 = vld [vmem:[#allocation2 + $0x9b8] sm:$0xff]  ;;  %v839_v29 = vld [vmem:[#allocation2 + $0x8a0] sm:$0xff] }
 0x3c5   :  { %1764 = vmatmul.mubr.f32.gmra.mrb[58].mxu0 %v7562_v63  ;;  %6404 = vmatprep.subr.bf16.mxu1 %v6403_v45  ;;  %v6421_v45 = vpack.c.bf16 %v615_v33, %v583_v32  ;;  %v871_v30 = vld [vmem:[#allocation2 + $0x9a0] sm:$0xff]  ;;  %v841_v32 = vld [vmem:[#allocation2 + $0x8b0] sm:$0xff] }
 0x3c6   :  { %6374 = vmatpush1.bf16.msra.mxu0 %v6373_v48  ;;  %1865 = vmatmul.mubr.f32.gmra.mrb[72].mxu1 %v7562_v63  ;;  %v6453_v48 = vpack.c.bf16 %v617_v36, %v585_v35  ;;  %v873_v33 = vld [vmem:[#allocation2 + $0x9b0] sm:$0xff]  ;;  %v904_v35 = vld [vmem:[#allocation2 + $0xaa8] sm:$0xff] }
 0x3c7   :  { %1767 = vmatprep.mubr.f32.mxu0 %v7292_v1  ;;  %6406 = vmatpush1.bf16.msra.mxu1 %v6405_v52  ;;  %v6423_v52 = vpack.c.bf16 %v680_v43, %v648_v42  ;;  %v936_v36 = vld [vmem:[#allocation2 + $0xba8] sm:$0xff]  ;;  %v906_v42 = vld [vmem:[#allocation2 + $0xab8] sm:$0xff] }
 0x3c8   :  { %6376 = vmatprep.subr.bf16.mxu0 %v6375_v56  ;;  %1868 = vmatprep.mubr.f32.mxu1 %v7292_v1  ;;  %v6455_v56 = vpack.c.bf16 %v682_v47, %v650_v46  ;;  %v938_v43 = vld [vmem:[#allocation2 + $0xbb8] sm:$0xff]  ;;  %v903_v46 = vld [vmem:[#allocation2 + $0xaa0] sm:$0xff] }
 0x3c9   :  { %1768 = vmatmul.mubr.f32.gmra.mrb[60].mxu0 %v7560_v60  ;;  %6408 = vmatprep.subr.bf16.mxu1 %v6407_v59  ;;  %v6425_v59 = vpack.c.bf16 %v679_v51, %v647_v49  ;;  %v935_v47 = vld [vmem:[#allocation2 + $0xba0] sm:$0xff]  ;;  %v905_v49 = vld [vmem:[#allocation2 + $0xab0] sm:$0xff] }
 0x3ca   :  { %6378 = vmatpush1.bf16.msra.mxu0 %v6377_v0  ;;  %1869 = vmatmul.mubr.f32.gmra.mrb[74].mxu1 %v7560_v60  ;;  %v6457_v0 = vpack.c.bf16 %v681_v55, %v649_v54  ;;  %v937_v51 = vld [vmem:[#allocation2 + $0xbb0] sm:$0xff]  ;;  %v968_v54 = vld [vmem:[#allocation2 + $0xca8] sm:$0xff] }
 0x3cb   :  { %1773 = vmatprep.mubr.f32.mxu0 %v7292_v1  ;;  %6410 = vmatpush1.bf16.msra.mxu1 %v6409_v8  ;;  %v6427_v8 = vpack.c.bf16 %v744_v58, %v712_v57  ;;  %v1000_v55 = vld [vmem:[#allocation2 + $0xda8] sm:$0xff]  ;;  %v970_v57 = vld [vmem:[#allocation2 + $0xcb8] sm:$0xff] }
 0x3cc   :  { %6380 = vmatprep.subr.bf16.mxu0 %v6379_v14  ;;  %1874 = vmatprep.mubr.f32.mxu1 %v7292_v1  ;;  %v6459_v14 = vpack.c.bf16 %v746_v62, %v714_v61  ;;  %v1002_v58 = vld [vmem:[#allocation2 + $0xdb8] sm:$0xff]  ;;  %v967_v61 = vld [vmem:[#allocation2 + $0xca0] sm:$0xff] }
 0x3cd   :  { %1774 = vmatmul.mubr.f32.gmra.mrb[62].mxu0 %v7566_v7  ;;  %6412 = vmatprep.subr.bf16.mxu1 %v6411_v6  ;;  %v6429_v6 = vpack.c.bf16 %v743_v4, %v711_v2  ;;  %v999_v62 = vld [vmem:[#allocation2 + $0xda0] sm:$0xff]  ;;  %v969_v2 = vld [vmem:[#allocation2 + $0xcb0] sm:$0xff] }
 0x3ce   :  { %6382 = vmatpush1.bf16.msra.mxu0 %v6381_v13  ;;  %1875 = vmatmul.mubr.f32.gmra.mrb[76].mxu1 %v7566_v7  ;;  %v6461_v13 = vpack.c.bf16 %v745_v12, %v713_v9  ;;  %v1001_v4 = vld [vmem:[#allocation2 + $0xdb0] sm:$0xff]  ;;  %v1032_v9 = vld [vmem:[#allocation2 + $0xea8] sm:$0xff] }
 0x3cf   :  { %1777 = vmatprep.mubr.f32.mxu0 %v7292_v1  ;;  %6414 = vmatpush1.bf16.msra.mxu1 %v6413_v17  ;;  %v6431_v17 = vpack.c.bf16 %v808_v19, %v776_v15  ;;  %v1064_v12 = vld [vmem:[#allocation2 + $0xfa8] sm:$0xff]  ;;  %v1034_v15 = vld [vmem:[#allocation2 + $0xeb8] sm:$0xff] }
 0x3d0   :  { %6384 = vmatprep.subr.bf16.mxu0 %v6383_v22  ;;  %1878 = vmatprep.mubr.f32.mxu1 %v7292_v1  ;;  %v6463_v22 = vpack.c.bf16 %v810_v18, %v778_v11  ;;  %v1066_v19 = vld [vmem:[#allocation2 + $0xfb8] sm:$0xff]  ;;  %v1031_v11 = vld [vmem:[#allocation2 + $0xea0] sm:$0xff] }
 0x3d1   :  { %1778 = vmatmul.mubr.f32.gmra.mrb[64].mxu0 %v7564_v5  ;;  %6416 = vmatprep.subr.bf16.mxu1 %v6415_v25  ;;  %v6433_v25 = vpack.c.bf16 %v807_v16, %v775_v10  ;;  %v1063_v18 = vld [vmem:[#allocation2 + $0xfa0] sm:$0xff]  ;;  %v1033_v10 = vld [vmem:[#allocation2 + $0xeb0] sm:$0xff] }
 0x3d2   :  { %6386 = vmatpush1.bf16.msra.mxu0 %v6385_v28  ;;  %1879 = vmatmul.mubr.f32.gmra.mrb[78].mxu1 %v7564_v5  ;;  %v6465_v28 = vpack.c.bf16 %v809_v21, %v777_v20  ;;  %v1065_v16 = vld [vmem:[#allocation2 + $0xfb0] sm:$0xff]  ;;  %v588_v20 = vld [vmem:[#allocation2 + $0xc8] sm:$0xff] }
 0x3d3   :  { %1947 = vmatprep.mubr.f32.mxu0 %v7292_v1  ;;  %6418 = vmatpush1.bf16.msra.mxu1 %v6417_v31  ;;  %v6435_v31 = vpack.c.bf16 %v872_v24, %v840_v23  ;;  %v620_v21 = vld [vmem:[#allocation2 + $0x1c8] sm:$0xff]  ;;  %v590_v23 = vld [vmem:[#allocation2 + $0xd8] sm:$0xff] }
 0x3d4   :  { %6420 = vmatprep.subr.bf16.mxu0 %v6419_v34  ;;  %2048 = vmatprep.mubr.f32.mxu1 %v7292_v1  ;;  %v6467_v34 = vpack.c.bf16 %v874_v27, %v842_v26  ;;  %v622_v24 = vld [vmem:[#allocation2 + $0x1d8] sm:$0xff]  ;;  %v587_v26 = vld [vmem:[#allocation2 + $0xc0] sm:$0xff] }
 0x3d5   :  { %1948 = vmatmul.mubr.f32.vlgmr.msra.gmra.mrb[66].mxu0 %v7554_v44  ;;  %6452 = vmatprep.subr.bf16.mxu1 %v6451_v38  ;;  %v6437_v38 = vpack.c.bf16 %v871_v30, %v839_v29  ;;  %v619_v27 = vld [vmem:[#allocation2 + $0x1c0] sm:$0xff]  ;;  %v589_v29 = vld [vmem:[#allocation2 + $0xd0] sm:$0xff] }
 0x3d6   :  { %6422 = vmatpush1.bf16.msra.mxu0 %v6421_v45  ;;  %2049 = vmatmul.mubr.f32.vlgmr.msra.gmra.mrb[80].mxu1 %v7554_v44  ;;  %v6469_v45 = vpack.c.bf16 %v873_v33, %v841_v32  ;;  %v621_v30 = vld [vmem:[#allocation2 + $0x1d0] sm:$0xff]  ;;  %v652_v32 = vld [vmem:[#allocation2 + $0x2c8] sm:$0xff] }
 0x3d7   :  { %1951 = vmatprep.mubr.f32.mxu0 %v7292_v1  ;;  %6454 = vmatpush1.bf16.msra.mxu1 %v6453_v48  ;;  %v6439_v48 = vpack.c.bf16 %v936_v36, %v904_v35  ;;  %v684_v33 = vld [vmem:[#allocation2 + $0x3c8] sm:$0xff]  ;;  %v654_v35 = vld [vmem:[#allocation2 + $0x2d8] sm:$0xff] }
 0x3d8   :  { %6424 = vmatprep.subr.bf16.mxu0 %v6423_v52  ;;  %2052 = vmatprep.mubr.f32.mxu1 %v7292_v1  ;;  %v6471_v52 = vpack.c.bf16 %v938_v43, %v906_v42  ;;  %v686_v36 = vld [vmem:[#allocation2 + $0x3d8] sm:$0xff]  ;;  %v651_v42 = vld [vmem:[#allocation2 + $0x2c0] sm:$0xff] }
 0x3d9   :  { %1952 = vmatmul.mubr.f32.gmra.mrb[68].mxu0 %v7552_v37  ;;  %6456 = vmatprep.subr.bf16.mxu1 %v6455_v56  ;;  %v6441_v56 = vpack.c.bf16 %v935_v47, %v903_v46  ;;  %v683_v43 = vld [vmem:[#allocation2 + $0x3c0] sm:$0xff]  ;;  %v653_v46 = vld [vmem:[#allocation2 + $0x2d0] sm:$0xff] }
 0x3da   :  { %6426 = vmatpush1.bf16.msra.mxu0 %v6425_v59  ;;  %2053 = vmatmul.mubr.f32.gmra.mrb[82].mxu1 %v7552_v37  ;;  %v6473_v59 = vpack.c.bf16 %v937_v51, %v905_v49  ;;  %v685_v47 = vld [vmem:[#allocation2 + $0x3d0] sm:$0xff]  ;;  %v716_v49 = vld [vmem:[#allocation2 + $0x4c8] sm:$0xff] }
 0x3db   :  { %1955 = vmatprep.mubr.f32.mxu0 %v7292_v1  ;;  %6458 = vmatpush1.bf16.msra.mxu1 %v6457_v0  ;;  %v6443_v0 = vpack.c.bf16 %v1000_v55, %v968_v54  ;;  %v748_v51 = vld [vmem:[#allocation2 + $0x5c8] sm:$0xff]  ;;  %v718_v54 = vld [vmem:[#allocation2 + $0x4d8] sm:$0xff] }
 0x3dc   :  { %6428 = vmatprep.subr.bf16.mxu0 %v6427_v8  ;;  %2056 = vmatprep.mubr.f32.mxu1 %v7292_v1  ;;  %v6475_v8 = vpack.c.bf16 %v1002_v58, %v970_v57  ;;  %v750_v55 = vld [vmem:[#allocation2 + $0x5d8] sm:$0xff]  ;;  %v715_v57 = vld [vmem:[#allocation2 + $0x4c0] sm:$0xff] }
 0x3dd   :  { %1956 = vmatmul.mubr.f32.gmra.mrb[70].mxu0 %v7558_v53  ;;  %6460 = vmatprep.subr.bf16.mxu1 %v6459_v14  ;;  %v6445_v14 = vpack.c.bf16 %v999_v62, %v967_v61  ;;  %v747_v58 = vld [vmem:[#allocation2 + $0x5c0] sm:$0xff]  ;;  %v717_v61 = vld [vmem:[#allocation2 + $0x4d0] sm:$0xff] }
 0x3de   :  { %6430 = vmatpush1.bf16.msra.mxu0 %v6429_v6  ;;  %2057 = vmatmul.mubr.f32.gmra.mrb[84].mxu1 %v7558_v53  ;;  %v6477_v6 = vpack.c.bf16 %v1001_v4, %v969_v2  ;;  %v749_v62 = vld [vmem:[#allocation2 + $0x5d0] sm:$0xff]  ;;  %v780_v2 = vld [vmem:[#allocation2 + $0x6c8] sm:$0xff] }
 0x3df   :  { %1961 = vmatprep.mubr.f32.mxu0 %v7292_v1  ;;  %6462 = vmatpush1.bf16.msra.mxu1 %v6461_v13  ;;  %v6447_v13 = vpack.c.bf16 %v1064_v12, %v1032_v9  ;;  %v812_v4 = vld [vmem:[#allocation2 + $0x7c8] sm:$0xff]  ;;  %v782_v9 = vld [vmem:[#allocation2 + $0x6d8] sm:$0xff] }
 0x3e0   :  { %6432 = vmatprep.subr.bf16.mxu0 %v6431_v17  ;;  %2062 = vmatprep.mubr.f32.mxu1 %v7292_v1  ;;  %v6479_v17 = vpack.c.bf16 %v1066_v19, %v1034_v15  ;;  %v814_v12 = vld [vmem:[#allocation2 + $0x7d8] sm:$0xff]  ;;  %v779_v15 = vld [vmem:[#allocation2 + $0x6c0] sm:$0xff] }
 0x3e1   :  { %1962 = vmatmul.mubr.f32.gmra.mrb[72].mxu0 %v7556_v50  ;;  %6464 = vmatprep.subr.bf16.mxu1 %v6463_v22  ;;  %v6449_v22 = vpack.c.bf16 %v1063_v18, %v1031_v11  ;;  %v811_v19 = vld [vmem:[#allocation2 + $0x7c0] sm:$0xff]  ;;  %v781_v11 = vld [vmem:[#allocation2 + $0x6d0] sm:$0xff] }
 0x3e2   :  { %6434 = vmatpush1.bf16.msra.mxu0 %v6433_v25  ;;  %2063 = vmatmul.mubr.f32.gmra.mrb[86].mxu1 %v7556_v50  ;;  %v6481_v25 = vpack.c.bf16 %v1065_v16, %v1033_v10  ;;  %v813_v18 = vld [vmem:[#allocation2 + $0x7d0] sm:$0xff]  ;;  %v844_v10 = vld [vmem:[#allocation2 + $0x8c8] sm:$0xff] }
 0x3e3   :  { %1965 = vmatprep.mubr.f32.mxu0 %v7292_v1  ;;  %6466 = vmatpush1.bf16.msra.mxu1 %v6465_v28  ;;  %v6483_v28 = vpack.c.bf16 %v620_v21, %v588_v20  ;;  %v876_v16 = vld [vmem:[#allocation2 + $0x9c8] sm:$0xff]  ;;  %v846_v20 = vld [vmem:[#allocation2 + $0x8d8] sm:$0xff] }
 0x3e4   :  { %6436 = vmatprep.subr.bf16.mxu0 %v6435_v31  ;;  %2066 = vmatprep.mubr.f32.mxu1 %v7292_v1  ;;  %v6515_v31 = vpack.c.bf16 %v622_v24, %v590_v23  ;;  %v878_v21 = vld [vmem:[#allocation2 + $0x9d8] sm:$0xff]  ;;  %v843_v23 = vld [vmem:[#allocation2 + $0x8c0] sm:$0xff] }
 0x3e5   :  { %1966 = vmatmul.mubr.f32.gmra.mrb[74].mxu0 %v7562_v63  ;;  %6468 = vmatprep.subr.bf16.mxu1 %v6467_v34  ;;  %v6485_v34 = vpack.c.bf16 %v619_v27, %v587_v26  ;;  %v875_v24 = vld [vmem:[#allocation2 + $0x9c0] sm:$0xff]  ;;  %v845_v26 = vld [vmem:[#allocation2 + $0x8d0] sm:$0xff] }
 0x3e6   :  { %6438 = vmatpush1.bf16.msra.mxu0 %v6437_v38  ;;  %2067 = vmatmul.mubr.f32.gmra.mrb[88].mxu1 %v7562_v63  ;;  %v6517_v38 = vpack.c.bf16 %v621_v30, %v589_v29  ;;  %v877_v27 = vld [vmem:[#allocation2 + $0x9d0] sm:$0xff]  ;;  %v908_v29 = vld [vmem:[#allocation2 + $0xac8] sm:$0xff] }
 0x3e7   :  { %1969 = vmatprep.mubr.f32.mxu0 %v7292_v1  ;;  %6470 = vmatpush1.bf16.msra.mxu1 %v6469_v45  ;;  %v6487_v45 = vpack.c.bf16 %v684_v33, %v652_v32  ;;  %v940_v30 = vld [vmem:[#allocation2 + $0xbc8] sm:$0xff]  ;;  %v910_v32 = vld [vmem:[#allocation2 + $0xad8] sm:$0xff] }
 0x3e8   :  { %6440 = vmatprep.subr.bf16.mxu0 %v6439_v48  ;;  %2070 = vmatprep.mubr.f32.mxu1 %v7292_v1  ;;  %v6519_v48 = vpack.c.bf16 %v686_v36, %v654_v35  ;;  %v942_v33 = vld [vmem:[#allocation2 + $0xbd8] sm:$0xff]  ;;  %v907_v35 = vld [vmem:[#allocation2 + $0xac0] sm:$0xff] }
 0x3e9   :  { %1970 = vmatmul.mubr.f32.gmra.mrb[76].mxu0 %v7560_v60  ;;  %6472 = vmatprep.subr.bf16.mxu1 %v6471_v52  ;;  %v6489_v52 = vpack.c.bf16 %v683_v43, %v651_v42  ;;  %v939_v36 = vld [vmem:[#allocation2 + $0xbc0] sm:$0xff]  ;;  %v909_v42 = vld [vmem:[#allocation2 + $0xad0] sm:$0xff] }
 0x3ea   :  { %6442 = vmatpush1.bf16.msra.mxu0 %v6441_v56  ;;  %2071 = vmatmul.mubr.f32.gmra.mrb[90].mxu1 %v7560_v60  ;;  %v6521_v56 = vpack.c.bf16 %v685_v47, %v653_v46  ;;  %v941_v43 = vld [vmem:[#allocation2 + $0xbd0] sm:$0xff]  ;;  %v972_v46 = vld [vmem:[#allocation2 + $0xcc8] sm:$0xff] }
 0x3eb   :  { %1973 = vmatprep.mubr.f32.mxu0 %v7292_v1  ;;  %6474 = vmatpush1.bf16.msra.mxu1 %v6473_v59  ;;  %v6491_v59 = vpack.c.bf16 %v748_v51, %v716_v49  ;;  %v1004_v47 = vld [vmem:[#allocation2 + $0xdc8] sm:$0xff]  ;;  %v974_v49 = vld [vmem:[#allocation2 + $0xcd8] sm:$0xff] }
 0x3ec   :  { %6444 = vmatprep.subr.bf16.mxu0 %v6443_v0  ;;  %2074 = vmatprep.mubr.f32.mxu1 %v7292_v1  ;;  %v6523_v0 = vpack.c.bf16 %v750_v55, %v718_v54  ;;  %v1006_v51 = vld [vmem:[#allocation2 + $0xdd8] sm:$0xff]  ;;  %v971_v54 = vld [vmem:[#allocation2 + $0xcc0] sm:$0xff] }
 0x3ed   :  { %1974 = vmatmul.mubr.f32.gmra.mrb[78].mxu0 %v7566_v7  ;;  %6476 = vmatprep.subr.bf16.mxu1 %v6475_v8  ;;  %v6493_v8 = vpack.c.bf16 %v747_v58, %v715_v57  ;;  %v1003_v55 = vld [vmem:[#allocation2 + $0xdc0] sm:$0xff]  ;;  %v973_v57 = vld [vmem:[#allocation2 + $0xcd0] sm:$0xff] }
 0x3ee   :  { %6446 = vmatpush1.bf16.msra.mxu0 %v6445_v14  ;;  %2075 = vmatmul.mubr.f32.gmra.mrb[92].mxu1 %v7566_v7  ;;  %v6525_v14 = vpack.c.bf16 %v749_v62, %v717_v61  ;;  %v1005_v58 = vld [vmem:[#allocation2 + $0xdd0] sm:$0xff]  ;;  %v1036_v61 = vld [vmem:[#allocation2 + $0xec8] sm:$0xff] }
 0x3ef   :  { %1979 = vmatprep.mubr.f32.mxu0 %v7292_v1  ;;  %6478 = vmatpush1.bf16.msra.mxu1 %v6477_v6  ;;  %v6495_v6 = vpack.c.bf16 %v812_v4, %v780_v2  ;;  %v1068_v62 = vld [vmem:[#allocation2 + $0xfc8] sm:$0xff]  ;;  %v1038_v2 = vld [vmem:[#allocation2 + $0xed8] sm:$0xff] }
 0x3f0   :  { %6448 = vmatprep.subr.bf16.mxu0 %v6447_v13  ;;  %2080 = vmatprep.mubr.f32.mxu1 %v7292_v1  ;;  %v6527_v13 = vpack.c.bf16 %v814_v12, %v782_v9  ;;  %v1070_v4 = vld [vmem:[#allocation2 + $0xfd8] sm:$0xff]  ;;  %v1035_v9 = vld [vmem:[#allocation2 + $0xec0] sm:$0xff] }
 0x3f1   :  { %1980 = vmatmul.mubr.f32.gmra.mrb[80].mxu0 %v7564_v5  ;;  %6480 = vmatprep.subr.bf16.mxu1 %v6479_v17  ;;  %v6497_v17 = vpack.c.bf16 %v811_v19, %v779_v15  ;;  %v1067_v12 = vld [vmem:[#allocation2 + $0xfc0] sm:$0xff]  ;;  %v1037_v15 = vld [vmem:[#allocation2 + $0xed0] sm:$0xff] }
 0x3f2   :  { %6450 = vmatpush1.bf16.msra.mxu0 %v6449_v22  ;;  %2081 = vmatmul.mubr.f32.gmra.mrb[94].mxu1 %v7564_v5  ;;  %v6529_v22 = vpack.c.bf16 %v813_v18, %v781_v11  ;;  %v1069_v19 = vld [vmem:[#allocation2 + $0xfd0] sm:$0xff]  ;;  %v592_v11 = vld [vmem:[#allocation2 + $0xe8] sm:$0xff] }
 0x3f3   :  { %2149 = vmatprep.mubr.f32.mxu0 %v7292_v1  ;;  %6482 = vmatpush1.bf16.msra.mxu1 %v6481_v25  ;;  %v6499_v25 = vpack.c.bf16 %v876_v16, %v844_v10  ;;  %v624_v18 = vld [vmem:[#allocation2 + $0x1e8] sm:$0xff]  ;;  %v594_v10 = vld [vmem:[#allocation2 + $0xf8] sm:$0xff] }
 0x3f4   :  { %6484 = vmatprep.subr.bf16.mxu0 %v6483_v28  ;;  %2250 = vmatprep.mubr.f32.mxu1 %v7292_v1  ;;  %v6531_v28 = vpack.c.bf16 %v878_v21, %v846_v20  ;;  %v626_v16 = vld [vmem:[#allocation2 + $0x1f8] sm:$0xff]  ;;  %v591_v20 = vld [vmem:[#allocation2 + $0xe0] sm:$0xff] }
 0x3f5   :  { %2150 = vmatmul.mubr.f32.vlgmr.msra.gmra.mrb[82].mxu0 %v7554_v44  ;;  %6516 = vmatprep.subr.bf16.mxu1 %v6515_v31  ;;  %v6501_v31 = vpack.c.bf16 %v875_v24, %v843_v23  ;;  %v623_v21 = vld [vmem:[#allocation2 + $0x1e0] sm:$0xff]  ;;  %v593_v23 = vld [vmem:[#allocation2 + $0xf0] sm:$0xff] }
 0x3f6   :  { %6486 = vmatpush1.bf16.msra.mxu0 %v6485_v34  ;;  %2251 = vmatmul.mubr.f32.vlgmr.msra.gmra.mrb[96].mxu1 %v7554_v44  ;;  %v6533_v34 = vpack.c.bf16 %v877_v27, %v845_v26  ;;  %v625_v24 = vld [vmem:[#allocation2 + $0x1f0] sm:$0xff]  ;;  %v656_v26 = vld [vmem:[#allocation2 + $0x2e8] sm:$0xff] }
 0x3f7   :  { %2153 = vmatprep.mubr.f32.mxu0 %v7292_v1  ;;  %6518 = vmatpush1.bf16.msra.mxu1 %v6517_v38  ;;  %v6503_v38 = vpack.c.bf16 %v940_v30, %v908_v29  ;;  %v688_v27 = vld [vmem:[#allocation2 + $0x3e8] sm:$0xff]  ;;  %v658_v29 = vld [vmem:[#allocation2 + $0x2f8] sm:$0xff] }
 0x3f8   :  { %6488 = vmatprep.subr.bf16.mxu0 %v6487_v45  ;;  %2254 = vmatprep.mubr.f32.mxu1 %v7292_v1  ;;  %v6535_v45 = vpack.c.bf16 %v942_v33, %v910_v32  ;;  %v690_v30 = vld [vmem:[#allocation2 + $0x3f8] sm:$0xff]  ;;  %v655_v32 = vld [vmem:[#allocation2 + $0x2e0] sm:$0xff] }
 0x3f9   :  { %2154 = vmatmul.mubr.f32.gmra.mrb[84].mxu0 %v7552_v37  ;;  %6520 = vmatprep.subr.bf16.mxu1 %v6519_v48  ;;  %v6505_v48 = vpack.c.bf16 %v939_v36, %v907_v35  ;;  %v687_v33 = vld [vmem:[#allocation2 + $0x3e0] sm:$0xff]  ;;  %v657_v35 = vld [vmem:[#allocation2 + $0x2f0] sm:$0xff] }
 0x3fa   :  { %6490 = vmatpush1.bf16.msra.mxu0 %v6489_v52  ;;  %2255 = vmatmul.mubr.f32.gmra.mrb[98].mxu1 %v7552_v37  ;;  %v6537_v52 = vpack.c.bf16 %v941_v43, %v909_v42  ;;  %v689_v36 = vld [vmem:[#allocation2 + $0x3f0] sm:$0xff]  ;;  %v720_v42 = vld [vmem:[#allocation2 + $0x4e8] sm:$0xff] }
 0x3fb   :  { %2157 = vmatprep.mubr.f32.mxu0 %v7292_v1  ;;  %6522 = vmatpush1.bf16.msra.mxu1 %v6521_v56  ;;  %v6507_v56 = vpack.c.bf16 %v1004_v47, %v972_v46  ;;  %v752_v43 = vld [vmem:[#allocation2 + $0x5e8] sm:$0xff]  ;;  %v722_v46 = vld [vmem:[#allocation2 + $0x4f8] sm:$0xff] }
 0x3fc   :  { %6492 = vmatprep.subr.bf16.mxu0 %v6491_v59  ;;  %2258 = vmatprep.mubr.f32.mxu1 %v7292_v1  ;;  %v6539_v59 = vpack.c.bf16 %v1006_v51, %v974_v49  ;;  %v754_v47 = vld [vmem:[#allocation2 + $0x5f8] sm:$0xff]  ;;  %v719_v49 = vld [vmem:[#allocation2 + $0x4e0] sm:$0xff] }
 0x3fd   :  { %2158 = vmatmul.mubr.f32.gmra.mrb[86].mxu0 %v7558_v53  ;;  %6524 = vmatprep.subr.bf16.mxu1 %v6523_v0  ;;  %v6509_v0 = vpack.c.bf16 %v1003_v55, %v971_v54  ;;  %v751_v51 = vld [vmem:[#allocation2 + $0x5e0] sm:$0xff]  ;;  %v721_v54 = vld [vmem:[#allocation2 + $0x4f0] sm:$0xff] }
 0x3fe   :  { %6494 = vmatpush1.bf16.msra.mxu0 %v6493_v8  ;;  %2259 = vmatmul.mubr.f32.gmra.mrb[100].mxu1 %v7558_v53  ;;  %v6541_v8 = vpack.c.bf16 %v1005_v58, %v973_v57  ;;  %v753_v55 = vld [vmem:[#allocation2 + $0x5f0] sm:$0xff]  ;;  %v784_v57 = vld [vmem:[#allocation2 + $0x6e8] sm:$0xff] }
 0x3ff   :  { %2163 = vmatprep.mubr.f32.mxu0 %v7292_v1  ;;  %6526 = vmatpush1.bf16.msra.mxu1 %v6525_v14  ;;  %v6511_v14 = vpack.c.bf16 %v1068_v62, %v1036_v61  ;;  %v816_v58 = vld [vmem:[#allocation2 + $0x7e8] sm:$0xff]  ;;  %v786_v61 = vld [vmem:[#allocation2 + $0x6f8] sm:$0xff] }
 0x400   :  { %6496 = vmatprep.subr.bf16.mxu0 %v6495_v6  ;;  %2264 = vmatprep.mubr.f32.mxu1 %v7292_v1  ;;  %v6543_v6 = vpack.c.bf16 %v1070_v4, %v1038_v2  ;;  %v818_v62 = vld [vmem:[#allocation2 + $0x7f8] sm:$0xff]  ;;  %v783_v2 = vld [vmem:[#allocation2 + $0x6e0] sm:$0xff] }
 0x401   :  { %2164 = vmatmul.mubr.f32.gmra.mrb[88].mxu0 %v7556_v50  ;;  %6528 = vmatprep.subr.bf16.mxu1 %v6527_v13  ;;  %v6513_v13 = vpack.c.bf16 %v1067_v12, %v1035_v9  ;;  %v815_v4 = vld [vmem:[#allocation2 + $0x7e0] sm:$0xff]  ;;  %v785_v9 = vld [vmem:[#allocation2 + $0x6f0] sm:$0xff] }
 0x402   :  { %6498 = vmatpush1.bf16.msra.mxu0 %v6497_v17  ;;  %2265 = vmatmul.mubr.f32.gmra.mrb[102].mxu1 %v7556_v50  ;;  %v6545_v17 = vpack.c.bf16 %v1069_v19, %v1037_v15  ;;  %v817_v12 = vld [vmem:[#allocation2 + $0x7f0] sm:$0xff]  ;;  %v848_v15 = vld [vmem:[#allocation2 + $0x8e8] sm:$0xff] }
 0x403   :  { %2167 = vmatprep.mubr.f32.mxu0 %v7292_v1  ;;  %6530 = vmatpush1.bf16.msra.mxu1 %v6529_v22  ;;  %v6547_v22 = vpack.c.bf16 %v624_v18, %v592_v11  ;;  %v880_v19 = vld [vmem:[#allocation2 + $0x9e8] sm:$0xff]  ;;  %v850_v11 = vld [vmem:[#allocation2 + $0x8f8] sm:$0xff] }
 0x404   :  { %6500 = vmatprep.subr.bf16.mxu0 %v6499_v25  ;;  %2268 = vmatprep.mubr.f32.mxu1 %v7292_v1  ;;  %v6579_v25 = vpack.c.bf16 %v626_v16, %v594_v10  ;;  %v882_v18 = vld [vmem:[#allocation2 + $0x9f8] sm:$0xff]  ;;  %v6593_v16 = vpack.c.bf16 %v817_v12, %v785_v9 }
 0x405   :  { %2168 = vmatmul.mubr.f32.gmra.mrb[90].mxu0 %v7562_v63  ;;  %6532 = vmatprep.subr.bf16.mxu1 %v6531_v28  ;;  %v6549_v28 = vpack.c.bf16 %v623_v21, %v591_v20  ;;  %v879_v20 = vld [vmem:[#allocation2 + $0x9e0] sm:$0xff]  ;;  %v6563_v21 = vpack.c.bf16 %v880_v19, %v848_v15  ;;  %v1042_v15 = vld [vmem:[#allocation2 + $0xef8] sm:$0xff] }
 0x406   :  { %6502 = vmatpush1.bf16.msra.mxu0 %v6501_v31  ;;  %2269 = vmatmul.mubr.f32.gmra.mrb[104].mxu1 %v7562_v63  ;;  %v6581_v31 = vpack.c.bf16 %v625_v24, %v593_v23  ;;  %v881_v23 = vld [vmem:[#allocation2 + $0x9f0] sm:$0xff]  ;;  %v6595_v24 = vpack.c.bf16 %v882_v18, %v850_v11  ;;  %v1074_v19 = vld [vmem:[#allocation2 + $0xff8] sm:$0xff] }
 0x407   :  { %2171 = vmatprep.mubr.f32.mxu0 %v7292_v1  ;;  %6534 = vmatpush1.bf16.msra.mxu1 %v6533_v34  ;;  %v6551_v34 = vpack.c.bf16 %v688_v27, %v656_v26  ;;  %v944_v26 = vld [vmem:[#allocation2 + $0xbe8] sm:$0xff] }
 0x408   :  { %6504 = vmatprep.subr.bf16.mxu0 %v6503_v38  ;;  %2272 = vmatprep.mubr.f32.mxu1 %v7292_v1  ;;  %v6583_v38 = vpack.c.bf16 %v690_v30, %v658_v29  ;;  %v914_v29 = vld [vmem:[#allocation2 + $0xaf8] sm:$0xff] }
 0x409   :  { %2172 = vmatmul.mubr.f32.gmra.mrb[92].mxu0 %v7560_v60  ;;  %6536 = vmatprep.subr.bf16.mxu1 %v6535_v45  ;;  %v6553_v45 = vpack.c.bf16 %v687_v33, %v655_v32  ;;  %v946_v30 = vld [vmem:[#allocation2 + $0xbf8] sm:$0xff]  ;;  %v911_v32 = vld [vmem:[#allocation2 + $0xae0] sm:$0xff] }
 0x40a   :  { %6506 = vmatpush1.bf16.msra.mxu0 %v6505_v48  ;;  %2273 = vmatmul.mubr.f32.gmra.mrb[106].mxu1 %v7560_v60  ;;  %v6585_v48 = vpack.c.bf16 %v689_v36, %v657_v35  ;;  %v943_v33 = vld [vmem:[#allocation2 + $0xbe0] sm:$0xff]  ;;  %v913_v35 = vld [vmem:[#allocation2 + $0xaf0] sm:$0xff] }
 0x40b   :  { %2175 = vmatprep.mubr.f32.mxu0 %v7292_v1  ;;  %6538 = vmatpush1.bf16.msra.mxu1 %v6537_v52  ;;  %v6555_v52 = vpack.c.bf16 %v752_v43, %v720_v42  ;;  %v945_v36 = vld [vmem:[#allocation2 + $0xbf0] sm:$0xff]  ;;  %v976_v42 = vld [vmem:[#allocation2 + $0xce8] sm:$0xff] }
 0x40c   :  { %6508 = vmatprep.subr.bf16.mxu0 %v6507_v56  ;;  %2276 = vmatprep.mubr.f32.mxu1 %v7292_v1  ;;  %v6587_v56 = vpack.c.bf16 %v754_v47, %v722_v46  ;;  %v1008_v43 = vld [vmem:[#allocation2 + $0xde8] sm:$0xff]  ;;  %v6569_v46 = vpack.c.bf16 %v943_v33, %v911_v32  ;;  %v978_v47 = vld [vmem:[#allocation2 + $0xcf8] sm:$0xff] }
 0x40d   :  { %2176 = vmatmul.mubr.f32.gmra.mrb[94].mxu0 %v7566_v7  ;;  %6540 = vmatprep.subr.bf16.mxu1 %v6539_v59  ;;  %v6557_v59 = vpack.c.bf16 %v751_v51, %v719_v49  ;;  %v6601_v49 = vpack.c.bf16 %v945_v36, %v913_v35  ;;  %v975_v51 = vld [vmem:[#allocation2 + $0xce0] sm:$0xff] }
 0x40e   :  { %6510 = vmatpush1.bf16.msra.mxu0 %v6509_v0  ;;  %2277 = vmatmul.mubr.f32.gmra.mrb[108].mxu1 %v7566_v7  ;;  %v6589_v0 = vpack.c.bf16 %v753_v55, %v721_v54  ;;  %v6571_v55 = vpack.c.bf16 %v1008_v43, %v976_v42 }
 0x40f   :  { %2181 = vmatprep.mubr.f32.mxu0 %v7292_v1  ;;  %6542 = vmatpush1.bf16.msra.mxu1 %v6541_v8  ;;  %v6559_v8 = vpack.c.bf16 %v816_v58, %v784_v57  ;;  %v1009_v57 = vld [vmem:[#allocation2 + $0xdf0] sm:$0xff] }
 0x410   :  { %6512 = vmatprep.subr.bf16.mxu0 %v6511_v14  ;;  %2282 = vmatprep.mubr.f32.mxu1 %v7292_v1  ;;  %v6591_v14 = vpack.c.bf16 %v818_v62, %v786_v61  ;;  %v1040_v62 = vld [vmem:[#allocation2 + $0xee8] sm:$0xff] }
 0x411   :  { %2182 = vmatmul.mubr.f32.gmra.mrb[96].mxu0 %v7564_v5  ;;  %6544 = vmatprep.subr.bf16.mxu1 %v6543_v6  ;;  %v6561_v6 = vpack.c.bf16 %v815_v4, %v783_v2  ;;  %v1039_v2 = vld [vmem:[#allocation2 + $0xee0] sm:$0xff] }
 0x412   :  { %6514 = vmatpush1.bf16.msra.mxu0 %v6513_v13  ;;  %2283 = vmatmul.mubr.f32.gmra.mrb[110].mxu1 %v7564_v5  ;;  %v7297_v13 = vmov 1966171168  }
 0x413   :  { %2351 = vmatprep.mubr.f32.mxu0 %v7292_v1  ;;  %6546 = vmatpush1.bf16.msra.mxu1 %v6545_v17  ;;  %v2694_v10 = vunpack.c.l.s4 %v7297_v13  ;;  %v847_v17 = vld [vmem:[#allocation2 + $0x8e0] sm:$0xff] }
 0x414   :  { %6548 = vmatprep.subr.bf16.mxu0 %v6547_v22  ;;  %2452 = vmatprep.mubr.f32.mxu1 %v7292_v1  ;;  %v849_v22 = vld [vmem:[#allocation2 + $0x8f0] sm:$0xff]  ;;  %v6565_v27 = vpack.c.bf16 %v879_v20, %v847_v17 }
 0x415   :  { %2352 = vmatmul.mubr.f32.vlgmr.msra.gmra.mrb[98].mxu0 %v7554_v44  ;;  %6580 = vmatprep.subr.bf16.mxu1 %v6579_v25  ;;  %v912_v25 = vld [vmem:[#allocation2 + $0xae8] sm:$0xff]  ;;  %v1041_v17 = vld [vmem:[#allocation2 + $0xef0] sm:$0xff] }
 0x416   :  { %6550 = vmatpush1.bf16.msra.mxu0 %v6549_v28  ;;  %2453 = vmatmul.mubr.f32.vlgmr.msra.gmra.mrb[112].mxu1 %v7554_v44  ;;  %v2695_v28 = vunpack.c.0.s8 %v2694_v10  ;;  %v1073_v20 = vld [vmem:[#allocation2 + $0xff0] sm:$0xff] }
 0x417   :  { %2355 = vmatprep.mubr.f32.mxu0 %v7292_v1  ;;  %6582 = vmatpush1.bf16.msra.mxu1 %v6581_v31  ;;  %v6597_v31 = vpack.c.bf16 %v881_v23, %v849_v22 }
 0x418   :  { %6552 = vmatprep.subr.bf16.mxu0 %v6551_v34  ;;  %2456 = vmatprep.mubr.f32.mxu1 %v7292_v1  ;;  %v6567_v34 = vpack.c.bf16 %v944_v26, %v912_v25  ;;  %v6607_v25 = vpack.c.bf16 %v1074_v19, %v1042_v15 }
 0x419   :  { %2356 = vmatmul.mubr.f32.gmra.mrb[100].mxu0 %v7552_v37  ;;  %6584 = vmatprep.subr.bf16.mxu1 %v6583_v38  ;;  %v6599_v38 = vpack.c.bf16 %v946_v30, %v914_v29 }
 0x41a   :  { %6554 = vmatpush1.bf16.msra.mxu0 %v6553_v45  ;;  %2457 = vmatmul.mubr.f32.gmra.mrb[114].mxu1 %v7552_v37  ;;  %v7781_v45 = vsub.s32 %v2695_v28, %v7458_v39 }
 0x41b   :  { %2359 = vmatprep.mubr.f32.mxu0 %v7292_v1  ;;  %6586 = vmatpush1.bf16.msra.mxu1 %v6585_v48  ;;  %v1010_v48 = vld [vmem:[#allocation2 + $0xdf8] sm:$0xff] }
 0x41c   :  { %6556 = vmatprep.subr.bf16.mxu0 %v6555_v52  ;;  %2460 = vmatprep.mubr.f32.mxu1 %v7292_v1  ;;  %v1007_v52 = vld [vmem:[#allocation2 + $0xde0] sm:$0xff]  ;;  %v6603_v61 = vpack.c.bf16 %v1010_v48, %v978_v47 }
 0x41d   :  { %2360 = vmatmul.mubr.f32.gmra.mrb[102].mxu0 %v7558_v53  ;;  %6588 = vmatprep.subr.bf16.mxu1 %v6587_v56  ;;  %v977_v56 = vld [vmem:[#allocation2 + $0xcf0] sm:$0xff]  ;;  %v6573_v12 = vpack.c.bf16 %v1007_v52, %v975_v51 }
 0x41e   :  { %6558 = vmatpush1.bf16.msra.mxu0 %v6557_v59  ;;  %2461 = vmatmul.mubr.f32.gmra.mrb[116].mxu1 %v7558_v53  ;;  %v6605_v11 = vpack.c.bf16 %v1009_v57, %v977_v56 }
 0x41f   :  { %2363 = vmatprep.mubr.f32.mxu0 %v7292_v1  ;;  %6590 = vmatpush1.bf16.msra.mxu1 %v6589_v0  ;;  %v1072_v0 = vld [vmem:[#allocation2 + $0xfe8] sm:$0xff] }
 0x420   :  { %6560 = vmatprep.subr.bf16.mxu0 %v6559_v8  ;;  %2464 = vmatprep.mubr.f32.mxu1 %v7292_v1 }
 0x421   :  { %2364 = vmatmul.mubr.f32.gmra.mrb[104].mxu0 %v7556_v50  ;;  %6592 = vmatprep.subr.bf16.mxu1 %v6591_v14  ;;  %v1071_v14 = vld [vmem:[#allocation2 + $0xfe0] sm:$0xff] }
 0x422   :  { %6562 = vmatpush1.bf16.msra.mxu0 %v6561_v6  ;;  %2465 = vmatmul.mubr.f32.gmra.mrb[118].mxu1 %v7556_v50 }
 0x423   :  { %2369 = vmatprep.mubr.f32.mxu0 %v7292_v1  ;;  %6594 = vmatpush1.bf16.msra.mxu1 %v6593_v16  ;;  %v6575_v16 = vpack.c.bf16 %v1072_v0, %v1040_v62 }
 0x424   :  { %6564 = vmatprep.subr.bf16.mxu0 %v6563_v21  ;;  %2470 = vmatprep.mubr.f32.mxu1 %v7292_v1 }
 0x425   :  { %2370 = vmatmul.mubr.f32.gmra.mrb[106].mxu0 %v7562_v63  ;;  %6596 = vmatprep.subr.bf16.mxu1 %v6595_v24  ;;  %v6577_v24 = vpack.c.bf16 %v1071_v14, %v1039_v2 }
 0x426   :  { %6566 = vmatpush1.bf16.msra.mxu0 %v6565_v27  ;;  %2471 = vmatmul.mubr.f32.gmra.mrb[120].mxu1 %v7562_v63 }
 0x427   :  { %2373 = vmatprep.mubr.f32.mxu0 %v7292_v1  ;;  %6598 = vmatpush1.bf16.msra.mxu1 %v6597_v31  ;;  %v6609_v31 = vpack.c.bf16 %v1073_v20, %v1041_v17 }
 0x428   :  { %v1141_v54 = vpop.f32.mrb[2].mxu0  ;;  %6568 = vmatprep.subr.bf16.mxu0 %v6567_v34  ;;  %2474 = vmatprep.mubr.f32.mxu1 %v7292_v1 }
 0x429   :  { %v1143_v58 = vpop.f32.mrb[3].mxu0  ;;  %2374 = vmatmul.mubr.f32.gmra.mrb[108].mxu0 %v7560_v60  ;;  %v1242_v59 = vpop.f32.mrb[16].mxu1  ;;  %6600 = vmatprep.subr.bf16.mxu1 %v6599_v38  ;;  %v2691_v26 = vadd.f32 %v1141_v54, %v7398_v3 }
 0x42a   :  { %v2699_v4 = vrot.slane %v1143_v58, %v7781_v45  ;;  %v2717_v8 = vrot.slane %v1242_v59, %v7781_v45  ;;  %6570 = vmatpush1.bf16.msra.mxu0 %v6569_v46  ;;  %v1244_v9 = vpop.f32.mrb[17].mxu1  ;;  %2475 = vmatmul.mubr.f32.gmra.mrb[122].mxu1 %v7560_v60 }
 0x42b   :  { %v2735_v6 = vrot.slane %v1244_v9, %v7781_v45  ;;  %2377 = vmatprep.mubr.f32.mxu0 %v7292_v1  ;;  %6602 = vmatpush1.bf16.msra.mxu1 %v6601_v49 }
 0x42c   :  { %v2700_v18 = vcombine.high %v2699_v4, %v2699_v4  ;;  %v2724_v13 = vrot.slane %v2717_v8, %v7781_v45  ;;  %v1147_v10 = vpop.f32.mrb[4].mxu0  ;;  %6572 = vmatprep.subr.bf16.mxu0 %v6571_v55  ;;  %2478 = vmatprep.mubr.f32.mxu1 %v7292_v1 }
 0x42d   :  { %v2736_v21 = vcombine.high %v2735_v6, %v2735_v6  ;;  %v1148_v22 = vpop.f32.mrb[5].mxu0  ;;  %2378 = vmatmul.mubr.f32.gmra.mrb[110].mxu0 %v7566_v7  ;;  %v1248_v23 = vpop.f32.mrb[18].mxu1  ;;  %6604 = vmatprep.subr.bf16.mxu1 %v6603_v61 }
 0x42e   :  { %v2707_v27 = vrot.slane %v2700_v18, %v7781_v45  ;;  %v2725_v28 = vcombine.high %v2724_v13, %v2724_v13  ;;  %6574 = vmatpush1.bf16.msra.mxu0 %v6573_v12  ;;  %v1249_v29 = vpop.f32.mrb[19].mxu1  ;;  %2479 = vmatmul.mubr.f32.gmra.mrb[124].mxu1 %v7566_v7 }
 0x42f   :  { %v2743_v30 = vrot.slane %v2736_v21, %v7781_v45  ;;  %2381 = vmatprep.mubr.f32.mxu0 %v7292_v1  ;;  %6606 = vmatpush1.bf16.msra.mxu1 %v6605_v11 }
 0x430   :  { %v2709_v32 = vadd.f32 %v2707_v27, %v2691_v26  ;;  %v1151_v33 = vpop.f32.mrb[6].mxu0  ;;  %6576 = vmatprep.subr.bf16.mxu0 %v6575_v16  ;;  %2482 = vmatprep.mubr.f32.mxu1 %v7292_v1 }
 0x431   :  { %v2744_v34 = vcombine.high %v2743_v30, %v2743_v30  ;;  %v1152_v35 = vpop.f32.mrb[7].mxu0  ;;  %2382 = vmatmul.mubr.f32.gmra.mrb[112].mxu0 %v7564_v5  ;;  %v1252_v36 = vpop.f32.mrb[20].mxu1  ;;  %6608 = vmatprep.subr.bf16.mxu1 %v6607_v25 }
 0x432   :  { %v2727_v38 = vadd.f32 %v2725_v28, %v2709_v32  ;;  %6578 = vmatpush1.bf16.msra.mxu0 %v6577_v24  ;;  %v1253_v42 = vpop.f32.mrb[21].mxu1  ;;  %2483 = vmatmul.mubr.f32.gmra.mrb[126].mxu1 %v7564_v5 }
 0x433   :  { %2553 = vmatprep.mubr.f32.mxu0 %v7292_v1  ;;  %6610 = vmatpush1.bf16.msra.mxu1 %v6609_v31 }
 0x434   :  { %v7803_v43 = vadd.f32 %v2744_v34, %v2727_v38  ;;  %v1155_v46 = vpop.f32.mrb[8].mxu0  ;;  %2654 = vmatprep.mubr.f32.mxu1 %v7292_v1 }
 0x435   :  { %v1156_v47 = vpop.f32.mrb[9].mxu0  ;;  %2554 = vmatmul.mubr.f32.vlgmr.msra.gmra.mrb[114].mxu0 %v7554_v44  ;;  %v1256_v48 = vpop.f32.mrb[22].mxu1 }
 0x436   :  { %v1257_v49 = vpop.f32.mrb[23].mxu1  ;;  %2655 = vmatmul.mubr.f32.vlgmr.msra.gmra.mrb[128].mxu1 %v7554_v44  ;;  %2557 = vmatprep.mubr.f32.mxu0 %v7292_v1 }
 0x437   :  { %2658 = vmatprep.mubr.f32.mxu1 %v7292_v1 }
 0x438   :  { %v1159_v51 = vpop.f32.mrb[10].mxu0 }
 0x439   :  { %v1161_v52 = vpop.f32.mrb[11].mxu0  ;;  %2558 = vmatmul.mubr.f32.gmra.mrb[116].mxu0 %v7552_v37  ;;  %v1260_v54 = vpop.f32.mrb[24].mxu1  ;;  %v3219_v4 = vadd.f32 %v1159_v51, %v7398_v3 }
 0x43a   :  { %v3227_v55 = vrot.slane %v1161_v52, %v7781_v45  ;;  %v3245_v56 = vrot.slane %v1260_v54, %v7781_v45  ;;  %v1262_v57 = vpop.f32.mrb[25].mxu1  ;;  %2659 = vmatmul.mubr.f32.gmra.mrb[130].mxu1 %v7552_v37  ;;  %2561 = vmatprep.mubr.f32.mxu0 %v7292_v1 }
 0x43b   :  { %v3263_v44 = vrot.slane %v1262_v57, %v7781_v45  ;;  %2662 = vmatprep.mubr.f32.mxu1 %v7292_v1 }
 0x43c   :  { %v3228_v58 = vcombine.high %v3227_v55, %v3227_v55  ;;  %v3252_v59 = vrot.slane %v3245_v56, %v7781_v45  ;;  %v1165_v61 = vpop.f32.mrb[12].mxu0 }
 0x43d   :  { %v3264_v62 = vcombine.high %v3263_v44, %v3263_v44  ;;  %v1166_v0 = vpop.f32.mrb[13].mxu0  ;;  %2562 = vmatmul.mubr.f32.gmra.mrb[118].mxu0 %v7558_v53  ;;  %v1266_v2 = vpop.f32.mrb[26].mxu1 }
 0x43e   :  { %v3235_v8 = vrot.slane %v3228_v58, %v7781_v45  ;;  %v3253_v37 = vcombine.high %v3252_v59, %v3252_v59  ;;  %v1267_v9 = vpop.f32.mrb[27].mxu1  ;;  %2663 = vmatmul.mubr.f32.gmra.mrb[132].mxu1 %v7558_v53  ;;  %2565 = vmatprep.mubr.f32.mxu0 %v7292_v1 }
 0x43f   :  { %v3271_v12 = vrot.slane %v3264_v62, %v7781_v45  ;;  %2666 = vmatprep.mubr.f32.mxu1 %v7292_v1 }
 0x440   :  { %v3237_v14 = vadd.f32 %v3235_v8, %v3219_v4  ;;  %v1169_v15 = vpop.f32.mrb[14].mxu0 }
 0x441   :  { %v3272_v19 = vcombine.high %v3271_v12, %v3271_v12  ;;  %v1170_v6 = vpop.f32.mrb[15].mxu0  ;;  %2566 = vmatmul.mubr.f32.gmra.mrb[120].mxu0 %v7556_v50  ;;  %v1270_v11 = vpop.f32.mrb[28].mxu1 }
 0x442   :  { %v3255_v3 = vadd.f32 %v3253_v37, %v3237_v14  ;;  %v1271_v18 = vpop.f32.mrb[29].mxu1  ;;  %2667 = vmatmul.mubr.f32.gmra.mrb[134].mxu1 %v7556_v50  ;;  %2571 = vmatprep.mubr.f32.mxu0 %v7292_v1 }
 0x443   :  { %2672 = vmatprep.mubr.f32.mxu1 %v7292_v1 }
 0x444   :  { %v7829_v53 = vadd.f32 %v3272_v19, %v3255_v3  ;;  %v1173_v13 = vpop.f32.mrb[16].mxu0 }
 0x445   :  { %v1174_v10 = vpop.f32.mrb[17].mxu0  ;;  %2572 = vmatmul.mubr.f32.gmra.mrb[122].mxu0 %v7562_v63  ;;  %v1274_v16 = vpop.f32.mrb[30].mxu1 }
 0x446   :  { %v1275_v17 = vpop.f32.mrb[31].mxu1  ;;  %2673 = vmatmul.mubr.f32.gmra.mrb[136].mxu1 %v7562_v63  ;;  %2575 = vmatprep.mubr.f32.mxu0 %v7292_v1 }
 0x447   :  { %2676 = vmatprep.mubr.f32.mxu1 %v7292_v1 }
 0x448   :  { %v1343_v20 = vpop.f32.mrb[18].mxu0 }
 0x449   :  { %v2748_v50 = vcombine.high %v1343_v20, %v1343_v20  ;;  %v1345_v21 = vpop.f32.mrb[19].mxu0  ;;  %2576 = vmatmul.mubr.f32.gmra.mrb[124].mxu0 %v7560_v60  ;;  %v1444_v22 = vpop.f32.mrb[32].mxu1 }
 0x44a   :  { %v2766_v23 = vcombine.high %v1345_v21, %v1345_v21  ;;  %v2785_v24 = vcombine.high %v1444_v22, %v1444_v22  ;;  %v1446_v25 = vpop.f32.mrb[33].mxu1  ;;  %2677 = vmatmul.mubr.f32.gmra.mrb[138].mxu1 %v7560_v60  ;;  %2579 = vmatprep.mubr.f32.mxu0 %v7292_v1 }
 0x44b   :  { %v2755_v26 = vrot.slane %v2748_v50, %v7781_v45  ;;  %v2804_v63 = vcombine.high %v1446_v25, %v1446_v25  ;;  %2680 = vmatprep.mubr.f32.mxu1 %v7292_v1 }
 0x44c   :  { %v2773_v27 = vrot.slane %v2766_v23, %v7781_v45  ;;  %v2792_v28 = vrot.slane %v2785_v24, %v7781_v45  ;;  %v1349_v29 = vpop.f32.mrb[20].mxu0 }
 0x44d   :  { %v2762_v30 = vrot.slane %v2755_v26, %v7781_v45  ;;  %v2811_v31 = vrot.slane %v2804_v63, %v7781_v45  ;;  %v1350_v32 = vpop.f32.mrb[21].mxu0  ;;  %2580 = vmatmul.mubr.f32.gmra.mrb[126].mxu0 %v7566_v7  ;;  %v1450_v60 = vpop.f32.mrb[34].mxu1 }
 0x44e   :  { %v2774_v33 = vcombine.high %v2773_v27, %v2773_v27  ;;  %v2799_v34 = vrot.slane %v2792_v28, %v7781_v45  ;;  %v1451_v35 = vpop.f32.mrb[35].mxu1  ;;  %2681 = vmatmul.mubr.f32.gmra.mrb[140].mxu1 %v7566_v7  ;;  %2583 = vmatprep.mubr.f32.mxu0 %v7292_v1 }
 0x44f   :  { %v2764_v36 = vadd.f32 %v2762_v30, %v7803_v43  ;;  %v2812_v38 = vcombine.high %v2811_v31, %v2811_v31  ;;  %2684 = vmatprep.mubr.f32.mxu1 %v7292_v1 }
 0x450   :  { %v2781_v42 = vrot.slane %v2774_v33, %v7781_v45  ;;  %v2800_v46 = vcombine.high %v2799_v34, %v2799_v34  ;;  %v1353_v47 = vpop.f32.mrb[22].mxu0 }
 0x451   :  { %v1354_v48 = vpop.f32.mrb[23].mxu0  ;;  %2584 = vmatmul.mubr.f32.gmra.mrb[128].mxu0 %v7564_v5  ;;  %v1454_v49 = vpop.f32.mrb[36].mxu1  ;;  %v2819_v51 = vrot.slane %v2812_v38, %v7781_v45 }
 0x452   :  { %v1455_v52 = vpop.f32.mrb[37].mxu1  ;;  %2685 = vmatmul.mubr.f32.gmra.mrb[142].mxu1 %v7564_v5  ;;  %v2783_v7 = vadd.f32 %v2781_v42, %v2764_v36 }
 0x453   :  { %v2820_v54 = vcombine.high %v2819_v51, %v2819_v51 }
 0x454   :  { %v1357_v55 = vpop.f32.mrb[24].mxu0  ;;  %v2802_v43 = vadd.f32 %v2800_v46, %v2783_v7 }
 0x455   :  { %v1358_v56 = vpop.f32.mrb[25].mxu0  ;;  %v1458_v57 = vpop.f32.mrb[38].mxu1 }
 0x456   :  { %v1459_v44 = vpop.f32.mrb[39].mxu1  ;;  %v2822_v58 = vadd.f32 %v2820_v54, %v2802_v43 }
 0x458   :  { %v1361_v59 = vpop.f32.mrb[26].mxu0 }
 0x459   :  { %v3276_v61 = vcombine.high %v1361_v59, %v1361_v59  ;;  %v1363_v62 = vpop.f32.mrb[27].mxu0  ;;  %v1462_v0 = vpop.f32.mrb[40].mxu1 }
 0x45a   :  { %v3294_v2 = vcombine.high %v1363_v62, %v1363_v62  ;;  %v3313_v4 = vcombine.high %v1462_v0, %v1462_v0  ;;  %v1464_v8 = vpop.f32.mrb[41].mxu1 }
 0x45b   :  { %v3283_v37 = vrot.slane %v3276_v61, %v7781_v45  ;;  %v3332_v9 = vcombine.high %v1464_v8, %v1464_v8 }
 0x45c   :  { %v3301_v5 = vrot.slane %v3294_v2, %v7781_v45  ;;  %v3320_v12 = vrot.slane %v3313_v4, %v7781_v45  ;;  %v1367_v14 = vpop.f32.mrb[28].mxu0 }
 0x45d   :  { %v3290_v15 = vrot.slane %v3283_v37, %v7781_v45  ;;  %v3339_v19 = vrot.slane %v3332_v9, %v7781_v45  ;;  %v1368_v6 = vpop.f32.mrb[29].mxu0  ;;  %v1468_v11 = vpop.f32.mrb[42].mxu1 }
 0x45e   :  { %v3302_v3 = vcombine.high %v3301_v5, %v3301_v5  ;;  %v3327_v18 = vrot.slane %v3320_v12, %v7781_v45  ;;  %v1469_v13 = vpop.f32.mrb[43].mxu1 }
 0x45f   :  { %v3292_v10 = vadd.f32 %v3290_v15, %v7829_v53  ;;  %v3340_v16 = vcombine.high %v3339_v19, %v3339_v19 }
 0x460   :  { %v3309_v17 = vrot.slane %v3302_v3, %v7781_v45  ;;  %v3328_v20 = vcombine.high %v3327_v18, %v3327_v18  ;;  %v1371_v50 = vpop.f32.mrb[30].mxu0 }
 0x461   :  { %v1372_v21 = vpop.f32.mrb[31].mxu0  ;;  %v1472_v22 = vpop.f32.mrb[44].mxu1  ;;  %v3347_v23 = vrot.slane %v3340_v16, %v7781_v45 }
 0x462   :  { %v1473_v24 = vpop.f32.mrb[45].mxu1  ;;  %v3311_v25 = vadd.f32 %v3309_v17, %v3292_v10 }
 0x463   :  { %v3348_v26 = vcombine.high %v3347_v23, %v3347_v23 }
 0x464   :  { %v1375_v63 = vpop.f32.mrb[32].mxu0  ;;  %v3330_v27 = vadd.f32 %v3328_v20, %v3311_v25 }
 0x465   :  { %v1376_v28 = vpop.f32.mrb[33].mxu0  ;;  %v1476_v29 = vpop.f32.mrb[46].mxu1 }
 0x466   :  { %v1477_v30 = vpop.f32.mrb[47].mxu1  ;;  %v3350_v31 = vadd.f32 %v3348_v26, %v3330_v27 }
 0x468   :  { %v1545_v32 = vpop.f32.mrb[34].mxu0 }
 0x469   :  { %v1546_v53 = vpop.f32.mrb[35].mxu0  ;;  %v1646_v60 = vpop.f32.mrb[48].mxu1 }
 0x46a   :  { %v1647_v33 = vpop.f32.mrb[49].mxu1 }
 0x46c   :  { %v1549_v34 = vpop.f32.mrb[36].mxu0 }
 0x46d   :  { %v2823_v35 = vadd.f32 %v2822_v58, %v1549_v34  ;;  %v1551_v36 = vpop.f32.mrb[37].mxu0  ;;  %v1650_v38 = vpop.f32.mrb[50].mxu1 }
 0x46e   :  { %v2831_v42 = vrot.slane %v1551_v36, %v7781_v45  ;;  %v2849_v46 = vrot.slane %v1650_v38, %v7781_v45  ;;  %v1652_v47 = vpop.f32.mrb[51].mxu1 }
 0x46f   :  { %v2867_v48 = vrot.slane %v1652_v47, %v7781_v45 }
 0x470   :  { %v2832_v49 = vcombine.high %v2831_v42, %v2831_v42  ;;  %v2856_v51 = vrot.slane %v2849_v46, %v7781_v45  ;;  %v1555_v52 = vpop.f32.mrb[38].mxu0 }
 0x471   :  { %v2868_v7 = vcombine.high %v2867_v48, %v2867_v48  ;;  %v1556_v54 = vpop.f32.mrb[39].mxu0  ;;  %v1656_v55 = vpop.f32.mrb[52].mxu1 }
 0x472   :  { %v2839_v43 = vrot.slane %v2832_v49, %v7781_v45  ;;  %v2857_v56 = vcombine.high %v2856_v51, %v2856_v51  ;;  %v1657_v57 = vpop.f32.mrb[53].mxu1 }
 0x473   :  { %v2875_v44 = vrot.slane %v2868_v7, %v7781_v45 }
 0x474   :  { %v2841_v58 = vadd.f32 %v2839_v43, %v2823_v35  ;;  %v1559_v59 = vpop.f32.mrb[40].mxu0 }
 0x475   :  { %v2876_v61 = vcombine.high %v2875_v44, %v2875_v44  ;;  %v1560_v62 = vpop.f32.mrb[41].mxu0  ;;  %v1660_v0 = vpop.f32.mrb[54].mxu1 }
 0x476   :  { %v2859_v2 = vadd.f32 %v2857_v56, %v2841_v58  ;;  %v1661_v4 = vpop.f32.mrb[55].mxu1 }
 0x478   :  { %v2878_v8 = vadd.f32 %v2876_v61, %v2859_v2  ;;  %v1563_v37 = vpop.f32.mrb[42].mxu0 }
 0x479   :  { %v1564_v9 = vpop.f32.mrb[43].mxu0  ;;  %v1664_v5 = vpop.f32.mrb[56].mxu1 }
 0x47a   :  { %v1665_v12 = vpop.f32.mrb[57].mxu1 }
 0x47c   :  { %v1567_v14 = vpop.f32.mrb[44].mxu0 }
 0x47d   :  { %v3351_v15 = vadd.f32 %v3350_v31, %v1567_v14  ;;  %v1569_v19 = vpop.f32.mrb[45].mxu0  ;;  %v1668_v6 = vpop.f32.mrb[58].mxu1 }
 0x47e   :  { %v3359_v11 = vrot.slane %v1569_v19, %v7781_v45  ;;  %v3377_v3 = vrot.slane %v1668_v6, %v7781_v45  ;;  %v1670_v18 = vpop.f32.mrb[59].mxu1 }
 0x47f   :  { %v3395_v13 = vrot.slane %v1670_v18, %v7781_v45 }
 0x480   :  { %v3360_v10 = vcombine.high %v3359_v11, %v3359_v11  ;;  %v3384_v16 = vrot.slane %v3377_v3, %v7781_v45  ;;  %v1573_v17 = vpop.f32.mrb[46].mxu0 }
 0x481   :  { %v3396_v20 = vcombine.high %v3395_v13, %v3395_v13  ;;  %v1574_v50 = vpop.f32.mrb[47].mxu0  ;;  %v1674_v21 = vpop.f32.mrb[60].mxu1 }
 0x482   :  { %v3367_v22 = vrot.slane %v3360_v10, %v7781_v45  ;;  %v3385_v23 = vcombine.high %v3384_v16, %v3384_v16  ;;  %v1675_v24 = vpop.f32.mrb[61].mxu1 }
 0x483   :  { %v3403_v25 = vrot.slane %v3396_v20, %v7781_v45 }
 0x484   :  { %v3369_v26 = vadd.f32 %v3367_v22, %v3351_v15  ;;  %v1577_v63 = vpop.f32.mrb[48].mxu0 }
 0x485   :  { %v3404_v27 = vcombine.high %v3403_v25, %v3403_v25  ;;  %v1578_v28 = vpop.f32.mrb[49].mxu0  ;;  %v1678_v29 = vpop.f32.mrb[62].mxu1 }
 0x486   :  { %v3387_v30 = vadd.f32 %v3385_v23, %v3369_v26  ;;  %v1679_v31 = vpop.f32.mrb[63].mxu1 }
 0x488   :  { %v3406_v32 = vadd.f32 %v3404_v27, %v3387_v30  ;;  %v1747_v53 = vpop.f32.mrb[50].mxu0 }
 0x489   :  { %v1748_v60 = vpop.f32.mrb[51].mxu0  ;;  %v1848_v33 = vpop.f32.mrb[64].mxu1 }
 0x48a   :  { %v1849_v34 = vpop.f32.mrb[65].mxu1 }
 0x48c   :  { %v1751_v35 = vpop.f32.mrb[52].mxu0 }
 0x48d   :  { %v2880_v36 = vcombine.high %v1751_v35, %v1751_v35  ;;  %v1753_v38 = vpop.f32.mrb[53].mxu0  ;;  %v1852_v42 = vpop.f32.mrb[66].mxu1 }
 0x48e   :  { %v2898_v46 = vcombine.high %v1753_v38, %v1753_v38  ;;  %v2917_v47 = vcombine.high %v1852_v42, %v1852_v42  ;;  %v1854_v48 = vpop.f32.mrb[67].mxu1 }
 0x48f   :  { %v2887_v49 = vrot.slane %v2880_v36, %v7781_v45  ;;  %v2936_v51 = vcombine.high %v1854_v48, %v1854_v48 }
 0x490   :  { %v2905_v52 = vrot.slane %v2898_v46, %v7781_v45  ;;  %v2924_v7 = vrot.slane %v2917_v47, %v7781_v45  ;;  %v1757_v54 = vpop.f32.mrb[54].mxu0 }
 0x491   :  { %v2894_v55 = vrot.slane %v2887_v49, %v7781_v45  ;;  %v2943_v43 = vrot.slane %v2936_v51, %v7781_v45  ;;  %v1758_v56 = vpop.f32.mrb[55].mxu0  ;;  %v1858_v57 = vpop.f32.mrb[68].mxu1 }
 0x492   :  { %v2906_v44 = vcombine.high %v2905_v52, %v2905_v52  ;;  %v2931_v58 = vrot.slane %v2924_v7, %v7781_v45  ;;  %v1859_v59 = vpop.f32.mrb[69].mxu1 }
 0x493   :  { %v2896_v61 = vadd.f32 %v2894_v55, %v2878_v8  ;;  %v2944_v62 = vcombine.high %v2943_v43, %v2943_v43 }
 0x494   :  { %v2913_v0 = vrot.slane %v2906_v44, %v7781_v45  ;;  %v2932_v2 = vcombine.high %v2931_v58, %v2931_v58  ;;  %v1761_v4 = vpop.f32.mrb[56].mxu0 }
 0x495   :  { %v1762_v37 = vpop.f32.mrb[57].mxu0  ;;  %v1862_v9 = vpop.f32.mrb[70].mxu1  ;;  %v2951_v5 = vrot.slane %v2944_v62, %v7781_v45 }
 0x496   :  { %v1863_v12 = vpop.f32.mrb[71].mxu1  ;;  %v2915_v14 = vadd.f32 %v2913_v0, %v2896_v61 }
 0x497   :  { %v2952_v15 = vcombine.high %v2951_v5, %v2951_v5 }
 0x498   :  { %v1765_v19 = vpop.f32.mrb[58].mxu0  ;;  %v2934_v6 = vadd.f32 %v2932_v2, %v2915_v14 }
 0x499   :  { %v1766_v11 = vpop.f32.mrb[59].mxu0  ;;  %v1866_v3 = vpop.f32.mrb[72].mxu1 }
 0x49a   :  { %v1867_v18 = vpop.f32.mrb[73].mxu1  ;;  %v2954_v13 = vadd.f32 %v2952_v15, %v2934_v6 }
 0x49c   :  { %v1769_v10 = vpop.f32.mrb[60].mxu0 }
 0x49d   :  { %v3408_v8 = vcombine.high %v1769_v10, %v1769_v10  ;;  %v1771_v16 = vpop.f32.mrb[61].mxu0  ;;  %v1870_v17 = vpop.f32.mrb[74].mxu1 }
 0x49e   :  { %v3426_v20 = vcombine.high %v1771_v16, %v1771_v16  ;;  %v3445_v50 = vcombine.high %v1870_v17, %v1870_v17  ;;  %v1872_v21 = vpop.f32.mrb[75].mxu1 }
 0x49f   :  { %v3415_v22 = vrot.slane %v3408_v8, %v7781_v45  ;;  %v3464_v23 = vcombine.high %v1872_v21, %v1872_v21 }
 0x4a0   :  { %v3433_v24 = vrot.slane %v3426_v20, %v7781_v45  ;;  %v3452_v25 = vrot.slane %v3445_v50, %v7781_v45  ;;  %v1775_v26 = vpop.f32.mrb[62].mxu0 }
 0x4a1   :  { %v3422_v63 = vrot.slane %v3415_v22, %v7781_v45  ;;  %v3471_v27 = vrot.slane %v3464_v23, %v7781_v45  ;;  %v1776_v28 = vpop.f32.mrb[63].mxu0  ;;  %v1876_v29 = vpop.f32.mrb[76].mxu1 }
 0x4a2   :  { %v3434_v30 = vcombine.high %v3433_v24, %v3433_v24  ;;  %v3459_v31 = vrot.slane %v3452_v25, %v7781_v45  ;;  %v1877_v53 = vpop.f32.mrb[77].mxu1 }
 0x4a3   :  { %v3424_v60 = vadd.f32 %v3422_v63, %v3406_v32  ;;  %v3472_v33 = vcombine.high %v3471_v27, %v3471_v27 }
 0x4a4   :  { %v3441_v34 = vrot.slane %v3434_v30, %v7781_v45  ;;  %v3460_v35 = vcombine.high %v3459_v31, %v3459_v31  ;;  %v1779_v36 = vpop.f32.mrb[64].mxu0 }
 0x4a5   :  { %v1780_v38 = vpop.f32.mrb[65].mxu0  ;;  %v1880_v42 = vpop.f32.mrb[78].mxu1  ;;  %v3479_v46 = vrot.slane %v3472_v33, %v7781_v45 }
 0x4a6   :  { %v1881_v47 = vpop.f32.mrb[79].mxu1  ;;  %v3443_v48 = vadd.f32 %v3441_v34, %v3424_v60 }
 0x4a7   :  { %v3480_v49 = vcombine.high %v3479_v46, %v3479_v46 }
 0x4a8   :  { %v1949_v51 = vpop.f32.mrb[66].mxu0  ;;  %v3462_v52 = vadd.f32 %v3460_v35, %v3443_v48 }
 0x4a9   :  { %v1950_v7 = vpop.f32.mrb[67].mxu0  ;;  %v2050_v54 = vpop.f32.mrb[80].mxu1 }
 0x4aa   :  { %v2051_v55 = vpop.f32.mrb[81].mxu1  ;;  %v3482_v43 = vadd.f32 %v3480_v49, %v3462_v52 }
 0x4ac   :  { %v1953_v56 = vpop.f32.mrb[68].mxu0 }
 0x4ad   :  { %v1954_v32 = vpop.f32.mrb[69].mxu0  ;;  %v2054_v57 = vpop.f32.mrb[82].mxu1 }
 0x4ae   :  { %v2055_v44 = vpop.f32.mrb[83].mxu1 }
 0x4b0   :  { %v1957_v58 = vpop.f32.mrb[70].mxu0 }
 0x4b1   :  { %v2955_v59 = vadd.f32 %v2954_v13, %v1957_v58  ;;  %v1959_v61 = vpop.f32.mrb[71].mxu0  ;;  %v2058_v62 = vpop.f32.mrb[84].mxu1 }
 0x4b2   :  { %v2963_v0 = vrot.slane %v1959_v61, %v7781_v45  ;;  %v2981_v2 = vrot.slane %v2058_v62, %v7781_v45  ;;  %v2060_v4 = vpop.f32.mrb[85].mxu1 }
 0x4b3   :  { %v2999_v37 = vrot.slane %v2060_v4, %v7781_v45 }
 0x4b4   :  { %v2964_v9 = vcombine.high %v2963_v0, %v2963_v0  ;;  %v2988_v5 = vrot.slane %v2981_v2, %v7781_v45  ;;  %v1963_v12 = vpop.f32.mrb[72].mxu0 }
 0x4b5   :  { %v3000_v14 = vcombine.high %v2999_v37, %v2999_v37  ;;  %v1964_v15 = vpop.f32.mrb[73].mxu0  ;;  %v2064_v19 = vpop.f32.mrb[86].mxu1 }
 0x4b6   :  { %v2971_v6 = vrot.slane %v2964_v9, %v7781_v45  ;;  %v2989_v11 = vcombine.high %v2988_v5, %v2988_v5  ;;  %v2065_v3 = vpop.f32.mrb[87].mxu1 }
 0x4b7   :  { %v3007_v18 = vrot.slane %v3000_v14, %v7781_v45 }
 0x4b8   :  { %v2973_v13 = vadd.f32 %v2971_v6, %v2955_v59  ;;  %v1967_v10 = vpop.f32.mrb[74].mxu0 }
 0x4b9   :  { %v3008_v8 = vcombine.high %v3007_v18, %v3007_v18  ;;  %v1968_v16 = vpop.f32.mrb[75].mxu0  ;;  %v2068_v17 = vpop.f32.mrb[88].mxu1 }
 0x4ba   :  { %v2991_v20 = vadd.f32 %v2989_v11, %v2973_v13  ;;  %v2069_v50 = vpop.f32.mrb[89].mxu1 }
 0x4bc   :  { %v3010_v21 = vadd.f32 %v3008_v8, %v2991_v20  ;;  %v1971_v22 = vpop.f32.mrb[76].mxu0 }
 0x4bd   :  { %v1972_v23 = vpop.f32.mrb[77].mxu0  ;;  %v2072_v24 = vpop.f32.mrb[90].mxu1 }
 0x4be   :  { %v2073_v25 = vpop.f32.mrb[91].mxu1 }
 0x4c0   :  { %v1975_v26 = vpop.f32.mrb[78].mxu0 }
 0x4c1   :  { %v3483_v63 = vadd.f32 %v3482_v43, %v1975_v26  ;;  %v1977_v27 = vpop.f32.mrb[79].mxu0  ;;  %v2076_v28 = vpop.f32.mrb[92].mxu1 }
 0x4c2   :  { %v3491_v29 = vrot.slane %v1977_v27, %v7781_v45  ;;  %v3509_v30 = vrot.slane %v2076_v28, %v7781_v45  ;;  %v2078_v31 = vpop.f32.mrb[93].mxu1 }
 0x4c3   :  { %v3527_v53 = vrot.slane %v2078_v31, %v7781_v45 }
 0x4c4   :  { %v3492_v60 = vcombine.high %v3491_v29, %v3491_v29  ;;  %v3516_v33 = vrot.slane %v3509_v30, %v7781_v45  ;;  %v1981_v34 = vpop.f32.mrb[80].mxu0 }
 0x4c5   :  { %v3528_v35 = vcombine.high %v3527_v53, %v3527_v53  ;;  %v1982_v36 = vpop.f32.mrb[81].mxu0  ;;  %v2082_v38 = vpop.f32.mrb[94].mxu1 }
 0x4c6   :  { %v3499_v42 = vrot.slane %v3492_v60, %v7781_v45  ;;  %v3517_v46 = vcombine.high %v3516_v33, %v3516_v33  ;;  %v2083_v47 = vpop.f32.mrb[95].mxu1 }
 0x4c7   :  { %v3535_v48 = vrot.slane %v3528_v35, %v7781_v45 }
 0x4c8   :  { %v3501_v49 = vadd.f32 %v3499_v42, %v3483_v63  ;;  %v2151_v51 = vpop.f32.mrb[82].mxu0 }
 0x4c9   :  { %v3536_v52 = vcombine.high %v3535_v48, %v3535_v48  ;;  %v2152_v7 = vpop.f32.mrb[83].mxu0  ;;  %v2252_v54 = vpop.f32.mrb[96].mxu1 }
 0x4ca   :  { %v3519_v55 = vadd.f32 %v3517_v46, %v3501_v49  ;;  %v2253_v43 = vpop.f32.mrb[97].mxu1 }
 0x4cc   :  { %v3538_v56 = vadd.f32 %v3536_v52, %v3519_v55  ;;  %v2155_v32 = vpop.f32.mrb[84].mxu0 }
 0x4cd   :  { %v2156_v57 = vpop.f32.mrb[85].mxu0  ;;  %v2256_v44 = vpop.f32.mrb[98].mxu1 }
 0x4ce   :  { %v2257_v58 = vpop.f32.mrb[99].mxu1 }
 0x4d0   :  { %v2159_v59 = vpop.f32.mrb[86].mxu0 }
 0x4d1   :  { %v3012_v61 = vcombine.high %v2159_v59, %v2159_v59  ;;  %v2161_v62 = vpop.f32.mrb[87].mxu0  ;;  %v2260_v0 = vpop.f32.mrb[100].mxu1 }
 0x4d2   :  { %v3030_v2 = vcombine.high %v2161_v62, %v2161_v62  ;;  %v3049_v4 = vcombine.high %v2260_v0, %v2260_v0  ;;  %v2262_v37 = vpop.f32.mrb[101].mxu1 }
 0x4d3   :  { %v3019_v9 = vrot.slane %v3012_v61, %v7781_v45  ;;  %v3068_v5 = vcombine.high %v2262_v37, %v2262_v37 }
 0x4d4   :  { %v3037_v12 = vrot.slane %v3030_v2, %v7781_v45  ;;  %v3056_v14 = vrot.slane %v3049_v4, %v7781_v45  ;;  %v2165_v15 = vpop.f32.mrb[88].mxu0 }
 0x4d5   :  { %v3026_v19 = vrot.slane %v3019_v9, %v7781_v45  ;;  %v3075_v6 = vrot.slane %v3068_v5, %v7781_v45  ;;  %v2166_v11 = vpop.f32.mrb[89].mxu0  ;;  %v2266_v3 = vpop.f32.mrb[102].mxu1 }
 0x4d6   :  { %v3038_v18 = vcombine.high %v3037_v12, %v3037_v12  ;;  %v3063_v13 = vrot.slane %v3056_v14, %v7781_v45  ;;  %v2267_v10 = vpop.f32.mrb[103].mxu1 }
 0x4d7   :  { %v3028_v8 = vadd.f32 %v3026_v19, %v3010_v21  ;;  %v3076_v16 = vcombine.high %v3075_v6, %v3075_v6 }
 0x4d8   :  { %v3045_v17 = vrot.slane %v3038_v18, %v7781_v45  ;;  %v3064_v20 = vcombine.high %v3063_v13, %v3063_v13  ;;  %v2169_v50 = vpop.f32.mrb[90].mxu0 }
 0x4d9   :  { %v2170_v22 = vpop.f32.mrb[91].mxu0  ;;  %v2270_v23 = vpop.f32.mrb[104].mxu1  ;;  %v3083_v24 = vrot.slane %v3076_v16, %v7781_v45 }
 0x4da   :  { %v2271_v25 = vpop.f32.mrb[105].mxu1  ;;  %v3047_v26 = vadd.f32 %v3045_v17, %v3028_v8 }
 0x4db   :  { %v3084_v63 = vcombine.high %v3083_v24, %v3083_v24 }
 0x4dc   :  { %v2173_v27 = vpop.f32.mrb[92].mxu0  ;;  %v3066_v28 = vadd.f32 %v3064_v20, %v3047_v26 }
 0x4dd   :  { %v2174_v29 = vpop.f32.mrb[93].mxu0  ;;  %v2274_v30 = vpop.f32.mrb[106].mxu1 }
 0x4de   :  { %v2275_v31 = vpop.f32.mrb[107].mxu1  ;;  %v3086_v53 = vadd.f32 %v3084_v63, %v3066_v28 }
 0x4e0   :  { %v2177_v60 = vpop.f32.mrb[94].mxu0 }
 0x4e1   :  { %v3540_v21 = vcombine.high %v2177_v60, %v2177_v60  ;;  %v2179_v33 = vpop.f32.mrb[95].mxu0  ;;  %v2278_v34 = vpop.f32.mrb[108].mxu1 }
 0x4e2   :  { %v3558_v35 = vcombine.high %v2179_v33, %v2179_v33  ;;  %v3577_v36 = vcombine.high %v2278_v34, %v2278_v34  ;;  %v2280_v38 = vpop.f32.mrb[109].mxu1 }
 0x4e3   :  { %v3547_v42 = vrot.slane %v3540_v21, %v7781_v45  ;;  %v3596_v46 = vcombine.high %v2280_v38, %v2280_v38 }
 0x4e4   :  { %v3565_v47 = vrot.slane %v3558_v35, %v7781_v45  ;;  %v3584_v48 = vrot.slane %v3577_v36, %v7781_v45  ;;  %v2183_v49 = vpop.f32.mrb[96].mxu0 }
 0x4e5   :  { %v3554_v51 = vrot.slane %v3547_v42, %v7781_v45  ;;  %v3603_v52 = vrot.slane %v3596_v46, %v7781_v45  ;;  %v2184_v7 = vpop.f32.mrb[97].mxu0  ;;  %v2284_v54 = vpop.f32.mrb[110].mxu1 }
 0x4e6   :  { %v3566_v55 = vcombine.high %v3565_v47, %v3565_v47  ;;  %v3591_v43 = vrot.slane %v3584_v48, %v7781_v45  ;;  %v2285_v32 = vpop.f32.mrb[111].mxu1 }
 0x4e7   :  { %v3556_v57 = vadd.f32 %v3554_v51, %v3538_v56  ;;  %v3604_v44 = vcombine.high %v3603_v52, %v3603_v52 }
 0x4e8   :  { %v3573_v58 = vrot.slane %v3566_v55, %v7781_v45  ;;  %v3592_v59 = vcombine.high %v3591_v43, %v3591_v43  ;;  %v2353_v61 = vpop.f32.mrb[98].mxu0 }
 0x4e9   :  { %v2354_v62 = vpop.f32.mrb[99].mxu0  ;;  %v2454_v0 = vpop.f32.mrb[112].mxu1  ;;  %v3611_v2 = vrot.slane %v3604_v44, %v7781_v45 }
 0x4ea   :  { %v2455_v4 = vpop.f32.mrb[113].mxu1  ;;  %v3575_v37 = vadd.f32 %v3573_v58, %v3556_v57 }
 0x4eb   :  { %v3612_v9 = vcombine.high %v3611_v2, %v3611_v2 }
 0x4ec   :  { %v2357_v5 = vpop.f32.mrb[100].mxu0  ;;  %v3594_v12 = vadd.f32 %v3592_v59, %v3575_v37 }
 0x4ed   :  { %v2358_v14 = vpop.f32.mrb[101].mxu0  ;;  %v2458_v15 = vpop.f32.mrb[114].mxu1 }
 0x4ee   :  { %v2459_v19 = vpop.f32.mrb[115].mxu1  ;;  %v3614_v6 = vadd.f32 %v3612_v9, %v3594_v12 }
 0x4f0   :  { %v2361_v11 = vpop.f32.mrb[102].mxu0 }
 0x4f1   :  { %v2362_v56 = vpop.f32.mrb[103].mxu0  ;;  %v2462_v3 = vpop.f32.mrb[116].mxu1 }
 0x4f2   :  { %v2463_v18 = vpop.f32.mrb[117].mxu1 }
 0x4f4   :  { %v2365_v13 = vpop.f32.mrb[104].mxu0 }
 0x4f5   :  { %v3087_v10 = vadd.f32 %v3086_v53, %v2365_v13  ;;  %v2367_v8 = vpop.f32.mrb[105].mxu0  ;;  %v2466_v16 = vpop.f32.mrb[118].mxu1 }
 0x4f6   :  { %v3095_v17 = vrot.slane %v2367_v8, %v7781_v45  ;;  %v3113_v20 = vrot.slane %v2466_v16, %v7781_v45  ;;  %v2468_v50 = vpop.f32.mrb[119].mxu1 }
 0x4f7   :  { %v3131_v22 = vrot.slane %v2468_v50, %v7781_v45 }
 0x4f8   :  { %v3096_v23 = vcombine.high %v3095_v17, %v3095_v17  ;;  %v3120_v24 = vrot.slane %v3113_v20, %v7781_v45  ;;  %v2371_v25 = vpop.f32.mrb[106].mxu0 }
 0x4f9   :  { %v3132_v26 = vcombine.high %v3131_v22, %v3131_v22  ;;  %v2372_v63 = vpop.f32.mrb[107].mxu0  ;;  %v2472_v27 = vpop.f32.mrb[120].mxu1 }
 0x4fa   :  { %v3103_v28 = vrot.slane %v3096_v23, %v7781_v45  ;;  %v3121_v29 = vcombine.high %v3120_v24, %v3120_v24  ;;  %v2473_v30 = vpop.f32.mrb[121].mxu1 }
 0x4fb   :  { %v3139_v31 = vrot.slane %v3132_v26, %v7781_v45 }
 0x4fc   :  { %v3105_v53 = vadd.f32 %v3103_v28, %v3087_v10  ;;  %v2375_v60 = vpop.f32.mrb[108].mxu0 }
 0x4fd   :  { %v3140_v21 = vcombine.high %v3139_v31, %v3139_v31  ;;  %v2376_v33 = vpop.f32.mrb[109].mxu0  ;;  %v2476_v34 = vpop.f32.mrb[122].mxu1 }
 0x4fe   :  { %v3123_v35 = vadd.f32 %v3121_v29, %v3105_v53  ;;  %v2477_v36 = vpop.f32.mrb[123].mxu1 }
 0x500   :  { %v3142_v38 = vadd.f32 %v3140_v21, %v3123_v35  ;;  %v2379_v42 = vpop.f32.mrb[110].mxu0 }
 0x501   :  { %v2380_v46 = vpop.f32.mrb[111].mxu0  ;;  %v2480_v47 = vpop.f32.mrb[124].mxu1 }
 0x502   :  { %v2481_v48 = vpop.f32.mrb[125].mxu1 }
 0x504   :  { %v2383_v49 = vpop.f32.mrb[112].mxu0 }
 0x505   :  { %v3615_v51 = vadd.f32 %v3614_v6, %v2383_v49  ;;  %v2385_v52 = vpop.f32.mrb[113].mxu0  ;;  %v2484_v7 = vpop.f32.mrb[126].mxu1 }
 0x506   :  { %v3623_v54 = vrot.slane %v2385_v52, %v7781_v45  ;;  %v3641_v55 = vrot.slane %v2484_v7, %v7781_v45  ;;  %v2486_v43 = vpop.f32.mrb[127].mxu1 }
 0x507   :  { %v3659_v32 = vrot.slane %v2486_v43, %v7781_v45 }
 0x508   :  { %v3624_v57 = vcombine.high %v3623_v54, %v3623_v54  ;;  %v3648_v44 = vrot.slane %v3641_v55, %v7781_v45  ;;  %v2555_v58 = vpop.f32.mrb[114].mxu0 }
 0x509   :  { %v3660_v59 = vcombine.high %v3659_v32, %v3659_v32  ;;  %v2556_v61 = vpop.f32.mrb[115].mxu0  ;;  %v2656_v62 = vpop.f32.mrb[128].mxu1 }
 0x50a   :  { %v3631_v0 = vrot.slane %v3624_v57, %v7781_v45  ;;  %v3649_v2 = vcombine.high %v3648_v44, %v3648_v44  ;;  %v2657_v4 = vpop.f32.mrb[129].mxu1 }
 0x50b   :  { %v3667_v37 = vrot.slane %v3660_v59, %v7781_v45 }
 0x50c   :  { %v3633_v9 = vadd.f32 %v3631_v0, %v3615_v51  ;;  %v2559_v5 = vpop.f32.mrb[116].mxu0 }
 0x50d   :  { %v3668_v12 = vcombine.high %v3667_v37, %v3667_v37  ;;  %v2560_v14 = vpop.f32.mrb[117].mxu0  ;;  %v2660_v15 = vpop.f32.mrb[130].mxu1 }
 0x50e   :  { %v3651_v19 = vadd.f32 %v3649_v2, %v3633_v9  ;;  %v2661_v6 = vpop.f32.mrb[131].mxu1 }
 0x510   :  { %v3670_v11 = vadd.f32 %v3668_v12, %v3651_v19  ;;  %v2563_v56 = vpop.f32.mrb[118].mxu0 }
 0x511   :  { %v2564_v3 = vpop.f32.mrb[119].mxu0  ;;  %v2664_v18 = vpop.f32.mrb[132].mxu1 }
 0x512   :  { %v2665_v13 = vpop.f32.mrb[133].mxu1 }
 0x514   :  { %v2567_v10 = vpop.f32.mrb[120].mxu0 }
 0x515   :  { %v3144_v8 = vcombine.high %v2567_v10, %v2567_v10  ;;  %v2569_v16 = vpop.f32.mrb[121].mxu0  ;;  %v2668_v17 = vpop.f32.mrb[134].mxu1 }
 0x516   :  { %v3162_v20 = vcombine.high %v2569_v16, %v2569_v16  ;;  %v3181_v50 = vcombine.high %v2668_v17, %v2668_v17  ;;  %v2670_v22 = vpop.f32.mrb[135].mxu1 }
 0x517   :  { %v3151_v23 = vrot.slane %v3144_v8, %v7781_v45  ;;  %v3200_v24 = vcombine.high %v2670_v22, %v2670_v22 }
 0x518   :  { %v3169_v25 = vrot.slane %v3162_v20, %v7781_v45  ;;  %v3188_v26 = vrot.slane %v3181_v50, %v7781_v45  ;;  %v2573_v63 = vpop.f32.mrb[122].mxu0 }
 0x519   :  { %v3158_v27 = vrot.slane %v3151_v23, %v7781_v45  ;;  %v3207_v28 = vrot.slane %v3200_v24, %v7781_v45  ;;  %v2574_v29 = vpop.f32.mrb[123].mxu0  ;;  %v2674_v30 = vpop.f32.mrb[136].mxu1 }
 0x51a   :  { %v3170_v31 = vcombine.high %v3169_v25, %v3169_v25  ;;  %v3195_v53 = vrot.slane %v3188_v26, %v7781_v45  ;;  %v2675_v60 = vpop.f32.mrb[137].mxu1 }
 0x51b   :  { %v3160_v21 = vadd.f32 %v3158_v27, %v3142_v38  ;;  %v3208_v33 = vcombine.high %v3207_v28, %v3207_v28 }
 0x51c   :  { %v3177_v34 = vrot.slane %v3170_v31, %v7781_v45  ;;  %v3196_v35 = vcombine.high %v3195_v53, %v3195_v53  ;;  %v2577_v36 = vpop.f32.mrb[124].mxu0 }
 0x51d   :  { %v3215_v42 = vrot.slane %v3208_v33, %v7781_v45  ;;  %v2578_v46 = vpop.f32.mrb[125].mxu0  ;;  %v2678_v47 = vpop.f32.mrb[138].mxu1 }
 0x51e   :  { %v3179_v48 = vadd.f32 %v3177_v34, %v3160_v21  ;;  %v2679_v49 = vpop.f32.mrb[139].mxu1 }
 0x51f   :  { %v3216_v51 = vcombine.high %v3215_v42, %v3215_v42 }
 0x520   :  { %v3198_v52 = vadd.f32 %v3196_v35, %v3179_v48  ;;  %v2581_v7 = vpop.f32.mrb[126].mxu0 }
 0x521   :  { %v2582_v54 = vpop.f32.mrb[127].mxu0  ;;  %v2682_v55 = vpop.f32.mrb[140].mxu1 }
 0x522   :  { %v3218_v43 = vadd.f32 %v3216_v51, %v3198_v52  ;;  %v2683_v32 = vpop.f32.mrb[141].mxu1 }
 0x524   :  { %v2585_v57 = vpop.f32.mrb[128].mxu0 }
 0x525   :  { %v3672_v38 = vcombine.high %v2585_v57, %v2585_v57  ;;  %v2587_v44 = vpop.f32.mrb[129].mxu0  ;;  %v2686_v58 = vpop.f32.mrb[142].mxu1 }
 0x526   :  { %v3690_v59 = vcombine.high %v2587_v44, %v2587_v44  ;;  %v3709_v61 = vcombine.high %v2686_v58, %v2686_v58  ;;  %v2688_v62 = vpop.f32.mrb[143].mxu1 }
 0x527   :  { %v3679_v0 = vrot.slane %v3672_v38, %v7781_v45  ;;  %v3728_v2 = vcombine.high %v2688_v62, %v2688_v62 }
 0x528   :  { %v3697_v4 = vrot.slane %v3690_v59, %v7781_v45  ;;  %v3716_v37 = vrot.slane %v3709_v61, %v7781_v45 }
 0x529   :  { %v3686_v9 = vrot.slane %v3679_v0, %v7781_v45  ;;  %v3735_v5 = vrot.slane %v3728_v2, %v7781_v45 }
 0x52a   :  { %v3698_v12 = vcombine.high %v3697_v4, %v3697_v4  ;;  %v3723_v14 = vrot.slane %v3716_v37, %v7781_v45 }
 0x52b   :  { %v3688_v15 = vadd.f32 %v3686_v9, %v3670_v11  ;;  %v3736_v19 = vcombine.high %v3735_v5, %v3735_v5 }
 0x52c   :  { %v3705_v6 = vrot.slane %v3698_v12, %v7781_v45  ;;  %v3724_v56 = vcombine.high %v3723_v14, %v3723_v14 }
 0x52d   :  { %v3743_v3 = vrot.slane %v3736_v19, %v7781_v45 }
 0x52e   :  { %v3707_v18 = vadd.f32 %v3705_v6, %v3688_v15 }
 0x52f   :  { %v3744_v13 = vcombine.high %v3743_v3, %v3743_v3 }
 0x530   :  { %v3726_v10 = vadd.f32 %v3724_v56, %v3707_v18 }
 0x532   :  { %v3746_v8 = vadd.f32 %v3744_v13, %v3726_v10 }
 0x534   :  { %v3751_v16 = vrot.slane %v3746_v8, %v7461_v40 }
 0x536   :  { %v7948_v17 = vsel %vm3753_vm14, %v3218_v43, %v3751_v16 }
 0x537   :  { %7282 = dma.done.wait [#allocation4 + $0x1], 65536 }
 0x538   :  { %7283 = vsyncadd [#allocation4 + $0x1], 4294901760  ;;  %4501 = vmatprep.mubr.f32.mxu0 %v7292_v1  ;;  %4572 = vmatprep.mubr.f32.mxu1 %v7292_v1  ;;  %v3758_v11 = vld [vmem:[#allocation3 + $0x8] sm:$0xff]  ;;  %v3760_v50 = vld [vmem:[#allocation3 + $0x18] sm:$0xff] }
 0x539   :  { %v3790_v20 = vld [vmem:[#allocation3 + $0x108] sm:$0xff]  ;;  %v3792_v45 = vld [vmem:[#allocation3 + $0x118] sm:$0xff]  ;;  %v3757_v23 = vld [vmem:[#allocation3] sm:$0xff] }
 0x53a   :  { %v6611_v22 = vpack.c.bf16 %v3790_v20, %v3758_v11  ;;  %v3789_v24 = vld [vmem:[#allocation3 + $0x100] sm:$0xff]  ;;  %v6643_v25 = vpack.c.bf16 %v3792_v45, %v3760_v50  ;;  %v3759_v63 = vld [vmem:[#allocation3 + $0x10] sm:$0xff]  ;;  %v3822_v28 = vld [vmem:[#allocation3 + $0x208] sm:$0xff] }
 0x53b   :  { %v6613_v26 = vpack.c.bf16 %v3789_v24, %v3757_v23  ;;  %v3791_v27 = vld [vmem:[#allocation3 + $0x110] sm:$0xff]  ;;  %v3854_v30 = vld [vmem:[#allocation3 + $0x308] sm:$0xff]  ;;  %v3824_v31 = vld [vmem:[#allocation3 + $0x218] sm:$0xff] }
 0x53c   :  { %6612 = vmatprep.subr.bf16.mxu0 %v6611_v22  ;;  %v6645_v29 = vpack.c.bf16 %v3791_v27, %v3759_v63  ;;  %v3856_v53 = vld [vmem:[#allocation3 + $0x318] sm:$0xff]  ;;  %6644 = vmatprep.subr.bf16.mxu1 %v6643_v25  ;;  %v6615_v60 = vpack.c.bf16 %v3854_v30, %v3822_v28  ;;  %v3821_v33 = vld [vmem:[#allocation3 + $0x200] sm:$0xff]  ;;  %v3823_v35 = vld [vmem:[#allocation3 + $0x210] sm:$0xff] }
 0x53d   :  { %6614 = vmatpush1.bf16.msra.mxu0 %v6613_v26  ;;  %v6647_v21 = vpack.c.bf16 %v3856_v53, %v3824_v31  ;;  %v3853_v34 = vld [vmem:[#allocation3 + $0x300] sm:$0xff]  ;;  %v3855_v42 = vld [vmem:[#allocation3 + $0x310] sm:$0xff]  ;;  %v3886_v46 = vld [vmem:[#allocation3 + $0x408] sm:$0xff] }
 0x53e   :  { %6646 = vmatpush1.bf16.msra.mxu1 %v6645_v29  ;;  %v6617_v36 = vpack.c.bf16 %v3853_v34, %v3821_v33  ;;  %v3918_v47 = vld [vmem:[#allocation3 + $0x508] sm:$0xff]  ;;  %6616 = vmatprep.subr.bf16.mxu0 %v6615_v60  ;;  %v6649_v48 = vpack.c.bf16 %v3855_v42, %v3823_v35  ;;  %v3888_v51 = vld [vmem:[#allocation3 + $0x418] sm:$0xff]  ;;  %v3885_v7 = vld [vmem:[#allocation3 + $0x400] sm:$0xff] }
 0x53f   :  { %6648 = vmatprep.subr.bf16.mxu1 %v6647_v21  ;;  %v6619_v49 = vpack.c.bf16 %v3918_v47, %v3886_v46  ;;  %v3920_v52 = vld [vmem:[#allocation3 + $0x518] sm:$0xff]  ;;  %v3917_v55 = vld [vmem:[#allocation3 + $0x500] sm:$0xff]  ;;  %v3887_v43 = vld [vmem:[#allocation3 + $0x410] sm:$0xff] }
 0x540   :  { %v6651_v54 = vpack.c.bf16 %v3920_v52, %v3888_v51  ;;  %v3919_v32 = vld [vmem:[#allocation3 + $0x510] sm:$0xff]  ;;  %v6621_v57 = vpack.c.bf16 %v3917_v55, %v3885_v7  ;;  %v3950_v38 = vld [vmem:[#allocation3 + $0x608] sm:$0xff]  ;;  %v3952_v58 = vld [vmem:[#allocation3 + $0x618] sm:$0xff] }
 0x541   :  { %6618 = vmatpush1.bf16.msra.mxu0 %v6617_v36  ;;  %v3982_v44 = vld [vmem:[#allocation3 + $0x708] sm:$0xff]  ;;  %v6653_v59 = vpack.c.bf16 %v3919_v32, %v3887_v43  ;;  %v3984_v62 = vld [vmem:[#allocation3 + $0x718] sm:$0xff]  ;;  %v3949_v0 = vld [vmem:[#allocation3 + $0x600] sm:$0xff] }
 0x542   :  { %6650 = vmatpush1.bf16.msra.mxu1 %v6649_v48  ;;  %6620 = vmatprep.subr.bf16.mxu0 %v6619_v49  ;;  %v6623_v61 = vpack.c.bf16 %v3982_v44, %v3950_v38  ;;  %v3981_v2 = vld [vmem:[#allocation3 + $0x700] sm:$0xff]  ;;  %v6655_v4 = vpack.c.bf16 %v3984_v62, %v3952_v58  ;;  %v3951_v37 = vld [vmem:[#allocation3 + $0x610] sm:$0xff]  ;;  %v4014_v5 = vld [vmem:[#allocation3 + $0x808] sm:$0xff] }
 0x543   :  { %6652 = vmatprep.subr.bf16.mxu1 %v6651_v54  ;;  %v3983_v9 = vld [vmem:[#allocation3 + $0x710] sm:$0xff]  ;;  %v4046_v12 = vld [vmem:[#allocation3 + $0x908] sm:$0xff]  ;;  %v4016_v14 = vld [vmem:[#allocation3 + $0x818] sm:$0xff]  ;;  %v6625_v19 = vpack.c.bf16 %v3981_v2, %v3949_v0 }
 0x544   :  { %v4048_v15 = vld [vmem:[#allocation3 + $0x918] sm:$0xff]  ;;  %v6657_v6 = vpack.c.bf16 %v3983_v9, %v3951_v37  ;;  %v6627_v56 = vpack.c.bf16 %v4046_v12, %v4014_v5  ;;  %v4013_v3 = vld [vmem:[#allocation3 + $0x800] sm:$0xff]  ;;  %v4015_v13 = vld [vmem:[#allocation3 + $0x810] sm:$0xff] }
 0x545   :  { %6622 = vmatpush1.bf16.msra.mxu0 %v6621_v57  ;;  %v4045_v18 = vld [vmem:[#allocation3 + $0x900] sm:$0xff]  ;;  %v6659_v10 = vpack.c.bf16 %v4048_v15, %v4016_v14  ;;  %v4047_v8 = vld [vmem:[#allocation3 + $0x910] sm:$0xff]  ;;  %v4078_v16 = vld [vmem:[#allocation3 + $0xa08] sm:$0xff] }
 0x546   :  { %6654 = vmatpush1.bf16.msra.mxu1 %v6653_v59  ;;  %6624 = vmatprep.subr.bf16.mxu0 %v6623_v61  ;;  %v4110_v11 = vld [vmem:[#allocation3 + $0xb08] sm:$0xff]  ;;  %v4080_v20 = vld [vmem:[#allocation3 + $0xa18] sm:$0xff]  ;;  %v6629_v22 = vpack.c.bf16 %v4045_v18, %v4013_v3  ;;  %v6661_v45 = vpack.c.bf16 %v4047_v8, %v4015_v13  ;;  %v4077_v24 = vld [vmem:[#allocation3 + $0xa00] sm:$0xff] }
 0x547   :  { %6656 = vmatprep.subr.bf16.mxu1 %v6655_v4  ;;  %v4112_v50 = vld [vmem:[#allocation3 + $0xb18] sm:$0xff]  ;;  %v6631_v23 = vpack.c.bf16 %v4110_v11, %v4078_v16  ;;  %v4109_v25 = vld [vmem:[#allocation3 + $0xb00] sm:$0xff]  ;;  %v4079_v26 = vld [vmem:[#allocation3 + $0xa10] sm:$0xff] }
 0x548   :  { %v6663_v63 = vpack.c.bf16 %v4112_v50, %v4080_v20  ;;  %v4111_v27 = vld [vmem:[#allocation3 + $0xb10] sm:$0xff]  ;;  %v4142_v28 = vld [vmem:[#allocation3 + $0xc08] sm:$0xff]  ;;  %v4144_v30 = vld [vmem:[#allocation3 + $0xc18] sm:$0xff]  ;;  %v6633_v53 = vpack.c.bf16 %v4109_v25, %v4077_v24 }
 0x549   :  { %6626 = vmatpush1.bf16.msra.mxu0 %v6625_v19  ;;  %v4174_v29 = vld [vmem:[#allocation3 + $0xd08] sm:$0xff]  ;;  %v4176_v31 = vld [vmem:[#allocation3 + $0xd18] sm:$0xff]  ;;  %v6665_v60 = vpack.c.bf16 %v4111_v27, %v4079_v26  ;;  %v4141_v33 = vld [vmem:[#allocation3 + $0xc00] sm:$0xff] }
 0x54a   :  { %6658 = vmatpush1.bf16.msra.mxu1 %v6657_v6  ;;  %6628 = vmatprep.subr.bf16.mxu0 %v6627_v56  ;;  %v6635_v21 = vpack.c.bf16 %v4174_v29, %v4142_v28  ;;  %v4173_v34 = vld [vmem:[#allocation3 + $0xd00] sm:$0xff]  ;;  %v4143_v35 = vld [vmem:[#allocation3 + $0xc10] sm:$0xff]  ;;  %v6667_v36 = vpack.c.bf16 %v4176_v31, %v4144_v30  ;;  %v4206_v46 = vld [vmem:[#allocation3 + $0xe08] sm:$0xff] }
 0x54b   :  { %6660 = vmatprep.subr.bf16.mxu1 %v6659_v10  ;;  %v4175_v42 = vld [vmem:[#allocation3 + $0xd10] sm:$0xff]  ;;  %v4238_v47 = vld [vmem:[#allocation3 + $0xf08] sm:$0xff]  ;;  %v4208_v48 = vld [vmem:[#allocation3 + $0xe18] sm:$0xff]  ;;  %v6637_v51 = vpack.c.bf16 %v4173_v34, %v4141_v33 }
 0x54c   :  { %v4240_v49 = vld [vmem:[#allocation3 + $0xf18] sm:$0xff]  ;;  %v6669_v52 = vpack.c.bf16 %v4175_v42, %v4143_v35  ;;  %v6639_v7 = vpack.c.bf16 %v4238_v47, %v4206_v46  ;;  %v4205_v54 = vld [vmem:[#allocation3 + $0xe00] sm:$0xff]  ;;  %v4207_v43 = vld [vmem:[#allocation3 + $0xe10] sm:$0xff] }
 0x54d   :  { %6630 = vmatpush1.bf16.msra.mxu0 %v6629_v22  ;;  %v4237_v55 = vld [vmem:[#allocation3 + $0xf00] sm:$0xff]  ;;  %v6671_v32 = vpack.c.bf16 %v4240_v49, %v4208_v48  ;;  %v4239_v57 = vld [vmem:[#allocation3 + $0xf10] sm:$0xff]  ;;  %v3762_v38 = vld [vmem:[#allocation3 + $0x28] sm:$0xff] }
 0x54e   :  { %6662 = vmatpush1.bf16.msra.mxu1 %v6661_v45  ;;  %6632 = vmatprep.subr.bf16.mxu0 %v6631_v23  ;;  %v3794_v44 = vld [vmem:[#allocation3 + $0x128] sm:$0xff]  ;;  %v3764_v58 = vld [vmem:[#allocation3 + $0x38] sm:$0xff]  ;;  %v6641_v61 = vpack.c.bf16 %v4237_v55, %v4205_v54  ;;  %v6673_v62 = vpack.c.bf16 %v4239_v57, %v4207_v43  ;;  %v3761_v2 = vld [vmem:[#allocation3 + $0x20] sm:$0xff] }
 0x54f   :  { %6664 = vmatprep.subr.bf16.mxu1 %v6663_v63  ;;  %v3796_v59 = vld [vmem:[#allocation3 + $0x138] sm:$0xff]  ;;  %v6675_v0 = vpack.c.bf16 %v3794_v44, %v3762_v38  ;;  %v3793_v4 = vld [vmem:[#allocation3 + $0x120] sm:$0xff]  ;;  %v3763_v37 = vld [vmem:[#allocation3 + $0x30] sm:$0xff] }
 0x550   :  { %v6707_v9 = vpack.c.bf16 %v3796_v59, %v3764_v58  ;;  %v3795_v5 = vld [vmem:[#allocation3 + $0x130] sm:$0xff]  ;;  %v3826_v12 = vld [vmem:[#allocation3 + $0x228] sm:$0xff]  ;;  %v3828_v15 = vld [vmem:[#allocation3 + $0x238] sm:$0xff]  ;;  %v6677_v6 = vpack.c.bf16 %v3793_v4, %v3761_v2 }
 0x551   :  { %6634 = vmatpush1.bf16.msra.mxu0 %v6633_v53  ;;  %v3858_v14 = vld [vmem:[#allocation3 + $0x328] sm:$0xff]  ;;  %v3860_v19 = vld [vmem:[#allocation3 + $0x338] sm:$0xff]  ;;  %v6709_v56 = vpack.c.bf16 %v3795_v5, %v3763_v37  ;;  %v3825_v18 = vld [vmem:[#allocation3 + $0x220] sm:$0xff] }
 0x552   :  { %6666 = vmatpush1.bf16.msra.mxu1 %v6665_v60  ;;  %6636 = vmatprep.subr.bf16.mxu0 %v6635_v21  ;;  %v6679_v3 = vpack.c.bf16 %v3858_v14, %v3826_v12  ;;  %v3857_v13 = vld [vmem:[#allocation3 + $0x320] sm:$0xff]  ;;  %v3827_v10 = vld [vmem:[#allocation3 + $0x230] sm:$0xff]  ;;  %v6711_v8 = vpack.c.bf16 %v3860_v19, %v3828_v15  ;;  %v3890_v11 = vld [vmem:[#allocation3 + $0x428] sm:$0xff] }
 0x553   :  { %6668 = vmatprep.subr.bf16.mxu1 %v6667_v36  ;;  %v3859_v16 = vld [vmem:[#allocation3 + $0x330] sm:$0xff]  ;;  %v3922_v20 = vld [vmem:[#allocation3 + $0x528] sm:$0xff]  ;;  %v3892_v50 = vld [vmem:[#allocation3 + $0x438] sm:$0xff]  ;;  %v6681_v45 = vpack.c.bf16 %v3857_v13, %v3825_v18 }
 0x554   :  { %v3924_v22 = vld [vmem:[#allocation3 + $0x538] sm:$0xff]  ;;  %v6713_v23 = vpack.c.bf16 %v3859_v16, %v3827_v10  ;;  %v6683_v24 = vpack.c.bf16 %v3922_v20, %v3890_v11  ;;  %v3889_v25 = vld [vmem:[#allocation3 + $0x420] sm:$0xff]  ;;  %v3891_v63 = vld [vmem:[#allocation3 + $0x430] sm:$0xff] }
 0x555   :  { %6638 = vmatpush1.bf16.msra.mxu0 %v6637_v51  ;;  %v3921_v26 = vld [vmem:[#allocation3 + $0x520] sm:$0xff]  ;;  %v6715_v27 = vpack.c.bf16 %v3924_v22, %v3892_v50  ;;  %v3923_v28 = vld [vmem:[#allocation3 + $0x530] sm:$0xff]  ;;  %v3954_v29 = vld [vmem:[#allocation3 + $0x628] sm:$0xff] }
 0x556   :  { %6670 = vmatpush1.bf16.msra.mxu1 %v6669_v52  ;;  %6640 = vmatprep.subr.bf16.mxu0 %v6639_v7  ;;  %v3986_v30 = vld [vmem:[#allocation3 + $0x728] sm:$0xff]  ;;  %v3956_v31 = vld [vmem:[#allocation3 + $0x638] sm:$0xff]  ;;  %v6685_v60 = vpack.c.bf16 %v3921_v26, %v3889_v25  ;;  %v6717_v21 = vpack.c.bf16 %v3923_v28, %v3891_v63  ;;  %v3953_v34 = vld [vmem:[#allocation3 + $0x620] sm:$0xff] }
 0x557   :  { %6672 = vmatprep.subr.bf16.mxu1 %v6671_v32  ;;  %v3988_v53 = vld [vmem:[#allocation3 + $0x738] sm:$0xff]  ;;  %v6687_v33 = vpack.c.bf16 %v3986_v30, %v3954_v29  ;;  %v3985_v35 = vld [vmem:[#allocation3 + $0x720] sm:$0xff]  ;;  %v3955_v36 = vld [vmem:[#allocation3 + $0x630] sm:$0xff] }
 0x558   :  { %v6719_v42 = vpack.c.bf16 %v3988_v53, %v3956_v31  ;;  %v3987_v46 = vld [vmem:[#allocation3 + $0x730] sm:$0xff]  ;;  %v4018_v47 = vld [vmem:[#allocation3 + $0x828] sm:$0xff]  ;;  %v4020_v49 = vld [vmem:[#allocation3 + $0x838] sm:$0xff]  ;;  %v6689_v52 = vpack.c.bf16 %v3985_v35, %v3953_v34 }
 0x559   :  { %6642 = vmatpush1.bf16.msra.mxu0 %v6641_v61  ;;  %v4050_v48 = vld [vmem:[#allocation3 + $0x928] sm:$0xff]  ;;  %v4052_v51 = vld [vmem:[#allocation3 + $0x938] sm:$0xff]  ;;  %v6721_v7 = vpack.c.bf16 %v3987_v46, %v3955_v36  ;;  %v4017_v55 = vld [vmem:[#allocation3 + $0x820] sm:$0xff] }
 0x55a   :  { %6674 = vmatpush1.bf16.msra.mxu1 %v6673_v62  ;;  %6676 = vmatprep.subr.bf16.mxu0 %v6675_v0  ;;  %v6691_v54 = vpack.c.bf16 %v4050_v48, %v4018_v47  ;;  %v4049_v43 = vld [vmem:[#allocation3 + $0x920] sm:$0xff]  ;;  %v4019_v32 = vld [vmem:[#allocation3 + $0x830] sm:$0xff]  ;;  %v6723_v57 = vpack.c.bf16 %v4052_v51, %v4020_v49  ;;  %v4082_v44 = vld [vmem:[#allocation3 + $0xa28] sm:$0xff] }
 0x55b   :  { %6708 = vmatprep.subr.bf16.mxu1 %v6707_v9  ;;  %v4051_v38 = vld [vmem:[#allocation3 + $0x930] sm:$0xff]  ;;  %v4114_v58 = vld [vmem:[#allocation3 + $0xb28] sm:$0xff]  ;;  %v4084_v59 = vld [vmem:[#allocation3 + $0xa38] sm:$0xff]  ;;  %v6693_v62 = vpack.c.bf16 %v4049_v43, %v4017_v55 }
 0x55c   :  { %4502 = vmatmul.mubr.f32.vlgmr.msra.gmra.mrb[130].mxu0 %v7948_v17  ;;  %v4116_v61 = vld [vmem:[#allocation3 + $0xb38] sm:$0xff]  ;;  %v6725_v0 = vpack.c.bf16 %v4051_v38, %v4019_v32  ;;  %v6695_v2 = vpack.c.bf16 %v4114_v58, %v4082_v44  ;;  %v4081_v4 = vld [vmem:[#allocation3 + $0xa20] sm:$0xff]  ;;  %v4083_v9 = vld [vmem:[#allocation3 + $0xa30] sm:$0xff] }
 0x55d   :  { %4573 = vmatmul.mubr.f32.vlgmr.msra.gmra.mrb[144].mxu1 %v7948_v17  ;;  %6678 = vmatpush1.bf16.msra.mxu0 %v6677_v6  ;;  %v4113_v37 = vld [vmem:[#allocation3 + $0xb20] sm:$0xff]  ;;  %v6727_v5 = vpack.c.bf16 %v4116_v61, %v4084_v59  ;;  %v4115_v12 = vld [vmem:[#allocation3 + $0xb30] sm:$0xff]  ;;  %v4146_v14 = vld [vmem:[#allocation3 + $0xc28] sm:$0xff] }
 0x55e   :  { %6710 = vmatpush1.bf16.msra.mxu1 %v6709_v56  ;;  %6680 = vmatprep.subr.bf16.mxu0 %v6679_v3  ;;  %v4178_v15 = vld [vmem:[#allocation3 + $0xd28] sm:$0xff]  ;;  %v4148_v19 = vld [vmem:[#allocation3 + $0xc38] sm:$0xff]  ;;  %v6697_v56 = vpack.c.bf16 %v4113_v37, %v4081_v4  ;;  %v6729_v3 = vpack.c.bf16 %v4115_v12, %v4083_v9  ;;  %v4145_v13 = vld [vmem:[#allocation3 + $0xc20] sm:$0xff] }
 0x55f   :  { %6712 = vmatprep.subr.bf16.mxu1 %v6711_v8  ;;  %4643 = vmatprep.mubr.f32.mxu0 %v7292_v1  ;;  %v4180_v6 = vld [vmem:[#allocation3 + $0xd38] sm:$0xff]  ;;  %v6699_v18 = vpack.c.bf16 %v4178_v15, %v4146_v14  ;;  %v4177_v10 = vld [vmem:[#allocation3 + $0xd20] sm:$0xff]  ;;  %v4147_v8 = vld [vmem:[#allocation3 + $0xc30] sm:$0xff] }
 0x560   :  { %4714 = vmatprep.mubr.f32.mxu1 %v7292_v1  ;;  %v6731_v16 = vpack.c.bf16 %v4180_v6, %v4148_v19  ;;  %v4179_v11 = vld [vmem:[#allocation3 + $0xd30] sm:$0xff]  ;;  %v4210_v20 = vld [vmem:[#allocation3 + $0xe28] sm:$0xff]  ;;  %v4212_v22 = vld [vmem:[#allocation3 + $0xe38] sm:$0xff] }
 0x561   :  { %6682 = vmatpush1.bf16.msra.mxu0 %v6681_v45  ;;  %v4242_v50 = vld [vmem:[#allocation3 + $0xf28] sm:$0xff]  ;;  %v4244_v45 = vld [vmem:[#allocation3 + $0xf38] sm:$0xff]  ;;  %v4209_v26 = vld [vmem:[#allocation3 + $0xe20] sm:$0xff] }
 0x562   :  { %6714 = vmatpush1.bf16.msra.mxu1 %v6713_v23  ;;  %6684 = vmatprep.subr.bf16.mxu0 %v6683_v24  ;;  %v6701_v23 = vpack.c.bf16 %v4177_v10, %v4145_v13  ;;  %v6733_v24 = vpack.c.bf16 %v4179_v11, %v4147_v8  ;;  %v6703_v25 = vpack.c.bf16 %v4242_v50, %v4210_v20  ;;  %v4241_v63 = vld [vmem:[#allocation3 + $0xf20] sm:$0xff]  ;;  %v4243_v29 = vld [vmem:[#allocation3 + $0xf30] sm:$0xff]  ;;  %v3766_v30 = vld [vmem:[#allocation3 + $0x48] sm:$0xff] }
 0x563   :  { %6716 = vmatprep.subr.bf16.mxu1 %v6715_v27  ;;  %v4211_v27 = vld [vmem:[#allocation3 + $0xe30] sm:$0xff]  ;;  %v6735_v28 = vpack.c.bf16 %v4244_v45, %v4212_v22  ;;  %v3798_v31 = vld [vmem:[#allocation3 + $0x148] sm:$0xff]  ;;  %v3768_v53 = vld [vmem:[#allocation3 + $0x58] sm:$0xff] }
 0x564   :  { %v6739_v34 = vpack.c.bf16 %v3798_v31, %v3766_v30  ;;  %v3765_v35 = vld [vmem:[#allocation3 + $0x40] sm:$0xff]  ;;  %v3799_v47 = vld [vmem:[#allocation3 + $0x150] sm:$0xff]  ;;  %v3830_v48 = vld [vmem:[#allocation3 + $0x248] sm:$0xff] }
 0x565   :  { %6686 = vmatpush1.bf16.msra.mxu0 %v6685_v60  ;;  %v3800_v60 = vld [vmem:[#allocation3 + $0x158] sm:$0xff]  ;;  %v3797_v36 = vld [vmem:[#allocation3 + $0x140] sm:$0xff]  ;;  %v3862_v49 = vld [vmem:[#allocation3 + $0x348] sm:$0xff] }
 0x566   :  { %6718 = vmatpush1.bf16.msra.mxu1 %v6717_v21  ;;  %6688 = vmatprep.subr.bf16.mxu0 %v6687_v33  ;;  %v6705_v21 = vpack.c.bf16 %v4241_v63, %v4209_v26  ;;  %v6737_v33 = vpack.c.bf16 %v4243_v29, %v4211_v27  ;;  %v6771_v46 = vpack.c.bf16 %v3800_v60, %v3768_v53  ;;  %v3832_v51 = vld [vmem:[#allocation3 + $0x258] sm:$0xff]  ;;  %v3829_v43 = vld [vmem:[#allocation3 + $0x240] sm:$0xff]  ;;  %v3863_v44 = vld [vmem:[#allocation3 + $0x350] sm:$0xff] }
 0x567   :  { %6720 = vmatprep.subr.bf16.mxu1 %v6719_v42  ;;  %v3767_v42 = vld [vmem:[#allocation3 + $0x50] sm:$0xff]  ;;  %v6743_v55 = vpack.c.bf16 %v3862_v49, %v3830_v48  ;;  %v3861_v32 = vld [vmem:[#allocation3 + $0x340] sm:$0xff]  ;;  %v3894_v58 = vld [vmem:[#allocation3 + $0x448] sm:$0xff] }
 0x568   :  { %v3926_v59 = vld [vmem:[#allocation3 + $0x548] sm:$0xff]  ;;  %v3896_v61 = vld [vmem:[#allocation3 + $0x458] sm:$0xff]  ;;  %v3893_v37 = vld [vmem:[#allocation3 + $0x440] sm:$0xff] }
 0x569   :  { %6690 = vmatpush1.bf16.msra.mxu0 %v6689_v52  ;;  %v3864_v52 = vld [vmem:[#allocation3 + $0x358] sm:$0xff]  ;;  %v6747_v4 = vpack.c.bf16 %v3926_v59, %v3894_v58  ;;  %v3925_v9 = vld [vmem:[#allocation3 + $0x540] sm:$0xff]  ;;  %v3927_v14 = vld [vmem:[#allocation3 + $0x550] sm:$0xff] }
 0x56a   :  { %6722 = vmatpush1.bf16.msra.mxu1 %v6721_v7  ;;  %6692 = vmatprep.subr.bf16.mxu0 %v6691_v54  ;;  %v6741_v7 = vpack.c.bf16 %v3797_v36, %v3765_v35  ;;  %v6773_v54 = vpack.c.bf16 %v3799_v47, %v3767_v42  ;;  %v6775_v38 = vpack.c.bf16 %v3864_v52, %v3832_v51  ;;  %v3958_v15 = vld [vmem:[#allocation3 + $0x648] sm:$0xff]  ;;  %v3960_v6 = vld [vmem:[#allocation3 + $0x658] sm:$0xff]  ;;  %v3957_v10 = vld [vmem:[#allocation3 + $0x640] sm:$0xff] }
 0x56b   :  { %6724 = vmatprep.subr.bf16.mxu1 %v6723_v57  ;;  %v3831_v57 = vld [vmem:[#allocation3 + $0x250] sm:$0xff]  ;;  %v3990_v19 = vld [vmem:[#allocation3 + $0x748] sm:$0xff]  ;;  %v3989_v8 = vld [vmem:[#allocation3 + $0x740] sm:$0xff] }
 0x56c   :  { %v6751_v13 = vpack.c.bf16 %v3990_v19, %v3958_v15  ;;  %v3991_v20 = vld [vmem:[#allocation3 + $0x750] sm:$0xff]  ;;  %v4022_v50 = vld [vmem:[#allocation3 + $0x848] sm:$0xff]  ;;  %v4024_v45 = vld [vmem:[#allocation3 + $0x858] sm:$0xff] }
 0x56d   :  { %6694 = vmatpush1.bf16.msra.mxu0 %v6693_v62  ;;  %v3928_v62 = vld [vmem:[#allocation3 + $0x558] sm:$0xff]  ;;  %v4054_v22 = vld [vmem:[#allocation3 + $0x948] sm:$0xff]  ;;  %v4021_v63 = vld [vmem:[#allocation3 + $0x840] sm:$0xff] }
 0x56e   :  { %6726 = vmatpush1.bf16.msra.mxu1 %v6725_v0  ;;  %6696 = vmatprep.subr.bf16.mxu0 %v6695_v2  ;;  %v6745_v0 = vpack.c.bf16 %v3861_v32, %v3829_v43  ;;  %v6777_v2 = vpack.c.bf16 %v3863_v44, %v3831_v57  ;;  %v6779_v12 = vpack.c.bf16 %v3928_v62, %v3896_v61  ;;  %v4053_v27 = vld [vmem:[#allocation3 + $0x940] sm:$0xff]  ;;  %v4055_v30 = vld [vmem:[#allocation3 + $0x950] sm:$0xff]  ;;  %v4086_v31 = vld [vmem:[#allocation3 + $0xa48] sm:$0xff] }
 0x56f   :  { %6728 = vmatprep.subr.bf16.mxu1 %v6727_v5  ;;  %v3895_v5 = vld [vmem:[#allocation3 + $0x450] sm:$0xff]  ;;  %v6755_v26 = vpack.c.bf16 %v4054_v22, %v4022_v50  ;;  %v4118_v53 = vld [vmem:[#allocation3 + $0xb48] sm:$0xff]  ;;  %v4088_v60 = vld [vmem:[#allocation3 + $0xa58] sm:$0xff] }
 0x570   :  { %v6759_v35 = vpack.c.bf16 %v4118_v53, %v4086_v31  ;;  %v4085_v36 = vld [vmem:[#allocation3 + $0xa40] sm:$0xff]  ;;  %v4119_v48 = vld [vmem:[#allocation3 + $0xb50] sm:$0xff]  ;;  %v4150_v49 = vld [vmem:[#allocation3 + $0xc48] sm:$0xff] }
 0x571   :  { %6698 = vmatpush1.bf16.msra.mxu0 %v6697_v56  ;;  %v3992_v56 = vld [vmem:[#allocation3 + $0x758] sm:$0xff]  ;;  %v4117_v42 = vld [vmem:[#allocation3 + $0xb40] sm:$0xff]  ;;  %v4182_v51 = vld [vmem:[#allocation3 + $0xd48] sm:$0xff] }
 0x572   :  { %6730 = vmatpush1.bf16.msra.mxu1 %v6729_v3  ;;  %6700 = vmatprep.subr.bf16.mxu0 %v6699_v18  ;;  %v6749_v3 = vpack.c.bf16 %v3925_v9, %v3893_v37  ;;  %v6781_v18 = vpack.c.bf16 %v3927_v14, %v3895_v5  ;;  %v6783_v11 = vpack.c.bf16 %v3992_v56, %v3960_v6  ;;  %v4152_v52 = vld [vmem:[#allocation3 + $0xc58] sm:$0xff]  ;;  %v4149_v32 = vld [vmem:[#allocation3 + $0xc40] sm:$0xff]  ;;  %v4183_v58 = vld [vmem:[#allocation3 + $0xd50] sm:$0xff] }
 0x573   :  { %6732 = vmatprep.subr.bf16.mxu1 %v6731_v16  ;;  %v3959_v16 = vld [vmem:[#allocation3 + $0x650] sm:$0xff]  ;;  %v6763_v43 = vpack.c.bf16 %v4182_v51, %v4150_v49  ;;  %v4181_v57 = vld [vmem:[#allocation3 + $0xd40] sm:$0xff]  ;;  %v4214_v59 = vld [vmem:[#allocation3 + $0xe48] sm:$0xff] }
 0x574   :  { %v4246_v61 = vld [vmem:[#allocation3 + $0xf48] sm:$0xff]  ;;  %v4216_v62 = vld [vmem:[#allocation3 + $0xe58] sm:$0xff]  ;;  %v4213_v9 = vld [vmem:[#allocation3 + $0xe40] sm:$0xff] }
 0x575   :  { %6702 = vmatpush1.bf16.msra.mxu0 %v6701_v23  ;;  %v4056_v23 = vld [vmem:[#allocation3 + $0x958] sm:$0xff]  ;;  %v6767_v37 = vpack.c.bf16 %v4246_v61, %v4214_v59  ;;  %v4245_v5 = vld [vmem:[#allocation3 + $0xf40] sm:$0xff]  ;;  %v4247_v15 = vld [vmem:[#allocation3 + $0xf50] sm:$0xff] }
 0x576   :  { %6734 = vmatpush1.bf16.msra.mxu1 %v6733_v24  ;;  %6704 = vmatprep.subr.bf16.mxu0 %v6703_v25  ;;  %v6753_v24 = vpack.c.bf16 %v3989_v8, %v3957_v10  ;;  %v6785_v25 = vpack.c.bf16 %v3991_v20, %v3959_v16  ;;  %v6787_v29 = vpack.c.bf16 %v4056_v23, %v4024_v45  ;;  %v3770_v19 = vld [vmem:[#allocation3 + $0x68] sm:$0xff]  ;;  %v3772_v56 = vld [vmem:[#allocation3 + $0x78] sm:$0xff]  ;;  %v3769_v8 = vld [vmem:[#allocation3 + $0x60] sm:$0xff] }
 0x577   :  { %6736 = vmatprep.subr.bf16.mxu1 %v6735_v28  ;;  %v4023_v28 = vld [vmem:[#allocation3 + $0x850] sm:$0xff]  ;;  %v3802_v6 = vld [vmem:[#allocation3 + $0x168] sm:$0xff]  ;;  %v3801_v16 = vld [vmem:[#allocation3 + $0x160] sm:$0xff] }
 0x578   :  { %v6803_v10 = vpack.c.bf16 %v3802_v6, %v3770_v19  ;;  %v3803_v50 = vld [vmem:[#allocation3 + $0x170] sm:$0xff]  ;;  %v3834_v22 = vld [vmem:[#allocation3 + $0x268] sm:$0xff]  ;;  %v3836_v23 = vld [vmem:[#allocation3 + $0x278] sm:$0xff] }
 0x579   :  { %6706 = vmatpush1.bf16.msra.mxu0 %v6705_v21  ;;  %v4120_v21 = vld [vmem:[#allocation3 + $0xb58] sm:$0xff]  ;;  %v3866_v45 = vld [vmem:[#allocation3 + $0x368] sm:$0xff]  ;;  %v3867_v31 = vld [vmem:[#allocation3 + $0x370] sm:$0xff] }
 0x57a   :  { %6738 = vmatpush1.bf16.msra.mxu1 %v6737_v33  ;;  %6740 = vmatprep.subr.bf16.mxu0 %v6739_v34  ;;  %v6757_v33 = vpack.c.bf16 %v4053_v27, %v4021_v63  ;;  %v6789_v34 = vpack.c.bf16 %v4055_v30, %v4023_v28  ;;  %v6791_v47 = vpack.c.bf16 %v4120_v21, %v4088_v60  ;;  %v3833_v27 = vld [vmem:[#allocation3 + $0x260] sm:$0xff]  ;;  %v3898_v53 = vld [vmem:[#allocation3 + $0x468] sm:$0xff]  ;;  %v3900_v21 = vld [vmem:[#allocation3 + $0x478] sm:$0xff] }
 0x57b   :  { %6772 = vmatprep.subr.bf16.mxu1 %v6771_v46  ;;  %v4087_v46 = vld [vmem:[#allocation3 + $0xa50] sm:$0xff]  ;;  %v6807_v63 = vpack.c.bf16 %v3866_v45, %v3834_v22  ;;  %v3865_v28 = vld [vmem:[#allocation3 + $0x360] sm:$0xff]  ;;  %v3930_v60 = vld [vmem:[#allocation3 + $0x568] sm:$0xff] }
 0x57c   :  { %4644 = vmatmul.mubr.f32.vlgmr.msra.gmra.mrb[132].mxu0 %v7948_v17  ;;  %v3931_v49 = vld [vmem:[#allocation3 + $0x570] sm:$0xff]  ;;  %v3962_v51 = vld [vmem:[#allocation3 + $0x668] sm:$0xff] }
 0x57d   :  { %4715 = vmatmul.mubr.f32.vlgmr.msra.gmra.mrb[146].mxu1 %v7948_v17  ;;  %6742 = vmatpush1.bf16.msra.mxu0 %v6741_v7  ;;  %v4184_v7 = vld [vmem:[#allocation3 + $0xd58] sm:$0xff]  ;;  %v3995_v59 = vld [vmem:[#allocation3 + $0x770] sm:$0xff]  ;;  %v4026_v61 = vld [vmem:[#allocation3 + $0x868] sm:$0xff] }
 0x57e   :  { %6774 = vmatpush1.bf16.msra.mxu1 %v6773_v54  ;;  %6744 = vmatprep.subr.bf16.mxu0 %v6743_v55  ;;  %v6761_v54 = vpack.c.bf16 %v4117_v42, %v4085_v36  ;;  %v6793_v55 = vpack.c.bf16 %v4119_v48, %v4087_v46  ;;  %v6795_v44 = vpack.c.bf16 %v4184_v7, %v4152_v52  ;;  %v3897_v42 = vld [vmem:[#allocation3 + $0x460] sm:$0xff]  ;;  %v3994_v52 = vld [vmem:[#allocation3 + $0x768] sm:$0xff]  ;;  %v3964_v7 = vld [vmem:[#allocation3 + $0x678] sm:$0xff] }
 0x57f   :  { %6776 = vmatprep.subr.bf16.mxu1 %v6775_v38  ;;  %4785 = vmatprep.mubr.f32.mxu0 %v7292_v1  ;;  %v4151_v38 = vld [vmem:[#allocation3 + $0xc50] sm:$0xff]  ;;  %v6811_v36 = vpack.c.bf16 %v3930_v60, %v3898_v53  ;;  %v3929_v46 = vld [vmem:[#allocation3 + $0x560] sm:$0xff]  ;;  %v4090_v6 = vld [vmem:[#allocation3 + $0xa68] sm:$0xff] }
 0x580   :  { %4856 = vmatprep.mubr.f32.mxu1 %v7292_v1  ;;  %v4059_v19 = vld [vmem:[#allocation3 + $0x970] sm:$0xff]  ;;  %v4154_v45 = vld [vmem:[#allocation3 + $0xc68] sm:$0xff] }
 0x581   :  { %6746 = vmatpush1.bf16.msra.mxu0 %v6745_v0  ;;  %v4248_v0 = vld [vmem:[#allocation3 + $0xf58] sm:$0xff]  ;;  %v4123_v22 = vld [vmem:[#allocation3 + $0xb70] sm:$0xff]  ;;  %v4218_v60 = vld [vmem:[#allocation3 + $0xe68] sm:$0xff] }
 0x582   :  { %6778 = vmatpush1.bf16.msra.mxu1 %v6777_v2  ;;  %6748 = vmatprep.subr.bf16.mxu0 %v6747_v4  ;;  %v6765_v2 = vpack.c.bf16 %v4181_v57, %v4149_v32  ;;  %v6797_v4 = vpack.c.bf16 %v4183_v58, %v4151_v38  ;;  %v6799_v14 = vpack.c.bf16 %v4248_v0, %v4216_v62  ;;  %v3961_v57 = vld [vmem:[#allocation3 + $0x660] sm:$0xff]  ;;  %v4058_v62 = vld [vmem:[#allocation3 + $0x968] sm:$0xff]  ;;  %v4028_v0 = vld [vmem:[#allocation3 + $0x878] sm:$0xff] }
 0x583   :  { %6780 = vmatprep.subr.bf16.mxu1 %v6779_v12  ;;  %v4215_v12 = vld [vmem:[#allocation3 + $0xe50] sm:$0xff]  ;;  %v6815_v32 = vpack.c.bf16 %v3994_v52, %v3962_v51  ;;  %v3993_v38 = vld [vmem:[#allocation3 + $0x760] sm:$0xff]  ;;  %v3774_v52 = vld [vmem:[#allocation3 + $0x88] sm:$0xff] }
 0x584   :  { %v4187_v53 = vld [vmem:[#allocation3 + $0xd70] sm:$0xff] }
 0x585   :  { %6750 = vmatpush1.bf16.msra.mxu0 %v6749_v3  ;;  %v3804_v3 = vld [vmem:[#allocation3 + $0x178] sm:$0xff]  ;;  %v4251_v51 = vld [vmem:[#allocation3 + $0xf70] sm:$0xff] }
 0x586   :  { %6782 = vmatpush1.bf16.msra.mxu1 %v6781_v18  ;;  %6752 = vmatprep.subr.bf16.mxu0 %v6751_v13  ;;  %v6769_v18 = vpack.c.bf16 %v4245_v5, %v4213_v9  ;;  %v6801_v13 = vpack.c.bf16 %v4247_v15, %v4215_v12  ;;  %v6835_v20 = vpack.c.bf16 %v3804_v3, %v3772_v56  ;;  %v4025_v5 = vld [vmem:[#allocation3 + $0x860] sm:$0xff]  ;;  %v4122_v56 = vld [vmem:[#allocation3 + $0xb68] sm:$0xff]  ;;  %v4092_v3 = vld [vmem:[#allocation3 + $0xa78] sm:$0xff] }
 0x587   :  { %6784 = vmatprep.subr.bf16.mxu1 %v6783_v11  ;;  %v3771_v11 = vld [vmem:[#allocation3 + $0x70] sm:$0xff]  ;;  %v6819_v9 = vpack.c.bf16 %v4058_v62, %v4026_v61  ;;  %v4057_v12 = vld [vmem:[#allocation3 + $0x960] sm:$0xff]  ;;  %v3838_v62 = vld [vmem:[#allocation3 + $0x288] sm:$0xff] }
 0x588   :  { %v3807_v61 = vld [vmem:[#allocation3 + $0x190] sm:$0xff] }
 0x589   :  { %6754 = vmatpush1.bf16.msra.mxu0 %v6753_v24  ;;  %v3868_v24 = vld [vmem:[#allocation3 + $0x378] sm:$0xff] }
 0x58a   :  { %6786 = vmatpush1.bf16.msra.mxu1 %v6785_v25  ;;  %6756 = vmatprep.subr.bf16.mxu0 %v6755_v26  ;;  %v6805_v25 = vpack.c.bf16 %v3801_v16, %v3769_v8  ;;  %v6837_v26 = vpack.c.bf16 %v3803_v50, %v3771_v11  ;;  %v6839_v30 = vpack.c.bf16 %v3868_v24, %v3836_v23  ;;  %v4089_v16 = vld [vmem:[#allocation3 + $0xa60] sm:$0xff]  ;;  %v4186_v23 = vld [vmem:[#allocation3 + $0xd68] sm:$0xff]  ;;  %v4156_v24 = vld [vmem:[#allocation3 + $0xc78] sm:$0xff] }
 0x58b   :  { %6788 = vmatprep.subr.bf16.mxu1 %v6787_v29  ;;  %v3835_v29 = vld [vmem:[#allocation3 + $0x270] sm:$0xff]  ;;  %v6823_v8 = vpack.c.bf16 %v4122_v56, %v4090_v6  ;;  %v4121_v11 = vld [vmem:[#allocation3 + $0xb60] sm:$0xff]  ;;  %v3902_v56 = vld [vmem:[#allocation3 + $0x488] sm:$0xff] }
 0x58c   :  { %v3871_v6 = vld [vmem:[#allocation3 + $0x390] sm:$0xff] }
 0x58d   :  { %6758 = vmatpush1.bf16.msra.mxu0 %v6757_v33  ;;  %v3932_v33 = vld [vmem:[#allocation3 + $0x578] sm:$0xff] }
 0x58e   :  { %6790 = vmatpush1.bf16.msra.mxu1 %v6789_v34  ;;  %6760 = vmatprep.subr.bf16.mxu0 %v6759_v35  ;;  %v6809_v34 = vpack.c.bf16 %v3865_v28, %v3833_v27  ;;  %v6841_v35 = vpack.c.bf16 %v3867_v31, %v3835_v29  ;;  %v6843_v48 = vpack.c.bf16 %v3932_v33, %v3900_v21  ;;  %v4153_v28 = vld [vmem:[#allocation3 + $0xc60] sm:$0xff]  ;;  %v4250_v21 = vld [vmem:[#allocation3 + $0xf68] sm:$0xff]  ;;  %v4220_v33 = vld [vmem:[#allocation3 + $0xe78] sm:$0xff] }
 0x58f   :  { %6792 = vmatprep.subr.bf16.mxu1 %v6791_v47  ;;  %v3899_v47 = vld [vmem:[#allocation3 + $0x470] sm:$0xff]  ;;  %v6827_v27 = vpack.c.bf16 %v4186_v23, %v4154_v45  ;;  %v4185_v29 = vld [vmem:[#allocation3 + $0xd60] sm:$0xff]  ;;  %v3966_v23 = vld [vmem:[#allocation3 + $0x688] sm:$0xff] }
 0x590   :  { %v3935_v45 = vld [vmem:[#allocation3 + $0x590] sm:$0xff] }
 0x591   :  { %6762 = vmatpush1.bf16.msra.mxu0 %v6761_v54  ;;  %v3996_v54 = vld [vmem:[#allocation3 + $0x778] sm:$0xff] }
 0x592   :  { %6794 = vmatpush1.bf16.msra.mxu1 %v6793_v55  ;;  %6764 = vmatprep.subr.bf16.mxu0 %v6763_v43  ;;  %v6813_v55 = vpack.c.bf16 %v3929_v46, %v3897_v42  ;;  %v6845_v43 = vpack.c.bf16 %v3931_v49, %v3899_v47  ;;  %v6847_v58 = vpack.c.bf16 %v3996_v54, %v3964_v7  ;;  %v4217_v46 = vld [vmem:[#allocation3 + $0xe60] sm:$0xff]  ;;  %v3806_v7 = vld [vmem:[#allocation3 + $0x188] sm:$0xff]  ;;  %v3776_v54 = vld [vmem:[#allocation3 + $0x98] sm:$0xff] }
 0x593   :  { %6796 = vmatprep.subr.bf16.mxu1 %v6795_v44  ;;  %v3963_v44 = vld [vmem:[#allocation3 + $0x670] sm:$0xff]  ;;  %v6831_v42 = vpack.c.bf16 %v4250_v21, %v4218_v60  ;;  %v4249_v47 = vld [vmem:[#allocation3 + $0xf60] sm:$0xff]  ;;  %v4030_v21 = vld [vmem:[#allocation3 + $0x888] sm:$0xff] }
 0x594   :  { %v3999_v60 = vld [vmem:[#allocation3 + $0x790] sm:$0xff] }
 0x595   :  { %6766 = vmatpush1.bf16.msra.mxu0 %v6765_v2  ;;  %v4060_v2 = vld [vmem:[#allocation3 + $0x978] sm:$0xff] }
 0x596   :  { %6798 = vmatpush1.bf16.msra.mxu1 %v6797_v4  ;;  %6768 = vmatprep.subr.bf16.mxu0 %v6767_v37  ;;  %v6817_v4 = vpack.c.bf16 %v3993_v38, %v3961_v57  ;;  %v6849_v37 = vpack.c.bf16 %v3995_v59, %v3963_v44  ;;  %v6851_v15 = vpack.c.bf16 %v4060_v2, %v4028_v0  ;;  %v3773_v38 = vld [vmem:[#allocation3 + $0x80] sm:$0xff]  ;;  %v3870_v0 = vld [vmem:[#allocation3 + $0x388] sm:$0xff]  ;;  %v3840_v2 = vld [vmem:[#allocation3 + $0x298] sm:$0xff] }
 0x597   :  { %6800 = vmatprep.subr.bf16.mxu1 %v6799_v14  ;;  %v4027_v14 = vld [vmem:[#allocation3 + $0x870] sm:$0xff]  ;;  %v6867_v57 = vpack.c.bf16 %v3806_v7, %v3774_v52  ;;  %v3805_v44 = vld [vmem:[#allocation3 + $0x180] sm:$0xff]  ;;  %v4094_v7 = vld [vmem:[#allocation3 + $0xa88] sm:$0xff] }
 0x598   :  { %v4063_v52 = vld [vmem:[#allocation3 + $0x990] sm:$0xff] }
 0x599   :  { %6770 = vmatpush1.bf16.msra.mxu0 %v6769_v18  ;;  %v4124_v18 = vld [vmem:[#allocation3 + $0xb78] sm:$0xff] }
 0x59a   :  { %6802 = vmatpush1.bf16.msra.mxu1 %v6801_v13  ;;  %6804 = vmatprep.subr.bf16.mxu0 %v6803_v10  ;;  %v6821_v13 = vpack.c.bf16 %v4057_v12, %v4025_v5  ;;  %v6853_v10 = vpack.c.bf16 %v4059_v19, %v4027_v14  ;;  %v6855_v50 = vpack.c.bf16 %v4124_v18, %v4092_v3  ;;  %v3837_v12 = vld [vmem:[#allocation3 + $0x280] sm:$0xff]  ;;  %v3934_v3 = vld [vmem:[#allocation3 + $0x588] sm:$0xff]  ;;  %v3904_v18 = vld [vmem:[#allocation3 + $0x498] sm:$0xff] }
 0x59b   :  { %6836 = vmatprep.subr.bf16.mxu1 %v6835_v20  ;;  %v4091_v20 = vld [vmem:[#allocation3 + $0xa70] sm:$0xff]  ;;  %v6871_v5 = vpack.c.bf16 %v3870_v0, %v3838_v62  ;;  %v3869_v14 = vld [vmem:[#allocation3 + $0x380] sm:$0xff]  ;;  %v4158_v0 = vld [vmem:[#allocation3 + $0xc88] sm:$0xff] }
 0x59c   :  { %4786 = vmatmul.mubr.f32.vlgmr.msra.gmra.mrb[134].mxu0 %v7948_v17  ;;  %v4127_v62 = vld [vmem:[#allocation3 + $0xb90] sm:$0xff] }
 0x59d   :  { %4857 = vmatmul.mubr.f32.vlgmr.msra.gmra.mrb[148].mxu1 %v7948_v17  ;;  %6806 = vmatpush1.bf16.msra.mxu0 %v6805_v25  ;;  %v4188_v25 = vld [vmem:[#allocation3 + $0xd78] sm:$0xff] }
 0x59e   :  { %6838 = vmatpush1.bf16.msra.mxu1 %v6837_v26  ;;  %6808 = vmatprep.subr.bf16.mxu0 %v6807_v63  ;;  %v6825_v26 = vpack.c.bf16 %v4121_v11, %v4089_v16  ;;  %v6857_v63 = vpack.c.bf16 %v4123_v22, %v4091_v20  ;;  %v6859_v31 = vpack.c.bf16 %v4188_v25, %v4156_v24  ;;  %v3901_v11 = vld [vmem:[#allocation3 + $0x480] sm:$0xff]  ;;  %v3998_v24 = vld [vmem:[#allocation3 + $0x788] sm:$0xff]  ;;  %v3968_v25 = vld [vmem:[#allocation3 + $0x698] sm:$0xff] }
 0x59f   :  { %6840 = vmatprep.subr.bf16.mxu1 %v6839_v30  ;;  %4927 = vmatprep.mubr.f32.mxu0 %v7292_v1  ;;  %v4155_v30 = vld [vmem:[#allocation3 + $0xc70] sm:$0xff]  ;;  %v6875_v16 = vpack.c.bf16 %v3934_v3, %v3902_v56  ;;  %v3933_v20 = vld [vmem:[#allocation3 + $0x580] sm:$0xff]  ;;  %v4222_v3 = vld [vmem:[#allocation3 + $0xe88] sm:$0xff] }
 0x5a0   :  { %4998 = vmatprep.mubr.f32.mxu1 %v7292_v1  ;;  %v4191_v56 = vld [vmem:[#allocation3 + $0xd90] sm:$0xff] }
 0x5a1   :  { %6810 = vmatpush1.bf16.msra.mxu0 %v6809_v34  ;;  %v4252_v34 = vld [vmem:[#allocation3 + $0xf78] sm:$0xff] }
 0x5a2   :  { %6842 = vmatpush1.bf16.msra.mxu1 %v6841_v35  ;;  %6812 = vmatprep.subr.bf16.mxu0 %v6811_v36  ;;  %v6829_v35 = vpack.c.bf16 %v4185_v29, %v4153_v28  ;;  %v6861_v36 = vpack.c.bf16 %v4187_v53, %v4155_v30  ;;  %v6863_v49 = vpack.c.bf16 %v4252_v34, %v4220_v33  ;;  %v3965_v29 = vld [vmem:[#allocation3 + $0x680] sm:$0xff]  ;;  %v4062_v33 = vld [vmem:[#allocation3 + $0x988] sm:$0xff]  ;;  %v4032_v34 = vld [vmem:[#allocation3 + $0x898] sm:$0xff] }
 0x5a3   :  { %6844 = vmatprep.subr.bf16.mxu1 %v6843_v48  ;;  %v4219_v48 = vld [vmem:[#allocation3 + $0xe70] sm:$0xff]  ;;  %v6879_v28 = vpack.c.bf16 %v3998_v24, %v3966_v23  ;;  %v3997_v30 = vld [vmem:[#allocation3 + $0x780] sm:$0xff]  ;;  %v3778_v24 = vld [vmem:[#allocation3 + $0xa8] sm:$0xff] }
 0x5a4   :  { %v4255_v23 = vld [vmem:[#allocation3 + $0xf90] sm:$0xff] }
 0x5a5   :  { %6814 = vmatpush1.bf16.msra.mxu0 %v6813_v55  ;;  %v3808_v55 = vld [vmem:[#allocation3 + $0x198] sm:$0xff] }
 0x5a6   :  { %6846 = vmatpush1.bf16.msra.mxu1 %v6845_v43  ;;  %6816 = vmatprep.subr.bf16.mxu0 %v6815_v32  ;;  %v6833_v43 = vpack.c.bf16 %v4249_v47, %v4217_v46  ;;  %v6865_v32 = vpack.c.bf16 %v4251_v51, %v4219_v48  ;;  %v6899_v59 = vpack.c.bf16 %v3808_v55, %v3776_v54  ;;  %v4029_v47 = vld [vmem:[#allocation3 + $0x880] sm:$0xff]  ;;  %v4126_v54 = vld [vmem:[#allocation3 + $0xb88] sm:$0xff]  ;;  %v4096_v55 = vld [vmem:[#allocation3 + $0xa98] sm:$0xff] }
 0x5a7   :  { %6848 = vmatprep.subr.bf16.mxu1 %v6847_v58  ;;  %v3775_v58 = vld [vmem:[#allocation3 + $0x90] sm:$0xff]  ;;  %v6883_v46 = vpack.c.bf16 %v4062_v33, %v4030_v21  ;;  %v4061_v48 = vld [vmem:[#allocation3 + $0x980] sm:$0xff]  ;;  %v3842_v33 = vld [vmem:[#allocation3 + $0x2a8] sm:$0xff] }
 0x5a8   :  { %v3811_v21 = vld [vmem:[#allocation3 + $0x1b0] sm:$0xff] }
 0x5a9   :  { %6818 = vmatpush1.bf16.msra.mxu0 %v6817_v4  ;;  %v3872_v4 = vld [vmem:[#allocation3 + $0x398] sm:$0xff] }
 0x5aa   :  { %6850 = vmatpush1.bf16.msra.mxu1 %v6849_v37  ;;  %6820 = vmatprep.subr.bf16.mxu0 %v6819_v9  ;;  %v6869_v37 = vpack.c.bf16 %v3805_v44, %v3773_v38  ;;  %v6901_v9 = vpack.c.bf16 %v3807_v61, %v3775_v58  ;;  %v6903_v19 = vpack.c.bf16 %v3872_v4, %v3840_v2  ;;  %v4093_v44 = vld [vmem:[#allocation3 + $0xa80] sm:$0xff]  ;;  %v4190_v2 = vld [vmem:[#allocation3 + $0xd88] sm:$0xff]  ;;  %v4160_v4 = vld [vmem:[#allocation3 + $0xc98] sm:$0xff] }
 0x5ab   :  { %6852 = vmatprep.subr.bf16.mxu1 %v6851_v15  ;;  %v3839_v15 = vld [vmem:[#allocation3 + $0x290] sm:$0xff]  ;;  %v6887_v38 = vpack.c.bf16 %v4126_v54, %v4094_v7  ;;  %v4125_v58 = vld [vmem:[#allocation3 + $0xb80] sm:$0xff]  ;;  %v3906_v54 = vld [vmem:[#allocation3 + $0x4a8] sm:$0xff] }
 0x5ac   :  { %v3875_v7 = vld [vmem:[#allocation3 + $0x3b0] sm:$0xff] }
 0x5ad   :  { %6822 = vmatpush1.bf16.msra.mxu0 %v6821_v13  ;;  %v3936_v13 = vld [vmem:[#allocation3 + $0x598] sm:$0xff] }
 0x5ae   :  { %6854 = vmatpush1.bf16.msra.mxu1 %v6853_v10  ;;  %6824 = vmatprep.subr.bf16.mxu0 %v6823_v8  ;;  %v6873_v10 = vpack.c.bf16 %v3869_v14, %v3837_v12  ;;  %v6905_v8 = vpack.c.bf16 %v3871_v6, %v3839_v15  ;;  %v6907_v22 = vpack.c.bf16 %v3936_v13, %v3904_v18  ;;  %v4157_v14 = vld [vmem:[#allocation3 + $0xc80] sm:$0xff]  ;;  %v4254_v18 = vld [vmem:[#allocation3 + $0xf88] sm:$0xff]  ;;  %v4224_v13 = vld [vmem:[#allocation3 + $0xe98] sm:$0xff] }
 0x5af   :  { %6856 = vmatprep.subr.bf16.mxu1 %v6855_v50  ;;  %v3903_v50 = vld [vmem:[#allocation3 + $0x490] sm:$0xff]  ;;  %v6891_v12 = vpack.c.bf16 %v4190_v2, %v4158_v0  ;;  %v4189_v15 = vld [vmem:[#allocation3 + $0xd80] sm:$0xff]  ;;  %v3970_v2 = vld [vmem:[#allocation3 + $0x6a8] sm:$0xff] }
 0x5b0   :  { %v3939_v0 = vld [vmem:[#allocation3 + $0x5b0] sm:$0xff] }
 0x5b1   :  { %6826 = vmatpush1.bf16.msra.mxu0 %v6825_v26  ;;  %v4000_v26 = vld [vmem:[#allocation3 + $0x798] sm:$0xff] }
 0x5b2   :  { %6858 = vmatpush1.bf16.msra.mxu1 %v6857_v63  ;;  %6828 = vmatprep.subr.bf16.mxu0 %v6827_v27  ;;  %v6877_v63 = vpack.c.bf16 %v3933_v20, %v3901_v11  ;;  %v6909_v27 = vpack.c.bf16 %v3935_v45, %v3903_v50  ;;  %v6911_v53 = vpack.c.bf16 %v4000_v26, %v3968_v25  ;;  %v4221_v20 = vld [vmem:[#allocation3 + $0xe80] sm:$0xff]  ;;  %v3810_v25 = vld [vmem:[#allocation3 + $0x1a8] sm:$0xff]  ;;  %v3780_v26 = vld [vmem:[#allocation3 + $0xb8] sm:$0xff] }
 0x5b3   :  { %6860 = vmatprep.subr.bf16.mxu1 %v6859_v31  ;;  %v3967_v31 = vld [vmem:[#allocation3 + $0x690] sm:$0xff]  ;;  %v6895_v11 = vpack.c.bf16 %v4254_v18, %v4222_v3  ;;  %v4253_v50 = vld [vmem:[#allocation3 + $0xf80] sm:$0xff]  ;;  %v4034_v18 = vld [vmem:[#allocation3 + $0x8a8] sm:$0xff] }
 0x5b4   :  { %v4003_v3 = vld [vmem:[#allocation3 + $0x7b0] sm:$0xff] }
 0x5b5   :  { %6830 = vmatpush1.bf16.msra.mxu0 %v6829_v35  ;;  %v4064_v35 = vld [vmem:[#allocation3 + $0x998] sm:$0xff] }
 0x5b6   :  { %6862 = vmatpush1.bf16.msra.mxu1 %v6861_v36  ;;  %6832 = vmatprep.subr.bf16.mxu0 %v6831_v42  ;;  %v6881_v36 = vpack.c.bf16 %v3997_v30, %v3965_v29  ;;  %v6913_v42 = vpack.c.bf16 %v3999_v60, %v3967_v31  ;;  %v6915_v51 = vpack.c.bf16 %v4064_v35, %v4032_v34  ;;  %v3777_v30 = vld [vmem:[#allocation3 + $0xa0] sm:$0xff]  ;;  %v3874_v34 = vld [vmem:[#allocation3 + $0x3a8] sm:$0xff]  ;;  %v3844_v35 = vld [vmem:[#allocation3 + $0x2b8] sm:$0xff] }
 0x5b7   :  { %6864 = vmatprep.subr.bf16.mxu1 %v6863_v49  ;;  %v4031_v49 = vld [vmem:[#allocation3 + $0x890] sm:$0xff]  ;;  %v6931_v29 = vpack.c.bf16 %v3810_v25, %v3778_v24  ;;  %v3809_v31 = vld [vmem:[#allocation3 + $0x1a0] sm:$0xff]  ;;  %v4098_v25 = vld [vmem:[#allocation3 + $0xaa8] sm:$0xff] }
 0x5b8   :  { %v4067_v24 = vld [vmem:[#allocation3 + $0x9b0] sm:$0xff] }
 0x5b9   :  { %6834 = vmatpush1.bf16.msra.mxu0 %v6833_v43  ;;  %v4128_v43 = vld [vmem:[#allocation3 + $0xb98] sm:$0xff] }
 0x5ba   :  { %6866 = vmatpush1.bf16.msra.mxu1 %v6865_v32  ;;  %6868 = vmatprep.subr.bf16.mxu0 %v6867_v57  ;;  %v6885_v32 = vpack.c.bf16 %v4061_v48, %v4029_v47  ;;  %v6917_v57 = vpack.c.bf16 %v4063_v52, %v4031_v49  ;;  %v6919_v61 = vpack.c.bf16 %v4128_v43, %v4096_v55  ;;  %v3841_v48 = vld [vmem:[#allocation3 + $0x2a0] sm:$0xff]  ;;  %v3938_v55 = vld [vmem:[#allocation3 + $0x5a8] sm:$0xff]  ;;  %v3908_v43 = vld [vmem:[#allocation3 + $0x4b8] sm:$0xff] }
 0x5bb   :  { %6900 = vmatprep.subr.bf16.mxu1 %v6899_v59  ;;  %v4095_v59 = vld [vmem:[#allocation3 + $0xa90] sm:$0xff]  ;;  %v6935_v47 = vpack.c.bf16 %v3874_v34, %v3842_v33  ;;  %v3873_v49 = vld [vmem:[#allocation3 + $0x3a0] sm:$0xff]  ;;  %v4162_v34 = vld [vmem:[#allocation3 + $0xca8] sm:$0xff] }
 0x5bc   :  { %4928 = vmatmul.mubr.f32.vlgmr.msra.gmra.mrb[136].mxu0 %v7948_v17  ;;  %v4131_v33 = vld [vmem:[#allocation3 + $0xbb0] sm:$0xff] }
 0x5bd   :  { %4999 = vmatmul.mubr.f32.vlgmr.msra.gmra.mrb[150].mxu1 %v7948_v17  ;;  %6870 = vmatpush1.bf16.msra.mxu0 %v6869_v37  ;;  %v4192_v37 = vld [vmem:[#allocation3 + $0xd98] sm:$0xff] }
 0x5be   :  { %6902 = vmatpush1.bf16.msra.mxu1 %v6901_v9  ;;  %6872 = vmatprep.subr.bf16.mxu0 %v6871_v5  ;;  %v6889_v9 = vpack.c.bf16 %v4125_v58, %v4093_v44  ;;  %v6921_v5 = vpack.c.bf16 %v4127_v62, %v4095_v59  ;;  %v6923_v6 = vpack.c.bf16 %v4192_v37, %v4160_v4  ;;  %v3905_v58 = vld [vmem:[#allocation3 + $0x4a0] sm:$0xff]  ;;  %v4002_v4 = vld [vmem:[#allocation3 + $0x7a8] sm:$0xff]  ;;  %v3972_v37 = vld [vmem:[#allocation3 + $0x6b8] sm:$0xff] }
 0x5bf   :  { %6904 = vmatprep.subr.bf16.mxu1 %v6903_v19  ;;  %5069 = vmatprep.mubr.f32.mxu0 %v7292_v1  ;;  %v4159_v19 = vld [vmem:[#allocation3 + $0xc90] sm:$0xff]  ;;  %v6939_v44 = vpack.c.bf16 %v3938_v55, %v3906_v54  ;;  %v3937_v59 = vld [vmem:[#allocation3 + $0x5a0] sm:$0xff]  ;;  %v4226_v55 = vld [vmem:[#allocation3 + $0xea8] sm:$0xff] }
 0x5c0   :  { %5140 = vmatprep.mubr.f32.mxu1 %v7292_v1  ;;  %v4195_v54 = vld [vmem:[#allocation3 + $0xdb0] sm:$0xff] }
 0x5c1   :  { %6874 = vmatpush1.bf16.msra.mxu0 %v6873_v10  ;;  %v4256_v10 = vld [vmem:[#allocation3 + $0xf98] sm:$0xff] }
 0x5c2   :  { %6906 = vmatpush1.bf16.msra.mxu1 %v6905_v8  ;;  %6876 = vmatprep.subr.bf16.mxu0 %v6875_v16  ;;  %v6893_v8 = vpack.c.bf16 %v4189_v15, %v4157_v14  ;;  %v6925_v16 = vpack.c.bf16 %v4191_v56, %v4159_v19  ;;  %v6927_v45 = vpack.c.bf16 %v4256_v10, %v4224_v13  ;;  %v3969_v15 = vld [vmem:[#allocation3 + $0x6a0] sm:$0xff]  ;;  %v4066_v13 = vld [vmem:[#allocation3 + $0x9a8] sm:$0xff]  ;;  %v4036_v10 = vld [vmem:[#allocation3 + $0x8b8] sm:$0xff] }
 0x5c3   :  { %6908 = vmatprep.subr.bf16.mxu1 %v6907_v22  ;;  %v4223_v22 = vld [vmem:[#allocation3 + $0xe90] sm:$0xff]  ;;  %v6943_v14 = vpack.c.bf16 %v4002_v4, %v3970_v2  ;;  %v4001_v19 = vld [vmem:[#allocation3 + $0x7a0] sm:$0xff]  ;;  %v3782_v4 = vld [vmem:[#allocation3 + $0xc8] sm:$0xff] }
 0x5c4   :  { %v4259_v2 = vld [vmem:[#allocation3 + $0xfb0] sm:$0xff] }
 0x5c5   :  { %6878 = vmatpush1.bf16.msra.mxu0 %v6877_v63  ;;  %v3812_v63 = vld [vmem:[#allocation3 + $0x1b8] sm:$0xff] }
 0x5c6   :  { %6910 = vmatpush1.bf16.msra.mxu1 %v6909_v27  ;;  %6880 = vmatprep.subr.bf16.mxu0 %v6879_v28  ;;  %v6897_v27 = vpack.c.bf16 %v4253_v50, %v4221_v20  ;;  %v6929_v28 = vpack.c.bf16 %v4255_v23, %v4223_v22  ;;  %v6963_v60 = vpack.c.bf16 %v3812_v63, %v3780_v26  ;;  %v4033_v50 = vld [vmem:[#allocation3 + $0x8a0] sm:$0xff]  ;;  %v4130_v26 = vld [vmem:[#allocation3 + $0xba8] sm:$0xff]  ;;  %v4100_v63 = vld [vmem:[#allocation3 + $0xab8] sm:$0xff] }
 0x5c7   :  { %6912 = vmatprep.subr.bf16.mxu1 %v6911_v53  ;;  %v3779_v53 = vld [vmem:[#allocation3 + $0xb0] sm:$0xff]  ;;  %v6947_v20 = vpack.c.bf16 %v4066_v13, %v4034_v18  ;;  %v4065_v22 = vld [vmem:[#allocation3 + $0x9a0] sm:$0xff]  ;;  %v3846_v13 = vld [vmem:[#allocation3 + $0x2c8] sm:$0xff] }
 0x5c8   :  { %v3815_v18 = vld [vmem:[#allocation3 + $0x1d0] sm:$0xff] }
 0x5c9   :  { %6882 = vmatpush1.bf16.msra.mxu0 %v6881_v36  ;;  %v3876_v36 = vld [vmem:[#allocation3 + $0x3b8] sm:$0xff] }
 0x5ca   :  { %6914 = vmatpush1.bf16.msra.mxu1 %v6913_v42  ;;  %6884 = vmatprep.subr.bf16.mxu0 %v6883_v46  ;;  %v6933_v42 = vpack.c.bf16 %v3809_v31, %v3777_v30  ;;  %v6965_v46 = vpack.c.bf16 %v3811_v21, %v3779_v53  ;;  %v6967_v52 = vpack.c.bf16 %v3876_v36, %v3844_v35  ;;  %v4097_v31 = vld [vmem:[#allocation3 + $0xaa0] sm:$0xff]  ;;  %v4194_v35 = vld [vmem:[#allocation3 + $0xda8] sm:$0xff]  ;;  %v4164_v36 = vld [vmem:[#allocation3 + $0xcb8] sm:$0xff] }
 0x5cb   :  { %6916 = vmatprep.subr.bf16.mxu1 %v6915_v51  ;;  %v3843_v51 = vld [vmem:[#allocation3 + $0x2b0] sm:$0xff]  ;;  %v6951_v30 = vpack.c.bf16 %v4130_v26, %v4098_v25  ;;  %v4129_v53 = vld [vmem:[#allocation3 + $0xba0] sm:$0xff]  ;;  %v3910_v26 = vld [vmem:[#allocation3 + $0x4c8] sm:$0xff] }
 0x5cc   :  { %v3879_v25 = vld [vmem:[#allocation3 + $0x3d0] sm:$0xff] }
 0x5cd   :  { %6886 = vmatpush1.bf16.msra.mxu0 %v6885_v32  ;;  %v3940_v32 = vld [vmem:[#allocation3 + $0x5b8] sm:$0xff] }
 0x5ce   :  { %6918 = vmatpush1.bf16.msra.mxu1 %v6917_v57  ;;  %6888 = vmatprep.subr.bf16.mxu0 %v6887_v38  ;;  %v6937_v57 = vpack.c.bf16 %v3873_v49, %v3841_v48  ;;  %v6969_v38 = vpack.c.bf16 %v3875_v7, %v3843_v51  ;;  %v6971_v62 = vpack.c.bf16 %v3940_v32, %v3908_v43  ;;  %v4161_v49 = vld [vmem:[#allocation3 + $0xca0] sm:$0xff]  ;;  %v4258_v43 = vld [vmem:[#allocation3 + $0xfa8] sm:$0xff]  ;;  %v4228_v32 = vld [vmem:[#allocation3 + $0xeb8] sm:$0xff] }
 0x5cf   :  { %6920 = vmatprep.subr.bf16.mxu1 %v6919_v61  ;;  %v3907_v61 = vld [vmem:[#allocation3 + $0x4b0] sm:$0xff]  ;;  %v6955_v48 = vpack.c.bf16 %v4194_v35, %v4162_v34  ;;  %v4193_v51 = vld [vmem:[#allocation3 + $0xda0] sm:$0xff]  ;;  %v3974_v35 = vld [vmem:[#allocation3 + $0x6c8] sm:$0xff] }
 0x5d0   :  { %v3943_v34 = vld [vmem:[#allocation3 + $0x5d0] sm:$0xff] }
 0x5d1   :  { %6890 = vmatpush1.bf16.msra.mxu0 %v6889_v9  ;;  %v4004_v9 = vld [vmem:[#allocation3 + $0x7b8] sm:$0xff] }
 0x5d2   :  { %6922 = vmatpush1.bf16.msra.mxu1 %v6921_v5  ;;  %6892 = vmatprep.subr.bf16.mxu0 %v6891_v12  ;;  %v6941_v5 = vpack.c.bf16 %v3937_v59, %v3905_v58  ;;  %v6973_v12 = vpack.c.bf16 %v3939_v0, %v3907_v61  ;;  %v6975_v56 = vpack.c.bf16 %v4004_v9, %v3972_v37  ;;  %v4225_v59 = vld [vmem:[#allocation3 + $0xea0] sm:$0xff]  ;;  %v3814_v37 = vld [vmem:[#allocation3 + $0x1c8] sm:$0xff]  ;;  %v3784_v9 = vld [vmem:[#allocation3 + $0xd8] sm:$0xff] }
 0x5d3   :  { %6924 = vmatprep.subr.bf16.mxu1 %v6923_v6  ;;  %v3971_v6 = vld [vmem:[#allocation3 + $0x6b0] sm:$0xff]  ;;  %v6959_v58 = vpack.c.bf16 %v4258_v43, %v4226_v55  ;;  %v4257_v61 = vld [vmem:[#allocation3 + $0xfa0] sm:$0xff]  ;;  %v4038_v43 = vld [vmem:[#allocation3 + $0x8c8] sm:$0xff] }
 0x5d4   :  { %v4007_v55 = vld [vmem:[#allocation3 + $0x7d0] sm:$0xff] }
 0x5d5   :  { %6894 = vmatpush1.bf16.msra.mxu0 %v6893_v8  ;;  %v4068_v8 = vld [vmem:[#allocation3 + $0x9b8] sm:$0xff] }
 0x5d6   :  { %6926 = vmatpush1.bf16.msra.mxu1 %v6925_v16  ;;  %6896 = vmatprep.subr.bf16.mxu0 %v6895_v11  ;;  %v6945_v16 = vpack.c.bf16 %v4001_v19, %v3969_v15  ;;  %v6977_v11 = vpack.c.bf16 %v4003_v3, %v3971_v6  ;;  %v6979_v23 = vpack.c.bf16 %v4068_v8, %v4036_v10  ;;  %v3781_v19 = vld [vmem:[#allocation3 + $0xc0] sm:$0xff]  ;;  %v3878_v10 = vld [vmem:[#allocation3 + $0x3c8] sm:$0xff]  ;;  %v3848_v8 = vld [vmem:[#allocation3 + $0x2d8] sm:$0xff] }
 0x5d7   :  { %6928 = vmatprep.subr.bf16.mxu1 %v6927_v45  ;;  %v4035_v45 = vld [vmem:[#allocation3 + $0x8b0] sm:$0xff]  ;;  %v6995_v15 = vpack.c.bf16 %v3814_v37, %v3782_v4  ;;  %v3813_v6 = vld [vmem:[#allocation3 + $0x1c0] sm:$0xff]  ;;  %v4102_v37 = vld [vmem:[#allocation3 + $0xac8] sm:$0xff] }
 0x5d8   :  { %v4071_v4 = vld [vmem:[#allocation3 + $0x9d0] sm:$0xff] }
 0x5d9   :  { %6898 = vmatpush1.bf16.msra.mxu0 %v6897_v27  ;;  %v4132_v27 = vld [vmem:[#allocation3 + $0xbb8] sm:$0xff] }
 0x5da   :  { %6930 = vmatpush1.bf16.msra.mxu1 %v6929_v28  ;;  %6932 = vmatprep.subr.bf16.mxu0 %v6931_v29  ;;  %v6949_v28 = vpack.c.bf16 %v4065_v22, %v4033_v50  ;;  %v6981_v29 = vpack.c.bf16 %v4067_v24, %v4035_v45  ;;  %v6983_v21 = vpack.c.bf16 %v4132_v27, %v4100_v63  ;;  %v3845_v22 = vld [vmem:[#allocation3 + $0x2c0] sm:$0xff]  ;;  %v3942_v63 = vld [vmem:[#allocation3 + $0x5c8] sm:$0xff]  ;;  %v3912_v27 = vld [vmem:[#allocation3 + $0x4d8] sm:$0xff] }
 0x5db   :  { %6964 = vmatprep.subr.bf16.mxu1 %v6963_v60  ;;  %v4099_v60 = vld [vmem:[#allocation3 + $0xab0] sm:$0xff]  ;;  %v6999_v50 = vpack.c.bf16 %v3878_v10, %v3846_v13  ;;  %v3877_v45 = vld [vmem:[#allocation3 + $0x3c0] sm:$0xff]  ;;  %v4166_v10 = vld [vmem:[#allocation3 + $0xcc8] sm:$0xff] }
 0x5dc   :  { %5070 = vmatmul.mubr.f32.vlgmr.msra.gmra.mrb[138].mxu0 %v7948_v17  ;;  %v4135_v13 = vld [vmem:[#allocation3 + $0xbd0] sm:$0xff] }
 0x5dd   :  { %5141 = vmatmul.mubr.f32.vlgmr.msra.gmra.mrb[152].mxu1 %v7948_v17  ;;  %6934 = vmatpush1.bf16.msra.mxu0 %v6933_v42  ;;  %v4196_v42 = vld [vmem:[#allocation3 + $0xdb8] sm:$0xff] }
 0x5de   :  { %6966 = vmatpush1.bf16.msra.mxu1 %v6965_v46  ;;  %6936 = vmatprep.subr.bf16.mxu0 %v6935_v47  ;;  %v6953_v46 = vpack.c.bf16 %v4129_v53, %v4097_v31  ;;  %v6985_v47 = vpack.c.bf16 %v4131_v33, %v4099_v60  ;;  %v6987_v7 = vpack.c.bf16 %v4196_v42, %v4164_v36  ;;  %v3909_v53 = vld [vmem:[#allocation3 + $0x4c0] sm:$0xff]  ;;  %v4006_v36 = vld [vmem:[#allocation3 + $0x7c8] sm:$0xff]  ;;  %v3976_v42 = vld [vmem:[#allocation3 + $0x6d8] sm:$0xff] }
 0x5df   :  { %6968 = vmatprep.subr.bf16.mxu1 %v6967_v52  ;;  %5211 = vmatprep.mubr.f32.mxu0 %v7292_v1  ;;  %v4163_v52 = vld [vmem:[#allocation3 + $0xcb0] sm:$0xff]  ;;  %v7003_v31 = vpack.c.bf16 %v3942_v63, %v3910_v26  ;;  %v3941_v60 = vld [vmem:[#allocation3 + $0x5c0] sm:$0xff]  ;;  %v4230_v63 = vld [vmem:[#allocation3 + $0xec8] sm:$0xff] }
 0x5e0   :  { %5282 = vmatprep.mubr.f32.mxu1 %v7292_v1  ;;  %v4199_v26 = vld [vmem:[#allocation3 + $0xdd0] sm:$0xff] }
 0x5e1   :  { %6938 = vmatpush1.bf16.msra.mxu0 %v6937_v57  ;;  %v4260_v57 = vld [vmem:[#allocation3 + $0xfb8] sm:$0xff] }
 0x5e2   :  { %6970 = vmatpush1.bf16.msra.mxu1 %v6969_v38  ;;  %6940 = vmatprep.subr.bf16.mxu0 %v6939_v44  ;;  %v6957_v38 = vpack.c.bf16 %v4193_v51, %v4161_v49  ;;  %v6989_v44 = vpack.c.bf16 %v4195_v54, %v4163_v52  ;;  %v6991_v0 = vpack.c.bf16 %v4260_v57, %v4228_v32  ;;  %v3973_v51 = vld [vmem:[#allocation3 + $0x6c0] sm:$0xff]  ;;  %v4070_v32 = vld [vmem:[#allocation3 + $0x9c8] sm:$0xff]  ;;  %v4040_v57 = vld [vmem:[#allocation3 + $0x8d8] sm:$0xff] }
 0x5e3   :  { %6972 = vmatprep.subr.bf16.mxu1 %v6971_v62  ;;  %v4227_v62 = vld [vmem:[#allocation3 + $0xeb0] sm:$0xff]  ;;  %v7007_v49 = vpack.c.bf16 %v4006_v36, %v3974_v35  ;;  %v4005_v52 = vld [vmem:[#allocation3 + $0x7c0] sm:$0xff]  ;;  %v3786_v36 = vld [vmem:[#allocation3 + $0xe8] sm:$0xff] }
 0x5e4   :  { %v4263_v35 = vld [vmem:[#allocation3 + $0xfd0] sm:$0xff] }
 0x5e5   :  { %6942 = vmatpush1.bf16.msra.mxu0 %v6941_v5  ;;  %v3816_v5 = vld [vmem:[#allocation3 + $0x1d8] sm:$0xff] }
 0x5e6   :  { %6974 = vmatpush1.bf16.msra.mxu1 %v6973_v12  ;;  %6944 = vmatprep.subr.bf16.mxu0 %v6943_v14  ;;  %v6961_v12 = vpack.c.bf16 %v4257_v61, %v4225_v59  ;;  %v6993_v14 = vpack.c.bf16 %v4259_v2, %v4227_v62  ;;  %v7027_v3 = vpack.c.bf16 %v3816_v5, %v3784_v9  ;;  %v4037_v61 = vld [vmem:[#allocation3 + $0x8c0] sm:$0xff]  ;;  %v4134_v9 = vld [vmem:[#allocation3 + $0xbc8] sm:$0xff]  ;;  %v4104_v5 = vld [vmem:[#allocation3 + $0xad8] sm:$0xff] }
 0x5e7   :  { %6976 = vmatprep.subr.bf16.mxu1 %v6975_v56  ;;  %v3783_v56 = vld [vmem:[#allocation3 + $0xd0] sm:$0xff]  ;;  %v7011_v59 = vpack.c.bf16 %v4070_v32, %v4038_v43  ;;  %v4069_v62 = vld [vmem:[#allocation3 + $0x9c0] sm:$0xff]  ;;  %v3850_v32 = vld [vmem:[#allocation3 + $0x2e8] sm:$0xff] }
 0x5e8   :  { %v3819_v43 = vld [vmem:[#allocation3 + $0x1f0] sm:$0xff] }
 0x5e9   :  { %6946 = vmatpush1.bf16.msra.mxu0 %v6945_v16  ;;  %v3880_v16 = vld [vmem:[#allocation3 + $0x3d8] sm:$0xff] }
 0x5ea   :  { %6978 = vmatpush1.bf16.msra.mxu1 %v6977_v11  ;;  %6948 = vmatprep.subr.bf16.mxu0 %v6947_v20  ;;  %v6997_v11 = vpack.c.bf16 %v3813_v6, %v3781_v19  ;;  %v7029_v20 = vpack.c.bf16 %v3815_v18, %v3783_v56  ;;  %v7031_v24 = vpack.c.bf16 %v3880_v16, %v3848_v8  ;;  %v4101_v6 = vld [vmem:[#allocation3 + $0xac0] sm:$0xff]  ;;  %v4198_v8 = vld [vmem:[#allocation3 + $0xdc8] sm:$0xff]  ;;  %v4168_v16 = vld [vmem:[#allocation3 + $0xcd8] sm:$0xff] }
 0x5eb   :  { %6980 = vmatprep.subr.bf16.mxu1 %v6979_v23  ;;  %v3847_v23 = vld [vmem:[#allocation3 + $0x2d0] sm:$0xff]  ;;  %v7015_v19 = vpack.c.bf16 %v4134_v9, %v4102_v37  ;;  %v4133_v56 = vld [vmem:[#allocation3 + $0xbc0] sm:$0xff]  ;;  %v3914_v9 = vld [vmem:[#allocation3 + $0x4e8] sm:$0xff] }
 0x5ec   :  { %v3883_v37 = vld [vmem:[#allocation3 + $0x3f0] sm:$0xff] }
 0x5ed   :  { %6950 = vmatpush1.bf16.msra.mxu0 %v6949_v28  ;;  %v3944_v28 = vld [vmem:[#allocation3 + $0x5d8] sm:$0xff] }
 0x5ee   :  { %6982 = vmatpush1.bf16.msra.mxu1 %v6981_v29  ;;  %6952 = vmatprep.subr.bf16.mxu0 %v6951_v30  ;;  %v7001_v29 = vpack.c.bf16 %v3877_v45, %v3845_v22  ;;  %v7033_v30 = vpack.c.bf16 %v3879_v25, %v3847_v23  ;;  %v7035_v33 = vpack.c.bf16 %v3944_v28, %v3912_v27  ;;  %v4165_v45 = vld [vmem:[#allocation3 + $0xcc0] sm:$0xff]  ;;  %v4262_v27 = vld [vmem:[#allocation3 + $0xfc8] sm:$0xff]  ;;  %v4232_v28 = vld [vmem:[#allocation3 + $0xed8] sm:$0xff] }
 0x5ef   :  { %6984 = vmatprep.subr.bf16.mxu1 %v6983_v21  ;;  %v3911_v21 = vld [vmem:[#allocation3 + $0x4d0] sm:$0xff]  ;;  %v7019_v22 = vpack.c.bf16 %v4198_v8, %v4166_v10  ;;  %v4197_v23 = vld [vmem:[#allocation3 + $0xdc0] sm:$0xff]  ;;  %v3978_v8 = vld [vmem:[#allocation3 + $0x6e8] sm:$0xff] }
 0x5f0   :  { %v3947_v10 = vld [vmem:[#allocation3 + $0x5f0] sm:$0xff] }
 0x5f1   :  { %6954 = vmatpush1.bf16.msra.mxu0 %v6953_v46  ;;  %v4008_v46 = vld [vmem:[#allocation3 + $0x7d8] sm:$0xff] }
 0x5f2   :  { %6986 = vmatpush1.bf16.msra.mxu1 %v6985_v47  ;;  %6956 = vmatprep.subr.bf16.mxu0 %v6955_v48  ;;  %v7005_v47 = vpack.c.bf16 %v3941_v60, %v3909_v53  ;;  %v7037_v48 = vpack.c.bf16 %v3943_v34, %v3911_v21  ;;  %v7039_v54 = vpack.c.bf16 %v4008_v46, %v3976_v42  ;;  %v4229_v60 = vld [vmem:[#allocation3 + $0xec0] sm:$0xff]  ;;  %v3818_v42 = vld [vmem:[#allocation3 + $0x1e8] sm:$0xff]  ;;  %v3788_v46 = vld [vmem:[#allocation3 + $0xf8] sm:$0xff] }
 0x5f3   :  { %6988 = vmatprep.subr.bf16.mxu1 %v6987_v7  ;;  %v3975_v7 = vld [vmem:[#allocation3 + $0x6d0] sm:$0xff]  ;;  %v7023_v53 = vpack.c.bf16 %v4262_v27, %v4230_v63  ;;  %v4261_v21 = vld [vmem:[#allocation3 + $0xfc0] sm:$0xff]  ;;  %v4042_v27 = vld [vmem:[#allocation3 + $0x8e8] sm:$0xff] }
 0x5f4   :  { %v4011_v63 = vld [vmem:[#allocation3 + $0x7f0] sm:$0xff] }
 0x5f5   :  { %6958 = vmatpush1.bf16.msra.mxu0 %v6957_v38  ;;  %v4072_v38 = vld [vmem:[#allocation3 + $0x9d8] sm:$0xff] }
 0x5f6   :  { %6990 = vmatpush1.bf16.msra.mxu1 %v6989_v44  ;;  %6960 = vmatprep.subr.bf16.mxu0 %v6959_v58  ;;  %v7009_v44 = vpack.c.bf16 %v4005_v52, %v3973_v51  ;;  %v7041_v58 = vpack.c.bf16 %v4007_v55, %v3975_v7  ;;  %v7043_v2 = vpack.c.bf16 %v4072_v38, %v4040_v57  ;;  %v3785_v52 = vld [vmem:[#allocation3 + $0xe0] sm:$0xff]  ;;  %v3882_v57 = vld [vmem:[#allocation3 + $0x3e8] sm:$0xff]  ;;  %v3852_v38 = vld [vmem:[#allocation3 + $0x2f8] sm:$0xff] }
 0x5f7   :  { %6992 = vmatprep.subr.bf16.mxu1 %v6991_v0  ;;  %v4039_v0 = vld [vmem:[#allocation3 + $0x8d0] sm:$0xff]  ;;  %v7059_v51 = vpack.c.bf16 %v3818_v42, %v3786_v36  ;;  %v3817_v7 = vld [vmem:[#allocation3 + $0x1e0] sm:$0xff]  ;;  %v4106_v36 = vld [vmem:[#allocation3 + $0xae8] sm:$0xff] }
 0x5f8   :  { %v4138_v42 = vld [vmem:[#allocation3 + $0xbe8] sm:$0xff] }
 0x5f9   :  { %6962 = vmatpush1.bf16.msra.mxu0 %v6961_v12  ;;  %v4136_v12 = vld [vmem:[#allocation3 + $0xbd8] sm:$0xff] }
 0x5fa   :  { %6994 = vmatpush1.bf16.msra.mxu1 %v6993_v14  ;;  %6996 = vmatprep.subr.bf16.mxu0 %v6995_v15  ;;  %v7013_v14 = vpack.c.bf16 %v4069_v62, %v4037_v61  ;;  %v7045_v15 = vpack.c.bf16 %v4071_v4, %v4039_v0  ;;  %v7047_v18 = vpack.c.bf16 %v4136_v12, %v4104_v5  ;;  %v3849_v62 = vld [vmem:[#allocation3 + $0x2e0] sm:$0xff]  ;;  %v3946_v5 = vld [vmem:[#allocation3 + $0x5e8] sm:$0xff]  ;;  %v3916_v12 = vld [vmem:[#allocation3 + $0x4f8] sm:$0xff] }
 0x5fb   :  { %7028 = vmatprep.subr.bf16.mxu1 %v7027_v3  ;;  %v4103_v3 = vld [vmem:[#allocation3 + $0xad0] sm:$0xff]  ;;  %v7063_v61 = vpack.c.bf16 %v3882_v57, %v3850_v32  ;;  %v3881_v0 = vld [vmem:[#allocation3 + $0x3e0] sm:$0xff] }
 0x5fc   :  { %5212 = vmatmul.mubr.f32.vlgmr.msra.gmra.mrb[140].mxu0 %v7948_v17  ;;  %v4107_v32 = vld [vmem:[#allocation3 + $0xaf0] sm:$0xff] }
 0x5fd   :  { %5283 = vmatmul.mubr.f32.vlgmr.msra.gmra.mrb[154].mxu1 %v7948_v17  ;;  %6998 = vmatpush1.bf16.msra.mxu0 %v6997_v11  ;;  %v4200_v11 = vld [vmem:[#allocation3 + $0xdd8] sm:$0xff] }
 0x5fe   :  { %7030 = vmatpush1.bf16.msra.mxu1 %v7029_v20  ;;  %7000 = vmatprep.subr.bf16.mxu0 %v6999_v50  ;;  %v7017_v20 = vpack.c.bf16 %v4133_v56, %v4101_v6  ;;  %v7049_v50 = vpack.c.bf16 %v4135_v13, %v4103_v3  ;;  %v7051_v25 = vpack.c.bf16 %v4200_v11, %v4168_v16  ;;  %v3913_v56 = vld [vmem:[#allocation3 + $0x4e0] sm:$0xff]  ;;  %v4010_v16 = vld [vmem:[#allocation3 + $0x7e8] sm:$0xff]  ;;  %v3980_v11 = vld [vmem:[#allocation3 + $0x6f8] sm:$0xff] }
 0x5ff   :  { %7032 = vmatprep.subr.bf16.mxu1 %v7031_v24  ;;  %5353 = vmatprep.mubr.f32.mxu0 %v7292_v1  ;;  %v4167_v24 = vld [vmem:[#allocation3 + $0xcd0] sm:$0xff]  ;;  %v7067_v6 = vpack.c.bf16 %v3946_v5, %v3914_v9  ;;  %v3945_v3 = vld [vmem:[#allocation3 + $0x5e0] sm:$0xff] }
 0x600   :  { %5424 = vmatprep.mubr.f32.mxu1 %v7292_v1  ;;  %v4169_v5 = vld [vmem:[#allocation3 + $0xce0] sm:$0xff] }
 0x601   :  { %7002 = vmatpush1.bf16.msra.mxu0 %v7001_v29  ;;  %v4264_v29 = vld [vmem:[#allocation3 + $0xfd8] sm:$0xff] }
 0x602   :  { %7034 = vmatpush1.bf16.msra.mxu1 %v7033_v30  ;;  %7004 = vmatprep.subr.bf16.mxu0 %v7003_v31  ;;  %v7021_v30 = vpack.c.bf16 %v4197_v23, %v4165_v45  ;;  %v7053_v31 = vpack.c.bf16 %v4199_v26, %v4167_v24  ;;  %v7055_v34 = vpack.c.bf16 %v4264_v29, %v4232_v28  ;;  %v3977_v23 = vld [vmem:[#allocation3 + $0x6e0] sm:$0xff]  ;;  %v4074_v28 = vld [vmem:[#allocation3 + $0x9e8] sm:$0xff]  ;;  %v4044_v29 = vld [vmem:[#allocation3 + $0x8f8] sm:$0xff] }
 0x603   :  { %7036 = vmatprep.subr.bf16.mxu1 %v7035_v33  ;;  %v4231_v33 = vld [vmem:[#allocation3 + $0xed0] sm:$0xff]  ;;  %v7071_v45 = vpack.c.bf16 %v4010_v16, %v3978_v8  ;;  %v4009_v24 = vld [vmem:[#allocation3 + $0x7e0] sm:$0xff]  ;;  %v4236_v8 = vld [vmem:[#allocation3 + $0xef8] sm:$0xff] }
 0x604   :  { %v4268_v16 = vld [vmem:[#allocation3 + $0xff8] sm:$0xff] }
 0x605   :  { %7006 = vmatpush1.bf16.msra.mxu0 %v7005_v47  ;;  %v3820_v47 = vld [vmem:[#allocation3 + $0x1f8] sm:$0xff] }
 0x606   :  { %7038 = vmatpush1.bf16.msra.mxu1 %v7037_v48  ;;  %7008 = vmatprep.subr.bf16.mxu0 %v7007_v49  ;;  %v7025_v48 = vpack.c.bf16 %v4261_v21, %v4229_v60  ;;  %v7057_v49 = vpack.c.bf16 %v4263_v35, %v4231_v33  ;;  %v7091_v55 = vpack.c.bf16 %v3820_v47, %v3788_v46  ;;  %v4041_v60 = vld [vmem:[#allocation3 + $0x8e0] sm:$0xff]  ;;  %v4043_v33 = vld [vmem:[#allocation3 + $0x8f0] sm:$0xff]  ;;  %v4108_v46 = vld [vmem:[#allocation3 + $0xaf8] sm:$0xff] }
 0x607   :  { %7040 = vmatprep.subr.bf16.mxu1 %v7039_v54  ;;  %v3787_v54 = vld [vmem:[#allocation3 + $0xf0] sm:$0xff]  ;;  %v4073_v21 = vld [vmem:[#allocation3 + $0x9e0] sm:$0xff]  ;;  %v4140_v47 = vld [vmem:[#allocation3 + $0xbf8] sm:$0xff] }
 0x608   :  { %v4075_v35 = vld [vmem:[#allocation3 + $0x9f0] sm:$0xff]  ;;  %v7111_v57 = vpack.c.bf16 %v4140_v47, %v4108_v46 }
 0x609   :  { %7010 = vmatpush1.bf16.msra.mxu0 %v7009_v44  ;;  %v3884_v44 = vld [vmem:[#allocation3 + $0x3f8] sm:$0xff] }
 0x60a   :  { %7042 = vmatpush1.bf16.msra.mxu1 %v7041_v58  ;;  %7012 = vmatprep.subr.bf16.mxu0 %v7011_v59  ;;  %v7061_v58 = vpack.c.bf16 %v3817_v7, %v3785_v52  ;;  %v7093_v59 = vpack.c.bf16 %v3819_v43, %v3787_v54  ;;  %v7095_v4 = vpack.c.bf16 %v3884_v44, %v3852_v38  ;;  %v7986_v7 = vsub.s32 3, %v7458_v39  ;;  %v4137_v43 = vld [vmem:[#allocation3 + $0xbe0] sm:$0xff]  ;;  %v4139_v38 = vld [vmem:[#allocation3 + $0xbf0] sm:$0xff]  ;;  %v4170_v44 = vld [vmem:[#allocation3 + $0xce8] sm:$0xff] }
 0x60b   :  { %7044 = vmatprep.subr.bf16.mxu1 %v7043_v2  ;;  %v3851_v2 = vld [vmem:[#allocation3 + $0x2f0] sm:$0xff]  ;;  %v7109_v52 = vpack.c.bf16 %v4075_v35, %v4043_v33  ;;  %v7079_v54 = vpack.c.bf16 %v4138_v42, %v4106_v36 }
 0x60d   :  { %7014 = vmatpush1.bf16.msra.mxu0 %v7013_v14  ;;  %v3948_v14 = vld [vmem:[#allocation3 + $0x5f8] sm:$0xff] }
 0x60e   :  { %7046 = vmatpush1.bf16.msra.mxu1 %v7045_v15  ;;  %7016 = vmatprep.subr.bf16.mxu0 %v7015_v19  ;;  %v7065_v15 = vpack.c.bf16 %v3881_v0, %v3849_v62  ;;  %v7097_v19 = vpack.c.bf16 %v3883_v37, %v3851_v2  ;;  %v7099_v13 = vpack.c.bf16 %v3948_v14, %v3916_v12  ;;  %v4172_v0 = vld [vmem:[#allocation3 + $0xcf8] sm:$0xff]  ;;  %v4201_v12 = vld [vmem:[#allocation3 + $0xde0] sm:$0xff]  ;;  %v4171_v14 = vld [vmem:[#allocation3 + $0xcf0] sm:$0xff] }
 0x60f   :  { %7048 = vmatprep.subr.bf16.mxu1 %v7047_v18  ;;  %v3915_v18 = vld [vmem:[#allocation3 + $0x4f0] sm:$0xff]  ;;  %v4204_v2 = vld [vmem:[#allocation3 + $0xdf8] sm:$0xff] }
 0x611   :  { %7018 = vmatpush1.bf16.msra.mxu0 %v7017_v20  ;;  %v4012_v20 = vld [vmem:[#allocation3 + $0x7f8] sm:$0xff] }
 0x612   :  { %7050 = vmatpush1.bf16.msra.mxu1 %v7049_v50  ;;  %7020 = vmatprep.subr.bf16.mxu0 %v7019_v22  ;;  %v7069_v50 = vpack.c.bf16 %v3945_v3, %v3913_v56  ;;  %v7101_v22 = vpack.c.bf16 %v3947_v10, %v3915_v18  ;;  %v7103_v26 = vpack.c.bf16 %v4012_v20, %v3980_v11  ;;  %v4203_v56 = vld [vmem:[#allocation3 + $0xdf0] sm:$0xff]  ;;  %v4234_v3 = vld [vmem:[#allocation3 + $0xee8] sm:$0xff] }
 0x613   :  { %7052 = vmatprep.subr.bf16.mxu1 %v7051_v25  ;;  %v3979_v25 = vld [vmem:[#allocation3 + $0x6f0] sm:$0xff]  ;;  %v4266_v18 = vld [vmem:[#allocation3 + $0xfe8] sm:$0xff]  ;;  %v7115_v10 = vpack.c.bf16 %v4204_v2, %v4172_v0 }
 0x615   :  { %7022 = vmatpush1.bf16.msra.mxu0 %v7021_v30  ;;  %v4076_v30 = vld [vmem:[#allocation3 + $0x9f8] sm:$0xff] }
 0x616   :  { %7054 = vmatpush1.bf16.msra.mxu1 %v7053_v31  ;;  %7024 = vmatprep.subr.bf16.mxu0 %v7023_v53  ;;  %v7073_v31 = vpack.c.bf16 %v4009_v24, %v3977_v23  ;;  %v7075_v53 = vpack.c.bf16 %v4074_v28, %v4042_v27  ;;  %v4233_v27 = vld [vmem:[#allocation3 + $0xee0] sm:$0xff] }
 0x617   :  { %7056 = vmatprep.subr.bf16.mxu1 %v7055_v34  ;;  %v7107_v34 = vpack.c.bf16 %v4076_v30, %v4044_v29  ;;  %v7119_v30 = vpack.c.bf16 %v4268_v16, %v4236_v8 }
 0x619   :  { %7026 = vmatpush1.bf16.msra.mxu0 %v7025_v48  ;;  %v7077_v48 = vpack.c.bf16 %v4073_v21, %v4041_v60 }
 0x61a   :  { %7058 = vmatpush1.bf16.msra.mxu1 %v7057_v49  ;;  %7060 = vmatprep.subr.bf16.mxu0 %v7059_v51  ;;  %v7980_v49 = vld [vmem:[#allocation10] sm:$0xff]  ;;  %v7983_v51 = vsub.s32 2, %v7458_v39 }
 0x61b   :  { %7092 = vmatprep.subr.bf16.mxu1 %v7091_v55  ;;  %v4105_v55 = vld [vmem:[#allocation3 + $0xae0] sm:$0xff]  ;;  %v4284_v37 = vrot.slane %v7980_v49, %v7464_v41 }
 0x61c   :  { %5354 = vmatmul.mubr.f32.vlgmr.msra.gmra.mrb[142].mxu0 %v7948_v17  ;;  %v7081_v9 = vpack.c.bf16 %v4137_v43, %v4105_v55 }
 0x61d   :  { %5425 = vmatmul.mubr.f32.vlgmr.msra.gmra.mrb[156].mxu1 %v7948_v17  ;;  %7062 = vmatpush1.bf16.msra.mxu0 %v7061_v58  ;;  %v4202_v58 = vld [vmem:[#allocation3 + $0xde8] sm:$0xff] }
 0x61e   :  { %7094 = vmatpush1.bf16.msra.mxu1 %v7093_v59  ;;  %7064 = vmatprep.subr.bf16.mxu0 %v7063_v61  ;;  %v4280_v59 = vrot.slane %v7980_v49, %v7461_v40  ;;  %v7298_v61 = vmov 1983009808  }
 0x61f   :  { %7096 = vmatprep.subr.bf16.mxu1 %v7095_v4  ;;  %5495 = vmatprep.mubr.f32.mxu0 %v7292_v1  ;;  %v5704_v62 = vunpack.c.l.s4 %v7298_v61  ;;  %v4288_v4 = vrot.slane %v7980_v49, %v7983_v51 }
 0x620   :  { %5566 = vmatprep.mubr.f32.mxu1 %v7292_v1  ;;  %v7105_v1 = vpack.c.bf16 %v4011_v63, %v3979_v25  ;;  %v7087_v63 = vpack.c.bf16 %v4266_v18, %v4234_v3 }
 0x621   :  { %7066 = vmatpush1.bf16.msra.mxu0 %v7065_v15  ;;  %v4292_v15 = vrot.slane %v7980_v49, %v7986_v7 }
 0x622   :  { %7098 = vmatpush1.bf16.msra.mxu1 %v7097_v19  ;;  %7068 = vmatprep.subr.bf16.mxu0 %v7067_v6  ;;  %v7113_v19 = vpack.c.bf16 %v4139_v38, %v4107_v32  ;;  %v7083_v6 = vpack.c.bf16 %v4202_v58, %v4170_v44  ;;  %v8010_v38 = vsub.s32 6, %v7458_v39  ;;  %v8013_v44 = vsub.s32 5, %v7458_v39 }
 0x623   :  { %7100 = vmatprep.subr.bf16.mxu1 %v7099_v13  ;;  %v8016_v58 = vsub.s32 7, %v7458_v39 }
 0x624   :  { %v4304_v61 = vrot.slane %v7980_v49, %v8010_v38 }
 0x625   :  { %7070 = vmatpush1.bf16.msra.mxu0 %v7069_v50 }
 0x626   :  { %7102 = vmatpush1.bf16.msra.mxu1 %v7101_v22  ;;  %7072 = vmatprep.subr.bf16.mxu0 %v7071_v45  ;;  %v5705_v22 = vunpack.c.0.s8 %v5704_v62  ;;  %v7085_v45 = vpack.c.bf16 %v4201_v12, %v4169_v5  ;;  %v4308_v62 = vrot.slane %v7980_v49, %v8016_v58 }
 0x627   :  { %7104 = vmatprep.subr.bf16.mxu1 %v7103_v26  ;;  %v7117_v26 = vpack.c.bf16 %v4203_v56, %v4171_v14 }
 0x629   :  { %7074 = vmatpush1.bf16.msra.mxu0 %v7073_v31  ;;  %v4265_v31 = vld [vmem:[#allocation3 + $0xfe0] sm:$0xff] }
 0x62a   :  { %7106 = vmatpush1.bf16.msra.mxu1 %v7105_v1  ;;  %7076 = vmatprep.subr.bf16.mxu0 %v7075_v53  ;;  %v4235_v1 = vld [vmem:[#allocation3 + $0xef0] sm:$0xff]  ;;  %v7089_v46 = vpack.c.bf16 %v4265_v31, %v4233_v27 }
 0x62b   :  { %7108 = vmatprep.subr.bf16.mxu1 %v7107_v34  ;;  %v4267_v53 = vld [vmem:[#allocation3 + $0xff0] sm:$0xff]  ;;  %v7997_v34 = vsub.s32 %v5705_v22, %v7458_v39 }
 0x62d   :  { %7078 = vmatpush1.bf16.msra.mxu0 %v7077_v48 }
 0x62e   :  { %7110 = vmatpush1.bf16.msra.mxu1 %v7109_v52  ;;  %7080 = vmatprep.subr.bf16.mxu0 %v7079_v54  ;;  %v7121_v52 = vpack.c.bf16 %v4267_v53, %v4235_v1 }
 0x62f   :  { %v4503_v13 = vpop.f32.mrb[130].mxu0  ;;  %7112 = vmatprep.subr.bf16.mxu1 %v7111_v57  ;;  %v8007_v57 = vsub.s32 4, %v7458_v39 }
 0x630   :  { %v4504_v11 = vadd.f32 %v4503_v13, %v4280_v59  ;;  %v4574_v20 = vpop.f32.mrb[144].mxu1  ;;  %v4505_v50 = vpop.f32.mrb[131].mxu0 }
 0x631   :  { %v4575_v23 = vadd.f32 %v4574_v20, %v4288_v4  ;;  %v4506_v24 = vadd.f32 %v4505_v50, %v4284_v37  ;;  %v4576_v25 = vpop.f32.mrb[145].mxu1  ;;  %7082 = vmatpush1.bf16.msra.mxu0 %v7081_v9  ;;  %v4296_v59 = vrot.slane %v7980_v49, %v8007_v57  ;;  %v4270_v20 = vld [vmem:[#allocation10 + $0x8] sm:$0xff] }
 0x632   :  { %vm5573_vm15 = vcmp.ge.f32.partialorder %v4504_v11, 0.0  ;;  %v5605_v28 = vmul.f32 0.01, %v4504_v11  ;;  %v4577_v29 = vadd.f32 %v4576_v25, %v4292_v15  ;;  %7114 = vmatpush1.bf16.msra.mxu1 %v7113_v19  ;;  %7084 = vmatprep.subr.bf16.mxu0 %v7083_v6  ;;  %v4312_v50 = vrot.slane %v4270_v20, %v7461_v40 }
 0x633   :  { %vm5575_vm0 = vcmp.ge.f32.partialorder %v4575_v23, 0.0  ;;  %v5607_v60 = vmul.f32 0.01, %v4575_v23  ;;  %vm5574_vm1 = vcmp.ge.f32.partialorder %v4506_v24, 0.0  ;;  %v5606_v21 = vmul.f32 0.01, %v4506_v24  ;;  %7116 = vmatprep.subr.bf16.mxu1 %v7115_v10 }
 0x634   :  { %v5637_v33 = vsel %vm5573_vm15, %v4504_v11, %v5605_v28  ;;  %vm5576_vm2 = vcmp.ge.f32.partialorder %v4577_v29, 0.0  ;;  %v5608_v35 = vmul.f32 0.01, %v4577_v29  ;;  %v4320_v22 = vrot.slane %v4270_v20, %v7983_v51 }
 0x635   :  { %v5639_v36 = vsel %vm5575_vm0, %v4575_v23, %v5607_v60  ;;  %v5638_v42 = vsel %vm5574_vm1, %v4506_v24, %v5606_v21  ;;  %7086 = vmatpush1.bf16.msra.mxu0 %v7085_v45  ;;  %v4316_v45 = vrot.slane %v4270_v20, %v7464_v41  ;;  %v4324_v23 = vrot.slane %v4270_v20, %v7986_v7 }
 0x636   :  { %v5701_v47 = vcombine.low %v5637_v33, %v5638_v42  ;;  %v5640_v48 = vsel %vm5576_vm2, %v4577_v29, %v5608_v35  ;;  %7118 = vmatpush1.bf16.msra.mxu1 %v7117_v26  ;;  %7088 = vmatprep.subr.bf16.mxu0 %v7087_v63 }
 0x637   :  { %v5702_v54 = vcombine.low %v5639_v36, %v5640_v48  ;;  %7120 = vmatprep.subr.bf16.mxu1 %v7119_v30 }
 0x638   :  { %v5709_v55 = vrot.slane %v5701_v47, %v7997_v34 }
 0x639   :  { %v5716_v43 = vrot.slane %v5702_v54, %v7997_v34  ;;  %7090 = vmatpush1.bf16.msra.mxu0 %v7089_v46  ;;  %v4328_v54 = vrot.slane %v4270_v20, %v8007_v57 }
 0x63a   :  { %7122 = vmatpush1.bf16.msra.mxu1 %v7121_v52 }
 0x63b   :  { %v5717_v32 = vcombine.low %v5709_v55, %v5716_v43  ;;  %v4336_v55 = vrot.slane %v4270_v20, %v8010_v38  ;;  %v4332_v43 = vrot.slane %v4270_v20, %v8013_v44 }
 0x63c   :  { %5496 = vmatmul.mubr.f32.vlgmr.msra.gmra.mrb[144].mxu0 %v7948_v17 }
 0x63d   :  { %5845 = vst [vmem:[%s8094_s9] sm:$0xff] %v5717_v32  ;;  %5567 = vmatmul.mubr.f32.vlgmr.msra.gmra.mrb[158].mxu1 %v7948_v17  ;;  %v4300_v17 = vrot.slane %v7980_v49, %v8013_v44  ;;  %v4340_v32 = vrot.slane %v4270_v20, %v8016_v58 }
 0x64f   :  { %v4645_v0 = vpop.f32.mrb[132].mxu0 }
 0x650   :  { %v4646_v2 = vadd.f32 %v4645_v0, %v4296_v59  ;;  %v4716_v4 = vpop.f32.mrb[146].mxu1  ;;  %v4647_v37 = vpop.f32.mrb[133].mxu0 }
 0x651   :  { %v4717_v9 = vadd.f32 %v4716_v4, %v4304_v61  ;;  %v4648_v5 = vadd.f32 %v4647_v37, %v4300_v17  ;;  %v4718_v39 = vpop.f32.mrb[147].mxu1 }
 0x652   :  { %vm5577_vm3 = vcmp.ge.f32.partialorder %v4646_v2, 0.0  ;;  %v5609_v12 = vmul.f32 0.01, %v4646_v2  ;;  %v4719_v14 = vadd.f32 %v4718_v39, %v4308_v62 }
 0x653   :  { %vm5579_vm4 = vcmp.ge.f32.partialorder %v4717_v9, 0.0  ;;  %v5611_v15 = vmul.f32 0.01, %v4717_v9  ;;  %vm5578_vm5 = vcmp.ge.f32.partialorder %v4648_v5, 0.0  ;;  %v5610_v19 = vmul.f32 0.01, %v4648_v5 }
 0x654   :  { %v5641_v6 = vsel %vm5577_vm3, %v4646_v2, %v5609_v12  ;;  %vm5580_vm6 = vcmp.ge.f32.partialorder %v4719_v14, 0.0  ;;  %v5612_v56 = vmul.f32 0.01, %v4719_v14 }
 0x655   :  { %v5643_v3 = vsel %vm5579_vm4, %v4717_v9, %v5611_v15  ;;  %v5642_v18 = vsel %vm5578_vm5, %v4648_v5, %v5610_v19 }
 0x656   :  { %v5718_v49 = vcombine.low %v5641_v6, %v5642_v18  ;;  %v5644_v13 = vsel %vm5580_vm6, %v4719_v14, %v5612_v56 }
 0x657   :  { %v5719_v10 = vcombine.low %v5643_v3, %v5644_v13 }
 0x658   :  { %v5726_v8 = vrot.slane %v5718_v49, %v7997_v34 }
 0x659   :  { %v5733_v16 = vrot.slane %v5719_v10, %v7997_v34  ;;  %v4271_v10 = vld [vmem:[#allocation10 + $0x10] sm:$0xff] }
 0x65a   :  { %v4356_v20 = vrot.slane %v4271_v10, %v7986_v7 }
 0x65b   :  { %v5734_v11 = vcombine.low %v5726_v8, %v5733_v16  ;;  %v4344_v8 = vrot.slane %v4271_v10, %v7461_v40  ;;  %v4352_v16 = vrot.slane %v4271_v10, %v7983_v51 }
 0x65d   :  { %5846 = vst [vmem:[%s8094_s9 + $0x8] sm:$0xff] %v5734_v11  ;;  %v4348_v11 = vrot.slane %v4271_v10, %v7464_v41 }
 0x66f   :  { %v4787_v24 = vpop.f32.mrb[134].mxu0 }
 0x670   :  { %v4788_v25 = vadd.f32 %v4787_v24, %v4312_v50  ;;  %v4858_v26 = vpop.f32.mrb[148].mxu1  ;;  %v4789_v63 = vpop.f32.mrb[135].mxu0 }
 0x671   :  { %v4859_v27 = vadd.f32 %v4858_v26, %v4320_v22  ;;  %v4790_v28 = vadd.f32 %v4789_v63, %v4316_v45  ;;  %v4860_v29 = vpop.f32.mrb[149].mxu1 }
 0x672   :  { %vm5581_vm7 = vcmp.ge.f32.partialorder %v4788_v25, 0.0  ;;  %v5613_v30 = vmul.f32 0.01, %v4788_v25  ;;  %v4861_v31 = vadd.f32 %v4860_v29, %v4324_v23 }
 0x673   :  { %vm5583_vm8 = vcmp.ge.f32.partialorder %v4859_v27, 0.0  ;;  %v5615_v1 = vmul.f32 0.01, %v4859_v27  ;;  %vm5582_vm9 = vcmp.ge.f32.partialorder %v4790_v28, 0.0  ;;  %v5614_v53 = vmul.f32 0.01, %v4790_v28 }
 0x674   :  { %v5645_v60 = vsel %vm5581_vm7, %v4788_v25, %v5613_v30  ;;  %vm5584_vm10 = vcmp.ge.f32.partialorder %v4861_v31, 0.0  ;;  %v5616_v21 = vmul.f32 0.01, %v4861_v31 }
 0x675   :  { %v5647_v33 = vsel %vm5583_vm8, %v4859_v27, %v5615_v1  ;;  %v5646_v35 = vsel %vm5582_vm9, %v4790_v28, %v5614_v53 }
 0x676   :  { %v5735_v36 = vcombine.low %v5645_v60, %v5646_v35  ;;  %v5648_v42 = vsel %vm5584_vm10, %v4861_v31, %v5616_v21 }
 0x677   :  { %v5736_v46 = vcombine.low %v5647_v33, %v5648_v42 }
 0x678   :  { %v5743_v47 = vrot.slane %v5735_v36, %v7997_v34 }
 0x679   :  { %v5750_v48 = vrot.slane %v5736_v46, %v7997_v34  ;;  %v4360_v46 = vrot.slane %v4271_v10, %v8007_v57 }
 0x67b   :  { %v5751_v52 = vcombine.low %v5743_v47, %v5750_v48  ;;  %v4368_v47 = vrot.slane %v4271_v10, %v8010_v38  ;;  %v4364_v48 = vrot.slane %v4271_v10, %v8013_v44 }
 0x67d   :  { %5847 = vst [vmem:[%s8094_s9 + $0x10] sm:$0xff] %v5751_v52  ;;  %v4372_v52 = vrot.slane %v4271_v10, %v8016_v58 }
 0x68f   :  { %v4929_v59 = vpop.f32.mrb[136].mxu0 }
 0x690   :  { %v4930_v61 = vadd.f32 %v4929_v59, %v4328_v54  ;;  %v5000_v17 = vpop.f32.mrb[150].mxu1  ;;  %v4931_v62 = vpop.f32.mrb[137].mxu0 }
 0x691   :  { %v5001_v0 = vadd.f32 %v5000_v17, %v4336_v55  ;;  %v4932_v2 = vadd.f32 %v4931_v62, %v4332_v43  ;;  %v5002_v4 = vpop.f32.mrb[151].mxu1 }
 0x692   :  { %vm5585_vm11 = vcmp.ge.f32.partialorder %v4930_v61, 0.0  ;;  %v5617_v37 = vmul.f32 0.01, %v4930_v61  ;;  %v5003_v9 = vadd.f32 %v5002_v4, %v4340_v32 }
 0x693   :  { %vm5587_vm12 = vcmp.ge.f32.partialorder %v5001_v0, 0.0  ;;  %v5619_v5 = vmul.f32 0.01, %v5001_v0  ;;  %vm5586_vm13 = vcmp.ge.f32.partialorder %v4932_v2, 0.0  ;;  %v5618_v39 = vmul.f32 0.01, %v4932_v2 }
 0x694   :  { %v5649_v12 = vsel %vm5585_vm11, %v4930_v61, %v5617_v37  ;;  %vm5588_vm14 = vcmp.ge.f32.partialorder %v5003_v9, 0.0  ;;  %v5620_v14 = vmul.f32 0.01, %v5003_v9 }
 0x695   :  { %v5651_v15 = vsel %vm5587_vm12, %v5001_v0, %v5619_v5  ;;  %v5650_v19 = vsel %vm5586_vm13, %v4932_v2, %v5618_v39 }
 0x696   :  { %v5752_v6 = vcombine.low %v5649_v12, %v5650_v19  ;;  %v5652_v56 = vsel %vm5588_vm14, %v5003_v9, %v5620_v14 }
 0x697   :  { %v5753_v3 = vcombine.low %v5651_v15, %v5652_v56 }
 0x698   :  { %v5760_v18 = vrot.slane %v5752_v6, %v7997_v34 }
 0x699   :  { %v5767_v49 = vrot.slane %v5753_v3, %v7997_v34  ;;  %v4272_v3 = vld [vmem:[#allocation10 + $0x18] sm:$0xff] }
 0x69a   :  { %v4388_v10 = vrot.slane %v4272_v3, %v7986_v7 }
 0x69b   :  { %v5768_v13 = vcombine.low %v5760_v18, %v5767_v49  ;;  %v4376_v18 = vrot.slane %v4272_v3, %v7461_v40  ;;  %v4384_v49 = vrot.slane %v4272_v3, %v7983_v51 }
 0x69d   :  { %5848 = vst [vmem:[%s8094_s9 + $0x18] sm:$0xff] %v5768_v13  ;;  %v4380_v13 = vrot.slane %v4272_v3, %v7464_v41 }
 0x6af   :  { %v5071_v50 = vpop.f32.mrb[138].mxu0 }
 0x6b0   :  { %v5072_v22 = vadd.f32 %v5071_v50, %v4344_v8  ;;  %v5142_v45 = vpop.f32.mrb[152].mxu1  ;;  %v5073_v23 = vpop.f32.mrb[139].mxu0 }
 0x6b1   :  { %v5143_v24 = vadd.f32 %v5142_v45, %v4352_v16  ;;  %v5074_v25 = vadd.f32 %v5073_v23, %v4348_v11  ;;  %v5144_v26 = vpop.f32.mrb[153].mxu1 }
 0x6b2   :  { %vm5589_vm15 = vcmp.ge.f32.partialorder %v5072_v22, 0.0  ;;  %v5621_v63 = vmul.f32 0.01, %v5072_v22  ;;  %v5145_v27 = vadd.f32 %v5144_v26, %v4356_v20 }
 0x6b3   :  { %vm5591_vm0 = vcmp.ge.f32.partialorder %v5143_v24, 0.0  ;;  %v5623_v28 = vmul.f32 0.01, %v5143_v24  ;;  %vm5590_vm1 = vcmp.ge.f32.partialorder %v5074_v25, 0.0  ;;  %v5622_v29 = vmul.f32 0.01, %v5074_v25 }
 0x6b4   :  { %v5653_v30 = vsel %vm5589_vm15, %v5072_v22, %v5621_v63  ;;  %vm5592_vm2 = vcmp.ge.f32.partialorder %v5145_v27, 0.0  ;;  %v5624_v31 = vmul.f32 0.01, %v5145_v27 }
 0x6b5   :  { %v5655_v1 = vsel %vm5591_vm0, %v5143_v24, %v5623_v28  ;;  %v5654_v53 = vsel %vm5590_vm1, %v5074_v25, %v5622_v29 }
 0x6b6   :  { %v5769_v60 = vcombine.low %v5653_v30, %v5654_v53  ;;  %v5656_v21 = vsel %vm5592_vm2, %v5145_v27, %v5624_v31  ;;  %v4400_v53 = vrot.slane %v4272_v3, %v8010_v38 }
 0x6b7   :  { %v5770_v33 = vcombine.low %v5655_v1, %v5656_v21  ;;  %v4392_v1 = vrot.slane %v4272_v3, %v8007_v57  ;;  %v4404_v21 = vrot.slane %v4272_v3, %v8016_v58 }
 0x6b8   :  { %v5777_v35 = vrot.slane %v5769_v60, %v7997_v34  ;;  %v4396_v60 = vrot.slane %v4272_v3, %v8013_v44 }
 0x6b9   :  { %v5784_v36 = vrot.slane %v5770_v33, %v7997_v34 }
 0x6bb   :  { %v5785_v42 = vcombine.low %v5777_v35, %v5784_v36 }
 0x6bd   :  { %5849 = vst [vmem:[%s8094_s9 + $0x20] sm:$0xff] %v5785_v42 }
 0x6cf   :  { %v5213_v54 = vpop.f32.mrb[140].mxu0 }
 0x6d0   :  { %v5214_v55 = vadd.f32 %v5213_v54, %v4360_v46  ;;  %v5284_v43 = vpop.f32.mrb[154].mxu1  ;;  %v5215_v32 = vpop.f32.mrb[141].mxu0 }
 0x6d1   :  { %v5285_v59 = vadd.f32 %v5284_v43, %v4368_v47  ;;  %v5216_v61 = vadd.f32 %v5215_v32, %v4364_v48  ;;  %v5286_v17 = vpop.f32.mrb[155].mxu1 }
 0x6d2   :  { %vm5593_vm3 = vcmp.ge.f32.partialorder %v5214_v55, 0.0  ;;  %v5625_v62 = vmul.f32 0.01, %v5214_v55  ;;  %v5287_v0 = vadd.f32 %v5286_v17, %v4372_v52 }
 0x6d3   :  { %vm5595_vm4 = vcmp.ge.f32.partialorder %v5285_v59, 0.0  ;;  %v5627_v2 = vmul.f32 0.01, %v5285_v59  ;;  %vm5594_vm5 = vcmp.ge.f32.partialorder %v5216_v61, 0.0  ;;  %v5626_v4 = vmul.f32 0.01, %v5216_v61 }
 0x6d4   :  { %v5657_v37 = vsel %vm5593_vm3, %v5214_v55, %v5625_v62  ;;  %vm5596_vm6 = vcmp.ge.f32.partialorder %v5287_v0, 0.0  ;;  %v5628_v9 = vmul.f32 0.01, %v5287_v0 }
 0x6d5   :  { %v5659_v5 = vsel %vm5595_vm4, %v5285_v59, %v5627_v2  ;;  %v5658_v39 = vsel %vm5594_vm5, %v5216_v61, %v5626_v4 }
 0x6d6   :  { %v5786_v12 = vcombine.low %v5657_v37, %v5658_v39  ;;  %v5660_v14 = vsel %vm5596_vm6, %v5287_v0, %v5628_v9 }
 0x6d7   :  { %v5787_v15 = vcombine.low %v5659_v5, %v5660_v14 }
 0x6d8   :  { %v5794_v19 = vrot.slane %v5786_v12, %v7997_v34 }
 0x6d9   :  { %v5801_v6 = vrot.slane %v5787_v15, %v7997_v34 }
 0x6db   :  { %v5802_v56 = vcombine.low %v5794_v19, %v5801_v6 }
 0x6dd   :  { %5850 = vst [vmem:[%s8094_s9 + $0x28] sm:$0xff] %v5802_v56 }
 0x6ef   :  { %v5355_v8 = vpop.f32.mrb[142].mxu0 }
 0x6f0   :  { %v5356_v16 = vadd.f32 %v5355_v8, %v4376_v18  ;;  %v5426_v11 = vpop.f32.mrb[156].mxu1  ;;  %v5357_v20 = vpop.f32.mrb[143].mxu0 }
 0x6f1   :  { %v5427_v50 = vadd.f32 %v5426_v11, %v4384_v49  ;;  %v5358_v22 = vadd.f32 %v5357_v20, %v4380_v13  ;;  %v5428_v45 = vpop.f32.mrb[157].mxu1 }
 0x6f2   :  { %vm5597_vm7 = vcmp.ge.f32.partialorder %v5356_v16, 0.0  ;;  %v5629_v23 = vmul.f32 0.01, %v5356_v16  ;;  %v5429_v24 = vadd.f32 %v5428_v45, %v4388_v10 }
 0x6f3   :  { %vm5599_vm8 = vcmp.ge.f32.partialorder %v5427_v50, 0.0  ;;  %v5631_v25 = vmul.f32 0.01, %v5427_v50  ;;  %vm5598_vm9 = vcmp.ge.f32.partialorder %v5358_v22, 0.0  ;;  %v5630_v40 = vmul.f32 0.01, %v5358_v22 }
 0x6f4   :  { %v5661_v26 = vsel %vm5597_vm7, %v5356_v16, %v5629_v23  ;;  %vm5600_vm10 = vcmp.ge.f32.partialorder %v5429_v24, 0.0  ;;  %v5632_v51 = vmul.f32 0.01, %v5429_v24 }
 0x6f5   :  { %v5663_v41 = vsel %vm5599_vm8, %v5427_v50, %v5631_v25  ;;  %v5662_v63 = vsel %vm5598_vm9, %v5358_v22, %v5630_v40 }
 0x6f6   :  { %v5803_v7 = vcombine.low %v5661_v26, %v5662_v63  ;;  %v5664_v27 = vsel %vm5600_vm10, %v5429_v24, %v5632_v51 }
 0x6f7   :  { %v5804_v28 = vcombine.low %v5663_v41, %v5664_v27 }
 0x6f8   :  { %v5811_v29 = vrot.slane %v5803_v7, %v7997_v34 }
 0x6f9   :  { %v5818_v30 = vrot.slane %v5804_v28, %v7997_v34 }
 0x6fb   :  { %v5819_v31 = vcombine.low %v5811_v29, %v5818_v30 }
 0x6fd   :  { %5851 = vst [vmem:[%s8094_s9 + $0x30] sm:$0xff] %v5819_v31 }
 0x70f   :  { %v5497_v33 = vpop.f32.mrb[144].mxu0 }
 0x710   :  { %v5498_v35 = vadd.f32 %v5497_v33, %v4392_v1  ;;  %v5568_v36 = vpop.f32.mrb[158].mxu1  ;;  %v5499_v42 = vpop.f32.mrb[145].mxu0 }
 0x711   :  { %v5569_v46 = vadd.f32 %v5568_v36, %v4400_v53  ;;  %v5500_v47 = vadd.f32 %v5499_v42, %v4396_v60  ;;  %v5570_v48 = vpop.f32.mrb[159].mxu1 }
 0x712   :  { %vm5601_vm11 = vcmp.ge.f32.partialorder %v5498_v35, 0.0  ;;  %v5633_v52 = vmul.f32 0.01, %v5498_v35  ;;  %v5571_v54 = vadd.f32 %v5570_v48, %v4404_v21 }
 0x713   :  { %vm5603_vm12 = vcmp.ge.f32.partialorder %v5569_v46, 0.0  ;;  %v5635_v55 = vmul.f32 0.01, %v5569_v46  ;;  %vm5602_vm13 = vcmp.ge.f32.partialorder %v5500_v47, 0.0  ;;  %v5634_v57 = vmul.f32 0.01, %v5500_v47 }
 0x714   :  { %v5665_v43 = vsel %vm5601_vm11, %v5498_v35, %v5633_v52  ;;  %vm5604_vm14 = vcmp.ge.f32.partialorder %v5571_v54, 0.0  ;;  %v5636_v38 = vmul.f32 0.01, %v5571_v54 }
 0x715   :  { %v5667_v44 = vsel %vm5603_vm12, %v5569_v46, %v5635_v55  ;;  %v5666_v32 = vsel %vm5602_vm13, %v5500_v47, %v5634_v57 }
 0x716   :  { %v5820_v58 = vcombine.low %v5665_v43, %v5666_v32  ;;  %v5668_v59 = vsel %vm5604_vm14, %v5571_v54, %v5636_v38 }
 0x717   :  { %v5821_v61 = vcombine.low %v5667_v44, %v5668_v59 }
 0x718   :  { %v5828_v17 = vrot.slane %v5820_v58, %v7997_v34 }
 0x719   :  { %v5835_v62 = vrot.slane %v5821_v61, %v7997_v34 }
 0x71b   :  { %v5836_v0 = vcombine.low %v5828_v17, %v5835_v62 }
 0x71d   :  { %5852 = vst [vmem:[%s8094_s9 + $0x38] sm:$0xff] %v5836_v0 }
 0x71e   :  { %5857 = vsyncpa [#allocation6], 1 }
 0x71f   :  { %5858 = vsyncpa [#allocation8], 1 }
 0x720   :  { %5859 = vsyncpa [#allocation11], 1 }
 0x721   :  { %5860 = vsyncmov [#allocation4] }
 0x724   :  { %s5861_s30 = vpop.sfrf %5860 }
 0x725   :  { %p5881_p6 = scmp.ne.s32.totalorder %s5861_s30, 0 }
 0x727   :  { %5865 = shalt.err (%p5881_p6)  }
 0x728   :  { %5867 = vsyncmov [#allocation4 + $0x1] }
 0x72b   :  { %s5868_s11 = vpop.sfrf %5867 }
 0x72c   :  { %p5882_p7 = scmp.ne.s32.totalorder %s5868_s11, 0 }
 0x72e   :  { %5872 = shalt.err (%p5882_p7)  }

</bundles_post_ra>
